<compile_context>
chip_gen: v6e
topology: v6e:2x2x1
jax: 0.10.0
libtpu: 0.0.40
codegen_flags: <defaults>
</compile_context>

<pallas_src>
import functools

import jax
import jax.numpy as jnp
from jax.experimental import pallas as pl
from jax.experimental.pallas import tpu as pltpu

_NEG = -3.0e38          # effectively -inf for finite f32 features
_VOX_CHUNK = 8          # voxel rows per max-mode inner step (one sublane group)
_PT_SUBCHUNK = 32       # points per max-mode inner sub-step


def _roiaware_pool3d_kernel(rois_ref, pts_ref, feat_ref, tri_ref, out_ref,
                            acc_ref, cnt_ref, *opt_scratch,
                            out_size, max_pts_per_voxel, mode, roi_batch, matmul_dtype):
    ox, oy, oz = out_size
    n_vox = ox * oy * oz
    r_batch = roi_batch
    rv = r_batch * n_vox                # live accumulator rows
    rvp = acc_ref.shape[0]              # rows padded to a multiple of _VOX_CHUNK
    t = pts_ref.shape[1]                # points per tile (lane axis)
    c_pad = feat_ref.shape[1]           # lane-dense channel count (multiple of 128)
    cap = max_pts_per_voxel - 1         # CUDA keeps at most this many points per voxel
    cap_f = float(cap)
    keep_ref = opt_scratch[0] if mode == 0 else None

    k = pl.program_id(1)                # point-tile index (reduction axis, last)

    # ---- init running accumulators on the first point tile ------------------------------
    @pl.when(k == 0)
    def _init():
        cnt_ref[...] = jnp.zeros_like(cnt_ref)
        if mode == 1:   # avg
            acc_ref[...] = jnp.zeros_like(acc_ref)
        else:           # max
            acc_ref[...] = jnp.full_like(acc_ref, _NEG)
            if rvp > rv:   # pad rows of the keep-mask scratch are never written afterwards
                keep_ref[rv:rvp, :] = jnp.zeros((rvp - rv, t), jnp.float32)

    # ---- per-ROI voxel membership for this point tile ------------------------------------
    px = pts_ref[0:1, :]                # (1, T), points on lanes
    py = pts_ref[1:2, :]
    pz = pts_ref[2:3, :]

    vox_ids = jax.lax.broadcasted_iota(jnp.int32, (n_vox, t), 0)

    i = pl.program_id(0)                # ROI-block index
    members = []
    for r in range(r_batch):
        n = i * r_batch + r
        cx = rois_ref[0, n]
        cy = rois_ref[1, n]
        cz = rois_ref[2, n]
        dx = rois_ref[3, n]
        dy = rois_ref[4, n]
        dz = rois_ref[5, n]
        rz = rois_ref[6, n]

        # Rotate into the box-local frame (rz = heading about z, cz = bottom center).
        neg_rz = jnp.zeros((1, 1), jnp.float32) - rz   # keep trig on the (vector) EUP
        cosa = jnp.cos(neg_rz)
        sina = jnp.sin(neg_rz)
        sx = px - cx
        sy = py - cy
        local_x = sx * cosa - sy * sina
        local_y = sx * sina + sy * cosa
        local_z = pz - cz                              # measured from the box bottom

        in_box = (jnp.abs(pz - (cz + dz * 0.5)) <= dz * 0.5) \
            & (local_x > -dx * 0.5) & (local_x < dx * 0.5) \
            & (local_y > -dy * 0.5) & (local_y < dy * 0.5)          # (1, T)

        # Per-ROI reciprocals (scalar divides) -> vector multiplies stay on the 4-wide VALU.
        inv_xr = ox / dx
        inv_yr = oy / dy
        inv_zr = oz / dz
        # Clamp in float *before* the int cast so far-away padded points never hit an
        # implementation-defined float->int conversion (equivalent for in-box points).
        xf = jnp.clip((local_x + dx * 0.5) * inv_xr, 0.0, float(ox - 1))
        yf = jnp.clip((local_y + dy * 0.5) * inv_yr, 0.0, float(oy - 1))
        zf = jnp.clip(local_z * inv_zr, 0.0, float(oz - 1))
        vox = xf.astype(jnp.int32) * (oy * oz) + yf.astype(jnp.int32) * oz \
            + zf.astype(jnp.int32)                                   # (1, T)
        vox = jnp.where(in_box, vox, -1)
        members.append(vox == vox_ids)                               # (V, T) bool

    member_b = members[0] if r_batch == 1 else jnp.concatenate(members, axis=0)  # (RV, T)

    # ---- per-voxel point-count capping ----------------------------------------------------
    # Within-tile exclusive rank via the resident strictly-earlier (T, T) mask on the MXU
    # (bf16 operands are exact for 0/1 data; f32 accumulation), combined with the running
    # per-voxel in-box count carried across point tiles.
    member_bf = member_b.astype(jnp.bfloat16)
    rank_f = jnp.dot(member_bf, tri_ref[...], preferred_element_type=jnp.float32)  # (RV, T)
    tile_cnt = rank_f[:, t - 1:t] + member_b[:, t - 1:t].astype(jnp.float32)        # (RV, 1)

    prior = cnt_ref[0:rv, :]                                         # (RV, 1) count so far
    keep_b = member_b & ((prior + rank_f) < cap_f)                   # (RV, T)
    cnt_ref[0:rv, :] = prior + tile_cnt

    # ---- pooling update --------------------------------------------------------------------
    if mode == 1:
        # avg: running sum via one (RV, T) x (T, C_pad) MXU matmul.
        keep_m = keep_b.astype(matmul_dtype)
        feat_m = feat_ref[...].astype(matmul_dtype)
        acc_ref[0:rv, :] = acc_ref[0:rv, :] + jnp.dot(
            keep_m, feat_m, preferred_element_type=jnp.float32)
    else:
        # max: masked running max.  The keep mask is staged in VMEM scratch and streamed in
        # (_VOX_CHUNK voxel rows) x (_PT_SUBCHUNK points) sub-blocks so temporaries stay
        # vreg-sized; the reduction runs over the point (sublane) axis -> mostly VPU vmax.
        keep_ref[0:rv, :] = keep_b.astype(jnp.float32)
        vc = _VOX_CHUNK
        ts = _PT_SUBCHUNK
        neg = jnp.float32(_NEG)

        def chunk_body(q, carry):
            row0 = pl.multiple_of(q * vc, vc)
            rows = pl.ds(row0, vc)
            mx = jnp.full((vc, c_pad), neg, jnp.float32)
            for t0 in range(0, t, ts):                               # static inner loop
                k_ch = keep_ref[rows, t0:t0 + ts]                    # (vc, ts)
                f_ch = feat_ref[t0:t0 + ts, :]                       # (ts, C_pad)
                m = jnp.where(k_ch[:, :, None] > 0.5,
                              f_ch[None, :, :], neg)                 # (vc, ts, C_pad)
                mx = jnp.maximum(mx, jnp.max(m, axis=1))             # sublane-axis reduce
            acc_ref[rows, :] = jnp.maximum(acc_ref[rows, :], mx)
            return carry

        jax.lax.fori_loop(0, rvp // vc, chunk_body, 0)

    # ---- finalize on the last point tile ----------------------------------------------------
    @pl.when(k == pl.num_programs(1) - 1)
    def _finalize():
        kept = jnp.minimum(cnt_ref[0:rv, :], cap_f)                  # (RV, 1) capped count
        nonempty = kept > 0.0
        acc = acc_ref[0:rv, :]
        if mode == 1:
            pooled = jnp.where(nonempty, acc / jnp.maximum(kept, 1.0), 0.0)
        else:
            pooled = jnp.where(nonempty, acc, 0.0)
        pooled = pooled.astype(out_ref.dtype)
        for r in range(r_batch):
            out_ref[r, :, :] = pooled[r * n_vox:(r + 1) * n_vox, :]


def roiaware_pool3d(rois, pts, pts_feature, out_size, max_pts_per_voxel=128, mode='max',
                    *, pt_tile=256, roi_batch=None, max_roi_batch=64,
                    matmul_dtype=jnp.float32):
    """Forward RoIAware pooling.

    matmul_dtype=jnp.bfloat16 doubles MXU throughput for avg mode on v6e/v7x at reduced
    feature precision (the 0/1 keep mask is exact in any dtype); default keeps full f32.
    roi_batch=None picks the largest ROI block fitting a ~12 MiB VMEM accumulator budget
    (capped at max_roi_batch) so the point cloud is streamed from HBM as few times as
    possible; on v7x keep at least 2 ROI blocks if you want both TensorCores busy.
    """
    if isinstance(out_size, int):
        out_size = (out_size, out_size, out_size)
    out_size = tuple(int(s) for s in out_size)
    ox, oy, oz = out_size
    n_vox = ox * oy * oz
    n_rois = rois.shape[0]
    n_pts, n_chan = pts_feature.shape
    mode_i = {'max': 0, 'avg': 1}[mode]

    assert pt_tile % 128 == 0, "pt_tile must be a multiple of 128 (lane width)"

    # Lane-dense channel padding (unmasked stores, no 3/4-idle vregs at C=32).
    c_pad = ((n_chan + 127) // 128) * 128
    # Point padding: padded points sit far away (never in any box), features are zero.
    p_pad = max(pt_tile, ((n_pts + pt_tile - 1) // pt_tile) * pt_tile)

    out_itemsize = jnp.dtype(pts_feature.dtype).itemsize
    if roi_batch is None:
        per_roi = n_vox * c_pad * 4                    # running sum / max accumulator
        per_roi += n_vox * 128 * 4                     # running count (lane-padded)
        per_roi += 2 * n_vox * c_pad * out_itemsize    # double-buffered output block
        if mode_i == 0:
            per_roi += n_vox * pt_tile * 4             # keep-mask staging (max mode only)
        budget = 12 * 1024 * 1024
        roi_batch = max(1, min(n_rois, int(max_roi_batch), budget // per_roi))
    roi_batch = max(1, min(int(roi_batch), n_rois))

    # ROI padding to a multiple of roi_batch: dummy unit boxes far below the cloud.
    n_roi_pad = ((n_rois + roi_batch - 1) // roi_batch) * roi_batch
    rv = roi_batch * n_vox
    rvp = ((rv + _VOX_CHUNK - 1) // _VOX_CHUNK) * _VOX_CHUNK

    pts_p = jnp.full((p_pad, 3), 1e8, dtype=jnp.float32).at[:n_pts].set(
        pts.astype(jnp.float32))
    pts_t = pts_p.T                                                   # (3, P_pad)
    feat_p = jnp.zeros((p_pad, c_pad), dtype=jnp.float32).at[:n_pts, :n_chan].set(
        pts_feature.astype(jnp.float32))

    rois_p = jnp.zeros((n_roi_pad, 7), dtype=jnp.float32)
    rois_p = rois_p.at[:, 2].set(-1e4).at[:, 3:6].set(1.0)            # dummy padding boxes
    rois_p = rois_p.at[:n_rois].set(rois.astype(jnp.float32))
    rois_t = rois_p.T                                                 # (7, N_pad): small SMEM

    # Strictly-earlier triangular mask, resident constant input (bf16 is exact for 0/1).
    idx = jnp.arange(pt_tile, dtype=jnp.int32)
    tri = (idx[:, None] < idx[None, :]).astype(jnp.bfloat16)          # (T, T)

    kernel = functools.partial(
        _roiaware_pool3d_kernel, out_size=out_size,
        max_pts_per_voxel=int(max_pts_per_voxel), mode=mode_i,
        roi_batch=roi_batch, matmul_dtype=matmul_dtype)

    grid = (n_roi_pad // roi_batch, p_pad // pt_tile)

    scratch = [pltpu.VMEM((rvp, c_pad), jnp.float32),   # running sum / max
               pltpu.VMEM((rvp, 1), jnp.float32)]       # running in-box count
    if mode_i == 0:
        scratch.append(pltpu.VMEM((rvp, pt_tile), jnp.float32))   # keep-mask staging

    out = pl.pallas_call(
        kernel,
        out_shape=jax.ShapeDtypeStruct((n_roi_pad, n_vox, c_pad), pts_feature.dtype),
        grid_spec=pltpu.PrefetchScalarGridSpec(
            num_scalar_prefetch=0,
            grid=grid,
            in_specs=[
                pl.BlockSpec(memory_space=pltpu.MemorySpace.SMEM),       # rois (7, N_pad)
                pl.BlockSpec((3, pt_tile), lambda i, k: (0, k)),         # pts  (3, T)
                pl.BlockSpec((pt_tile, c_pad), lambda i, k: (k, 0)),     # feat (T, C_pad)
                pl.BlockSpec((pt_tile, pt_tile), lambda i, k: (0, 0)),   # tri  (T, T) resident
            ],
            out_specs=pl.BlockSpec((roi_batch, n_vox, c_pad), lambda i, k: (i, 0, 0)),
            scratch_shapes=scratch,
        ),
        compiler_params=pltpu.CompilerParams(
            dimension_semantics=("parallel", "arbitrary"),             # ROI blocks across cores
            vmem_limit_bytes=32 * 1024 * 1024,
        ),
    )(rois_t, pts_t, feat_p, tri)

    out = out[:n_rois, :, :n_chan]
    return out.reshape(n_rois, ox, oy, oz, n_chan)


class RoIAwarePool3d:
    """JAX/Pallas equivalent of the PyTorch RoIAwarePool3d module (forward only)."""

    def __init__(self, out_size, max_pts_per_voxel=128, mode='max'):
        assert mode in ('max', 'avg')
        self.out_size = out_size
        self.max_pts_per_voxel = max_pts_per_voxel
        self.mode = mode

    def __call__(self, rois, pts, pts_feature):
        return roiaware_pool3d(rois, pts, pts_feature, self.out_size,
                               self.max_pts_per_voxel, self.mode)


def roiaware_pool3d_ref(rois, pts, pts_feature, out_size, max_pts_per_voxel, mode):
    """Pure-JAX reference mirroring the CUDA op semantics (for validation)."""
    if isinstance(out_size, int):
        out_size = (out_size,) * 3
    ox, oy, oz = out_size
    n_vox = ox * oy * oz
    n_pts, n_chan = pts_feature.shape
    pts = pts.astype(jnp.float32)
    feat = pts_feature.astype(jnp.float32)

    def per_roi(roi):
        cx, cy, cz, dx, dy, dz, rz = [roi[k] for k in range(7)]
        cosa, sina = jnp.cos(-rz), jnp.sin(-rz)
        sx = pts[:, 0] - cx
        sy = pts[:, 1] - cy
        lx = sx * cosa - sy * sina
        ly = sx * sina + sy * cosa
        lz = pts[:, 2] - cz
        in_box = (jnp.abs(pts[:, 2] - (cz + dz * 0.5)) <= dz * 0.5) \
            & (lx > -dx * 0.5) & (lx < dx * 0.5) & (ly > -dy * 0.5) & (ly < dy * 0.5)
        xi = jnp.clip((lx + dx * 0.5) * (ox / dx), 0.0, float(ox - 1)).astype(jnp.int32)
        yi = jnp.clip((ly + dy * 0.5) * (oy / dy), 0.0, float(oy - 1)).astype(jnp.int32)
        zi = jnp.clip(lz * (oz / dz), 0.0, float(oz - 1)).astype(jnp.int32)
        vox = jnp.where(in_box, xi * (oy * oz) + yi * oz + zi, -1)
        member = vox[None, :] == jnp.arange(n_vox)[:, None]              # (V, P)
        m_i = member.astype(jnp.int32)
        rank = jnp.cumsum(m_i, axis=1) - m_i
        member = member & (rank < max_pts_per_voxel - 1)
        count = member.sum(axis=1, keepdims=True).astype(jnp.float32)
        if mode == 'avg':
            s = jnp.where(member[:, :, None], feat[None, :, :], 0.0).sum(axis=1)
            pooled = jnp.where(count > 0, s / jnp.maximum(count, 1.0), 0.0)
        else:
            mx = jnp.max(jnp.where(member[:, :, None], feat[None, :, :], -jnp.inf), axis=1)
            pooled = jnp.where(count > 0, mx, 0.0)
        return pooled.reshape(ox, oy, oz, n_chan)

    return jax.vmap(per_roi)(rois.astype(jnp.float32))


if __name__ == "__main__":
    key = jax.random.PRNGKey(0)
    k1, k2, k3 = jax.random.split(key, 3)

    n_points, n_chan = 300, 32          # 2 point tiles of 256; C padded to 128 lanes
    pts = jnp.concatenate([
        jax.random.uniform(k1, (n_points, 2), minval=0.0, maxval=10.0),
        jax.random.uniform(k2, (n_points, 1), minval=0.0, maxval=4.0),
    ], axis=1).astype(jnp.float32)
    pts_feature = jax.random.normal(k3, (n_points, n_chan), dtype=jnp.float32)

    rois = jnp.array([
        [3.0, 3.0, 0.0, 4.0, 4.0, 3.0, 0.3],
        [6.0, 5.0, 0.5, 5.0, 3.0, 2.0, -0.7],
        [8.0, 2.0, 1.0, 3.0, 5.0, 2.5, 1.2],
    ], dtype=jnp.float32)

    out_size = (4, 4, 4)
    max_pts_per_voxel = 4               # small cap so the per-voxel limit path is exercised

    for mode in ("max", "avg"):
        pool = RoIAwarePool3d(out_size, max_pts_per_voxel, mode)
        pooled = jax.block_until_ready(pool(rois, pts, pts_feature))
        assert pooled.shape == (rois.shape[0],) + out_size + (n_chan,), pooled.shape
        ref = roiaware_pool3d_ref(rois, pts, pts_feature, out_size, max_pts_per_voxel, mode)
        if not jnp.allclose(pooled, ref, atol=1e-4, rtol=1e-4):
            raise AssertionError(f"mode={mode}: mismatch vs reference, "
                                 f"max abs err={float(jnp.max(jnp.abs(pooled - ref)))}")

    print("KERNEL_OK")
</pallas_src>

<mosaic_0001>
module attributes {stable_mosaic.version = 11 : i64} {
  func.func @_roiaware_pool3d_kernel(%arg0: i32, %arg1: i32, %arg2: memref<7x3xf32, #tpu.memory_space<smem>>, %arg3: memref<3x256xf32, #tpu.memory_space<vmem>>, %arg4: memref<256x128xf32, #tpu.memory_space<vmem>>, %arg5: memref<256x256xbf16, #tpu.memory_space<vmem>>, %arg6: memref<3x64x128xf32, #tpu.memory_space<vmem>>, %arg7: memref<192x128xf32, #tpu.memory_space<vmem>>, %arg8: memref<192x1xf32, #tpu.memory_space<vmem>>, %arg9: memref<192x256xf32, #tpu.memory_space<vmem>>) attributes {dimension_semantics = [#tpu.dimension_semantics<parallel>, #tpu.dimension_semantics<arbitrary>], iteration_bounds = array<i64: 1, 2>, scalar_prefetch = 0 : i64, scratch_operands = 3 : i64, tpu.core_type = #tpu.core_type<tc>, window_params = [{transform_indices = @transform_0, window_bounds = array<i64: 7, 3>}, {transform_indices = @transform_1, window_bounds = array<i64: 3, 256>}, {transform_indices = @transform_2, window_bounds = array<i64: 256, 128>}, {pipeline_mode = #tpu.pipeline_mode<synchronous>, transform_indices = @transform_3, window_bounds = array<i64: 256, 256>}, {transform_indices = @transform_4, window_bounds = array<i64: 3, 64, 128>}]} {
    %c0_i32 = arith.constant 0 : i32
    %0 = arith.cmpi eq, %arg1, %c0_i32 : i32
    %1 = arith.extui %0 : i1 to i32
    %c0_i32_0 = arith.constant 0 : i32
    %2 = arith.cmpi ne, %1, %c0_i32_0 : i32
    scf.if %2 {
      %cst_105 = arith.constant 0.000000e+00 : f32
      %342 = vector.broadcast %cst_105 : f32 to vector<192x1xf32>
      %c0_106 = arith.constant 0 : index
      %c0_107 = arith.constant 0 : index
      %343 = vector.load %arg8[%c0_106, %c0_107] : memref<192x1xf32, #tpu.memory_space<vmem>>, vector<192x1xf32>
      tpu.vector_store %arg8[%c0_106, %c0_107], %342 {strides = array<i32>} : memref<192x1xf32, #tpu.memory_space<vmem>>, vector<192x1xf32>,
      %cst_108 = arith.constant -3.000000e+38 : f32
      %344 = vector.broadcast %cst_108 : f32 to vector<192x128xf32>
      %c0_109 = arith.constant 0 : index
      %c0_110 = arith.constant 0 : index
      %345 = vector.load %arg7[%c0_109, %c0_110] : memref<192x128xf32, #tpu.memory_space<vmem>>, vector<192x128xf32>
      tpu.vector_store %arg7[%c0_109, %c0_110], %344 {strides = array<i32>} : memref<192x128xf32, #tpu.memory_space<vmem>>, vector<192x128xf32>,
    } else {
    }
    %c0 = arith.constant 0 : index
    %c0_1 = arith.constant 0 : index
    %3 = vector.load %arg3[%c0, %c0_1] : memref<3x256xf32, #tpu.memory_space<vmem>>, vector<1x256xf32>
    %c1 = arith.constant 1 : index
    %c0_2 = arith.constant 0 : index
    %4 = vector.load %arg3[%c1, %c0_2] : memref<3x256xf32, #tpu.memory_space<vmem>>, vector<1x256xf32>
    %c2 = arith.constant 2 : index
    %c0_3 = arith.constant 0 : index
    %5 = vector.load %arg3[%c2, %c0_3] : memref<3x256xf32, #tpu.memory_space<vmem>>, vector<1x256xf32>
    %6 = tpu.iota {dimensions = array<i32: 0>} : vector<64x256xi32>
    %c3_i32 = arith.constant 3 : i32
    %7 = arith.muli %arg0, %c3_i32 : i32
    %c0_i32_4 = arith.constant 0 : i32
    %8 = arith.addi %7, %c0_i32_4 : i32
    %c0_5 = arith.constant 0 : index
    %9 = arith.index_cast %8 : i32 to index
    %10 = memref.load %arg2[%c0_5, %9] : memref<7x3xf32, #tpu.memory_space<smem>>
    %c1_6 = arith.constant 1 : index
    %11 = arith.index_cast %8 : i32 to index
    %12 = memref.load %arg2[%c1_6, %11] : memref<7x3xf32, #tpu.memory_space<smem>>
    %c2_7 = arith.constant 2 : index
    %13 = arith.index_cast %8 : i32 to index
    %14 = memref.load %arg2[%c2_7, %13] : memref<7x3xf32, #tpu.memory_space<smem>>
    %c3 = arith.constant 3 : index
    %15 = arith.index_cast %8 : i32 to index
    %16 = memref.load %arg2[%c3, %15] : memref<7x3xf32, #tpu.memory_space<smem>>
    %c4 = arith.constant 4 : index
    %17 = arith.index_cast %8 : i32 to index
    %18 = memref.load %arg2[%c4, %17] : memref<7x3xf32, #tpu.memory_space<smem>>
    %c5 = arith.constant 5 : index
    %19 = arith.index_cast %8 : i32 to index
    %20 = memref.load %arg2[%c5, %19] : memref<7x3xf32, #tpu.memory_space<smem>>
    %c6 = arith.constant 6 : index
    %21 = arith.index_cast %8 : i32 to index
    %22 = memref.load %arg2[%c6, %21] : memref<7x3xf32, #tpu.memory_space<smem>>
    %cst = arith.constant 0.000000e+00 : f32
    %23 = vector.broadcast %cst : f32 to vector<1x1xf32>
    %24 = vector.broadcast %22 : f32 to vector<1x1xf32>
    %25 = arith.subf %23, %24 : vector<1x1xf32>
    %26 = math.cos %25 : vector<1x1xf32>
    %27 = math.sin %25 : vector<1x1xf32>
    %28 = vector.broadcast %10 : f32 to vector<1x256xf32>
    %29 = arith.subf %3, %28 : vector<1x256xf32>
    %30 = vector.broadcast %12 : f32 to vector<1x256xf32>
    %31 = arith.subf %4, %30 : vector<1x256xf32>
    %32 = vector.broadcast %26 : vector<1x1xf32> to vector<1x256xf32>
    %33 = arith.mulf %29, %32 : vector<1x256xf32>
    %34 = vector.broadcast %27 : vector<1x1xf32> to vector<1x256xf32>
    %35 = arith.mulf %31, %34 : vector<1x256xf32>
    %36 = arith.subf %33, %35 : vector<1x256xf32>
    %37 = vector.broadcast %27 : vector<1x1xf32> to vector<1x256xf32>
    %38 = arith.mulf %29, %37 : vector<1x256xf32>
    %39 = vector.broadcast %26 : vector<1x1xf32> to vector<1x256xf32>
    %40 = arith.mulf %31, %39 : vector<1x256xf32>
    %41 = arith.addf %38, %40 : vector<1x256xf32>
    %42 = vector.broadcast %14 : f32 to vector<1x256xf32>
    %43 = arith.subf %5, %42 : vector<1x256xf32>
    %cst_8 = arith.constant 5.000000e-01 : f32
    %44 = arith.mulf %20, %cst_8 : f32
    %45 = arith.addf %14, %44 : f32
    %46 = vector.broadcast %45 : f32 to vector<1x256xf32>
    %47 = arith.subf %5, %46 : vector<1x256xf32>
    %48 = math.absf %47 : vector<1x256xf32>
    %cst_9 = arith.constant 5.000000e-01 : f32
    %49 = arith.mulf %20, %cst_9 : f32
    %50 = vector.broadcast %49 : f32 to vector<1x256xf32>
    %51 = arith.cmpf ole, %48, %50 : vector<1x256xf32>
    %cst_10 = arith.constant 0.000000e+00 : f32
    %52 = arith.subf %cst_10, %16 : f32
    %cst_11 = arith.constant 5.000000e-01 : f32
    %53 = arith.mulf %52, %cst_11 : f32
    %54 = vector.broadcast %53 : f32 to vector<1x256xf32>
    %55 = arith.cmpf ogt, %36, %54 : vector<1x256xf32>
    %56 = arith.andi %51, %55 : vector<1x256xi1>
    %cst_12 = arith.constant 5.000000e-01 : f32
    %57 = arith.mulf %16, %cst_12 : f32
    %58 = vector.broadcast %57 : f32 to vector<1x256xf32>
    %59 = arith.cmpf olt, %36, %58 : vector<1x256xf32>
    %60 = arith.andi %56, %59 : vector<1x256xi1>
    %cst_13 = arith.constant 0.000000e+00 : f32
    %61 = arith.subf %cst_13, %18 : f32
    %cst_14 = arith.constant 5.000000e-01 : f32
    %62 = arith.mulf %61, %cst_14 : f32
    %63 = vector.broadcast %62 : f32 to vector<1x256xf32>
    %64 = arith.cmpf ogt, %41, %63 : vector<1x256xf32>
    %65 = arith.andi %60, %64 : vector<1x256xi1>
    %cst_15 = arith.constant 5.000000e-01 : f32
    %66 = arith.mulf %18, %cst_15 : f32
    %67 = vector.broadcast %66 : f32 to vector<1x256xf32>
    %68 = arith.cmpf olt, %41, %67 : vector<1x256xf32>
    %69 = arith.andi %65, %68 : vector<1x256xi1>
    %cst_16 = arith.constant 4.000000e+00 : f32
    %70 = arith.divf %cst_16, %16 : f32
    %cst_17 = arith.constant 4.000000e+00 : f32
    %71 = arith.divf %cst_17, %18 : f32
    %cst_18 = arith.constant 4.000000e+00 : f32
    %72 = arith.divf %cst_18, %20 : f32
    %cst_19 = arith.constant 5.000000e-01 : f32
    %73 = arith.mulf %16, %cst_19 : f32
    %74 = vector.broadcast %73 : f32 to vector<1x256xf32>
    %75 = arith.addf %36, %74 : vector<1x256xf32>
    %76 = vector.broadcast %70 : f32 to vector<1x256xf32>
    %77 = arith.mulf %75, %76 : vector<1x256xf32>
    %cst_20 = arith.constant 0.000000e+00 : f32
    %cst_21 = arith.constant 3.000000e+00 : f32
    %78 = vector.broadcast %cst_20 : f32 to vector<1x256xf32>
    %79 = arith.maximumf %78, %77 : vector<1x256xf32>
    %80 = vector.broadcast %cst_21 : f32 to vector<1x256xf32>
    %81 = arith.minimumf %80, %79 : vector<1x256xf32>
    %cst_22 = arith.constant 5.000000e-01 : f32
    %82 = arith.mulf %18, %cst_22 : f32
    %83 = vector.broadcast %82 : f32 to vector<1x256xf32>
    %84 = arith.addf %41, %83 : vector<1x256xf32>
    %85 = vector.broadcast %71 : f32 to vector<1x256xf32>
    %86 = arith.mulf %84, %85 : vector<1x256xf32>
    %cst_23 = arith.constant 0.000000e+00 : f32
    %cst_24 = arith.constant 3.000000e+00 : f32
    %87 = vector.broadcast %cst_23 : f32 to vector<1x256xf32>
    %88 = arith.maximumf %87, %86 : vector<1x256xf32>
    %89 = vector.broadcast %cst_24 : f32 to vector<1x256xf32>
    %90 = arith.minimumf %89, %88 : vector<1x256xf32>
    %91 = vector.broadcast %72 : f32 to vector<1x256xf32>
    %92 = arith.mulf %43, %91 : vector<1x256xf32>
    %cst_25 = arith.constant 0.000000e+00 : f32
    %cst_26 = arith.constant 3.000000e+00 : f32
    %93 = vector.broadcast %cst_25 : f32 to vector<1x256xf32>
    %94 = arith.maximumf %93, %92 : vector<1x256xf32>
    %95 = vector.broadcast %cst_26 : f32 to vector<1x256xf32>
    %96 = arith.minimumf %95, %94 : vector<1x256xf32>
    %97 = arith.fptosi %81 : vector<1x256xf32> to vector<1x256xi32>
    %c16_i32 = arith.constant 16 : i32
    %98 = vector.broadcast %c16_i32 : i32 to vector<1x256xi32>
    %99 = arith.muli %97, %98 : vector<1x256xi32>
    %100 = arith.fptosi %90 : vector<1x256xf32> to vector<1x256xi32>
    %c4_i32 = arith.constant 4 : i32
    %101 = vector.broadcast %c4_i32 : i32 to vector<1x256xi32>
    %102 = arith.muli %100, %101 : vector<1x256xi32>
    %103 = arith.addi %99, %102 : vector<1x256xi32>
    %104 = arith.fptosi %96 : vector<1x256xf32> to vector<1x256xi32>
    %105 = arith.addi %103, %104 : vector<1x256xi32>
    %c-1_i32 = arith.constant -1 : i32
    %106 = vector.broadcast %c-1_i32 : i32 to vector<1x256xi32>
    %107 = arith.select %69, %105, %106 : vector<1x256xi1>, vector<1x256xi32>
    %108 = vector.broadcast %107 : vector<1x256xi32> to vector<64x256xi32>
    %109 = arith.cmpi eq, %108, %6 : vector<64x256xi32>
    %c3_i32_27 = arith.constant 3 : i32
    %110 = arith.muli %arg0, %c3_i32_27 : i32
    %c1_i32 = arith.constant 1 : i32
    %111 = arith.addi %110, %c1_i32 : i32
    %c0_28 = arith.constant 0 : index
    %112 = arith.index_cast %111 : i32 to index
    %113 = memref.load %arg2[%c0_28, %112] : memref<7x3xf32, #tpu.memory_space<smem>>
    %c1_29 = arith.constant 1 : index
    %114 = arith.index_cast %111 : i32 to index
    %115 = memref.load %arg2[%c1_29, %114] : memref<7x3xf32, #tpu.memory_space<smem>>
    %c2_30 = arith.constant 2 : index
    %116 = arith.index_cast %111 : i32 to index
    %117 = memref.load %arg2[%c2_30, %116] : memref<7x3xf32, #tpu.memory_space<smem>>
    %c3_31 = arith.constant 3 : index
    %118 = arith.index_cast %111 : i32 to index
    %119 = memref.load %arg2[%c3_31, %118] : memref<7x3xf32, #tpu.memory_space<smem>>
    %c4_32 = arith.constant 4 : index
    %120 = arith.index_cast %111 : i32 to index
    %121 = memref.load %arg2[%c4_32, %120] : memref<7x3xf32, #tpu.memory_space<smem>>
    %c5_33 = arith.constant 5 : index
    %122 = arith.index_cast %111 : i32 to index
    %123 = memref.load %arg2[%c5_33, %122] : memref<7x3xf32, #tpu.memory_space<smem>>
    %c6_34 = arith.constant 6 : index
    %124 = arith.index_cast %111 : i32 to index
    %125 = memref.load %arg2[%c6_34, %124] : memref<7x3xf32, #tpu.memory_space<smem>>
    %cst_35 = arith.constant 0.000000e+00 : f32
    %126 = vector.broadcast %cst_35 : f32 to vector<1x1xf32>
    %127 = vector.broadcast %125 : f32 to vector<1x1xf32>
    %128 = arith.subf %126, %127 : vector<1x1xf32>
    %129 = math.cos %128 : vector<1x1xf32>
    %130 = math.sin %128 : vector<1x1xf32>
    %131 = vector.broadcast %113 : f32 to vector<1x256xf32>
    %132 = arith.subf %3, %131 : vector<1x256xf32>
    %133 = vector.broadcast %115 : f32 to vector<1x256xf32>
    %134 = arith.subf %4, %133 : vector<1x256xf32>
    %135 = vector.broadcast %129 : vector<1x1xf32> to vector<1x256xf32>
    %136 = arith.mulf %132, %135 : vector<1x256xf32>
    %137 = vector.broadcast %130 : vector<1x1xf32> to vector<1x256xf32>
    %138 = arith.mulf %134, %137 : vector<1x256xf32>
    %139 = arith.subf %136, %138 : vector<1x256xf32>
    %140 = vector.broadcast %130 : vector<1x1xf32> to vector<1x256xf32>
    %141 = arith.mulf %132, %140 : vector<1x256xf32>
    %142 = vector.broadcast %129 : vector<1x1xf32> to vector<1x256xf32>
    %143 = arith.mulf %134, %142 : vector<1x256xf32>
    %144 = arith.addf %141, %143 : vector<1x256xf32>
    %145 = vector.broadcast %117 : f32 to vector<1x256xf32>
    %146 = arith.subf %5, %145 : vector<1x256xf32>
    %cst_36 = arith.constant 5.000000e-01 : f32
    %147 = arith.mulf %123, %cst_36 : f32
    %148 = arith.addf %117, %147 : f32
    %149 = vector.broadcast %148 : f32 to vector<1x256xf32>
    %150 = arith.subf %5, %149 : vector<1x256xf32>
    %151 = math.absf %150 : vector<1x256xf32>
    %cst_37 = arith.constant 5.000000e-01 : f32
    %152 = arith.mulf %123, %cst_37 : f32
    %153 = vector.broadcast %152 : f32 to vector<1x256xf32>
    %154 = arith.cmpf ole, %151, %153 : vector<1x256xf32>
    %cst_38 = arith.constant 0.000000e+00 : f32
    %155 = arith.subf %cst_38, %119 : f32
    %cst_39 = arith.constant 5.000000e-01 : f32
    %156 = arith.mulf %155, %cst_39 : f32
    %157 = vector.broadcast %156 : f32 to vector<1x256xf32>
    %158 = arith.cmpf ogt, %139, %157 : vector<1x256xf32>
    %159 = arith.andi %154, %158 : vector<1x256xi1>
    %cst_40 = arith.constant 5.000000e-01 : f32
    %160 = arith.mulf %119, %cst_40 : f32
    %161 = vector.broadcast %160 : f32 to vector<1x256xf32>
    %162 = arith.cmpf olt, %139, %161 : vector<1x256xf32>
    %163 = arith.andi %159, %162 : vector<1x256xi1>
    %cst_41 = arith.constant 0.000000e+00 : f32
    %164 = arith.subf %cst_41, %121 : f32
    %cst_42 = arith.constant 5.000000e-01 : f32
    %165 = arith.mulf %164, %cst_42 : f32
    %166 = vector.broadcast %165 : f32 to vector<1x256xf32>
    %167 = arith.cmpf ogt, %144, %166 : vector<1x256xf32>
    %168 = arith.andi %163, %167 : vector<1x256xi1>
    %cst_43 = arith.constant 5.000000e-01 : f32
    %169 = arith.mulf %121, %cst_43 : f32
    %170 = vector.broadcast %169 : f32 to vector<1x256xf32>
    %171 = arith.cmpf olt, %144, %170 : vector<1x256xf32>
    %172 = arith.andi %168, %171 : vector<1x256xi1>
    %cst_44 = arith.constant 4.000000e+00 : f32
    %173 = arith.divf %cst_44, %119 : f32
    %cst_45 = arith.constant 4.000000e+00 : f32
    %174 = arith.divf %cst_45, %121 : f32
    %cst_46 = arith.constant 4.000000e+00 : f32
    %175 = arith.divf %cst_46, %123 : f32
    %cst_47 = arith.constant 5.000000e-01 : f32
    %176 = arith.mulf %119, %cst_47 : f32
    %177 = vector.broadcast %176 : f32 to vector<1x256xf32>
    %178 = arith.addf %139, %177 : vector<1x256xf32>
    %179 = vector.broadcast %173 : f32 to vector<1x256xf32>
    %180 = arith.mulf %178, %179 : vector<1x256xf32>
    %cst_48 = arith.constant 0.000000e+00 : f32
    %cst_49 = arith.constant 3.000000e+00 : f32
    %181 = vector.broadcast %cst_48 : f32 to vector<1x256xf32>
    %182 = arith.maximumf %181, %180 : vector<1x256xf32>
    %183 = vector.broadcast %cst_49 : f32 to vector<1x256xf32>
    %184 = arith.minimumf %183, %182 : vector<1x256xf32>
    %cst_50 = arith.constant 5.000000e-01 : f32
    %185 = arith.mulf %121, %cst_50 : f32
    %186 = vector.broadcast %185 : f32 to vector<1x256xf32>
    %187 = arith.addf %144, %186 : vector<1x256xf32>
    %188 = vector.broadcast %174 : f32 to vector<1x256xf32>
    %189 = arith.mulf %187, %188 : vector<1x256xf32>
    %cst_51 = arith.constant 0.000000e+00 : f32
    %cst_52 = arith.constant 3.000000e+00 : f32
    %190 = vector.broadcast %cst_51 : f32 to vector<1x256xf32>
    %191 = arith.maximumf %190, %189 : vector<1x256xf32>
    %192 = vector.broadcast %cst_52 : f32 to vector<1x256xf32>
    %193 = arith.minimumf %192, %191 : vector<1x256xf32>
    %194 = vector.broadcast %175 : f32 to vector<1x256xf32>
    %195 = arith.mulf %146, %194 : vector<1x256xf32>
    %cst_53 = arith.constant 0.000000e+00 : f32
    %cst_54 = arith.constant 3.000000e+00 : f32
    %196 = vector.broadcast %cst_53 : f32 to vector<1x256xf32>
    %197 = arith.maximumf %196, %195 : vector<1x256xf32>
    %198 = vector.broadcast %cst_54 : f32 to vector<1x256xf32>
    %199 = arith.minimumf %198, %197 : vector<1x256xf32>
    %200 = arith.fptosi %184 : vector<1x256xf32> to vector<1x256xi32>
    %c16_i32_55 = arith.constant 16 : i32
    %201 = vector.broadcast %c16_i32_55 : i32 to vector<1x256xi32>
    %202 = arith.muli %200, %201 : vector<1x256xi32>
    %203 = arith.fptosi %193 : vector<1x256xf32> to vector<1x256xi32>
    %c4_i32_56 = arith.constant 4 : i32
    %204 = vector.broadcast %c4_i32_56 : i32 to vector<1x256xi32>
    %205 = arith.muli %203, %204 : vector<1x256xi32>
    %206 = arith.addi %202, %205 : vector<1x256xi32>
    %207 = arith.fptosi %199 : vector<1x256xf32> to vector<1x256xi32>
    %208 = arith.addi %206, %207 : vector<1x256xi32>
    %c-1_i32_57 = arith.constant -1 : i32
    %209 = vector.broadcast %c-1_i32_57 : i32 to vector<1x256xi32>
    %210 = arith.select %172, %208, %209 : vector<1x256xi1>, vector<1x256xi32>
    %211 = vector.broadcast %210 : vector<1x256xi32> to vector<64x256xi32>
    %212 = arith.cmpi eq, %211, %6 : vector<64x256xi32>
    %c3_i32_58 = arith.constant 3 : i32
    %213 = arith.muli %arg0, %c3_i32_58 : i32
    %c2_i32 = arith.constant 2 : i32
    %214 = arith.addi %213, %c2_i32 : i32
    %c0_59 = arith.constant 0 : index
    %215 = arith.index_cast %214 : i32 to index
    %216 = memref.load %arg2[%c0_59, %215] : memref<7x3xf32, #tpu.memory_space<smem>>
    %c1_60 = arith.constant 1 : index
    %217 = arith.index_cast %214 : i32 to index
    %218 = memref.load %arg2[%c1_60, %217] : memref<7x3xf32, #tpu.memory_space<smem>>
    %c2_61 = arith.constant 2 : index
    %219 = arith.index_cast %214 : i32 to index
    %220 = memref.load %arg2[%c2_61, %219] : memref<7x3xf32, #tpu.memory_space<smem>>
    %c3_62 = arith.constant 3 : index
    %221 = arith.index_cast %214 : i32 to index
    %222 = memref.load %arg2[%c3_62, %221] : memref<7x3xf32, #tpu.memory_space<smem>>
    %c4_63 = arith.constant 4 : index
    %223 = arith.index_cast %214 : i32 to index
    %224 = memref.load %arg2[%c4_63, %223] : memref<7x3xf32, #tpu.memory_space<smem>>
    %c5_64 = arith.constant 5 : index
    %225 = arith.index_cast %214 : i32 to index
    %226 = memref.load %arg2[%c5_64, %225] : memref<7x3xf32, #tpu.memory_space<smem>>
    %c6_65 = arith.constant 6 : index
    %227 = arith.index_cast %214 : i32 to index
    %228 = memref.load %arg2[%c6_65, %227] : memref<7x3xf32, #tpu.memory_space<smem>>
    %cst_66 = arith.constant 0.000000e+00 : f32
    %229 = vector.broadcast %cst_66 : f32 to vector<1x1xf32>
    %230 = vector.broadcast %228 : f32 to vector<1x1xf32>
    %231 = arith.subf %229, %230 : vector<1x1xf32>
    %232 = math.cos %231 : vector<1x1xf32>
    %233 = math.sin %231 : vector<1x1xf32>
    %234 = vector.broadcast %216 : f32 to vector<1x256xf32>
    %235 = arith.subf %3, %234 : vector<1x256xf32>
    %236 = vector.broadcast %218 : f32 to vector<1x256xf32>
    %237 = arith.subf %4, %236 : vector<1x256xf32>
    %238 = vector.broadcast %232 : vector<1x1xf32> to vector<1x256xf32>
    %239 = arith.mulf %235, %238 : vector<1x256xf32>
    %240 = vector.broadcast %233 : vector<1x1xf32> to vector<1x256xf32>
    %241 = arith.mulf %237, %240 : vector<1x256xf32>
    %242 = arith.subf %239, %241 : vector<1x256xf32>
    %243 = vector.broadcast %233 : vector<1x1xf32> to vector<1x256xf32>
    %244 = arith.mulf %235, %243 : vector<1x256xf32>
    %245 = vector.broadcast %232 : vector<1x1xf32> to vector<1x256xf32>
    %246 = arith.mulf %237, %245 : vector<1x256xf32>
    %247 = arith.addf %244, %246 : vector<1x256xf32>
    %248 = vector.broadcast %220 : f32 to vector<1x256xf32>
    %249 = arith.subf %5, %248 : vector<1x256xf32>
    %cst_67 = arith.constant 5.000000e-01 : f32
    %250 = arith.mulf %226, %cst_67 : f32
    %251 = arith.addf %220, %250 : f32
    %252 = vector.broadcast %251 : f32 to vector<1x256xf32>
    %253 = arith.subf %5, %252 : vector<1x256xf32>
    %254 = math.absf %253 : vector<1x256xf32>
    %cst_68 = arith.constant 5.000000e-01 : f32
    %255 = arith.mulf %226, %cst_68 : f32
    %256 = vector.broadcast %255 : f32 to vector<1x256xf32>
    %257 = arith.cmpf ole, %254, %256 : vector<1x256xf32>
    %cst_69 = arith.constant 0.000000e+00 : f32
    %258 = arith.subf %cst_69, %222 : f32
    %cst_70 = arith.constant 5.000000e-01 : f32
    %259 = arith.mulf %258, %cst_70 : f32
    %260 = vector.broadcast %259 : f32 to vector<1x256xf32>
    %261 = arith.cmpf ogt, %242, %260 : vector<1x256xf32>
    %262 = arith.andi %257, %261 : vector<1x256xi1>
    %cst_71 = arith.constant 5.000000e-01 : f32
    %263 = arith.mulf %222, %cst_71 : f32
    %264 = vector.broadcast %263 : f32 to vector<1x256xf32>
    %265 = arith.cmpf olt, %242, %264 : vector<1x256xf32>
    %266 = arith.andi %262, %265 : vector<1x256xi1>
    %cst_72 = arith.constant 0.000000e+00 : f32
    %267 = arith.subf %cst_72, %224 : f32
    %cst_73 = arith.constant 5.000000e-01 : f32
    %268 = arith.mulf %267, %cst_73 : f32
    %269 = vector.broadcast %268 : f32 to vector<1x256xf32>
    %270 = arith.cmpf ogt, %247, %269 : vector<1x256xf32>
    %271 = arith.andi %266, %270 : vector<1x256xi1>
    %cst_74 = arith.constant 5.000000e-01 : f32
    %272 = arith.mulf %224, %cst_74 : f32
    %273 = vector.broadcast %272 : f32 to vector<1x256xf32>
    %274 = arith.cmpf olt, %247, %273 : vector<1x256xf32>
    %275 = arith.andi %271, %274 : vector<1x256xi1>
    %cst_75 = arith.constant 4.000000e+00 : f32
    %276 = arith.divf %cst_75, %222 : f32
    %cst_76 = arith.constant 4.000000e+00 : f32
    %277 = arith.divf %cst_76, %224 : f32
    %cst_77 = arith.constant 4.000000e+00 : f32
    %278 = arith.divf %cst_77, %226 : f32
    %cst_78 = arith.constant 5.000000e-01 : f32
    %279 = arith.mulf %222, %cst_78 : f32
    %280 = vector.broadcast %279 : f32 to vector<1x256xf32>
    %281 = arith.addf %242, %280 : vector<1x256xf32>
    %282 = vector.broadcast %276 : f32 to vector<1x256xf32>
    %283 = arith.mulf %281, %282 : vector<1x256xf32>
    %cst_79 = arith.constant 0.000000e+00 : f32
    %cst_80 = arith.constant 3.000000e+00 : f32
    %284 = vector.broadcast %cst_79 : f32 to vector<1x256xf32>
    %285 = arith.maximumf %284, %283 : vector<1x256xf32>
    %286 = vector.broadcast %cst_80 : f32 to vector<1x256xf32>
    %287 = arith.minimumf %286, %285 : vector<1x256xf32>
    %cst_81 = arith.constant 5.000000e-01 : f32
    %288 = arith.mulf %224, %cst_81 : f32
    %289 = vector.broadcast %288 : f32 to vector<1x256xf32>
    %290 = arith.addf %247, %289 : vector<1x256xf32>
    %291 = vector.broadcast %277 : f32 to vector<1x256xf32>
    %292 = arith.mulf %290, %291 : vector<1x256xf32>
    %cst_82 = arith.constant 0.000000e+00 : f32
    %cst_83 = arith.constant 3.000000e+00 : f32
    %293 = vector.broadcast %cst_82 : f32 to vector<1x256xf32>
    %294 = arith.maximumf %293, %292 : vector<1x256xf32>
    %295 = vector.broadcast %cst_83 : f32 to vector<1x256xf32>
    %296 = arith.minimumf %295, %294 : vector<1x256xf32>
    %297 = vector.broadcast %278 : f32 to vector<1x256xf32>
    %298 = arith.mulf %249, %297 : vector<1x256xf32>
    %cst_84 = arith.constant 0.000000e+00 : f32
    %cst_85 = arith.constant 3.000000e+00 : f32
    %299 = vector.broadcast %cst_84 : f32 to vector<1x256xf32>
    %300 = arith.maximumf %299, %298 : vector<1x256xf32>
    %301 = vector.broadcast %cst_85 : f32 to vector<1x256xf32>
    %302 = arith.minimumf %301, %300 : vector<1x256xf32>
    %303 = arith.fptosi %287 : vector<1x256xf32> to vector<1x256xi32>
    %c16_i32_86 = arith.constant 16 : i32
    %304 = vector.broadcast %c16_i32_86 : i32 to vector<1x256xi32>
    %305 = arith.muli %303, %304 : vector<1x256xi32>
    %306 = arith.fptosi %296 : vector<1x256xf32> to vector<1x256xi32>
    %c4_i32_87 = arith.constant 4 : i32
    %307 = vector.broadcast %c4_i32_87 : i32 to vector<1x256xi32>
    %308 = arith.muli %306, %307 : vector<1x256xi32>
    %309 = arith.addi %305, %308 : vector<1x256xi32>
    %310 = arith.fptosi %302 : vector<1x256xf32> to vector<1x256xi32>
    %311 = arith.addi %309, %310 : vector<1x256xi32>
    %c-1_i32_88 = arith.constant -1 : i32
    %312 = vector.broadcast %c-1_i32_88 : i32 to vector<1x256xi32>
    %313 = arith.select %275, %311, %312 : vector<1x256xi1>, vector<1x256xi32>
    %314 = vector.broadcast %313 : vector<1x256xi32> to vector<64x256xi32>
    %315 = arith.cmpi eq, %314, %6 : vector<64x256xi32>
    %316 = tpu.concatenate %109, %212, %315 in 0 : vector<64x256xi1>, vector<64x256xi1>, vector<64x256xi1> -> vector<192x256xi1>
    %317 = arith.extui %316 : vector<192x256xi1> to vector<192x256xi32>
    %318 = arith.sitofp %317 : vector<192x256xi32> to vector<192x256xf32>
    %319 = arith.truncf %318 : vector<192x256xf32> to vector<192x256xbf16>
    %c0_89 = arith.constant 0 : index
    %c0_90 = arith.constant 0 : index
    %320 = vector.load %arg5[%c0_89, %c0_90] : memref<256x256xbf16, #tpu.memory_space<vmem>>, vector<256x256xbf16>
    %cst_91 = arith.constant dense<0.000000e+00> : vector<192x256xf32>
    %321 = tpu.matmul %319, %320, %cst_91 {dimension_numbers = #tpu.dot_dimension_numbers<[1], [0], [0], [1], [0, 0, 1, 1], [], []>} : vector<192x256xbf16>, vector<256x256xbf16>, vector<192x256xf32> -> vector<192x256xf32>
    %322 = vector.extract_strided_slice %321 {offsets = [0, 255], sizes = [192, 1], strides = [1, 1]} : vector<192x256xf32> to vector<192x1xf32>
    %323 = vector.extract_strided_slice %316 {offsets = [0, 255], sizes = [192, 1], strides = [1, 1]} : vector<192x256xi1> to vector<192x1xi1>
    %324 = arith.extui %323 : vector<192x1xi1> to vector<192x1xi32>
    %325 = arith.sitofp %324 : vector<192x1xi32> to vector<192x1xf32>
    %326 = arith.addf %322, %325 : vector<192x1xf32>
    %c0_92 = arith.constant 0 : index
    %c0_93 = arith.constant 0 : index
    %327 = vector.load %arg8[%c0_92, %c0_93] : memref<192x1xf32, #tpu.memory_space<vmem>>, vector<192x1xf32>
    %328 = vector.broadcast %327 : vector<192x1xf32> to vector<192x256xf32>
    %329 = arith.addf %328, %321 : vector<192x256xf32>
    %cst_94 = arith.constant 3.000000e+00 : f32
    %330 = vector.broadcast %cst_94 : f32 to vector<192x256xf32>
    %331 = arith.cmpf olt, %329, %330 : vector<192x256xf32>
    %332 = arith.andi %316, %331 : vector<192x256xi1>
    %333 = arith.addf %327, %326 : vector<192x1xf32>
    %c0_95 = arith.constant 0 : index
    %c0_96 = arith.constant 0 : index
    %334 = vector.load %arg8[%c0_95, %c0_96] : memref<192x1xf32, #tpu.memory_space<vmem>>, vector<192x1xf32>
    tpu.vector_store %arg8[%c0_95, %c0_96], %333 {strides = array<i32>} : memref<192x1xf32, #tpu.memory_space<vmem>>, vector<192x1xf32>,
    %335 = arith.extui %332 : vector<192x256xi1> to vector<192x256xi32>
    %336 = arith.sitofp %335 : vector<192x256xi32> to vector<192x256xf32>
    %c0_97 = arith.constant 0 : index
    %c0_98 = arith.constant 0 : index
    %337 = vector.load %arg9[%c0_97, %c0_98] : memref<192x256xf32, #tpu.memory_space<vmem>>, vector<192x256xf32>
    tpu.vector_store %arg9[%c0_97, %c0_98], %336 {strides = array<i32>} : memref<192x256xf32, #tpu.memory_space<vmem>>, vector<192x256xf32>,
    %cst_99 = arith.constant -3.000000e+38 : f32
    %c0_i32_100 = arith.constant 0 : i32
    %c24_i32 = arith.constant 24 : i32
    %338 = arith.addi %c0_i32_100, %c24_i32 : i32
    %c1_i32_101 = arith.constant 1 : i32
    scf.for %arg10 = %c0_i32_100 to %338 step %c1_i32_101  : i32 {
      %c8_i32 = arith.constant 8 : i32
      %342 = arith.muli %arg10, %c8_i32 : i32
      %343 = tpu.assume_multiple %342, 8 : i32
      %344 = vector.broadcast %cst_99 : f32 to vector<8x128xf32>
      %345 = arith.index_cast %343 : i32 to index
      %c0_105 = arith.constant 0 : index
      %346 = vector.load %arg9[%345, %c0_105] : memref<192x256xf32, #tpu.memory_space<vmem>>, vector<8x32xf32>
      %c0_106 = arith.constant 0 : index
      %c0_107 = arith.constant 0 : index
      %347 = vector.load %arg4[%c0_106, %c0_107] : memref<256x128xf32, #tpu.memory_space<vmem>>, vector<32x128xf32>
      %348 = vector.shape_cast %346 : vector<8x32xf32> to vector<8x32x1xf32>
      %cst_108 = arith.constant 5.000000e-01 : f32
      %349 = vector.broadcast %cst_108 : f32 to vector<8x32x1xf32>
      %350 = arith.cmpf ogt, %348, %349 : vector<8x32x1xf32>
      %351 = vector.shape_cast %347 : vector<32x128xf32> to vector<1x32x128xf32>
      %352 = vector.shape_cast %350 : vector<8x32x1xi1> to vector<8x32x1xi1>
      %353 = vector.broadcast %352 : vector<8x32x1xi1> to vector<8x32x128xi1>
      %354 = vector.shape_cast %351 : vector<1x32x128xf32> to vector<1x32x128xf32>
      %355 = vector.broadcast %354 : vector<1x32x128xf32> to vector<8x32x128xf32>
      %356 = vector.broadcast %cst_99 : f32 to vector<8x32x128xf32>
      %357 = arith.select %353, %355, %356 : vector<8x32x128xi1>, vector<8x32x128xf32>
      %cst_109 = arith.constant dense<0xFF800000> : vector<8x128xf32>
      %358 = vector.multi_reduction <maximumf>, %357, %cst_109 [1] : vector<8x32x128xf32> to vector<8x128xf32>
      %359 = arith.maximumf %344, %358 : vector<8x128xf32>
      %360 = arith.index_cast %343 : i32 to index
      %c32 = arith.constant 32 : index
      %361 = vector.load %arg9[%360, %c32] : memref<192x256xf32, #tpu.memory_space<vmem>>, vector<8x32xf32>
      %c32_110 = arith.constant 32 : index
      %c0_111 = arith.constant 0 : index
      %362 = vector.load %arg4[%c32_110, %c0_111] : memref<256x128xf32, #tpu.memory_space<vmem>>, vector<32x128xf32>
      %363 = vector.shape_cast %361 : vector<8x32xf32> to vector<8x32x1xf32>
      %cst_112 = arith.constant 5.000000e-01 : f32
      %364 = vector.broadcast %cst_112 : f32 to vector<8x32x1xf32>
      %365 = arith.cmpf ogt, %363, %364 : vector<8x32x1xf32>
      %366 = vector.shape_cast %362 : vector<32x128xf32> to vector<1x32x128xf32>
      %367 = vector.shape_cast %365 : vector<8x32x1xi1> to vector<8x32x1xi1>
      %368 = vector.broadcast %367 : vector<8x32x1xi1> to vector<8x32x128xi1>
      %369 = vector.shape_cast %366 : vector<1x32x128xf32> to vector<1x32x128xf32>
      %370 = vector.broadcast %369 : vector<1x32x128xf32> to vector<8x32x128xf32>
      %371 = vector.broadcast %cst_99 : f32 to vector<8x32x128xf32>
      %372 = arith.select %368, %370, %371 : vector<8x32x128xi1>, vector<8x32x128xf32>
      %cst_113 = arith.constant dense<0xFF800000> : vector<8x128xf32>
      %373 = vector.multi_reduction <maximumf>, %372, %cst_113 [1] : vector<8x32x128xf32> to vector<8x128xf32>
      %374 = arith.maximumf %359, %373 : vector<8x128xf32>
      %375 = arith.index_cast %343 : i32 to index
      %c64 = arith.constant 64 : index
      %376 = vector.load %arg9[%375, %c64] : memref<192x256xf32, #tpu.memory_space<vmem>>, vector<8x32xf32>
      %c64_114 = arith.constant 64 : index
      %c0_115 = arith.constant 0 : index
      %377 = vector.load %arg4[%c64_114, %c0_115] : memref<256x128xf32, #tpu.memory_space<vmem>>, vector<32x128xf32>
      %378 = vector.shape_cast %376 : vector<8x32xf32> to vector<8x32x1xf32>
      %cst_116 = arith.constant 5.000000e-01 : f32
      %379 = vector.broadcast %cst_116 : f32 to vector<8x32x1xf32>
      %380 = arith.cmpf ogt, %378, %379 : vector<8x32x1xf32>
      %381 = vector.shape_cast %377 : vector<32x128xf32> to vector<1x32x128xf32>
      %382 = vector.shape_cast %380 : vector<8x32x1xi1> to vector<8x32x1xi1>
      %383 = vector.broadcast %382 : vector<8x32x1xi1> to vector<8x32x128xi1>
      %384 = vector.shape_cast %381 : vector<1x32x128xf32> to vector<1x32x128xf32>
      %385 = vector.broadcast %384 : vector<1x32x128xf32> to vector<8x32x128xf32>
      %386 = vector.broadcast %cst_99 : f32 to vector<8x32x128xf32>
      %387 = arith.select %383, %385, %386 : vector<8x32x128xi1>, vector<8x32x128xf32>
      %cst_117 = arith.constant dense<0xFF800000> : vector<8x128xf32>
      %388 = vector.multi_reduction <maximumf>, %387, %cst_117 [1] : vector<8x32x128xf32> to vector<8x128xf32>
      %389 = arith.maximumf %374, %388 : vector<8x128xf32>
      %390 = arith.index_cast %343 : i32 to index
      %c96 = arith.constant 96 : index
      %391 = vector.load %arg9[%390, %c96] : memref<192x256xf32, #tpu.memory_space<vmem>>, vector<8x32xf32>
      %c96_118 = arith.constant 96 : index
      %c0_119 = arith.constant 0 : index
      %392 = vector.load %arg4[%c96_118, %c0_119] : memref<256x128xf32, #tpu.memory_space<vmem>>, vector<32x128xf32>
      %393 = vector.shape_cast %391 : vector<8x32xf32> to vector<8x32x1xf32>
      %cst_120 = arith.constant 5.000000e-01 : f32
      %394 = vector.broadcast %cst_120 : f32 to vector<8x32x1xf32>
      %395 = arith.cmpf ogt, %393, %394 : vector<8x32x1xf32>
      %396 = vector.shape_cast %392 : vector<32x128xf32> to vector<1x32x128xf32>
      %397 = vector.shape_cast %395 : vector<8x32x1xi1> to vector<8x32x1xi1>
      %398 = vector.broadcast %397 : vector<8x32x1xi1> to vector<8x32x128xi1>
      %399 = vector.shape_cast %396 : vector<1x32x128xf32> to vector<1x32x128xf32>
      %400 = vector.broadcast %399 : vector<1x32x128xf32> to vector<8x32x128xf32>
      %401 = vector.broadcast %cst_99 : f32 to vector<8x32x128xf32>
      %402 = arith.select %398, %400, %401 : vector<8x32x128xi1>, vector<8x32x128xf32>
      %cst_121 = arith.constant dense<0xFF800000> : vector<8x128xf32>
      %403 = vector.multi_reduction <maximumf>, %402, %cst_121 [1] : vector<8x32x128xf32> to vector<8x128xf32>
      %404 = arith.maximumf %389, %403 : vector<8x128xf32>
      %405 = arith.index_cast %343 : i32 to index
      %c128 = arith.constant 128 : index
      %406 = vector.load %arg9[%405, %c128] : memref<192x256xf32, #tpu.memory_space<vmem>>, vector<8x32xf32>
      %c128_122 = arith.constant 128 : index
      %c0_123 = arith.constant 0 : index
      %407 = vector.load %arg4[%c128_122, %c0_123] : memref<256x128xf32, #tpu.memory_space<vmem>>, vector<32x128xf32>
      %408 = vector.shape_cast %406 : vector<8x32xf32> to vector<8x32x1xf32>
      %cst_124 = arith.constant 5.000000e-01 : f32
      %409 = vector.broadcast %cst_124 : f32 to vector<8x32x1xf32>
      %410 = arith.cmpf ogt, %408, %409 : vector<8x32x1xf32>
      %411 = vector.shape_cast %407 : vector<32x128xf32> to vector<1x32x128xf32>
      %412 = vector.shape_cast %410 : vector<8x32x1xi1> to vector<8x32x1xi1>
      %413 = vector.broadcast %412 : vector<8x32x1xi1> to vector<8x32x128xi1>
      %414 = vector.shape_cast %411 : vector<1x32x128xf32> to vector<1x32x128xf32>
      %415 = vector.broadcast %414 : vector<1x32x128xf32> to vector<8x32x128xf32>
      %416 = vector.broadcast %cst_99 : f32 to vector<8x32x128xf32>
      %417 = arith.select %413, %415, %416 : vector<8x32x128xi1>, vector<8x32x128xf32>
      %cst_125 = arith.constant dense<0xFF800000> : vector<8x128xf32>
      %418 = vector.multi_reduction <maximumf>, %417, %cst_125 [1] : vector<8x32x128xf32> to vector<8x128xf32>
      %419 = arith.maximumf %404, %418 : vector<8x128xf32>
      %420 = arith.index_cast %343 : i32 to index
      %c160 = arith.constant 160 : index
      %421 = vector.load %arg9[%420, %c160] : memref<192x256xf32, #tpu.memory_space<vmem>>, vector<8x32xf32>
      %c160_126 = arith.constant 160 : index
      %c0_127 = arith.constant 0 : index
      %422 = vector.load %arg4[%c160_126, %c0_127] : memref<256x128xf32, #tpu.memory_space<vmem>>, vector<32x128xf32>
      %423 = vector.shape_cast %421 : vector<8x32xf32> to vector<8x32x1xf32>
      %cst_128 = arith.constant 5.000000e-01 : f32
      %424 = vector.broadcast %cst_128 : f32 to vector<8x32x1xf32>
      %425 = arith.cmpf ogt, %423, %424 : vector<8x32x1xf32>
      %426 = vector.shape_cast %422 : vector<32x128xf32> to vector<1x32x128xf32>
      %427 = vector.shape_cast %425 : vector<8x32x1xi1> to vector<8x32x1xi1>
      %428 = vector.broadcast %427 : vector<8x32x1xi1> to vector<8x32x128xi1>
      %429 = vector.shape_cast %426 : vector<1x32x128xf32> to vector<1x32x128xf32>
      %430 = vector.broadcast %429 : vector<1x32x128xf32> to vector<8x32x128xf32>
      %431 = vector.broadcast %cst_99 : f32 to vector<8x32x128xf32>
      %432 = arith.select %428, %430, %431 : vector<8x32x128xi1>, vector<8x32x128xf32>
      %cst_129 = arith.constant dense<0xFF800000> : vector<8x128xf32>
      %433 = vector.multi_reduction <maximumf>, %432, %cst_129 [1] : vector<8x32x128xf32> to vector<8x128xf32>
      %434 = arith.maximumf %419, %433 : vector<8x128xf32>
      %435 = arith.index_cast %343 : i32 to index
      %c192 = arith.constant 192 : index
      %436 = vector.load %arg9[%435, %c192] : memref<192x256xf32, #tpu.memory_space<vmem>>, vector<8x32xf32>
      %c192_130 = arith.constant 192 : index
      %c0_131 = arith.constant 0 : index
      %437 = vector.load %arg4[%c192_130, %c0_131] : memref<256x128xf32, #tpu.memory_space<vmem>>, vector<32x128xf32>
      %438 = vector.shape_cast %436 : vector<8x32xf32> to vector<8x32x1xf32>
      %cst_132 = arith.constant 5.000000e-01 : f32
      %439 = vector.broadcast %cst_132 : f32 to vector<8x32x1xf32>
      %440 = arith.cmpf ogt, %438, %439 : vector<8x32x1xf32>
      %441 = vector.shape_cast %437 : vector<32x128xf32> to vector<1x32x128xf32>
      %442 = vector.shape_cast %440 : vector<8x32x1xi1> to vector<8x32x1xi1>
      %443 = vector.broadcast %442 : vector<8x32x1xi1> to vector<8x32x128xi1>
      %444 = vector.shape_cast %441 : vector<1x32x128xf32> to vector<1x32x128xf32>
      %445 = vector.broadcast %444 : vector<1x32x128xf32> to vector<8x32x128xf32>
      %446 = vector.broadcast %cst_99 : f32 to vector<8x32x128xf32>
      %447 = arith.select %443, %445, %446 : vector<8x32x128xi1>, vector<8x32x128xf32>
      %cst_133 = arith.constant dense<0xFF800000> : vector<8x128xf32>
      %448 = vector.multi_reduction <maximumf>, %447, %cst_133 [1] : vector<8x32x128xf32> to vector<8x128xf32>
      %449 = arith.maximumf %434, %448 : vector<8x128xf32>
      %450 = arith.index_cast %343 : i32 to index
      %c224 = arith.constant 224 : index
      %451 = vector.load %arg9[%450, %c224] : memref<192x256xf32, #tpu.memory_space<vmem>>, vector<8x32xf32>
      %c224_134 = arith.constant 224 : index
      %c0_135 = arith.constant 0 : index
      %452 = vector.load %arg4[%c224_134, %c0_135] : memref<256x128xf32, #tpu.memory_space<vmem>>, vector<32x128xf32>
      %453 = vector.shape_cast %451 : vector<8x32xf32> to vector<8x32x1xf32>
      %cst_136 = arith.constant 5.000000e-01 : f32
      %454 = vector.broadcast %cst_136 : f32 to vector<8x32x1xf32>
      %455 = arith.cmpf ogt, %453, %454 : vector<8x32x1xf32>
      %456 = vector.shape_cast %452 : vector<32x128xf32> to vector<1x32x128xf32>
      %457 = vector.shape_cast %455 : vector<8x32x1xi1> to vector<8x32x1xi1>
      %458 = vector.broadcast %457 : vector<8x32x1xi1> to vector<8x32x128xi1>
      %459 = vector.shape_cast %456 : vector<1x32x128xf32> to vector<1x32x128xf32>
      %460 = vector.broadcast %459 : vector<1x32x128xf32> to vector<8x32x128xf32>
      %461 = vector.broadcast %cst_99 : f32 to vector<8x32x128xf32>
      %462 = arith.select %458, %460, %461 : vector<8x32x128xi1>, vector<8x32x128xf32>
      %cst_137 = arith.constant dense<0xFF800000> : vector<8x128xf32>
      %463 = vector.multi_reduction <maximumf>, %462, %cst_137 [1] : vector<8x32x128xf32> to vector<8x128xf32>
      %464 = arith.maximumf %449, %463 : vector<8x128xf32>
      %465 = arith.index_cast %343 : i32 to index
      %c0_138 = arith.constant 0 : index
      %466 = vector.load %arg7[%465, %c0_138] : memref<192x128xf32, #tpu.memory_space<vmem>>, vector<8x128xf32>
      %467 = arith.maximumf %466, %464 : vector<8x128xf32>
      %468 = arith.index_cast %343 : i32 to index
      %c0_139 = arith.constant 0 : index
      %469 = vector.load %arg7[%468, %c0_139] : memref<192x128xf32, #tpu.memory_space<vmem>>, vector<8x128xf32>
      tpu.vector_store %arg7[%468, %c0_139], %467 {strides = array<i32>} : memref<192x128xf32, #tpu.memory_space<vmem>>, vector<8x128xf32>,
    }
    %c24_i32_102 = arith.constant 24 : i32
    %c1_i32_103 = arith.constant 1 : i32
    %339 = arith.cmpi eq, %arg1, %c1_i32_103 : i32
    %340 = arith.extui %339 : i1 to i32
    %c0_i32_104 = arith.constant 0 : i32
    %341 = arith.cmpi ne, %340, %c0_i32_104 : i32
    scf.if %341 {
      %c0_105 = arith.constant 0 : index
      %c0_106 = arith.constant 0 : index
      %342 = vector.load %arg8[%c0_105, %c0_106] : memref<192x1xf32, #tpu.memory_space<vmem>>, vector<192x1xf32>
      %cst_107 = arith.constant 3.000000e+00 : f32
      %343 = vector.broadcast %cst_107 : f32 to vector<192x1xf32>
      %344 = arith.minimumf %342, %343 : vector<192x1xf32>
      %cst_108 = arith.constant 0.000000e+00 : f32
      %345 = vector.broadcast %cst_108 : f32 to vector<192x1xf32>
      %346 = arith.cmpf ogt, %344, %345 : vector<192x1xf32>
      %c0_109 = arith.constant 0 : index
      %c0_110 = arith.constant 0 : index
      %347 = vector.load %arg7[%c0_109, %c0_110] : memref<192x128xf32, #tpu.memory_space<vmem>>, vector<192x128xf32>
      %cst_111 = arith.constant 0.000000e+00 : f32
      %348 = vector.shape_cast %346 : vector<192x1xi1> to vector<192x1xi1>
      %349 = vector.broadcast %348 : vector<192x1xi1> to vector<192x128xi1>
      %350 = vector.broadcast %cst_111 : f32 to vector<192x128xf32>
      %351 = arith.select %349, %347, %350 : vector<192x128xi1>, vector<192x128xf32>
      %352 = vector.extract_strided_slice %351 {offsets = [0, 0], sizes = [64, 128], strides = [1, 1]} : vector<192x128xf32> to vector<64x128xf32>
      %c0_112 = arith.constant 0 : index
      %c0_113 = arith.constant 0 : index
      %c0_114 = arith.constant 0 : index
      %353 = vector.load %arg6[%c0_112, %c0_113, %c0_114] : memref<3x64x128xf32, #tpu.memory_space<vmem>>, vector<1x64x128xf32>
      %354 = vector.shape_cast %353 : vector<1x64x128xf32> to vector<64x128xf32>
      %355 = vector.shape_cast %352 : vector<64x128xf32> to vector<1x64x128xf32>
      tpu.vector_store %arg6[%c0_112, %c0_113, %c0_114], %355 {strides = array<i32>} : memref<3x64x128xf32, #tpu.memory_space<vmem>>, vector<1x64x128xf32>,
      %356 = vector.extract_strided_slice %351 {offsets = [64, 0], sizes = [64, 128], strides = [1, 1]} : vector<192x128xf32> to vector<64x128xf32>
      %c1_115 = arith.constant 1 : index
      %c0_116 = arith.constant 0 : index
      %c0_117 = arith.constant 0 : index
      %357 = vector.load %arg6[%c1_115, %c0_116, %c0_117] : memref<3x64x128xf32, #tpu.memory_space<vmem>>, vector<1x64x128xf32>
      %358 = vector.shape_cast %357 : vector<1x64x128xf32> to vector<64x128xf32>
      %359 = vector.shape_cast %356 : vector<64x128xf32> to vector<1x64x128xf32>
      tpu.vector_store %arg6[%c1_115, %c0_116, %c0_117], %359 {strides = array<i32>} : memref<3x64x128xf32, #tpu.memory_space<vmem>>, vector<1x64x128xf32>,
      %360 = vector.extract_strided_slice %351 {offsets = [128, 0], sizes = [64, 128], strides = [1, 1]} : vector<192x128xf32> to vector<64x128xf32>
      %c2_118 = arith.constant 2 : index
      %c0_119 = arith.constant 0 : index
      %c0_120 = arith.constant 0 : index
      %361 = vector.load %arg6[%c2_118, %c0_119, %c0_120] : memref<3x64x128xf32, #tpu.memory_space<vmem>>, vector<1x64x128xf32>
      %362 = vector.shape_cast %361 : vector<1x64x128xf32> to vector<64x128xf32>
      %363 = vector.shape_cast %360 : vector<64x128xf32> to vector<1x64x128xf32>
      tpu.vector_store %arg6[%c2_118, %c0_119, %c0_120], %363 {strides = array<i32>} : memref<3x64x128xf32, #tpu.memory_space<vmem>>, vector<1x64x128xf32>,
    } else {
    }
    return
  }
  func.func @transform_0(%arg0: i32, %arg1: i32) -> (i32, i32) {
    %c0_i32 = arith.constant 0 : i32
    %c0_i32_0 = arith.constant 0 : i32
    %c0_i32_1 = arith.constant 0 : i32
    return %c0_i32, %c0_i32_0 : i32, i32
  }
  func.func @transform_1(%arg0: i32, %arg1: i32) -> (i32, i32) {
    %c0_i32 = arith.constant 0 : i32
    %c0_i32_0 = arith.constant 0 : i32
    return %c0_i32, %arg1 : i32, i32
  }
  func.func @transform_2(%arg0: i32, %arg1: i32) -> (i32, i32) {
    %c0_i32 = arith.constant 0 : i32
    %c0_i32_0 = arith.constant 0 : i32
    return %arg1, %c0_i32 : i32, i32
  }
  func.func @transform_3(%arg0: i32, %arg1: i32) -> (i32, i32) {
    %c0_i32 = arith.constant 0 : i32
    %c0_i32_0 = arith.constant 0 : i32
    %c0_i32_1 = arith.constant 0 : i32
    return %c0_i32, %c0_i32_0 : i32, i32
  }
  func.func @transform_4(%arg0: i32, %arg1: i32) -> (i32, i32, i32) {
    %c0_i32 = arith.constant 0 : i32
    %c0_i32_0 = arith.constant 0 : i32
    %c0_i32_1 = arith.constant 0 : i32
    return %arg0, %c0_i32, %c0_i32_0 : i32, i32, i32
  }
}

</mosaic_0001>

<bundles_post_ra>
// kernel: tpu_custom_call.1
= control target key start
LH: loop header
LB: loop body
LE: loop exit
PB: predicated region body
PF: predicated region fallthrough
CT: control target
= control target key end

     0   :  { %s9815_s0 = inlined_call_operand.vmem [shape: f32[7,3], index: 0, kind: input, shape index: {}]   ;;  %s9816_s1 = inlined_call_operand.hbm [shape: f32[3,512], index: 1, kind: input, shape index: {}]   ;;  %s9817_s2 = inlined_call_operand.hbm [shape: f32[512,128], index: 2, kind: input, shape index: {}]   ;;  %s9818_s3 = inlined_call_operand.hbm [shape: bf16[256,256], index: 3, kind: input, shape index: {}]   ;;  %s9819_s4 = inlined_call_operand.hbm [shape: f32[3,64,128], index: 4, kind: output, shape index: {}]  }
   0x1   :  { %9942 = sst [smem:[#allocation103_spill]] %s9815_s0 }
   0x2   :  { %9 = vsyncpa [#allocation8], 0 }
   0x3   :  { %10 = vsyncpa [#allocation6], 0 }
   0x4   :  { %12 = vsyncpa [#allocation6 + $0x1], 0 }
   0x5   :  { %13 = vsyncpa [#allocation11], 0 }
   0x6   :  { %15 = vsyncpa [#allocation11 + $0x1], 0 }
   0x7   :  { %16 = vsyncpa [#allocation7], 0  ;;  %s6440_s15 = smov 0   ;;  %s6442_s16 = smov 0  }
   0x8   :  { %s6444_s17 = smov 0   ;;  %s6446_s18 = smov 0  }
   0x9   :  { %s6448_s19 = smov 0   ;;  %s6450_s20 = smov 0  }
   0xa LB: > { %s6469_s21 = sadd.s32 4294967295, %s6387_s20   ;;  %p75_p0 = scmp.ne.s32.totalorder %s6371_s16, %s6367_s15  ;;  %s6387_s20 = sphi %s6450_s20, %s22_s20   ;;  %s6383_s19 = sphi %s6448_s19, %s10315_s19   ;;  %s6379_s18 = sphi %s6446_s18, %s10314_s18   ;;  %s6375_s17 = sphi %s6444_s17, %s10313_s17   ;;  %s6371_s16 = sphi %s6442_s16, %s10312_s16   ;;  %s6367_s15 = sphi %s6440_s15, %s10311_s15  }
   0xb   : > { %p76_p1 = scmp.eq.s32.totalorder %s6469_s21, 0  ;;  %p5632_p2 = scmp.ge.s32.totalorder %s6387_s20, 1 }
   0xc   : > { %p159_p3 = scmp.lt.s32.totalorder %s6387_s20, 3  ;;  %s6393_s24 = smov [#allocation12]  }
   0xd   : > { %p6477_p4 = por %p76_p1, %p75_p0  ;;  %s182_s25 = sshll.u32 %s6393_s24, 4  ;;  %s183_s25 = int_to_ptr.vmem [resolvable:$true] %s182_s25 }
   0xe   : > { %p6481_p5 = pnand %p5632_p2, %p159_p3  ;;  %s9946_s0 = sld [smem:[#allocation103_spill]] }
   0xf   : > { %s6207_s30 = scalar_lea.vmem %s183_s25, 4096  ;;  %p6215_p12 = scmp.lt.s32.totalorder %s183_s25, %s183_s25 }
  0x10   : > { %p5977_p6 = pneg %p6481_p5  ;;  %p6208_p9 = scmp.ne.s32.totalorder %s183_s25, %s6207_s30 }
  0x11   : > { %p6216_p13 = scmp.lt.s32.totalorder %s6207_s30, %s6207_s30 }
  0x12   : > { %p6489_p7 = pnand %p5977_p6, %p76_p1 }
  0x13   : > { %p6217_p0 = por %p6216_p13, %p6215_p12 }
  0x14   : > { %s172_s29 = sshll.u32 %s9946_s0, 4  ;;  %p6198_p8 = pneg %p6489_p7  ;;  %s173_s29 = int_to_ptr.vmem [resolvable:$true] %s172_s29 }
  0x16   : > { %p6210_p10 = pnand %p6208_p9, %p6198_p8 }
  0x18   : > { %p6211_p11 = pneg %p6210_p10 }
  0x1a   : > { %p6218_p2 = pnand %p6217_p0, %p6211_p11 }
  0x1c   : > { %6221 = shalt.err (!%p6218_p2)
}
  0x1d   : > { %s9820_s5 = smov 128   ;;  %s9821_s6 = smov 8  }
  0x1e   : > { %5983 = dma.hbm_to_vmem [thread:$0]  (!%p6489_p7), %s9818_s3, 4096, %s183_s25, [#allocation11], %s9820_s5, %s9820_s5, %s9821_s6  }
  0x1f   : > { %s6222_s9 = scalar_lea.vmem %s173_s29, 128  ;;  %p6230_p10 = scmp.lt.s32.totalorder %s173_s29, %s173_s29 }
  0x20   : > { %p6223_p3 = scmp.ne.s32.totalorder %s173_s29, %s6222_s9  ;;  %p6231_p11 = scmp.lt.s32.totalorder %s6222_s9, %s6222_s9 }
  0x22   : > { %p6225_p6 = pnand %p6223_p3, %p6198_p8  ;;  %p6232_p12 = por %p6231_p11, %p6230_p10 }
  0x24   : > { %p6226_p9 = pneg %p6225_p6 }
  0x26   : > { %p6233_p13 = pnand %p6232_p12, %p6226_p9 }
  0x28   : > { %6236 = shalt.err (!%p6233_p13)
}
  0x29   : > { %s6396_s10 = smov [#allocation5]   ;;  %s31_s11 = sadd.s32 1, %s6383_s19 }
  0x2a   : > { %5980 = dma.vmem_to_smem (!%p6489_p7), %s173_s29, 128, %s6396_s10, [#allocation8]  }
  0x2b   : > { %s62_s12 = sadd.s32 1, %s6375_s17  ;;  %p32_p8 = scmp.ge.s32.totalorder %s31_s11, 2 }
  0x2c   : > { %p69_p0 = scmp.ne.s32.totalorder %s6375_s17, %s6371_s16  ;;  %p70_p2 = scmp.eq.s32.totalorder %s6387_s20, 0 }
  0x2d   : > { %p5993_p3 = scmp.lt.s32.totalorder %s6387_s20, 2  ;;  %s10317_s11 = smov (%p32_p8, %s31_s11), 0 }
  0x2e   : > { %p71_p6 = por %p70_p2, %p69_p0  ;;  %s6523_s13 = sand.u32 1, %s6375_s17  }
  0x2f   : > { %s59_s14 = ssub.s32 %s6383_s19, %s10317_s11  ;;  %s5636_s15 = sshll.u32 %s6523_s13, 3 }
  0x30   : > { %p60_p9 = scmp.eq.s32.totalorder %s59_s14, 0  ;;  %s5878_s24 = sshll.u32 %s6383_s19, 7 }
  0x31   : > { %s206_s28 = scalar_lea.hbm %s9816_s1, %s5878_s24  ;;  %s200_s29 = scalar_lea.vmem [#allocation9], %s5636_s15 }
  0x32   : > { %s6530_s25 = scalar_select %p60_p9, %s6375_s17, %s62_s12  }
  0x33   : > { %s208_s30 = sshll.u32 %s200_s29, 4  ;;  %p6537_p7 = pnand %p5993_p3, %p71_p6  ;;  %s209_s30 = int_to_ptr.vmem [resolvable:$true] %s208_s30 }
  0x34   : > { %s5639_s8 = sshll.u32 %s6523_s13, 8  ;;  %s5879_s9 = sshll.u32 %s6383_s19, 12 }
  0x35   : > { %s197_s10 = scalar_lea.sflag [#allocation6], %s6523_s13  ;;  %p6239_p10 = pneg %p6537_p7 }
  0x36   : > { %s6250_s12 = scalar_lea.vmem %s209_s30, 128  ;;  %s6397_s14 = smov [#allocation9]  }
  0x37   : > { %p6251_p11 = scmp.ne.s32.totalorder %s209_s30, %s6250_s12  ;;  %s6255_s15 = sshll.u32 %s6397_s14, 4  ;;  %s6256_s15 = int_to_ptr.vmem [resolvable:$false] %s6255_s15 }
  0x38   : > { %s6257_s24 = scalar_lea.vmem %s6256_s15, 256  ;;  %p6258_p8 = scmp.lt.s32.totalorder %s209_s30, %s6256_s15 }
  0x39   : > { %p6253_p12 = pnand %p6251_p11, %p6239_p10  ;;  %p6259_p0 = scmp.lt.s32.totalorder %s6257_s24, %s6250_s12 }
  0x3b   : > { %p6254_p13 = pneg %p6253_p12  ;;  %p6260_p2 = por %p6259_p0, %p6258_p8 }
  0x3d   : > { %p6261_p3 = pnand %p6260_p2, %p6254_p13 }
  0x3f   : > { %6264 = shalt.err (!%p6261_p3)
}
  0x40   : > { %5987 = dma.hbm_to_vmem [thread:$0]  (!%p6537_p7), %s206_s28, 128, %s209_s30, %s197_s10  }
  0x41   : > { %s219_s13 = scalar_lea.vmem [#allocation10], %s5639_s8  ;;  %s215_s27 = sand.u32 1, %s6387_s20  }
  0x42   : > { %s226_s26 = sshll.u32 %s219_s13, 4  ;;  %s225_s14 = scalar_lea.hbm %s9817_s2, %s5879_s9  ;;  %s227_s26 = int_to_ptr.vmem [resolvable:$true] %s226_s26 }
  0x43   : > { %s216_s6 = scalar_lea.sflag [#allocation11], %s215_s27  ;;  %s6278_s0 = scalar_lea.vmem %s227_s26, 4096 }
  0x44   : > { %p6279_p6 = scmp.ne.s32.totalorder %s227_s26, %s6278_s0  ;;  %s6398_s12 = smov [#allocation10]  }
  0x45   : > { %s6283_s15 = sshll.u32 %s6398_s12, 4  ;;  %s6284_s15 = int_to_ptr.vmem [resolvable:$false] %s6283_s15 }
  0x46   : > { %p6281_p9 = pnand %p6279_p6, %p6239_p10  ;;  %s6285_s24 = scalar_lea.vmem %s6284_s15, 8192 }
  0x47   : > { %p6286_p12 = scmp.lt.s32.totalorder %s227_s26, %s6284_s15  ;;  %p6287_p13 = scmp.lt.s32.totalorder %s6285_s24, %s6278_s0 }
  0x48   : > { %p6282_p11 = pneg %p6281_p9 }
  0x49   : > { %p6288_p8 = por %p6287_p13, %p6286_p12 }
  0x4b   : > { %p6289_p0 = pnand %p6288_p8, %p6282_p11 }
  0x4d   : > { %6292 = shalt.err (!%p6289_p0)
}
  0x4e   : > { %s9948_s5 = smov 8   ;;  %s9949_s28 = smov 128  }
  0x4f   : > { %5990 = dma.hbm_to_vmem [thread:$0]  (!%p6537_p7), %s225_s14, 4096, %s227_s26, %s216_s6, %s9949_s28, %s9949_s28, %s9948_s5  }
  0x50   : > { %238 = sbr.rel (%p6481_p5) target bundleno = 1503 (0x5df), region = 36 }
  0x55   : > { %6346 = dma.done.wait (%p76_p1), [#allocation8], 128  }
  0x56   : > { %6348 = vsyncadd (%p76_p1), [#allocation8], 4294967168  ;;  %s244_s0 = sand.u32 1, %s6371_s16  }
  0x57   : > { %s5644_s30 = sshll.u32 %s244_s0, 3  ;;  %s245_s8 = scalar_lea.sflag [#allocation6], %s244_s0 }
  0x58   : > { %s6570_s9 = scalar_lea.vmem [#allocation9], %s5644_s30 }
  0x59   : > { %6350 = dma.done.wait (%p6477_p4), %s245_s8, 128  }
  0x5a   : > { %6352 = vsyncadd (%p6477_p4), %s245_s8, 4294967168  ;;  %s253_s23 = sand.u32 1, %s6469_s21   ;;  %s5645_s6 = sshll.u32 %s244_s0, 8 }
  0x5b   : > { %s254_s7 = scalar_lea.sflag [#allocation11], %s253_s23  ;;  %s6577_s10 = scalar_lea.vmem [#allocation10], %s5645_s6 }
  0x5c   : > { %6354 = dma.done.wait (%p6477_p4), %s254_s7, 4096  }
  0x5d   : > { %6356 = vsyncadd (%p6477_p4), %s254_s7, 4294963200 }
  0x5e   : > { %6358 = dma.done.wait (%p76_p1), [#allocation11], 4096  }
  0x5f   : > { %6360 = vsyncadd (%p76_p1), [#allocation11], 4294963200 }
  0x60   : > { %266 = sfence }
  0x61   : > { %p5647_p5 = scmp.ne.s32.totalorder %s6379_s18, 0 }
  0x63   : > { %293 = sbr.rel (%p5647_p5) target bundleno = 129 (0x81), region = 56 }
  0x68   : > { %vm294_vm0 = vcmask 7168   ;;  %v6399_v0 = vmov 0.0   ;;  %v6400_v1 = vmov -3e+38  }
  0x69   : > { %295 = vst.msk [vmem:[#allocation3] sm:$0xff] %vm294_vm0, %v6399_v0  ;;  %296 = vst.msk [vmem:[#allocation3 + $0x8] sm:$0xff] %vm294_vm0, %v6399_v0 }
  0x6a   : > { %297 = vst.msk [vmem:[#allocation3 + $0x10] sm:$0xff] %vm294_vm0, %v6399_v0  ;;  %298 = vst.msk [vmem:[#allocation3 + $0x18] sm:$0xff] %vm294_vm0, %v6399_v0 }
  0x6b   : > { %299 = vst.msk [vmem:[#allocation3 + $0x20] sm:$0xff] %vm294_vm0, %v6399_v0  ;;  %300 = vst.msk [vmem:[#allocation3 + $0x28] sm:$0xff] %vm294_vm0, %v6399_v0 }
  0x6c   : > { %301 = vst.msk [vmem:[#allocation3 + $0x30] sm:$0xff] %vm294_vm0, %v6399_v0  ;;  %302 = vst.msk [vmem:[#allocation3 + $0x38] sm:$0xff] %vm294_vm0, %v6399_v0 }
  0x6d   : > { %303 = vst.msk [vmem:[#allocation3 + $0x40] sm:$0xff] %vm294_vm0, %v6399_v0  ;;  %304 = vst.msk [vmem:[#allocation3 + $0x48] sm:$0xff] %vm294_vm0, %v6399_v0 }
  0x6e   : > { %305 = vst.msk [vmem:[#allocation3 + $0x50] sm:$0xff] %vm294_vm0, %v6399_v0  ;;  %306 = vst.msk [vmem:[#allocation3 + $0x58] sm:$0xff] %vm294_vm0, %v6399_v0 }
  0x6f   : > { %307 = vst.msk [vmem:[#allocation3 + $0x60] sm:$0xff] %vm294_vm0, %v6399_v0  ;;  %308 = vst.msk [vmem:[#allocation3 + $0x68] sm:$0xff] %vm294_vm0, %v6399_v0 }
  0x70   : > { %309 = vst.msk [vmem:[#allocation3 + $0x70] sm:$0xff] %vm294_vm0, %v6399_v0  ;;  %310 = vst.msk [vmem:[#allocation3 + $0x78] sm:$0xff] %vm294_vm0, %v6399_v0 }
  0x71   : > { %311 = vst.msk [vmem:[#allocation3 + $0x80] sm:$0xff] %vm294_vm0, %v6399_v0  ;;  %312 = vst.msk [vmem:[#allocation3 + $0x88] sm:$0xff] %vm294_vm0, %v6399_v0 }
  0x72   : > { %313 = vst.msk [vmem:[#allocation3 + $0x90] sm:$0xff] %vm294_vm0, %v6399_v0  ;;  %314 = vst.msk [vmem:[#allocation3 + $0x98] sm:$0xff] %vm294_vm0, %v6399_v0 }
  0x73   : > { %315 = vst.msk [vmem:[#allocation3 + $0xa0] sm:$0xff] %vm294_vm0, %v6399_v0  ;;  %316 = vst.msk [vmem:[#allocation3 + $0xa8] sm:$0xff] %vm294_vm0, %v6399_v0 }
  0x74   : > { %317 = vst.msk [vmem:[#allocation3 + $0xb0] sm:$0xff] %vm294_vm0, %v6399_v0  ;;  %318 = vst.msk [vmem:[#allocation3 + $0xb8] sm:$0xff] %vm294_vm0, %v6399_v0 }
  0x75   : > { %319 = vst [vmem:[#allocation2] sm:$0xff] %v6400_v1  ;;  %320 = vst [vmem:[#allocation2 + $0x8] sm:$0xff] %v6400_v1 }
  0x76   : > { %321 = vst [vmem:[#allocation2 + $0x10] sm:$0xff] %v6400_v1  ;;  %322 = vst [vmem:[#allocation2 + $0x18] sm:$0xff] %v6400_v1 }
  0x77   : > { %323 = vst [vmem:[#allocation2 + $0x20] sm:$0xff] %v6400_v1  ;;  %324 = vst [vmem:[#allocation2 + $0x28] sm:$0xff] %v6400_v1 }
  0x78   : > { %325 = vst [vmem:[#allocation2 + $0x30] sm:$0xff] %v6400_v1  ;;  %326 = vst [vmem:[#allocation2 + $0x38] sm:$0xff] %v6400_v1 }
  0x79   : > { %327 = vst [vmem:[#allocation2 + $0x40] sm:$0xff] %v6400_v1  ;;  %328 = vst [vmem:[#allocation2 + $0x48] sm:$0xff] %v6400_v1 }
  0x7a   : > { %329 = vst [vmem:[#allocation2 + $0x50] sm:$0xff] %v6400_v1  ;;  %330 = vst [vmem:[#allocation2 + $0x58] sm:$0xff] %v6400_v1 }
  0x7b   : > { %331 = vst [vmem:[#allocation2 + $0x60] sm:$0xff] %v6400_v1  ;;  %332 = vst [vmem:[#allocation2 + $0x68] sm:$0xff] %v6400_v1 }
  0x7c   : > { %333 = vst [vmem:[#allocation2 + $0x70] sm:$0xff] %v6400_v1  ;;  %334 = vst [vmem:[#allocation2 + $0x78] sm:$0xff] %v6400_v1 }
  0x7d   : > { %335 = vst [vmem:[#allocation2 + $0x80] sm:$0xff] %v6400_v1  ;;  %336 = vst [vmem:[#allocation2 + $0x88] sm:$0xff] %v6400_v1 }
  0x7e   : > { %337 = vst [vmem:[#allocation2 + $0x90] sm:$0xff] %v6400_v1  ;;  %338 = vst [vmem:[#allocation2 + $0x98] sm:$0xff] %v6400_v1 }
  0x7f   : > { %339 = vst [vmem:[#allocation2 + $0xa0] sm:$0xff] %v6400_v1  ;;  %340 = vst [vmem:[#allocation2 + $0xa8] sm:$0xff] %v6400_v1 }
  0x80   : > { %341 = vst [vmem:[#allocation2 + $0xb0] sm:$0xff] %v6400_v1  ;;  %342 = vst [vmem:[#allocation2 + $0xb8] sm:$0xff] %v6400_v1 }
  0x81 PF: > { %s6612_s22 = sld [smem:[#allocation5 + $0x180]]  ;;  %v6076_v2 = vld [vmem:[#allocation12 + $0x74] ss:$8 sps:$4 sm:$0xff]   ;;  %v6078_v3 = vld [vmem:[#allocation12 + $0x70] ss:$8 sps:$4 sm:$0xff]  }
  0x82   : > { %s6614_s13 = sld [smem:[#allocation5 + $0x200]]  ;;  %1671 = vmatprep.subr.bf16.mxu0 %v6076_v2  ;;  %5881 = vmatprep.subr.bf16.mxu1 %v6076_v2  ;;  %v6079_v4 = vld [vmem:[#allocation12 + $0x64] ss:$8 sps:$4 sm:$0xff]   ;;  %v6081_v5 = vld [vmem:[#allocation12 + $0x60] ss:$8 sps:$4 sm:$0xff]  }
  0x83   : > { %s6616_s26 = sld [smem:[#allocation5 + $0x280]]  ;;  %1672 = vmatpush1.bf16.msra.mxu0 %v6078_v3  ;;  %5897 = vmatpush1.bf16.msra.mxu1 %v6078_v3  ;;  %v6082_v6 = vld [vmem:[#allocation12 + $0x54] ss:$8 sps:$4 sm:$0xff]   ;;  %v6084_v9 = vld [vmem:[#allocation12 + $0x50] ss:$8 sps:$4 sm:$0xff]  }
  0x84   : > { %s6618_s27 = sld [smem:[#allocation5 + $0x181]]  ;;  %1673 = vmatprep.subr.bf16.mxu0 %v6079_v4  ;;  %5882 = vmatprep.subr.bf16.mxu1 %v6079_v4  ;;  %v6085_v11 = vld [vmem:[#allocation12 + $0x44] ss:$8 sps:$4 sm:$0xff]   ;;  %v6087_v15 = vld [vmem:[#allocation12 + $0x40] ss:$8 sps:$4 sm:$0xff]  }
  0x85   : > { %s6620_s29 = sld [smem:[#allocation5 + $0x201]]  ;;  %v6088_v17 = vld [vmem:[#allocation12 + $0x34] ss:$8 sps:$4 sm:$0xff]   ;;  %v6090_v20 = vld [vmem:[#allocation12 + $0x30] ss:$8 sps:$4 sm:$0xff]  }
  0x86   : > { %s6622_s14 = sld [smem:[#allocation5 + $0x281]]  ;;  %v6091_v21 = vld [vmem:[#allocation12 + $0x24] ss:$8 sps:$4 sm:$0xff]   ;;  %v6093_v22 = vld [vmem:[#allocation12 + $0x20] ss:$8 sps:$4 sm:$0xff]  }
  0x87   : > { %v633_v7 = vstv %s6612_s22  ;;  %s6625_s12 = sld [smem:[#allocation5 + $0x182]]  ;;  %1674 = vmatpush1.bf16.msra.mxu0 %v6081_v5  ;;  %5898 = vmatpush1.bf16.msra.mxu1 %v6081_v5  ;;  %v6094_v24 = vld [vmem:[#allocation12 + $0x14] ss:$8 sps:$4 sm:$0xff]   ;;  %v6096_v27 = vld [vmem:[#allocation12 + $0x10] ss:$8 sps:$4 sm:$0xff]  }
  0x88   : > { %6124 = vrcp.f32 %v633_v7  ;;  %v637_v8 = vstv %s6614_s13  ;;  %s6628_s15 = sld [smem:[#allocation5 + $0x202]]  ;;  %1675 = vmatprep.subr.bf16.mxu0 %v6082_v6  ;;  %5883 = vmatprep.subr.bf16.mxu1 %v6082_v6  ;;  %v6097_v32 = vld [vmem:[#allocation12 + $0x4] ss:$8 sps:$4 sm:$0xff]   ;;  %v6099_v38 = vld [vmem:[#allocation12] ss:$8 sps:$4 sm:$0xff]  }
  0x89   : > { %6126 = vrcp.f32 %v637_v8  ;;  %v641_v10 = vstv %s6616_s26  ;;  %s6631_s24 = sld [smem:[#allocation5 + $0x282]]  ;;  %v6100_v41 = vld [vmem:[#allocation12 + $0xf4] ss:$8 sps:$4 sm:$0xff]   ;;  %v6102_v46 = vld [vmem:[#allocation12 + $0xf0] ss:$8 sps:$4 sm:$0xff]   ;;  %s608_s6 = smul.f32 0.5, %s6616_s26 }
  0x8a   : > { %6128 = vrcp.f32 %v641_v10  ;;  %v967_v12 = vstv %s6618_s27  ;;  %s5655_s5 = sld [smem:[#allocation5 + $0x300]]  ;;  %v6103_v47 = vld [vmem:[#allocation12 + $0xe4] ss:$8 sps:$4 sm:$0xff]   ;;  %v6105_v52 = vld [vmem:[#allocation12 + $0xe0] ss:$8 sps:$4 sm:$0xff]  }
  0x8b   : > { %6130 = vrcp.f32 %v967_v12  ;;  %v971_v13 = vstv %s6620_s29  ;;  %1676 = vmatpush1.bf16.msra.mxu0 %v6084_v9  ;;  %5899 = vmatpush1.bf16.msra.mxu1 %v6084_v9  ;;  %s5670_s28 = sld [smem:[#allocation5 + $0x301]]  ;;  %v6106_v59 = vld [vmem:[#allocation12 + $0xd4] ss:$8 sps:$4 sm:$0xff]   ;;  %v6401_v61 = vmov 683565275  }
  0x8c   : > { %6132 = vrcp.f32 %v971_v13  ;;  %v975_v14 = vstv %s6622_s14  ;;  %1677 = vmatprep.subr.bf16.mxu0 %v6085_v11  ;;  %5884 = vmatprep.subr.bf16.mxu1 %v6085_v11  ;;  %s6655_s0 = sld [smem:[#allocation5 + $0x302]]  ;;  %v6402_v63 = vmov 2475754826   ;;  %v6403_v2 = vmov 2131351028  }
  0x8d   : > { %6134 = vrcp.f32 %v975_v14  ;;  %v1301_v16 = vstv %s6625_s12  ;;  %v6404_v4 = vmov 2102212464   ;;  %v6405_v6 = vmov 920167782   ;;  %v6108_v12 = vld [vmem:[#allocation12 + $0xd0] ss:$8 sps:$4 sm:$0xff]  }
  0x8e   : > { %6136 = vrcp.f32 %v1301_v16  ;;  %v1305_v18 = vstv %s6628_s15  ;;  %s6756_s30 = sld [smem:[#allocation5]] }
  0x8f   : > { %6138 = vrcp.f32 %v1305_v18  ;;  %v1309_v19 = vstv %s6631_s24  ;;  %1678 = vmatpush1.bf16.msra.mxu0 %v6087_v15  ;;  %5900 = vmatpush1.bf16.msra.mxu1 %v6087_v15  ;;  %v6406_v15 = vmov 1326507024   ;;  %s6762_s8 = sld [smem:[#allocation5 + $0x80]] }
  0x90   : > { %6140 = vrcp.f32 %v1309_v19  ;;  %1679 = vmatprep.subr.bf16.mxu0 %v6088_v17  ;;  %5885 = vmatprep.subr.bf16.mxu1 %v6088_v17  ;;  %v387_v28 = vstv %s5655_s5  ;;  %v6109_v17 = vld [vmem:[#allocation12 + $0xc4] ss:$8 sps:$4 sm:$0xff]   ;;  %s6776_s23 = sld [smem:[#allocation5 + $0x100]] }
  0x91   : > { %v6639_v30 = vsub.f32 0.0, %v387_v28  ;;  %v721_v44 = vstv %s5670_s28  ;;  %s615_s7 = ssub.f32 0.0, %s6612_s22  ;;  %s620_s28 = smul.f32 0.5, %s6612_s22 }
  0x92   : > { %v6645_v45 = vsub.f32 0.0, %v721_v44  ;;  %v1055_v28 = vstv %s6655_s0  ;;  %s629_s0 = smul.f32 0.5, %s6614_s13 }
  0x93   : > { %1680 = vmatpush1.bf16.msra.mxu0 %v6090_v20  ;;  %5901 = vmatpush1.bf16.msra.mxu1 %v6090_v20  ;;  %v389_v34 = vand.u32 2147483647, %v6639_v30  ;;  %v392_v35 = vand.u32 2139095040, %v6639_v30  ;;  %s6796_s5 = smul.f32 0.5, %s615_s7  ;;  %vm391_vm15 = vcmp.lt.s32.totalorder %v6639_v30, 0 }
  0x94   : > { %1681 = vmatprep.subr.bf16.mxu0 %v6091_v21  ;;  %5886 = vmatprep.subr.bf16.mxu1 %v6091_v21  ;;  %v723_v50 = vand.u32 2147483647, %v6645_v45  ;;  %v726_v51 = vand.u32 2139095040, %v6645_v45 }
  0x95   : > { %v6125_v23 = vpop.eup %6124  ;;  %v393_v39 = vshrl.u32 %v392_v35, 23  ;;  %v396_v42 = vand.u32 8388607, %v389_v34  ;;  %vm6847_vm0 = vcmp.le.f32.partialorder %v389_v34, 0.7853982 }
  0x96   : > { %v6127_v25 = vpop.eup %6126  ;;  %5917 = vpush %v6125_v23  ;;  %v727_v54 = vshrl.u32 %v726_v51, 23  ;;  %v6651_v55 = vand.u32 8388607, %v723_v50  ;;  %v6115_v51 = vld [vmem:[#allocation12 + $0xa4] ss:$8 sps:$4 sm:$0xff]   ;;  %s6794_s26 = sadd.f32 %s6776_s23, %s608_s6 }
  0x97   : > { %v6129_v26 = vpop.eup %6128  ;;  %5919 = vpush %v6127_v25  ;;  %1682 = vmatpush1.bf16.msra.mxu0 %v6093_v22  ;;  %5902 = vmatpush1.bf16.msra.mxu1 %v6093_v22  ;;  %v5656_v43 = vadd.s32 4294967169, %v393_v39  ;;  %v397_v49 = vor.u32 8388608, %v396_v42 }
  0x98   : > { %v6131_v29 = vpop.eup %6130  ;;  %5921 = vpush %v6129_v26  ;;  %1683 = vmatprep.subr.bf16.mxu0 %v6094_v24  ;;  %5887 = vmatprep.subr.bf16.mxu1 %v6094_v24  ;;  %v5671_v1 = vadd.s32 4294967169, %v727_v54  ;;  %v731_v8 = vor.u32 8388608, %v6651_v55  ;;  %v6111_v26 = vld [vmem:[#allocation12 + $0xc0] ss:$8 sps:$4 sm:$0xff]   ;;  %v6715_v54 = vsub.f32 0.0, %v1055_v28 }
  0x99   : > { %v6133_v31 = vpop.eup %6132  ;;  %5933 = vpush %v6131_v29  ;;  %v399_v48 = vadd.s32 1, %v5656_v43  ;;  %v6657_v58 = vshll.u32 %v397_v49, 8 }
  0x9a   : > { %v6135_v33 = vpop.eup %6134  ;;  %5935 = vpush %v6133_v31  ;;  %v733_v20 = vadd.s32 1, %v5671_v1 }
  0x9b   : > { %v6137_v36 = vpop.eup %6136  ;;  %5937 = vpush %v6135_v33  ;;  %1684 = vmatpush1.bf16.msra.mxu0 %v6096_v27  ;;  %5903 = vmatpush1.bf16.msra.mxu1 %v6096_v27  ;;  %vm400_vm1 = vcmp.gt.s32.totalorder %v399_v48, 0  ;;  %v6112_v27 = vld [vmem:[#allocation12 + $0xb4] ss:$8 sps:$4 sm:$0xff]  }
  0x9c   : > { %v6139_v37 = vpop.eup %6138  ;;  %5949 = vpush %v6137_v36  ;;  %1685 = vmatprep.subr.bf16.mxu0 %v6097_v32  ;;  %5888 = vmatprep.subr.bf16.mxu1 %v6097_v32  ;;  %v401_v53 = vsel %vm400_vm1, %v399_v48, 0  ;;  %vm734_vm6 = vcmp.gt.s32.totalorder %v733_v20, 0  ;;  %v6114_v48 = vld [vmem:[#allocation12 + $0xb0] ss:$8 sps:$4 sm:$0xff]  }
  0x9d   : > { %v6141_v40 = vpop.eup %6140  ;;  %5951 = vpush %v6139_v37  ;;  %v6653_v56 = vshrl.u32 %v401_v53, 5  ;;  %v403_v57 = vand.u32 31, %v401_v53  ;;  %v6713_v53 = vshll.u32 %v731_v8, 8 }
  0x9e   : > { %5953 = vpush %v6141_v40 }
  0x9f   : > { %1686 = vmatpush1.bf16.msra.mxu0 %v6099_v38  ;;  %5904 = vmatpush1.bf16.msra.mxu1 %v6099_v38  ;;  %v404_v60 = vsub.s32 32, %v403_v57  ;;  %v406_v62 = vshll.u32 %v6401_v61, %v403_v57  ;;  %v409_v0 = vshll.u32 %v6402_v63, %v403_v57  ;;  %v412_v3 = vshll.u32 %v6403_v2, %v403_v57 }
  0xa0   : > { %1687 = vmatprep.subr.bf16.mxu0 %v6100_v41  ;;  %5889 = vmatprep.subr.bf16.mxu1 %v6100_v41  ;;  %v415_v5 = vshll.u32 %v6404_v4, %v403_v57  ;;  %v418_v7 = vshll.u32 %v6405_v6, %v403_v57  ;;  %vm421_vm2 = vcmp.lt.s32.totalorder %v6653_v56, 1  ;;  %vm422_vm3 = vcmp.lt.s32.totalorder %v6653_v56, 2 }
  0xa1   : > { %v405_v9 = vshrl.u32 %v6401_v61, %v404_v60  ;;  %v407_v10 = vshrl.u32 %v6402_v63, %v404_v60  ;;  %v410_v11 = vshrl.u32 %v6403_v2, %v404_v60  ;;  %v413_v13 = vshrl.u32 %v6404_v4, %v404_v60 }
  0xa2   : > { %v416_v14 = vshrl.u32 %v6405_v6, %v404_v60  ;;  %v419_v16 = vshrl.u32 %v6406_v15, %v404_v60  ;;  %vm424_vm4 = vcmp.lt.s32.totalorder %v6653_v56, 4  ;;  %vm423_vm5 = vcmp.lt.s32.totalorder %v6653_v56, 3 }
  0xa3   : > { %1688 = vmatpush2.bf16.msra.mxu0 %v6102_v46  ;;  %5905 = vmatpush2.bf16.msra.mxu1 %v6102_v46  ;;  %v408_v18 = vor.u32 %v407_v10, %v406_v62  ;;  %v411_v19 = vor.u32 %v410_v11, %v409_v0  ;;  %v414_v21 = vor.u32 %v413_v13, %v412_v3  ;;  %v735_v38 = vsel %vm734_vm6, %v733_v20, 0  ;;  %v6117_v62 = vld [vmem:[#allocation12 + $0xa0] ss:$8 sps:$4 sm:$0xff]   ;;  %v6120_v20 = vld [vmem:[#allocation12 + $0x90] ss:$8 sps:$4 sm:$0xff]  }
  0xa4   : > { %1689 = vmatprep.subr.bf16.mxu0 %v6103_v47  ;;  %5890 = vmatprep.subr.bf16.mxu1 %v6103_v47  ;;  %v417_v22 = vor.u32 %v416_v14, %v415_v5  ;;  %v420_v23 = vor.u32 %v419_v16, %v418_v7  ;;  %v6700_v42 = vshrl.u32 %v735_v38, 5  ;;  %v737_v49 = vand.u32 31, %v735_v38  ;;  %v6118_v7 = vld [vmem:[#allocation12 + $0x94] ss:$8 sps:$4 sm:$0xff]   ;;  %v6123_v38 = vld [vmem:[#allocation12 + $0x80] ss:$8 sps:$4 sm:$0xff]  }
  0xa5   : > { %v425_v24 = vsel %vm421_vm2, %v405_v9, %v408_v18  ;;  %v429_v25 = vsel %vm421_vm2, %v408_v18, %v411_v19  ;;  %v426_v29 = vsel %vm424_vm4, %v414_v21, 2102212464  ;;  %v433_v32 = vsel %vm421_vm2, %v411_v19, %v414_v21 }
  0xa6   : > { %v430_v31 = vsel %vm424_vm4, %v417_v22, 920167782  ;;  %v434_v33 = vsel %vm424_vm4, %v420_v23, 1326507024  ;;  %v427_v35 = vsel %vm423_vm5, %v411_v19, %v426_v29  ;;  %vm755_vm7 = vcmp.lt.s32.totalorder %v6700_v42, 1 }
  0xa7   : > { %1690 = vmatpush2.bf16.msra.mxu0 %v6105_v52  ;;  %5906 = vmatpush2.bf16.msra.mxu1 %v6105_v52  ;;  %v431_v36 = vsel %vm423_vm5, %v414_v21, %v430_v31  ;;  %v435_v37 = vsel %vm423_vm5, %v417_v22, %v434_v33  ;;  %v428_v39 = vsel %vm422_vm3, %v425_v24, %v427_v35  ;;  %v738_v55 = vsub.s32 32, %v737_v49  ;;  %v6121_v24 = vld [vmem:[#allocation12 + $0x84] ss:$8 sps:$4 sm:$0xff]  }
  0xa8   : > { %1691 = vmatprep.subr.bf16.mxu0 %v6106_v59  ;;  %5891 = vmatprep.subr.bf16.mxu1 %v6106_v59  ;;  %v432_v40 = vsel %vm422_vm3, %v429_v25, %v431_v36  ;;  %v436_v41 = vsel %vm422_vm3, %v433_v32, %v435_v37  ;;  %v444_v52 = vmul.u32 %v6657_v58, %v428_v39  ;;  %vm758_vm9 = vcmp.lt.s32.totalorder %v6700_v42, 4 }
  0xa9   : > { %v6703_v43 = vmul.u32.u64.low %v6657_v58, %v436_v41  ;;  %v6704_v44 = vmul.u32.u64.high %v6657_v58, %v436_v41, %v6703_v43  ;;  %v6707_v46 = vmul.u32.u64.low %v6657_v58, %v432_v40  ;;  %v6708_v47 = vmul.u32.u64.high %v6657_v58, %v432_v40, %v6707_v46 }
  0xaa   : > { %v740_v56 = vshll.u32 %v6401_v61, %v737_v49  ;;  %v743_v57 = vshll.u32 %v6402_v63, %v737_v49  ;;  %v746_v59 = vshll.u32 %v6403_v2, %v737_v49  ;;  %v749_v58 = vshll.u32 %v6404_v4, %v737_v49 }
  0xab   : > { %1692 = vmatpush2.bf16.msra.mxu0 %v6108_v12  ;;  %5907 = vmatpush2.bf16.msra.mxu1 %v6108_v12  ;;  %vm446_vm8 = vc.u32 %v6704_v44, %v6707_v46  ;;  %v447_v60 = vadd.s32 1, %v6708_v47  ;;  %v739_v0 = vshrl.u32 %v6401_v61, %v738_v55  ;;  %v741_v1 = vshrl.u32 %v6402_v63, %v738_v55 }
  0xac   : > { %1693 = vmatprep.subr.bf16.mxu0 %v6109_v17  ;;  %5892 = vmatprep.subr.bf16.mxu1 %v6109_v17  ;;  %v744_v3 = vshrl.u32 %v6403_v2, %v738_v55  ;;  %v747_v5 = vshrl.u32 %v6404_v4, %v738_v55  ;;  %v750_v9 = vshrl.u32 %v6405_v6, %v738_v55  ;;  %vm757_vm10 = vcmp.lt.s32.totalorder %v6700_v42, 3 }
  0xad   : > { %v448_v8 = vsel %vm446_vm8, %v447_v60, %v6708_v47  ;;  %v752_v10 = vshll.u32 %v6405_v6, %v737_v49  ;;  %v753_v11 = vshrl.u32 %v6406_v15, %v738_v55  ;;  %v742_v13 = vor.u32 %v741_v1, %v740_v56 }
  0xae   : > { %v449_v12 = vadd.s32 %v448_v8, %v444_v52  ;;  %v745_v14 = vor.u32 %v744_v3, %v743_v57  ;;  %v748_v16 = vor.u32 %v747_v5, %v746_v59  ;;  %v751_v17 = vor.u32 %v750_v9, %v749_v58  ;;  %v6785_v59 = vld [vmem:[%s6570_s9] ss:$4 sm:$0x3] }
  0xaf   : > { %1694 = vmatpush2.bf16.msra.mxu0 %v6111_v26  ;;  %5908 = vmatpush2.bf16.msra.mxu1 %v6111_v26  ;;  %v754_v18 = vor.u32 %v753_v11, %v752_v10  ;;  %v1060_v19 = vand.u32 2139095040, %v6715_v54  ;;  %vm756_vm11 = vcmp.lt.s32.totalorder %v6700_v42, 2  ;;  %v759_v25 = vsel %vm755_vm7, %v739_v0, %v742_v13  ;;  %v6790_v0 = vld [vmem:[%s6570_s9 + $0x1] ss:$4 sm:$0x3] }
  0xb0   : > { %1695 = vmatprep.subr.bf16.mxu0 %v6112_v27  ;;  %5893 = vmatprep.subr.bf16.mxu1 %v6112_v27  ;;  %v450_v21 = vadd.s32 536870912, %v449_v12  ;;  %v760_v22 = vsel %vm758_vm9, %v748_v16, 2102212464  ;;  %v763_v23 = vsel %vm755_vm7, %v742_v13, %v745_v14  ;;  %v764_v26 = vsel %vm758_vm9, %v751_v17, 920167782 }
  0xb1   : > { %v767_v27 = vsel %vm755_vm7, %v745_v14, %v748_v16  ;;  %v768_v28 = vsel %vm758_vm9, %v754_v18, 1326507024  ;;  %v761_v31 = vsel %vm757_vm10, %v745_v14, %v760_v22  ;;  %v765_v32 = vsel %vm757_vm10, %v748_v16, %v764_v26 }
  0xb2   : > { %v6748_v29 = vshrl.u32 %v450_v21, 30  ;;  %v769_v33 = vsel %vm757_vm10, %v751_v17, %v768_v28  ;;  %v766_v35 = vsel %vm756_vm11, %v763_v23, %v765_v32  ;;  %v1061_v37 = vshrl.u32 %v1060_v19, 23  ;;  %v6815_v17 = vld [vmem:[%s6570_s9 + $0x2] ss:$4 sm:$0x3]  ;;  %s624_s9 = ssub.f32 0.0, %s6614_s13 }
  0xb3   : > { %1696 = vmatpush2.bf16.msra.mxu0 %v6114_v48  ;;  %5909 = vmatpush2.bf16.msra.mxu1 %v6114_v48  ;;  %v770_v36 = vsel %vm756_vm11, %v767_v27, %v769_v33  ;;  %v762_v43 = vsel %vm756_vm11, %v759_v25, %v761_v31  ;;  %v6772_v47 = vmul.u32.u64.low %v6713_v53, %v766_v35  ;;  %v6773_v48 = vmul.u32.u64.high %v6713_v53, %v766_v35, %v6772_v47  ;;  %s942_s13 = smul.f32 0.5, %s6622_s14 }
  0xb4   : > { %1697 = vmatprep.subr.bf16.mxu0 %v6115_v51  ;;  %5894 = vmatprep.subr.bf16.mxu1 %v6115_v51  ;;  %v452_v39 = vshll.u32 %v6748_v29, 30  ;;  %v6766_v40 = vmul.u32.u64.low %v6713_v53, %v770_v36  ;;  %v6767_v41 = vmul.u32.u64.high %v6713_v53, %v770_v36, %v6766_v40  ;;  %v5686_v49 = vadd.s32 4294967169, %v1061_v37  ;;  %s6855_s22 = smul.f32 0.5, %s624_s9 }
  0xb5   : > { %v778_v55 = vmul.u32 %v6713_v53, %v762_v43  ;;  %v781_v56 = vadd.s32 1, %v6773_v48  ;;  %v596_v60 = vstv %s6756_s30  ;;  %v348_v58 = vlaneseq  ;;  %s6883_s30 = sld [smem:[#allocation5 + $0x1]] }
  0xb6   : > { %v453_v51 = vsub.s32 %v449_v12, %v452_v39  ;;  %v1067_v42 = vadd.s32 1, %v5686_v49  ;;  %vm780_vm12 = vc.u32 %v6767_v41, %v6772_v47  ;;  %v598_v1 = vstv %s6762_s8  ;;  %s6894_s8 = sld [smem:[#allocation5 + $0x81]] }
  0xb7   : > { %1698 = vmatpush2.bf16.msra.mxu0 %v6117_v62  ;;  %5910 = vmatpush2.bf16.msra.mxu1 %v6117_v62  ;;  %v782_v62 = vsel %vm780_vm12, %v781_v56, %v6773_v48  ;;  %v6801_v9 = vsub.f32 %v6785_v59, %v596_v60  ;;  %v6804_v10 = vsub.f32 %v6790_v0, %v598_v1  ;;  %v1057_v11 = vand.u32 2147483647, %v6715_v54 }
  0xb8   : > { %1699 = vmatprep.subr.bf16.mxu0 %v6118_v7  ;;  %5895 = vmatprep.subr.bf16.mxu1 %v6118_v7  ;;  %v455_v52 = vsub.s32 0, %v453_v51  ;;  %v783_v3 = vadd.s32 %v782_v62, %v778_v55  ;;  %vm1068_vm13 = vcmp.gt.s32.totalorder %v1067_v42, 0  ;;  %v6798_v7 = vstv %s608_s6  ;;  %s6902_s6 = sld [smem:[#allocation5 + $0x101]] }
  0xb9   : > { %v1069_v12 = vsel %vm1068_vm13, %v1067_v42, 0  ;;  %v445_v13 = vadd.s32 %v6707_v46, %v6704_v44  ;;  %v6810_v14 = vshrl.u32 %v348_v58, 7  ;;  %v610_v19 = vstv %s6794_s26  ;;  %s954_s26 = smul.f32 0.5, %s6618_s27 }
  0xba   : > { %v5657_v57 = vmin.u32 %v455_v52, %v453_v51  ;;  %v784_v8 = vadd.s32 536870912, %v783_v3  ;;  %v606_v21 = vstv %s6776_s23  ;;  %v1071_v25 = vand.u32 31, %v1069_v12  ;;  %s949_s23 = ssub.f32 0.0, %s6618_s27 }
  0xbb   : > { %1700 = vmatpush2.bf16.msra.mxu0 %v6120_v20  ;;  %5911 = vmatpush2.bf16.msra.mxu1 %v6120_v20  ;;  %9950 = vst [vmem:[#allocation19_spill] sm:$0xff] %v6810_v14  ;;  %v617_v20 = vstv %s6796_s5  ;;  %v475_v26 = vsub.s32 4, %v6748_v29  ;;  %v6822_v44 = vstv %s620_s28  ;;  %v1064_v27 = vand.u32 8388607, %v1057_v11  ;;  %s963_s28 = smul.f32 0.5, %s6620_s29 }
  0xbc   : > { %1701 = vmatprep.subr.bf16.mxu0 %v6121_v24  ;;  %5896 = vmatprep.subr.bf16.mxu1 %v6121_v24  ;;  %v457_v53 = vclz %v5657_v57  ;;  %v6812_v16 = vshrl.u32 %v784_v8, 30  ;;  %v6829_v32 = vsub.f32 %v6815_v17, %v606_v21  ;;  %v6832_v33 = vsub.s32 0, %v6810_v14 }
  0xbd   : > { %v6835_v35 = vsub.f32 %v6815_v17, %v610_v19  ;;  %v6837_v36 = vstv %s629_s0  ;;  %v6840_v37 = vsub.s32 1, %v6810_v14  ;;  %v1072_v43 = vsub.s32 32, %v1071_v25  ;;  %s6925_s0 = smul.f32 0.5, %s949_s23 }
  0xbe   : > { %v5658_v5 = vadd.s32 4294967294, %v457_v53  ;;  %v786_v46 = vshll.u32 %v6812_v16, 30  ;;  %9951 = vst [vmem:[#allocation20_spill] sm:$0xff] %v6832_v33  ;;  %v476_v49 = vsel %vm391_vm15, %v475_v26, %v6748_v29  ;;  %v1065_v52 = vor.u32 8388608, %v1064_v27  ;;  %s6989_s23 = sadd.f32 %s6902_s6, %s942_s13 }
  0xbf   : > { %1702 = vmatpush2.bf16.msra.mxu0 %v6123_v38  ;;  %5912 = vmatpush2.bf16.msra.mxu1 %v6123_v38  ;;  %9952 = vst [vmem:[#allocation21_spill] sm:$0xff] %v6840_v37  ;;  %v6857_v56 = vshrl.u32 %v1069_v12, 5  ;;  %v1074_v57 = vshll.u32 %v6401_v61, %v1071_v25  ;;  %v1077_v60 = vshll.u32 %v6402_v63, %v1071_v25  ;;  %v478_v19 = vsel %vm6847_vm0, 0, %v476_v49 }
  0xc0   : > { %vm5659_vm14 = vcmp.lt.s32.totalorder %v5658_v5, 0  ;;  %v6842_v38 = vsub.s32 %v783_v3, %v786_v46  ;;  %v1080_v58 = vshll.u32 %v6403_v2, %v1071_v25  ;;  %v1083_v29 = vshll.u32 %v6404_v4, %v1071_v25 }
  0xc1   : > { %v460_v18 = vsel %vm5659_vm14, 0, %v5658_v5  ;;  %v1075_v53 = vshrl.u32 %v6402_v63, %v1072_v43  ;;  %v1078_v1 = vshrl.u32 %v6403_v2, %v1072_v43  ;;  %v1081_v3 = vshrl.u32 %v6404_v4, %v1072_v43 }
  0xc2   : > { %v461_v22 = vsub.s32 32, %v460_v18  ;;  %v462_v23 = vshll.u32 %v453_v51, %v460_v18  ;;  %v465_v24 = vsub.s32 4294967266, %v460_v18  ;;  %v789_v51 = vsub.s32 0, %v6842_v38 }
  0xc3   : > { %v1084_v8 = vshrl.u32 %v6405_v6, %v1072_v43  ;;  %v1086_v12 = vshll.u32 %v6405_v6, %v1071_v25  ;;  %v626_v21 = vstv %s6855_s22  ;;  %v779_v63 = vadd.s32 %v6772_v47, %v6767_v41  ;;  %s7164_s22 = sld [smem:[#allocation5 + $0x102]] }
  0xc4   : > { %v463_v28 = vshrl.u32 %v445_v13, %v461_v22  ;;  %v466_v31 = vadd.s32 127, %v465_v24  ;;  %v5672_v34 = vmin.u32 %v789_v51, %v6842_v38  ;;  %v1087_v13 = vshrl.u32 %v6406_v15, %v1072_v43 }
  0xc5   : > { %v6876_v22 = vstv %s942_s13  ;;  %v1073_v4 = vshrl.u32 %v6401_v61, %v1072_v43  ;;  %v1076_v6 = vor.u32 %v1075_v53, %v1074_v57  ;;  %v1079_v15 = vor.u32 %v1078_v1, %v1077_v60 }
  0xc6   : > { %v464_v39 = vor.u32 %v463_v28, %v462_v23  ;;  %v467_v40 = vshll.u32 %v466_v31, 23  ;;  %v791_v5 = vclz %v5672_v34  ;;  %v6881_v23 = vshll.u32 %v1065_v52, 8 }
  0xc7   : > { %v1082_v25 = vor.u32 %v1081_v3, %v1080_v58  ;;  %v1085_v26 = vor.u32 %v1084_v8, %v1083_v29  ;;  %v1088_v46 = vor.u32 %v1087_v13, %v1086_v12  ;;  %vm1092_vm2 = vcmp.lt.s32.totalorder %v6857_v56, 4  ;;  %s6906_s7 = spop %5917 }
  0xc8   : > { %v468_v55 = vor.u32 4788187, %v467_v40  ;;  %v471_v42 = vcvt.s32.f32 %v464_v39  ;;  %v5673_v2 = vadd.s32 4294967294, %v791_v5  ;;  %vm1089_vm3 = vcmp.lt.s32.totalorder %v6857_v56, 1  ;;  %s6922_s27 = spop %5919 }
  0xc9   : > { %v1094_v61 = vsel %vm1092_vm2, %v1082_v25, 2102212464  ;;  %vm1090_vm4 = vcmp.lt.s32.totalorder %v6857_v56, 2  ;;  %vm1091_vm5 = vcmp.lt.s32.totalorder %v6857_v56, 3  ;;  %v1093_v40 = vsel %vm1089_vm3, %v1073_v4, %v1076_v6  ;;  %s5922_s9 = spop %5921 }
  0xca   : > { %v469_v62 = vand.u32 2147483647, %v468_v55  ;;  %vm5674_vm1 = vcmp.lt.s32.totalorder %v5673_v2, 0  ;;  %v1095_v49 = vsel %vm1091_vm5, %v1079_v15, %v1094_v61  ;;  %v1098_v51 = vsel %vm1092_vm2, %v1085_v26, 920167782 }
  0xcb   : > { %v794_v47 = vsel %vm5674_vm1, 0, %v5673_v2  ;;  %v1101_v52 = vsel %vm1089_vm3, %v1079_v15, %v1082_v25  ;;  %v1102_v55 = vsel %vm1092_vm2, %v1088_v46, 1326507024  ;;  %v1099_v34 = vsel %vm1091_vm5, %v1082_v25, %v1098_v51 }
  0xcc   : > { %v472_v18 = vmul.f32 %v471_v42, %v469_v62  ;;  %v795_v28 = vsub.s32 32, %v794_v47  ;;  %v796_v31 = vshll.u32 %v6842_v38, %v794_v47  ;;  %v799_v39 = vsub.s32 4294967266, %v794_v47 }
  0xcd   : > { %v1097_v38 = vsel %vm1089_vm3, %v1076_v6, %v1079_v15  ;;  %v1103_v60 = vsel %vm1091_vm5, %v1085_v26, %v1102_v55  ;;  %v585_v58 = vadd.s32 3, %v478_v19  ;;  %v930_v29 = vstv %s6883_s30  ;;  %s644_s30 = smul.f32 4.0, %s5922_s9 }
  0xce   : > { %v473_v24 = vxor.u32 2147483648, %v472_v18  ;;  %v797_v43 = vshrl.u32 %v779_v63, %v795_v28  ;;  %v800_v48 = vadd.s32 127, %v799_v39  ;;  %v1100_v62 = vsel %vm1090_vm4, %v1097_v38, %v1099_v34  ;;  %v1850_v39 = vld [vmem:[#allocation3 + $0x10] sm:$0xff]  ;;  %v1851_v34 = vld [vmem:[#allocation3 + $0x18] sm:$0xff]  ;;  %s640_s9 = smul.f32 4.0, %s6922_s27 }
  0xcf   : > { %v1104_v53 = vsel %vm1090_vm4, %v1101_v52, %v1103_v60  ;;  %v612_v12 = vand.u32 2147483647, %v6835_v35  ;;  %v1096_v13 = vsel %vm1090_vm4, %v1093_v40, %v1095_v49  ;;  %v6943_v2 = vand.u32 3, %v478_v19 }
  0xd0   : > { %v474_v41 = vsel %vm391_vm15, %v473_v24, %v472_v18  ;;  %v798_v42 = vor.u32 %v797_v43, %v796_v31  ;;  %v801_v57 = vshll.u32 %v800_v48, 23  ;;  %v932_v24 = vstv %s6894_s8  ;;  %s958_s8 = ssub.f32 0.0, %s6620_s29  ;;  %v1848_v31 = vld [vmem:[#allocation3] sm:$0xff]  ;;  %s6977_s29 = spop %5933 }
  0xd1   : > { %v477_v27 = vsel %vm6847_vm0, %v6639_v30, %v474_v41  ;;  %v6932_v5 = vmul.u32.u64.low %v6881_v23, %v1104_v53  ;;  %v6933_v8 = vmul.u32.u64.high %v6881_v23, %v1104_v53, %v6932_v5  ;;  %v6946_v6 = vstv %s954_s26  ;;  %s7003_s13 = spop %5935  ;;  %s970_s27 = smul.f32 4.0, %s6977_s29 }
  0xd2   : > { %6142 = vcosq.f32 %v477_v27  ;;  %v802_v1 = vor.u32 4788187, %v801_v57  ;;  %v805_v3 = vcvt.s32.f32 %v798_v42  ;;  %vm481_vm6 = vweird.f32 %v6639_v30  ;;  %s7001_s14 = smul.f32 0.5, %s958_s8  ;;  %s7006_s26 = spop %5937 }
  0xd3   : > { %6144 = vsinq.f32 %v477_v27  ;;  %v6939_v18 = vmul.u32.u64.low %v6881_v23, %v1100_v62  ;;  %v6940_v63 = vmul.u32.u64.high %v6881_v23, %v1100_v62, %v6939_v18  ;;  %v6949_v35 = vand.u32 3, %v585_v58  ;;  %s974_s5 = smul.f32 4.0, %s7003_s13  ;;  %s7229_s29 = spop %5949 }
  0xd4   : > { %v803_v4 = vand.u32 2147483647, %v802_v1  ;;  %v6952_v56 = vsub.f32 %v6785_v59, %v930_v29  ;;  %v951_v15 = vstv %s6925_s0  ;;  %v6955_v25 = vstv %s963_s28  ;;  %s636_s28 = smul.f32 4.0, %s6906_s7  ;;  %s7207_s0 = sld [smem:[#allocation5 + $0x2]] }
  0xd5   : > { %v809_v19 = vsub.s32 4, %v6812_v16  ;;  %v1112_v46 = vmul.u32 %v6881_v23, %v1096_v13  ;;  %vm1114_vm7 = vc.u32 %v6933_v8, %v6939_v18  ;;  %vm725_vm8 = vcmp.lt.s32.totalorder %v6645_v45, 0  ;;  %s978_s7 = smul.f32 4.0, %s7006_s26  ;;  %s1283_s26 = ssub.f32 0.0, %s6625_s12 }
  0xd6   : > { %v806_v26 = vmul.f32 %v805_v3, %v803_v4  ;;  %v6963_v41 = vsub.f32 %v6790_v0, %v932_v24  ;;  %v940_v47 = vstv %s6902_s6  ;;  %v1115_v61 = vadd.s32 1, %v6940_v63  ;;  %s1276_s6 = smul.f32 0.5, %s6631_s24 }
  0xd7   : > { %vm483_vm9 = vcmp.lt.s32.totalorder %v6943_v2, 2  ;;  %v655_v27 = vstv %s644_s30  ;;  %vm6971_vm10 = vcmp.le.f32.partialorder %v723_v50, 0.7853982  ;;  %vm484_vm11 = vcmp.eq.s32.totalorder %v6943_v2, 0  ;;  %s7212_s30 = sld [smem:[#allocation5 + $0x82]]  ;;  %s1288_s24 = smul.f32 0.5, %s6625_s12 }
  0xd8   : > { %v807_v28 = vxor.u32 2147483648, %v806_v26  ;;  %vm487_vm12 = vcmp.eq.s32.totalorder %v6943_v2, 2  ;;  %v1116_v40 = vsel %vm1114_vm7, %v1115_v61, %v6940_v63  ;;  %vm591_vm13 = vcmp.eq.s32.totalorder %v6949_v35, 2  ;;  %s7219_s8 = sadd.f32 %s7164_s22, %s1276_s6 }
  0xd9   : > { %v810_v48 = vsel %vm725_vm8, %v809_v19, %v6812_v16  ;;  %v1117_v38 = vadd.s32 %v1116_v40, %v1112_v46  ;;  %v6407_v49 = vmov 0   ;;  %vm588_vm14 = vcmp.eq.s32.totalorder %v6949_v35, 0  ;;  %v1852_v19 = vld [vmem:[#allocation3 + $0x20] sm:$0xff]  ;;  %v1853_v46 = vld [vmem:[#allocation3 + $0x28] sm:$0xff] }
  0xda   : > { %v808_v50 = vsel %vm725_vm8, %v807_v28, %v806_v26  ;;  %6074 = vset.pattern.permute.xlu0 %v6407_v49  ;;  %6075 = vset.pattern.permute.xlu1 %v6407_v49  ;;  %vm6993_vm15 = vcmp.le.f32.partialorder %v612_v12, %v6798_v7  ;;  %v656_v42 = vmul.f32 %v655_v27, %v6829_v32  ;;  %vm587_vm0 = vcmp.lt.s32.totalorder %v6949_v35, 2  ;;  %v1849_v32 = vld [vmem:[#allocation3 + $0x8] sm:$0xff] }
  0xdb   : > { %v811_v16 = vsel %vm6971_vm10, %v6645_v45, %v808_v50  ;;  %1874 = vperm.xlu0 %6074, %v1848_v31   ;;  %1884 = vperm.xlu1 %6075, %v1850_v39   ;;  %v1118_v7 = vadd.s32 536870912, %v1117_v38  ;;  %v812_v29 = vsel %vm6971_vm10, 0, %v810_v48  ;;  %v944_v1 = vstv %s6989_s23  ;;  %s7250_s23 = spop %5951 }
  0xdc   : > { %6146 = vcosq.f32 %v811_v16  ;;  %v657_v13 = vmax.f32 %v656_v42, 0.0  ;;  %v960_v63 = vstv %s7001_s14  ;;  %v919_v26 = vadd.s32 3, %v812_v29  ;;  %v1855_v42 = vld [vmem:[#allocation3 + $0x38] sm:$0xff]  ;;  %s7267_s14 = spop %5953 }
  0xdd   : > { %6148 = vsinq.f32 %v811_v16  ;;  %v7021_v3 = vshrl.u32 %v1118_v7, 30  ;;  %v646_v28 = vstv %s636_s28  ;;  %v945_v31 = vsub.f32 %v6815_v17, %v944_v1  ;;  %s1312_s13 = smul.f32 4.0, %s7267_s14  ;;  %s1292_s28 = ssub.f32 0.0, %s6628_s15 }
  0xde   : > { %v941_v30 = vsub.f32 %v6815_v17, %v940_v47  ;;  %v651_v50 = vstv %s640_s9  ;;  %v7044_v48 = vand.u32 3, %v812_v29  ;;  %v989_v49 = vstv %s978_s7  ;;  %s7341_s9 = smul.f32 0.5, %s1283_s26 }
  0xdf   : > { %v6143_v43 = vpop.eup %6142  ;;  %1879 = vperm.xlu0 %6074, %v1849_v32   ;;  %1889 = vperm.xlu1 %6075, %v1851_v34   ;;  %v1120_v2 = vshll.u32 %v7021_v3, 30  ;;  %vm815_vm7 = vweird.f32 %v6645_v45  ;;  %s1297_s7 = smul.f32 0.5, %s6628_s15  ;;  %s6410_s15 = smov 1  }
  0xe0   : > { %v6145_v51 = vpop.eup %6144  ;;  %v488_v52 = vxor.u32 2147483648, %v6143_v43  ;;  %v7072_v32 = vmul.f32 %v989_v49, %v941_v30  ;;  %vm818_vm10 = vcmp.eq.s32.totalorder %v7044_v48, 0  ;;  %s7352_s12 = smul.f32 0.5, %s1292_s28 }
  0xe1   : > { %v485_v57 = vxor.u32 2147483648, %v6145_v51  ;;  %v7042_v39 = vsub.s32 %v1117_v38, %v1120_v2  ;;  %v1113_v2 = vadd.s32 %v6939_v18, %v6933_v8 }
  0xe2   : > { %v489_v60 = vsel %vm487_vm12, %v488_v52, %v6145_v51  ;;  %v593_v58 = vsel %vm591_vm13, %v488_v52, %v6145_v51  ;;  %v1854_v52 = vld [vmem:[#allocation3 + $0x30] sm:$0xff]  ;;  %vm821_vm12 = vcmp.eq.s32.totalorder %v7044_v48, 2 }
  0xe3   : > { %v486_v62 = vsel %vm484_vm11, %v6143_v43, %v485_v57  ;;  %v590_v53 = vsel %vm588_vm14, %v6143_v43, %v485_v57  ;;  %1894 = vperm.xlu0 %6074, %v1852_v19   ;;  %1899 = vperm.xlu1 %6075, %v1853_v46   ;;  %v1123_v51 = vsub.s32 0, %v7042_v39  ;;  %v946_v57 = vand.u32 2147483647, %v945_v31 }
  0xe4   : > { %v490_v5 = vsel %vm483_vm9, %v486_v62, %v489_v60  ;;  %v594_v12 = vsel %vm587_vm0, %v590_v53, %v593_v58  ;;  %vm817_vm9 = vcmp.lt.s32.totalorder %v7044_v48, 2  ;;  %v1856_v60 = vld [vmem:[#allocation3 + $0x40] sm:$0xff]  ;;  %v1857_v58 = vld [vmem:[#allocation3 + $0x48] sm:$0xff] }
  0xe5   : > { %v491_v4 = vsel %vm481_vm6, nan, %v490_v5  ;;  %v595_v24 = vsel %vm481_vm6, nan, %v594_v12  ;;  %v5687_v7 = vmin.u32 %v1123_v51, %v7042_v39 }
  0xe6   : > { %v600_v35 = vmul.f32 %v6801_v9, %v491_v4  ;;  %v601_v61 = vmul.f32 %v6804_v10, %v595_v24  ;;  %v603_v27 = vmul.f32 %v6801_v9, %v595_v24  ;;  %v604_v23 = vmul.f32 %v6804_v10, %v491_v4 }
  0xe7   : > { %v7047_v9 = vmin.f32 %v657_v13, 3.0  ;;  %v920_v10 = vand.u32 3, %v919_v26  ;;  %1904 = vperm.xlu0 %6074, %v1854_v52   ;;  %1909 = vperm.xlu1 %6075, %v1855_v42   ;;  %v1125_v34 = vclz %v5687_v7  ;;  %v1860_v42 = vld [vmem:[#allocation3 + $0x60] sm:$0xff] }
  0xe8   : > { %v602_v40 = vsub.f32 %v600_v35, %v601_v61  ;;  %v605_v43 = vadd.f32 %v604_v23, %v603_v27  ;;  %v1858_v61 = vld [vmem:[#allocation3 + $0x50] sm:$0xff]  ;;  %v1859_v27 = vld [vmem:[#allocation3 + $0x58] sm:$0xff] }
  0xe9   : > { %v6147_v29 = vpop.eup %6146  ;;  %v5927_v1 = vtrunc.f32 %v7047_v9  ;;  %vm925_vm13 = vcmp.eq.s32.totalorder %v920_v10, 2  ;;  %vm922_vm14 = vcmp.eq.s32.totalorder %v920_v10, 0  ;;  %v5688_v24 = vadd.s32 4294967294, %v1125_v34 }
  0xea   : > { %vm618_vm1 = vcmp.gt.f32.partialorder %v602_v40, %v617_v20  ;;  %vm622_vm2 = vcmp.lt.f32.partialorder %v602_v40, %v6822_v44  ;;  %v645_v47 = vadd.f32 %v6822_v44, %v602_v40  ;;  %vm7056_vm3 = vcmp.gt.f32.partialorder %v605_v43, %v626_v21  ;;  %v6149_v5 = vpop.eup %6148 }
  0xeb   : > { %vm619_vm4 = vmand %vm6993_vm15, %vm618_vm1  ;;  %vm631_vm5 = vcmp.lt.f32.partialorder %v605_v43, %v6837_v36  ;;  %v650_v16 = vadd.f32 %v6837_v36, %v605_v43  ;;  %v7070_v21 = vstv %s970_s27  ;;  %v822_v13 = vxor.u32 2147483648, %v6147_v29  ;;  %1914 = vperm.xlu0 %6074, %v1856_v60   ;;  %1919 = vperm.xlu1 %6075, %v1857_v58   ;;  %s1304_s27 = smul.f32 4.0, %s7229_s29 }
  0xec   : > { %vm7065_vm6 = vmand %vm619_vm4, %vm622_vm2  ;;  %v647_v44 = vmul.f32 %v646_v28, %v645_v47  ;;  %vm7089_vm15 = vcmp.le.f32.partialorder %v946_v57, %v6876_v22  ;;  %v819_v26 = vxor.u32 2147483648, %v6149_v5  ;;  %vm921_vm0 = vcmp.lt.s32.totalorder %v920_v10, 2  ;;  %v1861_v47 = vld [vmem:[#allocation3 + $0x68] sm:$0xff] }
  0xed   : > { %vm628_vm8 = vmand %vm7065_vm6, %vm7056_vm3  ;;  %v652_v55 = vmul.f32 %v651_v50, %v650_v16  ;;  %v823_v46 = vsel %vm821_vm12, %v822_v13, %v6149_v5  ;;  %v927_v35 = vsel %vm925_vm13, %v822_v13, %v6149_v5  ;;  %vm5689_vm1 = vcmp.lt.s32.totalorder %v5688_v24, 0 }
  0xee   : > { %v648_v62 = vmax.f32 %v647_v44, 0.0  ;;  %vm7082_vm11 = vmand %vm628_vm8, %vm631_vm5  ;;  %v820_v23 = vsel %vm818_vm10, %v6147_v29, %v819_v26  ;;  %v924_v28 = vsel %vm922_vm14, %v6147_v29, %v819_v26  ;;  %v1128_v31 = vsel %vm5689_vm1, 0, %v5688_v24  ;;  %v1862_v29 = vld [vmem:[#allocation3 + $0x70] sm:$0xff] }
  0xef   : > { %v653_v12 = vmax.f32 %v652_v55, 0.0  ;;  %v824_v8 = vsel %vm817_vm9, %v820_v23, %v823_v46  ;;  %v928_v18 = vsel %vm921_vm0, %v924_v28, %v927_v35  ;;  %v1129_v40 = vsub.s32 32, %v1128_v31  ;;  %1924 = vperm.xlu0 %6074, %v1858_v61   ;;  %1929 = vperm.xlu1 %6075, %v1859_v27   ;;  %v1864_v46 = vld [vmem:[#allocation3 + $0x80] sm:$0xff]  ;;  %v1865_v35 = vld [vmem:[#allocation3 + $0x88] sm:$0xff] }
  0xf0   : > { %v649_v36 = vmin.f32 %v648_v62, 3.0  ;;  %v825_v50 = vsel %vm815_vm7, nan, %v824_v8  ;;  %v929_v9 = vsel %vm815_vm7, nan, %v928_v18  ;;  %v1130_v49 = vshll.u32 %v7042_v39, %v1128_v31  ;;  %v1863_v62 = vld [vmem:[#allocation3 + $0x78] sm:$0xff] }
  0xf1   : > { %v654_v19 = vmin.f32 %v653_v12, 3.0  ;;  %v934_v52 = vmul.f32 %v6952_v56, %v825_v50  ;;  %v935_v48 = vmul.f32 %v6963_v41, %v929_v9  ;;  %v937_v10 = vmul.f32 %v6952_v56, %v929_v9  ;;  %v1867_v9 = vld [vmem:[#allocation3 + $0x98] sm:$0xff] }
  0xf2   : > { %v5923_v22 = vtrunc.f32 %v649_v36  ;;  %v938_v16 = vmul.f32 %v6963_v41, %v825_v50  ;;  %v1131_v45 = vshrl.u32 %v1113_v2, %v1129_v40  ;;  %v1133_v57 = vsub.s32 4294967266, %v1128_v31 }
  0xf3   : > { %v5925_v30 = vtrunc.f32 %v654_v19  ;;  %v5928_v20 = vcvt.f32.s32 %v5927_v1  ;;  %v936_v39 = vsub.f32 %v934_v52, %v935_v48  ;;  %v991_v44 = vmax.f32 %v7072_v32, 0.0  ;;  %1934 = vperm.xlu0 %6074, %v1860_v42   ;;  %1939 = vperm.xlu1 %6075, %v1861_v47  }
  0xf4   : > { %v5924_v43 = vcvt.f32.s32 %v5923_v22  ;;  %v939_v55 = vadd.f32 %v938_v16, %v937_v10  ;;  %v985_v34 = vstv %s974_s5  ;;  %v1132_v60 = vor.u32 %v1131_v45, %v1130_v49  ;;  %v1868_v16 = vld [vmem:[#allocation3 + $0xa0] sm:$0xff]  ;;  %s1308_s5 = smul.f32 4.0, %s7250_s23 }
  0xf5   : > { %v5926_v51 = vcvt.f32.s32 %v5925_v30  ;;  %v1134_v58 = vadd.s32 127, %v1133_v57  ;;  %vm952_vm2 = vcmp.gt.f32.partialorder %v936_v39, %v951_v15  ;;  %vm956_vm3 = vcmp.lt.f32.partialorder %v936_v39, %v6946_v6 }
  0xf6   : > { %v660_v38 = vmul.u32 16, %v5924_v43  ;;  %v979_v41 = vadd.f32 %v6946_v6, %v936_v39  ;;  %vm953_vm4 = vmand %vm7089_vm15, %vm952_vm2  ;;  %vm7120_vm5 = vcmp.gt.f32.partialorder %v939_v55, %v960_v63  ;;  %vm965_vm6 = vcmp.lt.f32.partialorder %v939_v55, %v6955_v25  ;;  %v1870_v39 = vld [vmem:[#allocation3 + $0xb0] sm:$0xff] }
  0xf7   : > { %v662_v7 = vmul.u32 4, %v5926_v51  ;;  %v984_v1 = vadd.f32 %v6955_v25, %v939_v55  ;;  %v1135_v5 = vshll.u32 %v1134_v58, 23  ;;  %vm957_vm7 = vmand %vm953_vm4, %vm956_vm3  ;;  %v992_v6 = vmin.f32 %v991_v44, 3.0  ;;  %1944 = vperm.xlu0 %6074, %v1862_v29   ;;  %1949 = vperm.xlu1 %6075, %v1863_v62  }
  0xf8   : > { %v981_v12 = vmul.f32 %v7070_v21, %v979_v41  ;;  %vm1059_vm8 = vcmp.lt.s32.totalorder %v6715_v54, 0  ;;  %vm962_vm9 = vmand %vm957_vm7, %vm7120_vm5  ;;  %v1139_v4 = vcvt.s32.f32 %v1132_v60  ;;  %v7131_v24 = vadd.s32 8, %v6810_v14 }
  0xf9   : > { %v663_v56 = vadd.s32 %v662_v7, %v660_v38  ;;  %v986_v13 = vmul.f32 %v985_v34, %v984_v1  ;;  %v1136_v63 = vor.u32 4788187, %v1135_v5  ;;  %vm7137_vm10 = vmand %vm962_vm9, %vm965_vm6  ;;  %v7142_v2 = vadd.s32 16, %v6810_v14  ;;  %v1871_v34 = vld [vmem:[#allocation3 + $0xb8] sm:$0xff] }
  0xfa   : > { %v982_v26 = vmax.f32 %v981_v12, 0.0  ;;  %v7145_v19 = vadd.s32 24, %v6810_v14  ;;  %v1143_v28 = vsub.s32 4, %v7021_v3  ;;  %v5943_v40 = vtrunc.f32 %v992_v6 }
  0xfb   : > { %v665_v15 = vadd.s32 %v5928_v20, %v663_v56  ;;  %v987_v27 = vmax.f32 %v986_v13, 0.0  ;;  %v1137_v25 = vand.u32 2147483647, %v1136_v63  ;;  %1954 = vperm.xlu0 %6074, %v1864_v46   ;;  %1959 = vperm.xlu1 %6075, %v1865_v35   ;;  %v6408_v50 = vmov 1.0|1.0  }
  0xfc   : > { %v983_v22 = vmin.f32 %v982_v26, 3.0  ;;  %v7189_v51 = vadd.s32 32, %v6810_v14  ;;  %v1144_v10 = vsel %vm1059_vm8, %v1143_v28, %v7021_v3  ;;  %v7204_v42 = vadd.s32 40, %v6810_v14  ;;  %v1869_v3 = vld [vmem:[#allocation3 + $0xa8] sm:$0xff] }
  0xfd   : > { %v666_v36 = vsel %vm7082_vm11, %v665_v15, 4294967295  ;;  %vm7155_vm11 = vcmp.le.f32.partialorder %v1057_v11, 0.7853982  ;;  %v988_v31 = vmin.f32 %v987_v27, 3.0  ;;  %v1140_v30 = vmul.f32 %v1139_v4, %v1137_v25  ;;  %v1866_v11 = vld [vmem:[#allocation3 + $0x90] sm:$0xff] }
  0xfe   : > { %v7148_v61 = vrot.slane %v666_v36, %v6832_v33  ;;  %v7151_v53 = vrot.slane %v666_v36, %v6840_v37  ;;  %v5939_v8 = vtrunc.f32 %v983_v22  ;;  %v5944_v57 = vcvt.f32.s32 %v5943_v40 }
  0xff   : > { %v5941_v18 = vtrunc.f32 %v988_v31  ;;  %v1141_v43 = vxor.u32 2147483648, %v1140_v30  ;;  %1964 = vperm.xlu0 %6074, %v1866_v11   ;;  %1969 = vperm.xlu1 %6075, %v1867_v9   ;;  %v1146_v7 = vsel %vm7155_vm11, 0, %v1144_v10  ;;  %v1278_v60 = vstv %s7219_s8 }
 0x100   : > { %vm676_vm12 = vcmp.eq.s32.totalorder %v7151_v53, %v6810_v14  ;;  %vm9845_vm13 = vcmp.eq.s32.totalorder %v7151_v53, %v7131_v24  ;;  %vm675_vm15 = vcmp.eq.s32.totalorder %v7148_v61, %v6810_v14  ;;  %vm9844_vm0 = vcmp.eq.s32.totalorder %v7148_v61, %v7131_v24 }
 0x101   : > { %vm5774_vm14 = vmpackc.low %vm9845_vm13, %vm676_vm12  ;;  %vm9830_vm1 = vcmp.eq.s32.totalorder %v7151_v53, %v7142_v2  ;;  %vm9824_vm3 = vcmp.eq.s32.totalorder %v7151_v53, %v7145_v19  ;;  %v5940_v49 = vcvt.f32.s32 %v5939_v8  ;;  %v5942_v52 = vcvt.f32.s32 %v5941_v18 }
 0x102   : > { %5775 = vmatprep.mubr.msk.bf16.mxu0 %vm5774_vm14, %v6408_v50  ;;  %vm5776_vm2 = vmpackc.low %vm9844_vm0, %vm675_vm15  ;;  %v1142_v48 = vsel %vm1059_vm8, %v1141_v43, %v1140_v30  ;;  %vm9843_vm5 = vcmp.eq.s32.totalorder %v7148_v61, %v7142_v2  ;;  %vm9825_vm6 = vcmp.eq.s32.totalorder %v7148_v61, %v7145_v19  ;;  %vm9823_vm7 = vcmp.eq.s32.totalorder %v7151_v53, %v7189_v51 }
 0x103   : > { %5777 = vmatmul.mubr.msk.bf16.vlgmr.msra.gmra.mxu0 %vm5776_vm2, %v6408_v50  ;;  %vm5778_vm4 = vmpackc.low %vm9824_vm3, %vm9830_vm1  ;;  %v994_v47 = vmul.u32 16, %v5940_v49  ;;  %v1145_v38 = vsel %vm7155_vm11, %v6715_v54, %v1142_v48  ;;  %v996_v45 = vmul.u32 4, %v5942_v52  ;;  %vm9822_vm8 = vcmp.eq.s32.totalorder %v7151_v53, %v7204_v42  ;;  %1974 = vperm.xlu0 %6074, %v1868_v16  }
 0x104   : > { %5779 = vmatprep.mubr.msk.bf16.mxu0 %vm5778_vm4, %v6408_v50  ;;  %6150 = vcosq.f32 %v1145_v38  ;;  %1979 = vperm.xlu1 %6075, %v1869_v3   ;;  %v1253_v55 = vadd.s32 3, %v1146_v7  ;;  %vm5780_vm9 = vmpackc.low %vm9825_vm6, %vm9843_vm5  ;;  %v7239_v58 = vadd.s32 48, %v6810_v14  ;;  %v7253_v41 = vadd.s32 56, %v6810_v14 }
 0x105   : > { %6152 = vsinq.f32 %v1145_v38  ;;  %v997_v20 = vadd.s32 %v996_v45, %v994_v47  ;;  %vm5782_vm11 = vmpackc.low %vm9822_vm8, %vm9823_vm7  ;;  %vm9827_vm14 = vcmp.eq.s32.totalorder %v7148_v61, %v7189_v51  ;;  %vm9826_vm2 = vcmp.eq.s32.totalorder %v7148_v61, %v7204_v42 }
 0x106   : > { %v1264_v32 = vstv %s7207_s0  ;;  %v1150_v1 = vand.u32 3, %v1146_v7  ;;  %v1254_v5 = vand.u32 3, %v1253_v55  ;;  %v1266_v15 = vstv %s7212_s30  ;;  %vm7287_vm8 = vmpackc.low %vm9826_vm2, %vm9827_vm14 }
 0x107   : > { %v999_v44 = vadd.s32 %v5944_v57, %v997_v20  ;;  %1984 = vperm.xlu0 %6074, %v1870_v39   ;;  %v7271_v12 = vsub.f32 %v6815_v17, %v1278_v60  ;;  %vm9835_vm2 = vcmp.eq.s32.totalorder %v7151_v53, %v7239_v58  ;;  %vm9834_vm14 = vcmp.eq.s32.totalorder %v7151_v53, %v7253_v41 }
 0x108   : > { %1989 = vperm.xlu1 %6075, %v1871_v34   ;;  %v1265_v13 = vsub.f32 %v6785_v59, %v1264_v32  ;;  %v1267_v63 = vsub.f32 %v6790_v0, %v1266_v15  ;;  %v1274_v4 = vstv %s7164_s22  ;;  %vm1155_vm1 = vcmp.eq.s32.totalorder %v1150_v1, 2  ;;  %s7932_s22 = smov 0  }
 0x109   : > { %v1000_v56 = vsel %vm7137_vm10, %v999_v44, 4294967295  ;;  %v1280_v26 = vand.u32 2147483647, %v7271_v12  ;;  %v1281_v59 = vstv %s1276_s6  ;;  %v1323_v46 = vstv %s1312_s13 }
 0x10a   : > { %v7261_v29 = vrot.slane %v1000_v56, %v6832_v33  ;;  %v7264_v62 = vrot.slane %v1000_v56, %v6840_v37  ;;  %v1275_v27 = vsub.f32 %v6815_v17, %v1274_v4  ;;  %v1285_v11 = vstv %s7341_s9 }
 0x10b   : > { %5781 = vmatmul.mubr.msk.bf16.gmra.mxu0 %vm5780_vm9, %v6408_v50  ;;  %v1289_v18 = vstv %s1288_s24  ;;  %v1298_v38 = vstv %s1297_s7  ;;  %v1314_v16 = vstv %s1304_s27  ;;  %v1319_v45 = vstv %s1308_s5 }
 0x10c   : > { %5783 = vmatprep.mubr.msk.bf16.mxu0 %vm5782_vm11, %v6408_v50  ;;  %vm9829_vm10 = vcmp.eq.s32.totalorder %v7264_v62, %v7189_v51  ;;  %vm9828_vm4 = vcmp.eq.s32.totalorder %v7264_v62, %v7204_v42  ;;  %vm9836_vm9 = vcmp.eq.s32.totalorder %v7261_v29, %v7189_v51  ;;  %vm9831_vm11 = vcmp.eq.s32.totalorder %v7261_v29, %v7204_v42 }
 0x10d   : > { %vm5798_vm7 = vmpackc.low %vm9828_vm4, %vm9829_vm10  ;;  %vm9833_vm3 = vcmp.eq.s32.totalorder %v7264_v62, %v7239_v58  ;;  %vm9832_vm6 = vcmp.eq.s32.totalorder %v7264_v62, %v7253_v41  ;;  %vm1149_vm10 = vweird.f32 %v6715_v54  ;;  %v1294_v54 = vstv %s7352_s12 }
 0x10e   : > { %5799 = vmatprep.mubr.msk.bf16.mxu1 %vm5798_vm7, %v6408_v50  ;;  %vm5800_vm4 = vmpackc.low %vm9831_vm11, %vm9836_vm9  ;;  %vm1259_vm11 = vcmp.eq.s32.totalorder %v1254_v5, 2  ;;  %vm9837_vm9 = vcmp.eq.s32.totalorder %v7264_v62, %v7131_v24  ;;  %v1324_v52 = vmul.f32 %v1323_v46, %v1275_v27  ;;  %vm1016_vm5 = vcmp.eq.s32.totalorder %v7264_v62, %v7145_v19 }
 0x10f   : > { %5801 = vmatmul.mubr.msk.bf16.vlgmr.msra.gmra.mxu1 %vm5800_vm4, %v6408_v50  ;;  %vm5802_vm7 = vmpackc.low %vm9832_vm6, %vm9833_vm3  ;;  %vm1152_vm6 = vcmp.eq.s32.totalorder %v1150_v1, 0  ;;  %vm1256_vm3 = vcmp.eq.s32.totalorder %v1254_v5, 0 }
 0x110   : > { %5803 = vmatprep.mubr.msk.bf16.mxu1 %vm5802_vm7, %v6408_v50  ;;  %vm5786_vm4 = vmpackc.low %vm9834_vm14, %vm9835_vm2  ;;  %vm1151_vm7 = vcmp.lt.s32.totalorder %v1150_v1, 2  ;;  %vm9842_vm14 = vcmp.eq.s32.totalorder %v7261_v29, %v7239_v58  ;;  %vm9841_vm2 = vcmp.eq.s32.totalorder %v7148_v61, %v7239_v58  ;;  %v1325_v7 = vmax.f32 %v1324_v52, 0.0 }
 0x111   : > { %v6151_v36 = vpop.eup %6150 }
 0x112   : > { %v6153_v0 = vpop.eup %6152  ;;  %v1156_v21 = vxor.u32 2147483648, %v6151_v36  ;;  %v1326_v60 = vmin.f32 %v1325_v7, 3.0 }
 0x113   : > { %5785 = vmatmul.mubr.msk.bf16.gmra.mxu0 %vm7287_vm8, %v6408_v50  ;;  %v1153_v35 = vxor.u32 2147483648, %v6153_v0  ;;  %vm1255_vm8 = vcmp.lt.s32.totalorder %v1254_v5, 2 }
 0x114   : > { %5787 = vmatprep.mubr.msk.bf16.mxu0 %vm5786_vm4, %v6408_v50  ;;  %v1157_v25 = vsel %vm1155_vm1, %v1156_v21, %v6153_v0  ;;  %v1261_v22 = vsel %vm1259_vm11, %v1156_v21, %v6153_v0  ;;  %vm9840_vm4 = vcmp.eq.s32.totalorder %v7261_v29, %v7253_v41  ;;  %vm9839_vm1 = vcmp.eq.s32.totalorder %v7148_v61, %v7253_v41 }
 0x115   : > { %v1154_v23 = vsel %vm1152_vm6, %v6151_v36, %v1153_v35  ;;  %v1258_v28 = vsel %vm1256_vm3, %v6151_v36, %v1153_v35  ;;  %vm9838_vm11 = vcmp.eq.s32.totalorder %v7264_v62, %v6810_v14  ;;  %vm5804_vm3 = vmpackc.low %vm9840_vm4, %vm9842_vm14  ;;  %vm1014_vm14 = vcmp.eq.s32.totalorder %v7264_v62, %v7142_v2 }
 0x116   : > { %v1158_v17 = vsel %vm1151_vm7, %v1154_v23, %v1157_v25  ;;  %v1262_v31 = vsel %vm1255_vm8, %v1258_v28, %v1261_v22  ;;  %vm5788_vm6 = vmpackc.low %vm9839_vm1, %vm9841_vm2  ;;  %vm1009_vm7 = vcmp.eq.s32.totalorder %v7261_v29, %v6810_v14  ;;  %vm1011_vm8 = vcmp.eq.s32.totalorder %v7261_v29, %v7131_v24 }
 0x117   : > { %v1159_v30 = vsel %vm1149_vm10, nan, %v1158_v17  ;;  %v1263_v8 = vsel %vm1149_vm10, nan, %v1262_v31  ;;  %5805 = vmatmul.mubr.msk.bf16.gmra.mxu1 %vm5804_vm3, %v6408_v50  ;;  %vm5790_vm10 = vmpackc.low %vm9837_vm9, %vm9838_vm11  ;;  %vm7394_vm3 = vcmp.le.f32.partialorder %v1280_v26, %v1281_v59  ;;  %v5959_v15 = vtrunc.f32 %v1326_v60 }
 0x118   : > { %v1268_v40 = vmul.f32 %v1265_v13, %v1159_v30  ;;  %v1269_v43 = vmul.f32 %v1267_v63, %v1263_v8  ;;  %v1271_v9 = vmul.f32 %v1265_v13, %v1263_v8  ;;  %v1272_v49 = vmul.f32 %v1267_v63, %v1159_v30  ;;  %vm5792_vm1 = vmpackc.low %vm1011_vm8, %vm1009_vm7 }
 0x119   : > { %v5960_v4 = vcvt.f32.s32 %v5959_v15 }
 0x11a   : > { %v1270_v48 = vsub.f32 %v1268_v40, %v1269_v43  ;;  %v1273_v47 = vadd.f32 %v1272_v49, %v1271_v9 }
 0x11b   : > { %5789 = vmatmul.mubr.msk.bf16.gmra.mxu0 %vm5788_vm6, %v6408_v50 }
 0x11c   : > { %5791 = vmatprep.mubr.msk.bf16.mxu0 %vm5790_vm10, %v6408_v50  ;;  %vm1286_vm6 = vcmp.gt.f32.partialorder %v1270_v48, %v1285_v11  ;;  %vm1290_vm9 = vcmp.lt.f32.partialorder %v1270_v48, %v1289_v18  ;;  %v1313_v57 = vadd.f32 %v1289_v18, %v1270_v48  ;;  %vm1295_vm11 = vcmp.gt.f32.partialorder %v1273_v47, %v1294_v54 }
 0x11d   : > { %vm1287_vm4 = vmand %vm7394_vm3, %vm1286_vm6  ;;  %vm1299_vm2 = vcmp.lt.f32.partialorder %v1273_v47, %v1298_v38  ;;  %v1318_v3 = vadd.f32 %v1298_v38, %v1273_v47  ;;  %v6409_v11 = vmov 0.0  }
 0x11e   : > { %vm1291_vm10 = vmand %vm1287_vm4, %vm1290_vm9  ;;  %v1315_v20 = vmul.f32 %v1314_v16, %v1313_v57 }
 0x11f   : > { %vm1296_vm0 = vmand %vm1291_vm10, %vm1295_vm11  ;;  %v1320_v39 = vmul.f32 %v1319_v45, %v1318_v3 }
 0x120   : > { %v1316_v44 = vmax.f32 %v1315_v20, 0.0  ;;  %vm7413_vm13 = vmand %vm1296_vm0, %vm1299_vm2  ;;  %vm1013_vm0 = vcmp.eq.s32.totalorder %v7261_v29, %v7142_v2  ;;  %vm1015_vm2 = vcmp.eq.s32.totalorder %v7261_v29, %v7145_v19 }
 0x121   : > { %v1321_v34 = vmax.f32 %v1320_v39, 0.0  ;;  %vm5794_vm9 = vmpackc.low %vm1016_vm5, %vm1014_vm14 }
 0x122   : > { %v1317_v56 = vmin.f32 %v1316_v44, 3.0  ;;  %vm5796_vm4 = vmpackc.low %vm1015_vm2, %vm1013_vm0 }
 0x123   : > { %5793 = vmatmul.mubr.msk.bf16.gmra.mxu0 %vm5792_vm1, %v6408_v50  ;;  %v1322_v32 = vmin.f32 %v1321_v34, 3.0 }
 0x124   : > { %5795 = vmatprep.mubr.msk.bf16.mxu0 %vm5794_vm9, %v6408_v50  ;;  %v5955_v1 = vtrunc.f32 %v1317_v56 }
 0x125   : > { %v5957_v5 = vtrunc.f32 %v1322_v32 }
 0x126   : > { %v5956_v12 = vcvt.f32.s32 %v5955_v1 }
 0x127   : > { %v5958_v6 = vcvt.f32.s32 %v5957_v5 }
 0x128   : > { %v1328_v13 = vmul.u32 16, %v5956_v12 }
 0x129   : > { %v1330_v63 = vmul.u32 4, %v5958_v6 }
 0x12b   : > { %5797 = vmatmul.mubr.msk.bf16.gmra.mxu0 %vm5796_vm4, %v6408_v50  ;;  %v1331_v36 = vadd.s32 %v1330_v63, %v1328_v13 }
 0x12d   : > { %v1333_v26 = vadd.s32 %v5960_v4, %v1331_v36 }
 0x12f   : > { %v1334_v59 = vsel %vm7413_vm13, %v1333_v26, 4294967295 }
 0x130   : > { %v7439_v0 = vrot.slane %v1334_v59, %v6832_v33  ;;  %v7442_v21 = vrot.slane %v1334_v59, %v6840_v37 }
 0x132   : > { %vm9847_vm1 = vcmp.eq.s32.totalorder %v7442_v21, %v6810_v14  ;;  %vm9846_vm11 = vcmp.eq.s32.totalorder %v7442_v21, %v7131_v24  ;;  %vm9851_vm3 = vcmp.eq.s32.totalorder %v7439_v0, %v6810_v14  ;;  %vm9848_vm6 = vcmp.eq.s32.totalorder %v7439_v0, %v7131_v24 }
 0x133   : > { %vm5806_vm13 = vmpackc.low %vm9846_vm11, %vm9847_vm1  ;;  %vm9850_vm10 = vcmp.eq.s32.totalorder %v7442_v21, %v7142_v2  ;;  %vm9849_vm9 = vcmp.eq.s32.totalorder %v7442_v21, %v7145_v19  ;;  %vm9852_vm1 = vcmp.eq.s32.totalorder %v7439_v0, %v7145_v19 }
 0x134   : > { %5807 = vmatprep.mubr.msk.bf16.mxu1 %vm5806_vm13, %v6408_v50  ;;  %vm5808_vm4 = vmpackc.low %vm9848_vm6, %vm9851_vm3  ;;  %vm9855_vm13 = vcmp.eq.s32.totalorder %v7439_v0, %v7142_v2  ;;  %vm9854_vm6 = vcmp.eq.s32.totalorder %v7442_v21, %v7189_v51  ;;  %vm9860_vm3 = vcmp.eq.s32.totalorder %v7439_v0, %v7204_v42 }
 0x135   : > { %5809 = vmatmul.mubr.msk.bf16.gmra.mxu1 %vm5808_vm4, %v6408_v50  ;;  %vm5810_vm11 = vmpackc.low %vm9849_vm9, %vm9850_vm10  ;;  %vm9853_vm4 = vcmp.eq.s32.totalorder %v7442_v21, %v7204_v42  ;;  %vm1351_vm10 = vcmp.eq.s32.totalorder %v7439_v0, %v7189_v51 }
 0x136   : > { %5811 = vmatprep.mubr.msk.bf16.mxu1 %vm5810_vm11, %v6408_v50  ;;  %vm5812_vm9 = vmpackc.low %vm9852_vm1, %vm9855_vm13  ;;  %vm9859_vm1 = vcmp.eq.s32.totalorder %v7442_v21, %v7239_v58  ;;  %vm9856_vm13 = vcmp.eq.s32.totalorder %v7439_v0, %v7253_v41 }
 0x137   : > { %vm5814_vm11 = vmpackc.low %vm9853_vm4, %vm9854_vm6  ;;  %vm9858_vm6 = vcmp.eq.s32.totalorder %v7439_v0, %v7239_v58 }
 0x138   : > { %vm5816_vm4 = vmpackc.low %vm9860_vm3, %vm1351_vm10 }
 0x13d   : > { %5813 = vmatmul.mubr.msk.bf16.gmra.mxu1 %vm5812_vm9, %v6408_v50  ;;  %vm9857_vm9 = vcmp.eq.s32.totalorder %v7442_v21, %v7253_v41 }
 0x13e   : > { %5815 = vmatprep.mubr.msk.bf16.mxu1 %vm5814_vm11, %v6408_v50  ;;  %vm5818_vm11 = vmpackc.low %vm9857_vm9, %vm9859_vm1 }
 0x145   : > { %5817 = vmatmul.mubr.msk.bf16.gmra.mxu1 %vm5816_vm4, %v6408_v50  ;;  %vm5820_vm4 = vmpackc.low %vm9856_vm13, %vm9858_vm6  ;;  %vm9979_vm6 = vcmp.eq.s32.totalorder %v7151_v53, %v7131_v24 }
 0x146   : > { %5819 = vmatprep.mubr.msk.bf16.mxu1 %vm5818_vm11, %v6408_v50  ;;  %v5697_v48 = vsel %vm9979_vm6, 1.0, %v6409_v11 }
 0x14d   : > { %5821 = vmatmul.mubr.msk.bf16.gmra.mxu1 %vm5820_vm4, %v6408_v50  ;;  %v5695_v50 = vsel %vm676_vm12, 1.0, %v6409_v11 }
 0x156   : > { %v1875_v46 = vpop.permute.xlu0 %1874  ;;  %v1885_v35 = vpop.permute.xlu1 %1884 }
 0x15a   : > { %v1880_v27 = vpop.permute.xlu0 %1879  ;;  %v1890_v25 = vpop.permute.xlu1 %1889 }
 0x15e   : > { %v7532_v22 = vpop.permute.xlu0 %1894  ;;  %v7534_v23 = vpop.permute.xlu1 %1899 }
 0x162   : > { %v7536_v28 = vpop.permute.xlu0 %1904  ;;  %v7538_v17 = vpop.permute.xlu1 %1909 }
 0x166   : > { %v7540_v30 = vpop.permute.xlu0 %1914  ;;  %v7549_v49 = vpop.permute.xlu1 %1919 }
 0x16a   : > { %v7560_v47 = vpop.permute.xlu0 %1924  ;;  %v7571_v39 = vpop.permute.xlu1 %1929 }
 0x16e   : > { %v1935_v60 = vpop.permute.xlu0 %1934  ;;  %v1940_v36 = vpop.permute.xlu1 %1939 }
 0x1c3   : > { %v1705_v31 = vpop.f32.mrf.mxu0 }
 0x1c4   : > { %v1992_v8 = vadd.f32 %v1875_v46, %v1705_v31 }
 0x1c5   : > { %v1707_v18 = vpop.f32.mrf.mxu0 }
 0x1c6   : > { %vm2040_vm11 = vcmp.lt.f32.partialorder %v1992_v8, 3.0  ;;  %v1824_v40 = vadd.f32 %v5695_v50, %v1707_v18  ;;  %v1993_v43 = vadd.f32 %v1875_v46, %v1707_v18 }
 0x1c7   : > { %vm2088_vm4 = vmand %vm675_vm15, %vm2040_vm11  ;;  %v1709_v9 = vpop.f32.mrf.mxu0  ;;  %vm9980_vm11 = vcmp.eq.s32.totalorder %v7148_v61, %v7131_v24 }
 0x1c8   : > { %v5822_v54 = vsel %vm2088_vm4, 1.0, %v6409_v11  ;;  %vm2041_vm13 = vcmp.lt.f32.partialorder %v1993_v43, 3.0  ;;  %v1994_v52 = vadd.f32 %v1880_v27, %v1709_v9  ;;  %2160 = vrot.lane.b32.xlu0 %v1824_v40, %s6410_s15 }
 0x1c9   : > { %2377 = vst [vmem:[#allocation4] sm:$0xff] %v5822_v54  ;;  %vm2089_vm9 = vmand %vm676_vm12, %vm2041_vm13  ;;  %v1711_v10 = vpop.f32.mrf.mxu0 }
 0x1ca   : > { %v5823_v38 = vsel %vm2089_vm9, 1.0, %v6409_v11  ;;  %vm2042_vm15 = vcmp.lt.f32.partialorder %v1994_v52, 3.0  ;;  %v1825_v16 = vadd.f32 %v5697_v48, %v1711_v10  ;;  %v1995_v45 = vadd.f32 %v1880_v27, %v1711_v10  ;;  %v1945_v52 = vpop.permute.xlu0 %1944 }
 0x1cb   : > { %2378 = vst [vmem:[#allocation4 + $0x8] sm:$0xff] %v5823_v38  ;;  %vm2090_vm4 = vmand %vm9980_vm11, %vm2042_vm15  ;;  %v1715_v57 = vpop.f32.mrf.mxu0  ;;  %vm9981_vm15 = vcmp.eq.s32.totalorder %v7148_v61, %v7142_v2 }
 0x1cc   : > { %v5824_v3 = vsel %vm2090_vm4, 1.0, %v6409_v11  ;;  %vm2043_vm12 = vcmp.lt.f32.partialorder %v1995_v45, 3.0  ;;  %v1996_v7 = vadd.f32 %v1885_v35, %v1715_v57  ;;  %2162 = vrot.lane.b32.xlu1 %v1825_v16, %s6410_s15 }
 0x1cd   : > { %2379 = vst [vmem:[#allocation4 + $0x10] sm:$0xff] %v5824_v3  ;;  %vm2091_vm13 = vmand %vm9979_vm6, %vm2043_vm12  ;;  %v1717_v20 = vpop.f32.mrf.mxu0  ;;  %vm9982_vm12 = vcmp.eq.s32.totalorder %v7151_v53, %v7142_v2 }
 0x1ce   : > { %v5825_v44 = vsel %vm2091_vm13, 1.0, %v6409_v11  ;;  %vm2044_vm9 = vcmp.lt.f32.partialorder %v1996_v7, 3.0  ;;  %v1997_v55 = vadd.f32 %v1885_v35, %v1717_v20 }
 0x1cf   : > { %2380 = vst [vmem:[#allocation4 + $0x18] sm:$0xff] %v5825_v44  ;;  %vm2092_vm11 = vmand %vm9981_vm15, %vm2044_vm9  ;;  %v1719_v34 = vpop.f32.mrf.mxu0  ;;  %v1765_v5 = vpop.f32.mrf.mxu1  ;;  %vm9983_vm9 = vcmp.eq.s32.totalorder %v7148_v61, %v7145_v19 }
 0x1d0   : > { %v5826_v56 = vsel %vm2092_vm11, 1.0, %v6409_v11  ;;  %vm2045_vm4 = vcmp.lt.f32.partialorder %v1997_v55, 3.0  ;;  %v1998_v32 = vadd.f32 %v1890_v25, %v1719_v34  ;;  %v2016_v6 = vadd.f32 %v1935_v60, %v1765_v5  ;;  %v1950_v5 = vpop.permute.xlu1 %1949 }
 0x1d1   : > { %2381 = vst [vmem:[#allocation4 + $0x20] sm:$0xff] %v5826_v56  ;;  %vm2093_vm6 = vmand %vm9982_vm12, %vm2045_vm4  ;;  %v1721_v1 = vpop.f32.mrf.mxu0  ;;  %vm9984_vm11 = vcmp.eq.s32.totalorder %v7264_v62, %v7189_v51  ;;  %v1767_v4 = vpop.f32.mrf.mxu1 }
 0x1d2   : > { %v5827_v15 = vsel %vm2093_vm6, 1.0, %v6409_v11  ;;  %vm2046_vm13 = vcmp.lt.f32.partialorder %v1998_v32, 3.0  ;;  %v1999_v12 = vadd.f32 %v1890_v25, %v1721_v1  ;;  %v5719_v63 = vsel %vm9984_vm11, 1.0, %v6409_v11 }
 0x1d3   : > { %2382 = vst [vmem:[#allocation4 + $0x28] sm:$0xff] %v5827_v15  ;;  %vm2094_vm15 = vmand %vm9983_vm9, %vm2046_vm13  ;;  %v1725_v13 = vpop.f32.mrf.mxu0  ;;  %vm2064_vm12 = vcmp.lt.f32.partialorder %v2016_v6, 3.0  ;;  %v1836_v46 = vadd.f32 %v5719_v63, %v1767_v4  ;;  %v2017_v35 = vadd.f32 %v1935_v60, %v1767_v4  ;;  %vm9985_vm6 = vcmp.eq.s32.totalorder %v7151_v53, %v7145_v19  ;;  %v1769_v25 = vpop.f32.mrf.mxu1 }
 0x1d4   : > { %v5828_v26 = vsel %vm2094_vm15, 1.0, %v6409_v11  ;;  %vm2047_vm4 = vcmp.lt.f32.partialorder %v1999_v12, 3.0  ;;  %v2000_v59 = vadd.f32 %v7532_v22, %v1725_v13  ;;  %vm9986_vm9 = vcmp.eq.s32.totalorder %v7261_v29, %v7189_v51 }
 0x1d5   : > { %2383 = vst [vmem:[#allocation4 + $0x30] sm:$0xff] %v5828_v26  ;;  %vm2095_vm13 = vmand %vm9985_vm6, %vm2047_vm4  ;;  %v7594_v27 = vpop.f32.mrf.mxu0  ;;  %vm9987_vm15 = vcmp.eq.s32.totalorder %v7151_v53, %v7142_v2  ;;  %vm2065_vm4 = vcmp.lt.f32.partialorder %v2017_v35, 3.0  ;;  %v2018_v40 = vadd.f32 %v1940_v36, %v1769_v25  ;;  %2184 = vrot.lane.b32.xlu0 %v1836_v46, %s6410_s15  ;;  %v1771_v54 = vpop.f32.mrf.mxu1 }
 0x1d6   : > { %vm2112_vm11 = vmand %vm9986_vm9, %vm2064_vm12  ;;  %v5699_v31 = vsel %vm9987_vm15, 1.0, %v6409_v11  ;;  %v5829_v8 = vsel %vm2095_vm13, 1.0, %v6409_v11  ;;  %vm2048_vm1 = vcmp.lt.f32.partialorder %v2000_v59, 3.0  ;;  %v2001_v50 = vadd.f32 %v7532_v22, %v7594_v27 }
 0x1d7   : > { %v5846_v18 = vsel %vm2112_vm11, 1.0, %v6409_v11  ;;  %v1826_v43 = vadd.f32 %v5699_v31, %v1717_v20  ;;  %2384 = vst [vmem:[#allocation4 + $0x38] sm:$0xff] %v5829_v8  ;;  %vm9988_vm12 = vcmp.eq.s32.totalorder %v7148_v61, %v7189_v51  ;;  %v1729_v9 = vpop.f32.mrf.mxu0  ;;  %vm9989_vm13 = vcmp.eq.s32.totalorder %v7264_v62, %v7189_v51  ;;  %v1775_v3 = vpop.f32.mrf.mxu1 }
 0x1d8   : > { %vm2096_vm6 = vmand %vm9988_vm12, %vm2048_vm1  ;;  %2401 = vst [vmem:[#allocation4 + $0xc0] sm:$0xff] %v5846_v18  ;;  %vm9990_vm11 = vcmp.eq.s32.totalorder %v7264_v62, %v7204_v42  ;;  %vm2049_vm15 = vcmp.lt.f32.partialorder %v2001_v50, 3.0  ;;  %v2002_v10 = vadd.f32 %v7534_v23, %v1729_v9  ;;  %vm2066_vm1 = vcmp.lt.f32.partialorder %v2018_v40, 3.0 }
 0x1d9   : > { %vm2113_vm9 = vmand %vm9989_vm13, %vm2065_vm4  ;;  %v5721_v22 = vsel %vm9990_vm11, 1.0, %v6409_v11  ;;  %v5830_v48 = vsel %vm2096_vm6, 1.0, %v6409_v11  ;;  %v2019_v45 = vadd.f32 %v1940_v36, %v1771_v54  ;;  %vm9991_vm4 = vcmp.eq.s32.totalorder %v7151_v53, %v7189_v51  ;;  %v7624_v57 = vpop.f32.mrf.mxu0  ;;  %2164 = vrot.lane.b32.xlu0 %v1826_v43, %s6410_s15  ;;  %v1777_v32 = vpop.f32.mrf.mxu1 }
 0x1da   : > { %v5847_v38 = vsel %vm2113_vm9, 1.0, %v6409_v11  ;;  %v1837_v16 = vadd.f32 %v5721_v22, %v1771_v54  ;;  %2385 = vst [vmem:[#allocation4 + $0x40] sm:$0xff] %v5830_v48  ;;  %vm2097_vm12 = vmand %vm9991_vm4, %vm2049_vm15  ;;  %vm9992_vm13 = vcmp.eq.s32.totalorder %v7261_v29, %v7204_v42  ;;  %vm9993_vm9 = vcmp.eq.s32.totalorder %v7151_v53, %v7145_v19 }
 0x1db   : > { %2402 = vst [vmem:[#allocation4 + $0xc8] sm:$0xff] %v5847_v38  ;;  %vm2114_vm6 = vmand %vm9992_vm13, %vm2066_vm1  ;;  %v5701_v7 = vsel %vm9993_vm9, 1.0, %v6409_v11  ;;  %v5831_v20 = vsel %vm2097_vm12, 1.0, %v6409_v11  ;;  %vm2050_vm11 = vcmp.lt.f32.partialorder %v2002_v10, 3.0  ;;  %v2003_v44 = vadd.f32 %v7534_v23, %v7624_v57  ;;  %v1735_v56 = vpop.f32.mrf.mxu0  ;;  %v1779_v4 = vpop.f32.mrf.mxu1 }
 0x1dc   : > { %v5848_v55 = vsel %vm2114_vm6, 1.0, %v6409_v11  ;;  %vm2067_vm15 = vcmp.lt.f32.partialorder %v2019_v45, 3.0  ;;  %v2020_v34 = vadd.f32 %v1945_v52, %v1775_v3  ;;  %2186 = vrot.lane.b32.xlu1 %v1837_v16, %s6410_s15  ;;  %v1827_v60 = vadd.f32 %v5701_v7, %v1721_v1  ;;  %2386 = vst [vmem:[#allocation4 + $0x48] sm:$0xff] %v5831_v20 }
 0x1dd   : > { %vm9994_vm1 = vcmp.eq.s32.totalorder %v7148_v61, %v7204_v42  ;;  %2403 = vst [vmem:[#allocation4 + $0xd0] sm:$0xff] %v5848_v55  ;;  %vm9995_vm12 = vcmp.eq.s32.totalorder %v7264_v62, %v7204_v42  ;;  %vm9996_vm6 = vcmp.eq.s32.totalorder %v7264_v62, %v7239_v58  ;;  %vm2051_vm9 = vcmp.lt.f32.partialorder %v2003_v44, 3.0  ;;  %v7655_v63 = vpop.f32.mrf.mxu0  ;;  %v1781_v8 = vpop.f32.mrf.mxu1 }
 0x1de   : > { %vm2098_vm4 = vmand %vm9994_vm1, %vm2050_vm11  ;;  %v5723_v23 = vsel %vm9996_vm6, 1.0, %v6409_v11  ;;  %v2004_v15 = vadd.f32 %v7536_v28, %v1735_v56  ;;  %vm2068_vm11 = vcmp.lt.f32.partialorder %v2020_v34, 3.0  ;;  %v2021_v13 = vadd.f32 %v1945_v52, %v1777_v32 }
 0x1df   : > { %vm2115_vm13 = vmand %vm9995_vm12, %vm2067_vm15  ;;  %v5832_v1 = vsel %vm2098_vm4, 1.0, %v6409_v11  ;;  %v1838_v6 = vadd.f32 %v5723_v23, %v1777_v32  ;;  %vm9997_vm15 = vcmp.eq.s32.totalorder %v7151_v53, %v7204_v42  ;;  %vm9998_vm12 = vcmp.eq.s32.totalorder %v7261_v29, %v7239_v58  ;;  %v1739_v31 = vpop.f32.mrf.mxu0 }
 0x1e0   : > { %v5849_v12 = vsel %vm2115_vm13, 1.0, %v6409_v11  ;;  %2387 = vst [vmem:[#allocation4 + $0x50] sm:$0xff] %v5832_v1  ;;  %vm2099_vm1 = vmand %vm9997_vm15, %vm2051_vm9  ;;  %vm9999_vm13 = vcmp.eq.s32.totalorder %v7151_v53, %v7189_v51  ;;  %vm2052_vm6 = vcmp.lt.f32.partialorder %v2004_v15, 3.0  ;;  %v2005_v59 = vadd.f32 %v7536_v28, %v7655_v63  ;;  %2166 = vrot.lane.b32.xlu1 %v1827_v60, %s6410_s15 }
 0x1e1   : > { %2404 = vst [vmem:[#allocation4 + $0xd8] sm:$0xff] %v5849_v12  ;;  %vm2116_vm4 = vmand %vm9998_vm12, %vm2068_vm11  ;;  %v5703_v36 = vsel %vm9999_vm13, 1.0, %v6409_v11  ;;  %v5833_v26 = vsel %vm2099_vm1, 1.0, %v6409_v11  ;;  %vm2069_vm9 = vcmp.lt.f32.partialorder %v2021_v13, 3.0  ;;  %v2022_v35 = vadd.f32 %v1950_v5, %v1779_v4  ;;  %2188 = vrot.lane.b32.xlu0 %v1838_v6, %s6410_s15  ;;  %v7687_v9 = vpop.f32.mrf.mxu0 }
 0x1e2   : > { %v5850_v46 = vsel %vm2116_vm4, 1.0, %v6409_v11  ;;  %v1828_v25 = vadd.f32 %v5703_v36, %v7594_v27  ;;  %2388 = vst [vmem:[#allocation4 + $0x58] sm:$0xff] %v5833_v26  ;;  %vm10000_vm11 = vcmp.eq.s32.totalorder %v7148_v61, %v7239_v58  ;;  %vm10001_vm1 = vcmp.eq.s32.totalorder %v7264_v62, %v7239_v58  ;;  %v1955_v36 = vpop.permute.xlu0 %1954 }
 0x1e3   : > { %vm2100_vm15 = vmand %vm10000_vm11, %vm2052_vm6  ;;  %2405 = vst [vmem:[#allocation4 + $0xe0] sm:$0xff] %v5850_v46  ;;  %vm10002_vm4 = vcmp.eq.s32.totalorder %v7264_v62, %v7253_v41  ;;  %vm2053_vm13 = vcmp.lt.f32.partialorder %v2005_v59, 3.0  ;;  %v2006_v27 = vadd.f32 %v7538_v17, %v1739_v31  ;;  %vm2070_vm6 = vcmp.lt.f32.partialorder %v2022_v35, 3.0  ;;  %v1745_v38 = vpop.f32.mrf.mxu0  ;;  %v1960_v35 = vpop.permute.xlu1 %1959 }
 0x1e4   : > { %vm2117_vm12 = vmand %vm10001_vm1, %vm2069_vm9  ;;  %v5725_v28 = vsel %vm10002_vm4, 1.0, %v6409_v11  ;;  %v5834_v50 = vsel %vm2100_vm15, 1.0, %v6409_v11  ;;  %v2023_v43 = vadd.f32 %v1950_v5, %v1781_v8  ;;  %vm10003_vm9 = vcmp.eq.s32.totalorder %v7151_v53, %v7239_v58 }
 0x1e5   : > { %v5851_v18 = vsel %vm2117_vm12, 1.0, %v6409_v11  ;;  %v1839_v40 = vadd.f32 %v5725_v28, %v1781_v8  ;;  %2389 = vst [vmem:[#allocation4 + $0x60] sm:$0xff] %v5834_v50  ;;  %vm2101_vm11 = vmand %vm10003_vm9, %vm2053_vm13  ;;  %vm10004_vm1 = vcmp.eq.s32.totalorder %v7261_v29, %v7253_v41  ;;  %vm10005_vm4 = vcmp.eq.s32.totalorder %v7151_v53, %v7204_v42  ;;  %2168 = vrot.lane.b32.xlu0 %v1828_v25, %s6410_s15 }
 0x1e6   : > { %2406 = vst [vmem:[#allocation4 + $0xe8] sm:$0xff] %v5851_v18  ;;  %vm2118_vm15 = vmand %vm10004_vm1, %vm2070_vm6  ;;  %v5705_v22 = vsel %vm10005_vm4, 1.0, %v6409_v11  ;;  %v5835_v54 = vsel %vm2101_vm11, 1.0, %v6409_v11  ;;  %vm2054_vm12 = vcmp.lt.f32.partialorder %v2006_v27, 3.0  ;;  %v2007_v52 = vadd.f32 %v7538_v17, %v7687_v9 }
 0x1e7   : > { %v5852_v48 = vsel %vm2118_vm15, 1.0, %v6409_v11  ;;  %vm2071_vm13 = vcmp.lt.f32.partialorder %v2023_v43, 3.0  ;;  %2190 = vrot.lane.b32.xlu1 %v1839_v40, %s6410_s15  ;;  %v1829_v10 = vadd.f32 %v5705_v22, %v7624_v57  ;;  %2390 = vst [vmem:[#allocation4 + $0x68] sm:$0xff] %v5835_v54  ;;  %vm10006_vm6 = vcmp.eq.s32.totalorder %v7148_v61, %v7253_v41  ;;  %v7715_v61 = vpop.f32.mrf.mxu0  ;;  %v1965_v22 = vpop.permute.xlu0 %1964 }
 0x1e8   : > { %vm2102_vm9 = vmand %vm10006_vm6, %vm2054_vm12  ;;  %2407 = vst [vmem:[#allocation4 + $0xf0] sm:$0xff] %v5852_v48  ;;  %vm10007_vm11 = vcmp.eq.s32.totalorder %v7264_v62, %v7253_v41  ;;  %vm2055_vm15 = vcmp.lt.f32.partialorder %v2007_v52, 3.0  ;;  %v2008_v16 = vadd.f32 %v7540_v30, %v1745_v38  ;;  %vm10008_vm4 = vcmp.eq.s32.totalorder %v7151_v53, %v7253_v41 }
 0x1e9   : > { %vm2119_vm1 = vmand %vm10007_vm11, %vm2071_vm13  ;;  %v5836_v17 = vsel %vm2102_vm9, 1.0, %v6409_v11  ;;  %v2009_v3 = vadd.f32 %v7540_v30, %v7715_v61  ;;  %v1749_v7 = vpop.f32.mrf.mxu0 }
 0x1ea   : > { %v5853_v45 = vsel %vm2119_vm1, 1.0, %v6409_v11  ;;  %2391 = vst [vmem:[#allocation4 + $0x70] sm:$0xff] %v5836_v17  ;;  %vm2103_vm3 = vmand %vm10008_vm4, %vm2055_vm15  ;;  %vm2056_vm12 = vcmp.lt.f32.partialorder %v2008_v16, 3.0  ;;  %v2010_v44 = vadd.f32 %v7549_v49, %v1749_v7  ;;  %vm10010_vm15 = vcmp.eq.s32.totalorder %v7264_v62, %v7131_v24 }
 0x1eb   : > { %2408 = vst [vmem:[#allocation4 + $0xf8] sm:$0xff] %v5853_v45  ;;  %v5837_v57 = vsel %vm2103_vm3, 1.0, %v6409_v11  ;;  %2170 = vrot.lane.b32.xlu1 %v1829_v10, %s6410_s15  ;;  %vm2104_vm13 = vmand %vm1009_vm7, %vm2056_vm12  ;;  %vm2057_vm6 = vcmp.lt.f32.partialorder %v2009_v3, 3.0  ;;  %vm10009_vm3 = vcmp.eq.s32.totalorder %v7264_v62, %v6810_v14  ;;  %v7729_v55 = vpop.f32.mrf.mxu0 }
 0x1ec   : > { %2392 = vst [vmem:[#allocation4 + $0x78] sm:$0xff] %v5837_v57  ;;  %v5838_v20 = vsel %vm2104_vm13, 1.0, %v6409_v11  ;;  %vm2105_vm9 = vmand %vm10009_vm3, %vm2057_vm6  ;;  %vm2058_vm11 = vcmp.lt.f32.partialorder %v2010_v44, 3.0  ;;  %v2011_v34 = vadd.f32 %v7549_v49, %v7729_v55  ;;  %v1970_v57 = vpop.permute.xlu1 %1969 }
 0x1ed   : > { %2393 = vst [vmem:[#allocation4 + $0x80] sm:$0xff] %v5838_v20  ;;  %v5839_v30 = vsel %vm2105_vm9, 1.0, %v6409_v11  ;;  %vm2106_vm7 = vmand %vm1011_vm8, %vm2058_vm11  ;;  %v1755_v60 = vpop.f32.mrf.mxu0 }
 0x1ee   : > { %2394 = vst [vmem:[#allocation4 + $0x88] sm:$0xff] %v5839_v30  ;;  %v5840_v56 = vsel %vm2106_vm7, 1.0, %v6409_v11  ;;  %vm2059_vm1 = vcmp.lt.f32.partialorder %v2011_v34, 3.0  ;;  %v2012_v23 = vadd.f32 %v7560_v47, %v1755_v60  ;;  %vm10011_vm7 = vcmp.eq.s32.totalorder %v7442_v21, %v6810_v14 }
 0x1ef   : > { %2395 = vst [vmem:[#allocation4 + $0x90] sm:$0xff] %v5840_v56  ;;  %vm2107_vm4 = vmand %vm10010_vm15, %vm2059_vm1  ;;  %v7742_v32 = vpop.f32.mrf.mxu0  ;;  %v5727_v29 = vsel %vm10011_vm7, 1.0, %v6409_v11  ;;  %vm10012_vm1 = vcmp.eq.s32.totalorder %v7439_v0, %v6810_v14 }
 0x1f0   : > { %v5841_v49 = vsel %vm2107_vm4, 1.0, %v6409_v11  ;;  %vm2060_vm12 = vcmp.lt.f32.partialorder %v2012_v23, 3.0  ;;  %v2013_v5 = vadd.f32 %v7560_v47, %v7742_v32  ;;  %vm10013_vm4 = vcmp.eq.s32.totalorder %v7151_v53, %v7239_v58 }
 0x1f1   : > { %2396 = vst [vmem:[#allocation4 + $0x98] sm:$0xff] %v5841_v49  ;;  %vm2108_vm8 = vmand %vm1013_vm0, %vm2060_vm12  ;;  %v1759_v1 = vpop.f32.mrf.mxu0  ;;  %v5707_v8 = vsel %vm10013_vm4, 1.0, %v6409_v11  ;;  %v1975_v49 = vpop.permute.xlu0 %1974 }
 0x1f2   : > { %v5842_v15 = vsel %vm2108_vm8, 1.0, %v6409_v11  ;;  %vm2061_vm13 = vcmp.lt.f32.partialorder %v2013_v5, 3.0  ;;  %v2014_v12 = vadd.f32 %v7571_v39, %v1759_v1  ;;  %v1830_v18 = vadd.f32 %v5707_v8, %v7655_v63  ;;  %vm10014_vm8 = vmmov %vm10011_vm7 }
 0x1f3   : > { %2397 = vst [vmem:[#allocation4 + $0xa0] sm:$0xff] %v5842_v15  ;;  %vm2109_vm6 = vmand %vm1014_vm14, %vm2061_vm13  ;;  %v7755_v6 = vpop.f32.mrf.mxu0 }
 0x1f4   : > { %v5843_v47 = vsel %vm2109_vm6, 1.0, %v6409_v11  ;;  %vm2062_vm3 = vcmp.lt.f32.partialorder %v2014_v12, 3.0  ;;  %v2015_v13 = vadd.f32 %v7571_v39, %v7755_v6  ;;  %vm10015_vm6 = vcmp.eq.s32.totalorder %v7442_v21, %v7131_v24 }
 0x1f5   : > { %2398 = vst [vmem:[#allocation4 + $0xa8] sm:$0xff] %v5843_v47  ;;  %vm2110_vm0 = vmand %vm1015_vm2, %vm2062_vm3  ;;  %v1785_v59 = vpop.f32.mrf.mxu1  ;;  %v5729_v40 = vsel %vm10015_vm6, 1.0, %v6409_v11  ;;  %v1985_v8 = vpop.permute.xlu0 %1984 }
 0x1f6   : > { %v5844_v4 = vsel %vm2110_vm0, 1.0, %v6409_v11  ;;  %vm2063_vm9 = vcmp.lt.f32.partialorder %v2015_v13, 3.0  ;;  %v2024_v46 = vadd.f32 %v1955_v36, %v1785_v59  ;;  %vm10016_vm0 = vcmp.eq.s32.totalorder %v7439_v0, %v7131_v24 }
 0x1f7   : > { %2399 = vst [vmem:[#allocation4 + $0xb0] sm:$0xff] %v5844_v4  ;;  %vm2111_vm11 = vmand %vm1016_vm5, %vm2063_vm9  ;;  %v1787_v39 = vpop.f32.mrf.mxu1 }
 0x1f8   : > { %v5845_v26 = vsel %vm2111_vm11, 1.0, %v6409_v11  ;;  %vm2072_vm2 = vcmp.lt.f32.partialorder %v2024_v46, 3.0  ;;  %v1840_v25 = vadd.f32 %v5727_v29, %v1787_v39  ;;  %v2025_v31 = vadd.f32 %v1955_v36, %v1787_v39 }
 0x1f9   : > { %2400 = vst [vmem:[#allocation4 + $0xb8] sm:$0xff] %v5845_v26  ;;  %vm2120_vm15 = vmand %vm10012_vm1, %vm2072_vm2  ;;  %v1789_v28 = vpop.f32.mrf.mxu1  ;;  %vm10017_vm11 = vcmp.eq.s32.totalorder %v7151_v53, %v7253_v41  ;;  %v1980_v26 = vpop.permute.xlu1 %1979  ;;  %v5715_v39 = vsel %vm1014_vm14, 1.0, %v6409_v11 }
 0x1fa   : > { %v5854_v50 = vsel %vm2120_vm15, 1.0, %v6409_v11  ;;  %vm2073_vm12 = vcmp.lt.f32.partialorder %v2025_v31, 3.0  ;;  %v2026_v27 = vadd.f32 %v1960_v35, %v1789_v28  ;;  %2192 = vrot.lane.b32.xlu0 %v1840_v25, %s6410_s15  ;;  %v5709_v10 = vsel %vm10017_vm11, 1.0, %v6409_v11  ;;  %vm10018_vm2 = vmmov %vm10015_vm6 }
 0x1fb   : > { %2409 = vst [vmem:[#allocation4 + $0x100] sm:$0xff] %v5854_v50  ;;  %vm2121_vm13 = vmand %vm10014_vm8, %vm2073_vm12  ;;  %v1791_v43 = vpop.f32.mrf.mxu1  ;;  %v1831_v16 = vadd.f32 %v5709_v10, %v7687_v9  ;;  %vm10019_vm15 = vcmp.eq.s32.totalorder %v7442_v21, %v7142_v2  ;;  %vm10020_vm12 = vcmp.eq.s32.totalorder %v7439_v0, %v7142_v2  ;;  %v1834_v31 = vadd.f32 %v5715_v39, %v7742_v32 }
 0x1fc   : > { %v5855_v54 = vsel %vm2121_vm13, 1.0, %v6409_v11  ;;  %vm2074_vm3 = vcmp.lt.f32.partialorder %v2026_v27, 3.0  ;;  %v1841_v52 = vadd.f32 %v5729_v40, %v1791_v43  ;;  %v2027_v48 = vadd.f32 %v1960_v35, %v1791_v43 }
 0x1fd   : > { %2410 = vst [vmem:[#allocation4 + $0x108] sm:$0xff] %v5855_v54  ;;  %vm2122_vm9 = vmand %vm10016_vm0, %vm2074_vm3  ;;  %v1795_v63 = vpop.f32.mrf.mxu1  ;;  %v5731_v53 = vsel %vm10019_vm15, 1.0, %v6409_v11  ;;  %vm10021_vm13 = vcmp.eq.s32.totalorder %v7264_v62, %v6810_v14  ;;  %v1990_v54 = vpop.permute.xlu1 %1989 }
 0x1fe   : > { %v5856_v38 = vsel %vm2122_vm9, 1.0, %v6409_v11  ;;  %vm2075_vm7 = vcmp.lt.f32.partialorder %v2027_v48, 3.0  ;;  %v2028_v17 = vadd.f32 %v1965_v22, %v1795_v63  ;;  %2194 = vrot.lane.b32.xlu1 %v1841_v52, %s6410_s15  ;;  %2172 = vrot.lane.b32.xlu0 %v1830_v18, %s6410_s15  ;;  %v5711_v44 = vsel %vm10021_vm13, 1.0, %v6409_v11  ;;  %vm10022_vm3 = vmmov %vm10019_vm15 }
 0x1ff   : > { %2411 = vst [vmem:[#allocation4 + $0x110] sm:$0xff] %v5856_v38  ;;  %vm2123_vm1 = vmand %vm10018_vm2, %vm2075_vm7  ;;  %v1797_v45 = vpop.f32.mrf.mxu1  ;;  %v1832_v60 = vadd.f32 %v5711_v44, %v7715_v61  ;;  %vm10023_vm9 = vcmp.eq.s32.totalorder %v7442_v21, %v7145_v19  ;;  %vm10024_vm7 = vcmp.eq.s32.totalorder %v7439_v0, %v7145_v19 }
 0x200   : > { %v5857_v3 = vsel %vm2123_vm1, 1.0, %v6409_v11  ;;  %vm2076_vm4 = vcmp.lt.f32.partialorder %v2028_v17, 3.0  ;;  %v1842_v7 = vadd.f32 %v5731_v53, %v1797_v45  ;;  %v2029_v20 = vadd.f32 %v1965_v22, %v1797_v45 }
 0x201   : > { %2412 = vst [vmem:[#allocation4 + $0x118] sm:$0xff] %v5857_v3  ;;  %vm2124_vm8 = vmand %vm10020_vm12, %vm2076_vm4  ;;  %v1799_v9 = vpop.f32.mrf.mxu1  ;;  %v5733_v56 = vsel %vm10023_vm9, 1.0, %v6409_v11  ;;  %vm10025_vm1 = vcmp.eq.s32.totalorder %v7264_v62, %v7131_v24 }
 0x202   : > { %v5858_v30 = vsel %vm2124_vm8, 1.0, %v6409_v11  ;;  %vm2077_vm6 = vcmp.lt.f32.partialorder %v2029_v20, 3.0  ;;  %v2030_v34 = vadd.f32 %v1970_v57, %v1799_v9  ;;  %2196 = vrot.lane.b32.xlu0 %v1842_v7, %s6410_s15  ;;  %2174 = vrot.lane.b32.xlu1 %v1831_v16, %s6410_s15  ;;  %v5713_v12 = vsel %vm10025_vm1, 1.0, %v6409_v11  ;;  %vm10026_vm4 = vmmov %vm10023_vm9  ;;  %v6154_v7 = vld [vmem:[#allocation3] sm:$0xff]  ;;  %v6155_v9 = vld [vmem:[#allocation3 + $0x8] sm:$0xff] }
 0x203   : > { %2413 = vst [vmem:[#allocation4 + $0x120] sm:$0xff] %v5858_v30  ;;  %vm2125_vm0 = vmand %vm10022_vm3, %vm2077_vm6  ;;  %v1801_v23 = vpop.f32.mrf.mxu1  ;;  %v1833_v4 = vadd.f32 %v5713_v12, %v7729_v55  ;;  %vm10027_vm8 = vcmp.eq.s32.totalorder %v7442_v21, %v7189_v51  ;;  %vm10029_vm9 = vcmp.eq.s32.totalorder %v7442_v21, %v7204_v42  ;;  %v5717_v51 = vsel %vm1016_vm5, 1.0, %v6409_v11  ;;  %v6160_v12 = vld [vmem:[#allocation3 + $0x18] sm:$0xff] }
 0x204   : > { %v5859_v5 = vsel %vm2125_vm0, 1.0, %v6409_v11  ;;  %vm2078_vm11 = vcmp.lt.f32.partialorder %v2030_v34, 3.0  ;;  %v1843_v1 = vadd.f32 %v5733_v56, %v1801_v23  ;;  %v2031_v15 = vadd.f32 %v1970_v57, %v1801_v23  ;;  %vm10031_vm1 = vmmov %vm10029_vm9  ;;  %v6156_v34 = vld [vmem:[#allocation3 + $0x60] sm:$0xff]  ;;  %v6158_v23 = vld [vmem:[#allocation3 + $0x10] sm:$0xff] }
 0x205   : > { %2414 = vst [vmem:[#allocation4 + $0x128] sm:$0xff] %v5859_v5  ;;  %vm2126_vm2 = vmand %vm10024_vm7, %vm2078_vm11  ;;  %v1805_v61 = vpop.f32.mrf.mxu1  ;;  %v5735_v24 = vsel %vm10027_vm8, 1.0, %v6409_v11  ;;  %v5737_v2 = vsel %vm10029_vm9, 1.0, %v6409_v11  ;;  %vm10030_vm11 = vcmp.eq.s32.totalorder %v7439_v0, %v7204_v42  ;;  %v1835_v22 = vadd.f32 %v5717_v51, %v7755_v6  ;;  %v6167_v51 = vld [vmem:[#allocation3 + $0x90] sm:$0xff] }
 0x206   : > { %v5860_v47 = vsel %vm2126_vm2, 1.0, %v6409_v11  ;;  %vm2079_vm15 = vcmp.lt.f32.partialorder %v2031_v15, 3.0  ;;  %v2032_v13 = vadd.f32 %v1975_v49, %v1805_v61  ;;  %2198 = vrot.lane.b32.xlu1 %v1843_v1, %s6410_s15  ;;  %2176 = vrot.lane.b32.xlu0 %v1832_v60, %s6410_s15  ;;  %vm10036_vm9 = vcmp.eq.s32.totalorder %v7439_v0, %v7253_v41  ;;  %v6159_v15 = vld [vmem:[#allocation3 + $0x70] sm:$0xff] }
 0x207   : > { %2415 = vst [vmem:[#allocation4 + $0x130] sm:$0xff] %v5860_v47  ;;  %vm2127_vm12 = vmand %vm10026_vm4, %vm2079_vm15  ;;  %v1807_v36 = vpop.f32.mrf.mxu1  ;;  %vm10032_vm4 = vcmp.eq.s32.totalorder %v7442_v21, %v7239_v58 }
 0x208   : > { %v5861_v59 = vsel %vm2127_vm12, 1.0, %v6409_v11  ;;  %vm2080_vm13 = vcmp.lt.f32.partialorder %v2032_v13, 3.0  ;;  %v1844_v46 = vadd.f32 %v5735_v24, %v1807_v36  ;;  %v2033_v29 = vadd.f32 %v1975_v49, %v1807_v36  ;;  %v6161_v24 = vld [vmem:[#allocation3 + $0x78] sm:$0xff] }
 0x209   : > { %2416 = vst [vmem:[#allocation4 + $0x138] sm:$0xff] %v5861_v59  ;;  %vm2128_vm6 = vmand %vm1351_vm10, %vm2080_vm13  ;;  %v1809_v55 = vpop.f32.mrf.mxu1  ;;  %v5739_v19 = vsel %vm10032_vm4, 1.0, %v6409_v11  ;;  %vm10033_vm12 = vcmp.eq.s32.totalorder %v7439_v0, %v7239_v58 }
 0x20a   : > { %v5862_v35 = vsel %vm2128_vm6, 1.0, %v6409_v11  ;;  %vm2081_vm3 = vcmp.lt.f32.partialorder %v2033_v29, 3.0  ;;  %v2034_v25 = vadd.f32 %v1980_v26, %v1809_v55  ;;  %2200 = vrot.lane.b32.xlu0 %v1844_v46, %s6410_s15  ;;  %2178 = vrot.lane.b32.xlu1 %v1833_v4, %s6410_s15  ;;  %vm10028_vm10 = vmmov %vm10027_vm8  ;;  %v6163_v29 = vld [vmem:[#allocation3 + $0x28] sm:$0xff] }
 0x20b   : > { %2417 = vst [vmem:[#allocation4 + $0x140] sm:$0xff] %v5862_v35  ;;  %vm2129_vm0 = vmand %vm10028_vm10, %vm2081_vm3  ;;  %v1811_v28 = vpop.f32.mrf.mxu1  ;;  %vm10035_vm10 = vcmp.eq.s32.totalorder %v7442_v21, %v7253_v41  ;;  %v6164_v35 = vld [vmem:[#allocation3 + $0x80] sm:$0xff] }
 0x20c   : > { %v5863_v50 = vsel %vm2129_vm0, 1.0, %v6409_v11  ;;  %vm2082_vm14 = vcmp.lt.f32.partialorder %v2034_v25, 3.0  ;;  %v1845_v27 = vadd.f32 %v5737_v2, %v1811_v28  ;;  %v2035_v18 = vadd.f32 %v1980_v26, %v1811_v28  ;;  %vm10034_vm6 = vmmov %vm10032_vm4  ;;  %v6162_v26 = vld [vmem:[#allocation3 + $0x20] sm:$0xff]  ;;  %v6165_v28 = vld [vmem:[#allocation3 + $0x88] sm:$0xff] }
 0x20d   : > { %2418 = vst [vmem:[#allocation4 + $0x148] sm:$0xff] %v5863_v50  ;;  %vm2130_vm7 = vmand %vm10030_vm11, %vm2082_vm14  ;;  %v1815_v32 = vpop.f32.mrf.mxu1  ;;  %v5741_v38 = vsel %vm10035_vm10, 1.0, %v6409_v11  ;;  %v6166_v50 = vld [vmem:[#allocation3 + $0x30] sm:$0xff] }
 0x20e   : > { %v5864_v40 = vsel %vm2130_vm7, 1.0, %v6409_v11  ;;  %vm2083_vm2 = vcmp.lt.f32.partialorder %v2035_v18, 3.0  ;;  %v2036_v43 = vadd.f32 %v1985_v8, %v1815_v32  ;;  %2202 = vrot.lane.b32.xlu1 %v1845_v27, %s6410_s15  ;;  %2180 = vrot.lane.b32.xlu0 %v1834_v31, %s6410_s15  ;;  %vm10037_vm7 = vmmov %vm10035_vm10 }
 0x20f   : > { %2419 = vst [vmem:[#allocation4 + $0x150] sm:$0xff] %v5864_v40  ;;  %vm2131_vm15 = vmand %vm10031_vm1, %vm2083_vm2  ;;  %v1817_v62 = vpop.f32.mrf.mxu1  ;;  %vm2256_vm1 = vcmask 7168  }
 0x210   : > { %v5865_v52 = vsel %vm2131_vm15, 1.0, %v6409_v11  ;;  %vm2084_vm5 = vcmp.lt.f32.partialorder %v2036_v43, 3.0  ;;  %v1846_v48 = vadd.f32 %v5739_v19, %v1817_v62  ;;  %v2037_v63 = vadd.f32 %v1985_v8, %v1817_v62  ;;  %v6168_v43 = vld [vmem:[#allocation3 + $0x38] sm:$0xff] }
 0x211   : > { %2420 = vst [vmem:[#allocation4 + $0x158] sm:$0xff] %v5865_v52  ;;  %vm2132_vm8 = vmand %vm10033_vm12, %vm2084_vm5  ;;  %v1819_v6 = vpop.f32.mrf.mxu1 }
 0x212   : > { %v5866_v42 = vsel %vm2132_vm8, 1.0, %v6409_v11  ;;  %vm2085_vm13 = vcmp.lt.f32.partialorder %v2037_v63, 3.0  ;;  %v2038_v10 = vadd.f32 %v1990_v54, %v1819_v6  ;;  %2204 = vrot.lane.b32.xlu0 %v1846_v48, %s6410_s15  ;;  %2182 = vrot.lane.b32.xlu1 %v1835_v22, %s6410_s15  ;;  %v6170_v48 = vld [vmem:[#allocation3 + $0x40] sm:$0xff] }
 0x213   : > { %2421 = vst [vmem:[#allocation4 + $0x160] sm:$0xff] %v5866_v42  ;;  %vm2133_vm3 = vmand %vm10034_vm6, %vm2085_vm13  ;;  %v1821_v17 = vpop.f32.mrf.mxu1 }
 0x214   : > { %v5867_v16 = vsel %vm2133_vm3, 1.0, %v6409_v11  ;;  %vm2086_vm0 = vcmp.lt.f32.partialorder %v2038_v10, 3.0  ;;  %v1847_v53 = vadd.f32 %v5741_v38, %v1821_v17  ;;  %v2039_v45 = vadd.f32 %v1990_v54, %v1821_v17  ;;  %v6169_v54 = vld [vmem:[#allocation3 + $0x98] sm:$0xff]  ;;  %v6171_v10 = vld [vmem:[#allocation3 + $0xa0] sm:$0xff]  ;;  %v6172_v17 = vld [vmem:[#allocation3 + $0x48] sm:$0xff] }
 0x215   : > { %2422 = vst [vmem:[#allocation4 + $0x168] sm:$0xff] %v5867_v16  ;;  %vm2134_vm14 = vmand %vm10036_vm9, %vm2086_vm0 }
 0x216   : > { %v5868_v57 = vsel %vm2134_vm14, 1.0, %v6409_v11  ;;  %vm2087_vm11 = vcmp.lt.f32.partialorder %v2039_v45, 3.0  ;;  %2206 = vrot.lane.b32.xlu1 %v1847_v53, %s6410_s15 }
 0x217   : > { %2423 = vst [vmem:[#allocation4 + $0x170] sm:$0xff] %v5868_v57  ;;  %vm2135_vm2 = vmand %vm10037_vm7, %vm2087_vm11  ;;  %v6173_v57 = vld [vmem:[#allocation3 + $0xa8] sm:$0xff] }
 0x218   : > { %v5869_v58 = vsel %vm2135_vm2, 1.0, %v6409_v11  ;;  %v6157_v11 = vld [vmem:[#allocation3 + $0x68] sm:$0xff] }
 0x219   : > { %2424 = vst [vmem:[#allocation4 + $0x178] sm:$0xff] %v5869_v58 }
 0x23a   : > { %v2161_v3 = vpop.permute.xlu0 %2160 }
 0x23b   : > { %v2232_v20 = vadd.f32 %v6154_v7, %v2161_v3  ;;  %v6174_v3 = vld [vmem:[#allocation3 + $0x50] sm:$0xff] }
 0x23d   : > { %2257 = vst.msk [vmem:[#allocation3] sm:$0xff] %vm2256_vm1, %v2232_v20 }
 0x23e   : > { %v2163_v0 = vpop.permute.xlu1 %2162 }
 0x23f   : > { %v2233_v44 = vadd.f32 %v6155_v9, %v2163_v0  ;;  %v6175_v9 = vld [vmem:[#allocation3 + $0xb0] sm:$0xff] }
 0x241   : > { %2258 = vst.msk [vmem:[#allocation3 + $0x8] sm:$0xff] %vm2256_vm1, %v2233_v44 }
 0x247   : > { %v2185_v30 = vpop.permute.xlu0 %2184 }
 0x248   : > { %v2244_v60 = vadd.f32 %v6156_v34, %v2185_v30  ;;  %v6176_v30 = vld [vmem:[#allocation3 + $0x58] sm:$0xff] }
 0x24a   : > { %2269 = vst.msk [vmem:[#allocation3 + $0x60] sm:$0xff] %vm2256_vm1, %v2244_v60 }
 0x24b   : > { %v2165_v21 = vpop.permute.xlu0 %2164 }
 0x24c   : > { %v2234_v49 = vadd.f32 %v6158_v23, %v2165_v21 }
 0x24e   : > { %v2187_v41 = vpop.permute.xlu1 %2186  ;;  %2259 = vst.msk [vmem:[#allocation3 + $0x10] sm:$0xff] %vm2256_vm1, %v2234_v49 }
 0x24f   : > { %v2245_v56 = vadd.f32 %v6157_v11, %v2187_v41  ;;  %v6177_v41 = vld [vmem:[#allocation3 + $0xb8] sm:$0xff] }
 0x251   : > { %2270 = vst.msk [vmem:[#allocation3 + $0x68] sm:$0xff] %vm2256_vm1, %v2245_v56 }
 0x252   : > { %v2167_v1 = vpop.permute.xlu1 %2166 }
 0x253   : > { %v2189_v5 = vpop.permute.xlu0 %2188  ;;  %v2235_v47 = vadd.f32 %v6160_v12, %v2167_v1 }
 0x254   : > { %v2246_v61 = vadd.f32 %v6159_v15, %v2189_v5 }
 0x255   : > { %2260 = vst.msk [vmem:[#allocation3 + $0x18] sm:$0xff] %vm2256_vm1, %v2235_v47 }
 0x256   : > { %2271 = vst.msk [vmem:[#allocation3 + $0x70] sm:$0xff] %vm2256_vm1, %v2246_v61 }
 0x257   : > { %v2169_v4 = vpop.permute.xlu0 %2168 }
 0x258   : > { %v2236_v59 = vadd.f32 %v6162_v26, %v2169_v4 }
 0x259   : > { %v2191_v13 = vpop.permute.xlu1 %2190 }
 0x25a   : > { %v2247_v36 = vadd.f32 %v6161_v24, %v2191_v13  ;;  %2261 = vst.msk [vmem:[#allocation3 + $0x20] sm:$0xff] %vm2256_vm1, %v2236_v59 }
 0x25c   : > { %2272 = vst.msk [vmem:[#allocation3 + $0x78] sm:$0xff] %vm2256_vm1, %v2247_v36 }
 0x25d   : > { %v2171_v46 = vpop.permute.xlu1 %2170 }
 0x25e   : > { %v2237_v55 = vadd.f32 %v6163_v29, %v2171_v46 }
 0x260   : > { %2262 = vst.msk [vmem:[#allocation3 + $0x28] sm:$0xff] %vm2256_vm1, %v2237_v55 }
 0x26c   : > { %v2193_v39 = vpop.permute.xlu0 %2192 }
 0x26d   : > { %v2248_v25 = vadd.f32 %v6164_v35, %v2193_v39 }
 0x26f   : > { %2273 = vst.msk [vmem:[#allocation3 + $0x80] sm:$0xff] %vm2256_vm1, %v2248_v25 }
 0x270   : > { %v2195_v31 = vpop.permute.xlu1 %2194  ;;  %v2173_v2 = vpop.permute.xlu0 %2172 }
 0x271   : > { %v2249_v8 = vadd.f32 %v6165_v28, %v2195_v31  ;;  %v2238_v27 = vadd.f32 %v6166_v50, %v2173_v2 }
 0x273   : > { %2274 = vst.msk [vmem:[#allocation3 + $0x88] sm:$0xff] %vm2256_vm1, %v2249_v8  ;;  %2263 = vst.msk [vmem:[#allocation3 + $0x30] sm:$0xff] %vm2256_vm1, %v2238_v27 }
 0x274   : > { %v2197_v18 = vpop.permute.xlu0 %2196  ;;  %v2175_v32 = vpop.permute.xlu1 %2174 }
 0x275   : > { %v2250_v40 = vadd.f32 %v6167_v51, %v2197_v18  ;;  %v2239_v22 = vadd.f32 %v6168_v43, %v2175_v32 }
 0x277   : > { %2275 = vst.msk [vmem:[#allocation3 + $0x90] sm:$0xff] %vm2256_vm1, %v2250_v40  ;;  %2264 = vst.msk [vmem:[#allocation3 + $0x38] sm:$0xff] %vm2256_vm1, %v2239_v22 }
 0x278   : > { %v2199_v19 = vpop.permute.xlu1 %2198  ;;  %v2177_v62 = vpop.permute.xlu0 %2176 }
 0x279   : > { %v2251_v52 = vadd.f32 %v6169_v54, %v2199_v19  ;;  %v2240_v63 = vadd.f32 %v6170_v48, %v2177_v62 }
 0x27b   : > { %2276 = vst.msk [vmem:[#allocation3 + $0x98] sm:$0xff] %vm2256_vm1, %v2251_v52  ;;  %2265 = vst.msk [vmem:[#allocation3 + $0x40] sm:$0xff] %vm2256_vm1, %v2240_v63 }
 0x27c   : > { %v2201_v6 = vpop.permute.xlu0 %2200  ;;  %v2179_v42 = vpop.permute.xlu1 %2178 }
 0x27d   : > { %v2252_v38 = vadd.f32 %v6171_v10, %v2201_v6  ;;  %v2241_v16 = vadd.f32 %v6172_v17, %v2179_v42 }
 0x27f   : > { %2277 = vst.msk [vmem:[#allocation3 + $0xa0] sm:$0xff] %vm2256_vm1, %v2252_v38  ;;  %2266 = vst.msk [vmem:[#allocation3 + $0x48] sm:$0xff] %vm2256_vm1, %v2241_v16 }
 0x280   : > { %v2203_v53 = vpop.permute.xlu1 %2202  ;;  %v2181_v45 = vpop.permute.xlu0 %2180 }
 0x281   : > { %v2253_v58 = vadd.f32 %v6173_v57, %v2203_v53  ;;  %v2242_v7 = vadd.f32 %v6174_v3, %v2181_v45 }
 0x283   : > { %2278 = vst.msk [vmem:[#allocation3 + $0xa8] sm:$0xff] %vm2256_vm1, %v2253_v58  ;;  %2267 = vst.msk [vmem:[#allocation3 + $0x50] sm:$0xff] %vm2256_vm1, %v2242_v7 }
 0x284   : > { %v2205_v20 = vpop.permute.xlu0 %2204  ;;  %v2183_v0 = vpop.permute.xlu1 %2182 }
 0x285   : > { %v2254_v44 = vadd.f32 %v6175_v9, %v2205_v20  ;;  %v2243_v34 = vadd.f32 %v6176_v30, %v2183_v0 }
 0x287   : > { %2279 = vst.msk [vmem:[#allocation3 + $0xb0] sm:$0xff] %vm2256_vm1, %v2254_v44  ;;  %2268 = vst.msk [vmem:[#allocation3 + $0x58] sm:$0xff] %vm2256_vm1, %v2243_v34 }
 0x288   : > { %v2207_v60 = vpop.permute.xlu1 %2206 }
 0x289   : > { %v2255_v21 = vadd.f32 %v6177_v41, %v2207_v60 }
 0x28b   : > { %2280 = vst.msk [vmem:[#allocation3 + $0xb8] sm:$0xff] %vm2256_vm1, %v2255_v21 }
 0x28c LB: >> { %v10038_v14 = vld [vmem:[#allocation19_spill] sm:$0xff]  ;;  %v10039_v37 = vld [vmem:[#allocation21_spill] sm:$0xff]  ;;  %v10040_v33 = vld [vmem:[#allocation20_spill] sm:$0xff]  ;;  %s5870_s6 = sshll.u32 %s6391_s22, 3  ;;  %s2430_s22 = sadd.s32 1, %s6391_s22   ;;  %s6391_s22 = sphi %s7932_s22, %s2430_s22  }
 0x28d   : >> { %s2432_s0 = sshra.s32 %s5870_s6, 3  ;;  %v9866_v49 = vsub.s32 2, %v10038_v14  ;;  %v9865_v1 = vsub.s32 3, %v10038_v14  ;;  %v9864_v61 = vsub.s32 4, %v10038_v14  ;;  %v9863_v47 = vsub.s32 5, %v10038_v14  ;;  %s5207_s29 = scalar_lea.vmem [#allocation2], %s5870_s6 }
 0x28e   : >> { %s5880_s30 = sshll.u32 %s2432_s0, 4  ;;  %v9862_v4 = vsub.s32 6, %v10038_v14  ;;  %v9861_v36 = vsub.s32 7, %v10038_v14  ;;  %p2427_p1 = scmp.ge.s32.totalorder %s2430_s22, 24  }
 0x28f   : >> { %s7940_s8 = scalar_lea.vmem [#allocation4], %s5880_s30  ;;  %p5873_p4 = scmp.ne.s32.totalorder (%p2427_p1), %s6379_s18, 1 }
 0x290   : >> { %v2437_v11 = vld [vmem:[%s7940_s8] sm:$0xff] }
 0x291   : >> { %v7944_v56 = vrot.slane %v2437_v11, %v10040_v33  ;;  %v7951_v23 = vrot.slane %v2437_v11, %v10039_v37  ;;  %v7960_v5 = vrot.slane %v2437_v11, %v9866_v49  ;;  %v7969_v15 = vrot.slane %v2437_v11, %v9865_v1 }
 0x292   : >> { %v7978_v12 = vrot.slane %v2437_v11, %v9864_v61  ;;  %v7987_v13 = vrot.slane %v2437_v11, %v9863_v47  ;;  %v7996_v24 = vrot.slane %v2437_v11, %v9862_v4  ;;  %v8005_v26 = vrot.slane %v2437_v11, %v9861_v36 }
 0x293   : >> { %2455 = vbcast.lane.b32.xlu1 %v7944_v56, 272  ;;  %2447 = vbcast.lane.b32.xlu0 %v7944_v56, 256 }
 0x297   : >> { %2459 = vbcast.lane.b32.xlu1 %v7944_v56, 280  ;;  %2451 = vbcast.lane.b32.xlu0 %v7944_v56, 264 }
 0x29b   : >> { %2470 = vbcast.lane.b32.xlu1 %v7951_v23, 264  ;;  %2466 = vbcast.lane.b32.xlu0 %v7951_v23, 256 }
 0x29f   : >> { %2478 = vbcast.lane.b32.xlu1 %v7951_v23, 280  ;;  %2474 = vbcast.lane.b32.xlu0 %v7951_v23, 272 }
 0x2a3   : >> { %2489 = vbcast.lane.b32.xlu1 %v7960_v5, 264  ;;  %2485 = vbcast.lane.b32.xlu0 %v7960_v5, 256 }
 0x2a7   : >> { %2497 = vbcast.lane.b32.xlu1 %v7960_v5, 280  ;;  %2493 = vbcast.lane.b32.xlu0 %v7960_v5, 272 }
 0x2ab   : >> { %2508 = vbcast.lane.b32.xlu1 %v7969_v15, 264  ;;  %2504 = vbcast.lane.b32.xlu0 %v7969_v15, 256 }
 0x2af   : >> { %2516 = vbcast.lane.b32.xlu1 %v7969_v15, 280  ;;  %2512 = vbcast.lane.b32.xlu0 %v7969_v15, 272 }
 0x2b3   : >> { %2527 = vbcast.lane.b32.xlu1 %v7978_v12, 264  ;;  %2523 = vbcast.lane.b32.xlu0 %v7978_v12, 256 }
 0x2b7   : >> { %2535 = vbcast.lane.b32.xlu1 %v7978_v12, 280  ;;  %2531 = vbcast.lane.b32.xlu0 %v7978_v12, 272 }
 0x2bb   : >> { %2546 = vbcast.lane.b32.xlu1 %v7987_v13, 264  ;;  %2542 = vbcast.lane.b32.xlu0 %v7987_v13, 256 }
 0x2bf   : >> { %2554 = vbcast.lane.b32.xlu1 %v7987_v13, 280  ;;  %2550 = vbcast.lane.b32.xlu0 %v7987_v13, 272 }
 0x2c3   : >> { %2565 = vbcast.lane.b32.xlu1 %v7996_v24, 264  ;;  %2561 = vbcast.lane.b32.xlu0 %v7996_v24, 256 }
 0x2c7   : >> { %2573 = vbcast.lane.b32.xlu1 %v7996_v24, 280  ;;  %2569 = vbcast.lane.b32.xlu0 %v7996_v24, 272 }
 0x2cb   : >> { %2584 = vbcast.lane.b32.xlu1 %v8005_v26, 264  ;;  %2580 = vbcast.lane.b32.xlu0 %v8005_v26, 256 }
 0x2cf   : >> { %2592 = vbcast.lane.b32.xlu1 %v8005_v26, 280  ;;  %2588 = vbcast.lane.b32.xlu0 %v8005_v26, 272 }
 0x2d3   : >> { %2812 = vbcast.lane.b32.xlu1 %v7944_v56, 296  ;;  %2808 = vbcast.lane.b32.xlu0 %v7944_v56, 288 }
 0x2d7   : >> { %2820 = vbcast.lane.b32.xlu1 %v7944_v56, 312  ;;  %2816 = vbcast.lane.b32.xlu0 %v7944_v56, 304 }
 0x2db   : >> { %2828 = vbcast.lane.b32.xlu1 %v7951_v23, 296  ;;  %2824 = vbcast.lane.b32.xlu0 %v7951_v23, 288 }
 0x2df   : >> { %2836 = vbcast.lane.b32.xlu1 %v7951_v23, 312  ;;  %2832 = vbcast.lane.b32.xlu0 %v7951_v23, 304 }
 0x2e3   : >> { %2844 = vbcast.lane.b32.xlu1 %v7960_v5, 296  ;;  %2840 = vbcast.lane.b32.xlu0 %v7960_v5, 288 }
 0x2e7   : >> { %2852 = vbcast.lane.b32.xlu1 %v7960_v5, 312  ;;  %2848 = vbcast.lane.b32.xlu0 %v7960_v5, 304 }
 0x2eb   : >> { %2860 = vbcast.lane.b32.xlu1 %v7969_v15, 296  ;;  %2856 = vbcast.lane.b32.xlu0 %v7969_v15, 288 }
 0x2ef   : >> { %2868 = vbcast.lane.b32.xlu1 %v7969_v15, 312  ;;  %2864 = vbcast.lane.b32.xlu0 %v7969_v15, 304 }
 0x2f3   : >> { %2876 = vbcast.lane.b32.xlu1 %v7978_v12, 296  ;;  %2872 = vbcast.lane.b32.xlu0 %v7978_v12, 288 }
 0x2f7   : >> { %2884 = vbcast.lane.b32.xlu1 %v7978_v12, 312  ;;  %2880 = vbcast.lane.b32.xlu0 %v7978_v12, 304 }
 0x2fb   : >> { %2892 = vbcast.lane.b32.xlu1 %v7987_v13, 296  ;;  %2888 = vbcast.lane.b32.xlu0 %v7987_v13, 288 }
 0x2ff   : >> { %2900 = vbcast.lane.b32.xlu1 %v7987_v13, 312  ;;  %2896 = vbcast.lane.b32.xlu0 %v7987_v13, 304 }
 0x303   : >> { %2908 = vbcast.lane.b32.xlu1 %v7996_v24, 296  ;;  %2904 = vbcast.lane.b32.xlu0 %v7996_v24, 288 }
 0x305   : >> { %v8037_v59 = vpop.permute.xlu1 %2455  ;;  %v8039_v46 = vpop.permute.xlu0 %2447 }
 0x306   : >> { %vm2594_vm4 = vcmp.gt.f32.partialorder %v8039_v46, 0.5  ;;  %vm2596_vm5 = vcmp.gt.f32.partialorder %v8037_v59, 0.5 }
 0x307   : >> { %2916 = vbcast.lane.b32.xlu1 %v7996_v24, 312  ;;  %2912 = vbcast.lane.b32.xlu0 %v7996_v24, 304 }
 0x309   : >> { %v8043_v29 = vpop.permute.xlu1 %2459  ;;  %v8045_v55 = vpop.permute.xlu0 %2451 }
 0x30a   : >> { %vm2595_vm15 = vcmp.gt.f32.partialorder %v8045_v55, 0.5  ;;  %v8407_v55 = vld [vmem:[%s6577_s10 + $0x10] sm:$0xff]  ;;  %vm2597_vm12 = vcmp.gt.f32.partialorder %v8043_v29, 0.5 }
 0x30b   : >> { %2924 = vbcast.lane.b32.xlu1 %v8005_v26, 296  ;;  %2920 = vbcast.lane.b32.xlu0 %v8005_v26, 288 }
 0x30d   : >> { %v8049_v39 = vpop.permute.xlu1 %2470  ;;  %v8051_v35 = vpop.permute.xlu0 %2466 }
 0x30e   : >> { %vm2599_vm8 = vcmp.gt.f32.partialorder %v8049_v39, 0.5  ;;  %vm2598_vm13 = vcmp.gt.f32.partialorder %v8051_v35, 0.5 }
 0x30f   : >> { %2932 = vbcast.lane.b32.xlu1 %v8005_v26, 312  ;;  %2928 = vbcast.lane.b32.xlu0 %v8005_v26, 304 }
 0x311   : >> { %v8055_v25 = vpop.permute.xlu1 %2478  ;;  %v8057_v31 = vpop.permute.xlu0 %2474 }
 0x312   : >> { %vm2600_vm6 = vcmp.gt.f32.partialorder %v8057_v31, 0.5  ;;  %vm2601_vm0 = vcmp.gt.f32.partialorder %v8055_v25, 0.5 }
 0x313   : >> { %3152 = vbcast.lane.b32.xlu1 %v7944_v56, 328  ;;  %3148 = vbcast.lane.b32.xlu0 %v7944_v56, 320  ;;  %v2696_v35 = vsel %vm2600_vm6, %v8407_v55, -3e+38 }
 0x315   : >> { %v8061_v2 = vpop.permute.xlu1 %2489  ;;  %v8063_v28 = vpop.permute.xlu0 %2485 }
 0x316   : >> { %vm2603_vm3 = vcmp.gt.f32.partialorder %v8061_v2, 0.5  ;;  %vm2602_vm10 = vcmp.gt.f32.partialorder %v8063_v28, 0.5 }
 0x317   : >> { %3160 = vbcast.lane.b32.xlu1 %v7944_v56, 344  ;;  %3156 = vbcast.lane.b32.xlu0 %v7944_v56, 336 }
 0x319   : >> { %v8067_v8 = vpop.permute.xlu1 %2497  ;;  %v8069_v50 = vpop.permute.xlu0 %2493 }
 0x31a   : >> { %vm2604_vm9 = vcmp.gt.f32.partialorder %v8069_v50, 0.5  ;;  %vm2605_vm14 = vcmp.gt.f32.partialorder %v8067_v8, 0.5 }
 0x31b   : >> { %3168 = vbcast.lane.b32.xlu1 %v7951_v23, 328  ;;  %3164 = vbcast.lane.b32.xlu0 %v7951_v23, 320 }
 0x31d   : >> { %v8073_v27 = vpop.permute.xlu1 %2508  ;;  %v8075_v18 = vpop.permute.xlu0 %2504 }
 0x31e   : >> { %vm2607_vm11 = vcmp.gt.f32.partialorder %v8073_v27, 0.5  ;;  %vm2606_vm7 = vcmp.gt.f32.partialorder %v8075_v18, 0.5 }
 0x31f   : >> { %3176 = vbcast.lane.b32.xlu1 %v7951_v23, 344  ;;  %3172 = vbcast.lane.b32.xlu0 %v7951_v23, 336 }
 0x321   : >> { %v8079_v32 = vpop.permute.xlu1 %2516  ;;  %v8081_v51 = vpop.permute.xlu0 %2512 }
 0x322   : >> { %vm2608_vm2 = vcmp.gt.f32.partialorder %v8081_v51, 0.5  ;;  %vm2609_vm1 = vcmp.gt.f32.partialorder %v8079_v32, 0.5 }
 0x323   : >> { %3184 = vbcast.lane.b32.xlu1 %v7960_v5, 328  ;;  %3180 = vbcast.lane.b32.xlu0 %v7960_v5, 320  ;;  %v2704_v18 = vsel %vm2608_vm2, %v8407_v55, -3e+38 }
 0x325   : >> { %v8085_v40 = vpop.permute.xlu1 %2527  ;;  %v8087_v43 = vpop.permute.xlu0 %2523 }
 0x327   : >> { %3192 = vbcast.lane.b32.xlu1 %v7960_v5, 344  ;;  %3188 = vbcast.lane.b32.xlu0 %v7960_v5, 336 }
 0x329   : >> { %v8091_v22 = vpop.permute.xlu1 %2535  ;;  %v8093_v19 = vpop.permute.xlu0 %2531 }
 0x32b   : >> { %3200 = vbcast.lane.b32.xlu1 %v7969_v15, 328  ;;  %3196 = vbcast.lane.b32.xlu0 %v7969_v15, 320 }
 0x32d   : >> { %v8097_v62 = vpop.permute.xlu1 %2546  ;;  %v8099_v54 = vpop.permute.xlu0 %2542 }
 0x32f   : >> { %3208 = vbcast.lane.b32.xlu1 %v7969_v15, 344  ;;  %3204 = vbcast.lane.b32.xlu0 %v7969_v15, 336 }
 0x331   : >> { %v8103_v52 = vpop.permute.xlu1 %2554  ;;  %v8105_v48 = vpop.permute.xlu0 %2550 }
 0x333   : >> { %3216 = vbcast.lane.b32.xlu1 %v7978_v12, 328  ;;  %3212 = vbcast.lane.b32.xlu0 %v7978_v12, 320 }
 0x335   : >> { %v8109_v63 = vpop.permute.xlu1 %2565  ;;  %v8111_v6 = vpop.permute.xlu0 %2561 }
 0x337   : >> { %3224 = vbcast.lane.b32.xlu1 %v7978_v12, 344  ;;  %3220 = vbcast.lane.b32.xlu0 %v7978_v12, 336 }
 0x339   : >> { %v8115_v42 = vpop.permute.xlu1 %2573  ;;  %v8117_v10 = vpop.permute.xlu0 %2569 }
 0x33a   : >> { %10041 = vst [vmem:[#allocation22_spill] sm:$0xff] %v8115_v42  ;;  %10042 = vst [vmem:[#allocation23_spill] sm:$0xff] %v8117_v10 }
 0x33b   : >> { %3232 = vbcast.lane.b32.xlu1 %v7987_v13, 328  ;;  %3228 = vbcast.lane.b32.xlu0 %v7987_v13, 320 }
 0x33d   : >> { %v8121_v38 = vpop.permute.xlu1 %2584  ;;  %v8123_v17 = vpop.permute.xlu0 %2580 }
 0x33f   : >> { %3240 = vbcast.lane.b32.xlu1 %v7987_v13, 344  ;;  %3236 = vbcast.lane.b32.xlu0 %v7987_v13, 336 }
 0x341   : >> { %v8127_v16 = vpop.permute.xlu1 %2592  ;;  %v8129_v53 = vpop.permute.xlu0 %2588 }
 0x343   : >> { %3248 = vbcast.lane.b32.xlu1 %v7996_v24, 328  ;;  %3244 = vbcast.lane.b32.xlu0 %v7996_v24, 320 }
 0x345   : >> { %v8133_v45 = vpop.permute.xlu1 %2812  ;;  %v8135_v57 = vpop.permute.xlu0 %2808 }
 0x346   : >> { %vm2935_vm6 = vcmp.gt.f32.partialorder %v8133_v45, 0.5 }
 0x347   : >> { %3256 = vbcast.lane.b32.xlu1 %v7996_v24, 344  ;;  %3252 = vbcast.lane.b32.xlu0 %v7996_v24, 336 }
 0x349   : >> { %v8139_v58 = vpop.permute.xlu1 %2820  ;;  %v8141_v3 = vpop.permute.xlu0 %2816 }
 0x34a   : >> { %vm2937_vm2 = vcmp.gt.f32.partialorder %v8139_v58, 0.5 }
 0x34b   : >> { %3264 = vbcast.lane.b32.xlu1 %v8005_v26, 328  ;;  %3260 = vbcast.lane.b32.xlu0 %v8005_v26, 320 }
 0x34d   : >> { %v8145_v7 = vpop.permute.xlu1 %2828  ;;  %v8147_v20 = vpop.permute.xlu0 %2824 }
 0x34f   : >> { %3272 = vbcast.lane.b32.xlu1 %v8005_v26, 344  ;;  %3268 = vbcast.lane.b32.xlu0 %v8005_v26, 336 }
 0x351   : >> { %v8151_v0 = vpop.permute.xlu1 %2836  ;;  %v8153_v9 = vpop.permute.xlu0 %2832 }
 0x353   : >> { %3492 = vbcast.lane.b32.xlu1 %v7944_v56, 360  ;;  %3488 = vbcast.lane.b32.xlu0 %v7944_v56, 352 }
 0x355   : >> { %v8157_v44 = vpop.permute.xlu1 %2844  ;;  %v8159_v30 = vpop.permute.xlu0 %2840 }
 0x357   : >> { %3500 = vbcast.lane.b32.xlu1 %v7944_v56, 376  ;;  %3496 = vbcast.lane.b32.xlu0 %v7944_v56, 368 }
 0x359   : >> { %v8163_v34 = vpop.permute.xlu1 %2852  ;;  %v8165_v60 = vpop.permute.xlu0 %2848 }
 0x35b   : >> { %3508 = vbcast.lane.b32.xlu1 %v7951_v23, 360  ;;  %3504 = vbcast.lane.b32.xlu0 %v7951_v23, 352 }
 0x35d   : >> { %v8169_v41 = vpop.permute.xlu1 %2860  ;;  %v8171_v21 = vpop.permute.xlu0 %2856 }
 0x35f   : >> { %3516 = vbcast.lane.b32.xlu1 %v7951_v23, 376  ;;  %3512 = vbcast.lane.b32.xlu0 %v7951_v23, 368 }
 0x361   : >> { %v8175_v11 = vpop.permute.xlu1 %2868  ;;  %v8177_v36 = vpop.permute.xlu0 %2864 }
 0x363   : >> { %3524 = vbcast.lane.b32.xlu1 %v7960_v5, 360  ;;  %3520 = vbcast.lane.b32.xlu0 %v7960_v5, 352 }
 0x365   : >> { %v8181_v56 = vpop.permute.xlu1 %2876  ;;  %v8183_v4 = vpop.permute.xlu0 %2872 }
 0x366   : >> { %10043 = vst [vmem:[#allocation24_spill] sm:$0xff] %v8183_v4  ;;  %v2692_v4 = vsel %vm2596_vm5, %v8407_v55, -3e+38  ;;  %vm2612_vm5 = vcmp.gt.f32.partialorder %v8093_v19, 0.5 }
 0x367   : >> { %3532 = vbcast.lane.b32.xlu1 %v7960_v5, 376  ;;  %3528 = vbcast.lane.b32.xlu0 %v7960_v5, 368 }
 0x369   : >> { %v8187_v47 = vpop.permute.xlu1 %2884  ;;  %v8189_v61 = vpop.permute.xlu0 %2880 }
 0x36a   : >> { %10044 = vst [vmem:[#allocation25_spill] sm:$0xff] %v8187_v47  ;;  %10045 = vst [vmem:[#allocation26_spill] sm:$0xff] %v8189_v61 }
 0x36b   : >> { %3540 = vbcast.lane.b32.xlu1 %v7969_v15, 360  ;;  %3536 = vbcast.lane.b32.xlu0 %v7969_v15, 352 }
 0x36d   : >> { %v8193_v23 = vpop.permute.xlu1 %2892  ;;  %v8195_v1 = vpop.permute.xlu0 %2888 }
 0x36e   : >> { %10046 = vst [vmem:[#allocation27_spill] sm:$0xff] %v8193_v23  ;;  %10047 = vst [vmem:[#allocation28_spill] sm:$0xff] %v8195_v1 }
 0x36f   : >> { %3548 = vbcast.lane.b32.xlu1 %v7969_v15, 376  ;;  %3544 = vbcast.lane.b32.xlu0 %v7969_v15, 368 }
 0x371   : >> { %v8199_v49 = vpop.permute.xlu1 %2900  ;;  %v8201_v42 = vpop.permute.xlu0 %2896 }
 0x372   : >> { %10048 = vst [vmem:[#allocation29_spill] sm:$0xff] %v8199_v49  ;;  %10049 = vst [vmem:[#allocation30_spill] sm:$0xff] %v8201_v42 }
 0x373   : >> { %3556 = vbcast.lane.b32.xlu1 %v7978_v12, 360  ;;  %3552 = vbcast.lane.b32.xlu0 %v7978_v12, 352 }
 0x375   : >> { %v8205_v5 = vpop.permute.xlu1 %2908  ;;  %v8207_v47 = vpop.permute.xlu0 %2904 }
 0x376   : >> { %10050 = vst [vmem:[#allocation31_spill] sm:$0xff] %v8205_v5  ;;  %10051 = vst [vmem:[#allocation32_spill] sm:$0xff] %v8207_v47 }
 0x377   : >> { %3564 = vbcast.lane.b32.xlu1 %v7978_v12, 376  ;;  %3560 = vbcast.lane.b32.xlu0 %v7978_v12, 368 }
 0x379   : >> { %v8211_v1 = vpop.permute.xlu1 %2916  ;;  %v8213_v23 = vpop.permute.xlu0 %2912 }
 0x37a   : >> { %10052 = vst [vmem:[#allocation33_spill] sm:$0xff] %v8211_v1  ;;  %10053 = vst [vmem:[#allocation34_spill] sm:$0xff] %v8213_v23 }
 0x37b   : >> { %3572 = vbcast.lane.b32.xlu1 %v7987_v13, 360  ;;  %3568 = vbcast.lane.b32.xlu0 %v7987_v13, 352 }
 0x37d   : >> { %v8217_v15 = vpop.permute.xlu1 %2924  ;;  %v8219_v42 = vpop.permute.xlu0 %2920 }
 0x37e   : >> { %10054 = vst [vmem:[#allocation35_spill] sm:$0xff] %v8217_v15  ;;  %10055 = vst [vmem:[#allocation36_spill] sm:$0xff] %v8219_v42  ;;  %v10087_v42 = vsub.s32 5, %v10038_v14  ;;  %v10092_v15 = vsub.s32 6, %v10038_v14 }
 0x37f   : >> { %3580 = vbcast.lane.b32.xlu1 %v7987_v13, 376  ;;  %3576 = vbcast.lane.b32.xlu0 %v7987_v13, 368  ;;  %v8242_v13 = vld [vmem:[%s7940_s8 + $0x8] sm:$0xff] }
 0x381   : >> { %v8223_v47 = vpop.permute.xlu1 %2932  ;;  %v8225_v12 = vpop.permute.xlu0 %2928 }
 0x382   : >> { %10056 = vst [vmem:[#allocation37_spill] sm:$0xff] %v8223_v47  ;;  %10057 = vst [vmem:[#allocation38_spill] sm:$0xff] %v8225_v12 }
 0x383   : >> { %3588 = vbcast.lane.b32.xlu1 %v7996_v24, 360  ;;  %3584 = vbcast.lane.b32.xlu0 %v7996_v24, 352 }
 0x385   : >> { %v8229_v1 = vpop.permute.xlu1 %3152  ;;  %v8231_v23 = vpop.permute.xlu0 %3148 }
 0x386   : >> { %10058 = vst [vmem:[#allocation39_spill] sm:$0xff] %v8229_v1  ;;  %10059 = vst [vmem:[#allocation40_spill] sm:$0xff] %v8231_v23  ;;  %v10082_v1 = vsub.s32 4, %v10038_v14 }
 0x387   : >> { %3596 = vbcast.lane.b32.xlu1 %v7996_v24, 376  ;;  %3592 = vbcast.lane.b32.xlu0 %v7996_v24, 368  ;;  %v8252_v24 = vrot.slane %v8242_v13, %v10040_v33 }
 0x389   : >> { %v8235_v5 = vpop.permute.xlu1 %3160  ;;  %v8237_v49 = vpop.permute.xlu0 %3156 }
 0x38a   : >> { %10060 = vst [vmem:[#allocation41_spill] sm:$0xff] %v8235_v5  ;;  %10061 = vst [vmem:[#allocation42_spill] sm:$0xff] %v8237_v49 }
 0x38b   : >> { %3604 = vbcast.lane.b32.xlu1 %v8005_v26, 360  ;;  %3600 = vbcast.lane.b32.xlu0 %v8005_v26, 352 }
 0x38d   : >> { %v8244_v47 = vpop.permute.xlu1 %3168  ;;  %v8246_v12 = vpop.permute.xlu0 %3164 }
 0x38e   : >> { %10062 = vst [vmem:[#allocation43_spill] sm:$0xff] %v8244_v47  ;;  %10063 = vst [vmem:[#allocation44_spill] sm:$0xff] %v8246_v12  ;;  %v10077_v12 = vsub.s32 3, %v10038_v14 }
 0x38f   : >> { %3612 = vbcast.lane.b32.xlu1 %v8005_v26, 376  ;;  %3608 = vbcast.lane.b32.xlu0 %v8005_v26, 368  ;;  %v8268_v26 = vrot.slane %v8242_v13, %v10039_v37 }
 0x391   : >> { %v8254_v5 = vpop.permute.xlu1 %3176  ;;  %v8256_v49 = vpop.permute.xlu0 %3172 }
 0x392   : >> { %10064 = vst [vmem:[#allocation45_spill] sm:$0xff] %v8254_v5  ;;  %10065 = vst [vmem:[#allocation46_spill] sm:$0xff] %v8256_v49 }
 0x393   : >> { %3836 = vbcast.lane.b32.xlu1 %v8252_v24, 264  ;;  %3832 = vbcast.lane.b32.xlu0 %v8252_v24, 256 }
 0x395   : >> { %v8260_v23 = vpop.permute.xlu1 %3184  ;;  %v8262_v47 = vpop.permute.xlu0 %3180 }
 0x396   : >> { %10066 = vst [vmem:[#allocation47_spill] sm:$0xff] %v8260_v23  ;;  %10067 = vst [vmem:[#allocation48_spill] sm:$0xff] %v8262_v47  ;;  %v10072_v47 = vsub.s32 2, %v10038_v14 }
 0x397   : >> { %3844 = vbcast.lane.b32.xlu1 %v8252_v24, 280  ;;  %3840 = vbcast.lane.b32.xlu0 %v8252_v24, 272 }
 0x398   : >> { %v8285_v37 = vrot.slane %v8242_v13, %v10072_v47  ;;  %v8302_v47 = vrot.slane %v8242_v13, %v10077_v12  ;;  %v8319_v12 = vrot.slane %v8242_v13, %v10082_v1  ;;  %v8336_v1 = vrot.slane %v8242_v13, %v10087_v42 }
 0x399   : >> { %v8270_v33 = vpop.permute.xlu1 %3192  ;;  %v8272_v5 = vpop.permute.xlu0 %3188  ;;  %v8353_v42 = vrot.slane %v8242_v13, %v10092_v15  ;;  %v10097_v15 = vsub.s32 7, %v10038_v14 }
 0x39a   : >> { %10068 = vst [vmem:[#allocation49_spill] sm:$0xff] %v8270_v33  ;;  %10069 = vst [vmem:[#allocation50_spill] sm:$0xff] %v8272_v5 }
 0x39b   : >> { %3855 = vbcast.lane.b32.xlu1 %v8268_v26, 264  ;;  %3851 = vbcast.lane.b32.xlu0 %v8268_v26, 256 }
 0x39d   : >> { %v8276_v49 = vpop.permute.xlu1 %3200  ;;  %v8278_v23 = vpop.permute.xlu0 %3196 }
 0x39e   : >> { %10070 = vst [vmem:[#allocation51_spill] sm:$0xff] %v8276_v49  ;;  %10071 = vst [vmem:[#allocation52_spill] sm:$0xff] %v8278_v23 }
 0x39f   : >> { %3863 = vbcast.lane.b32.xlu1 %v8268_v26, 280  ;;  %3859 = vbcast.lane.b32.xlu0 %v8268_v26, 272 }
 0x3a1   : >> { %v8287_v33 = vpop.permute.xlu1 %3208  ;;  %v8289_v5 = vpop.permute.xlu0 %3204 }
 0x3a2   : >> { %10073 = vst [vmem:[#allocation53_spill] sm:$0xff] %v8287_v33  ;;  %10074 = vst [vmem:[#allocation54_spill] sm:$0xff] %v8289_v5 }
 0x3a3   : >> { %3874 = vbcast.lane.b32.xlu1 %v8285_v37, 264  ;;  %3870 = vbcast.lane.b32.xlu0 %v8285_v37, 256 }
 0x3a5   : >> { %v8293_v49 = vpop.permute.xlu1 %3216  ;;  %v8295_v23 = vpop.permute.xlu0 %3212 }
 0x3a6   : >> { %10075 = vst [vmem:[#allocation55_spill] sm:$0xff] %v8293_v49  ;;  %10076 = vst [vmem:[#allocation56_spill] sm:$0xff] %v8295_v23 }
 0x3a7   : >> { %3882 = vbcast.lane.b32.xlu1 %v8285_v37, 280  ;;  %3878 = vbcast.lane.b32.xlu0 %v8285_v37, 272 }
 0x3a9   : >> { %v8304_v33 = vpop.permute.xlu1 %3224  ;;  %v8306_v5 = vpop.permute.xlu0 %3220 }
 0x3aa   : >> { %10078 = vst [vmem:[#allocation57_spill] sm:$0xff] %v8304_v33  ;;  %10079 = vst [vmem:[#allocation58_spill] sm:$0xff] %v8306_v5 }
 0x3ab   : >> { %3893 = vbcast.lane.b32.xlu1 %v8302_v47, 264  ;;  %3889 = vbcast.lane.b32.xlu0 %v8302_v47, 256 }
 0x3ad   : >> { %v8310_v49 = vpop.permute.xlu1 %3232  ;;  %v8312_v23 = vpop.permute.xlu0 %3228 }
 0x3ae   : >> { %10080 = vst [vmem:[#allocation59_spill] sm:$0xff] %v8310_v49  ;;  %10081 = vst [vmem:[#allocation60_spill] sm:$0xff] %v8312_v23 }
 0x3af   : >> { %3901 = vbcast.lane.b32.xlu1 %v8302_v47, 280  ;;  %3897 = vbcast.lane.b32.xlu0 %v8302_v47, 272 }
 0x3b1   : >> { %v8321_v33 = vpop.permute.xlu1 %3240  ;;  %v8323_v5 = vpop.permute.xlu0 %3236 }
 0x3b2   : >> { %10083 = vst [vmem:[#allocation61_spill] sm:$0xff] %v8321_v33  ;;  %10084 = vst [vmem:[#allocation62_spill] sm:$0xff] %v8323_v5 }
 0x3b3   : >> { %3912 = vbcast.lane.b32.xlu1 %v8319_v12, 264  ;;  %3908 = vbcast.lane.b32.xlu0 %v8319_v12, 256 }
 0x3b5   : >> { %v8327_v49 = vpop.permute.xlu1 %3248  ;;  %v8329_v23 = vpop.permute.xlu0 %3244 }
 0x3b6   : >> { %10085 = vst [vmem:[#allocation63_spill] sm:$0xff] %v8327_v49  ;;  %10086 = vst [vmem:[#allocation64_spill] sm:$0xff] %v8329_v23 }
 0x3b7   : >> { %3920 = vbcast.lane.b32.xlu1 %v8319_v12, 280  ;;  %3916 = vbcast.lane.b32.xlu0 %v8319_v12, 272 }
 0x3b9   : >> { %v8338_v33 = vpop.permute.xlu1 %3256  ;;  %v8340_v5 = vpop.permute.xlu0 %3252 }
 0x3ba   : >> { %10088 = vst [vmem:[#allocation65_spill] sm:$0xff] %v8338_v33  ;;  %10089 = vst [vmem:[#allocation66_spill] sm:$0xff] %v8340_v5 }
 0x3bb   : >> { %3931 = vbcast.lane.b32.xlu1 %v8336_v1, 264  ;;  %3927 = vbcast.lane.b32.xlu0 %v8336_v1, 256 }
 0x3bd   : >> { %v8344_v49 = vpop.permute.xlu1 %3264  ;;  %v8346_v23 = vpop.permute.xlu0 %3260 }
 0x3be   : >> { %10090 = vst [vmem:[#allocation67_spill] sm:$0xff] %v8344_v49  ;;  %10091 = vst [vmem:[#allocation68_spill] sm:$0xff] %v8346_v23 }
 0x3bf   : >> { %3939 = vbcast.lane.b32.xlu1 %v8336_v1, 280  ;;  %3935 = vbcast.lane.b32.xlu0 %v8336_v1, 272 }
 0x3c1   : >> { %v8355_v33 = vpop.permute.xlu1 %3272  ;;  %v8357_v5 = vpop.permute.xlu0 %3268 }
 0x3c2   : >> { %10093 = vst [vmem:[#allocation69_spill] sm:$0xff] %v8355_v33  ;;  %10094 = vst [vmem:[#allocation70_spill] sm:$0xff] %v8357_v5  ;;  %v8370_v33 = vrot.slane %v8242_v13, %v10097_v15  ;;  %v8389_v15 = vld [vmem:[%s6577_s10 + $0x8] sm:$0xff] }
 0x3c3   : >> { %3950 = vbcast.lane.b32.xlu1 %v8353_v42, 264  ;;  %3946 = vbcast.lane.b32.xlu0 %v8353_v42, 256 }
 0x3c5   : >> { %v8361_v49 = vpop.permute.xlu1 %3492  ;;  %v8363_v23 = vpop.permute.xlu0 %3488 }
 0x3c6   : >> { %10095 = vst [vmem:[#allocation71_spill] sm:$0xff] %v8361_v49  ;;  %10096 = vst [vmem:[#allocation72_spill] sm:$0xff] %v8363_v23 }
 0x3c7   : >> { %3958 = vbcast.lane.b32.xlu1 %v8353_v42, 280  ;;  %3954 = vbcast.lane.b32.xlu0 %v8353_v42, 272 }
 0x3c9   : >> { %v8372_v5 = vpop.permute.xlu1 %3500  ;;  %v8374_v10 = vpop.permute.xlu0 %3496 }
 0x3ca   : >> { %10098 = vst [vmem:[#allocation73_spill] sm:$0xff] %v8372_v5  ;;  %10099 = vst [vmem:[#allocation74_spill] sm:$0xff] %v8374_v10  ;;  %v8395_v5 = vld [vmem:[%s6577_s10] sm:$0xff]  ;;  %v2691_v10 = vsel %vm2595_vm15, %v8389_v15, -3e+38  ;;  %vm2611_vm15 = vcmp.gt.f32.partialorder %v8085_v40, 0.5 }
 0x3cb   : >> { %3969 = vbcast.lane.b32.xlu1 %v8370_v33, 264  ;;  %3965 = vbcast.lane.b32.xlu0 %v8370_v33, 256 }
 0x3cd   : >> { %v8378_v49 = vpop.permute.xlu1 %3508  ;;  %v8380_v23 = vpop.permute.xlu0 %3504 }
 0x3ce   : >> { %10100 = vst [vmem:[#allocation75_spill] sm:$0xff] %v8378_v49  ;;  %10101 = vst [vmem:[#allocation76_spill] sm:$0xff] %v8380_v23 }
 0x3cf   : >> { %3977 = vbcast.lane.b32.xlu1 %v8370_v33, 280  ;;  %3973 = vbcast.lane.b32.xlu0 %v8370_v33, 272 }
 0x3d1   : >> { %v8384_v14 = vpop.permute.xlu1 %3516  ;;  %v8386_v13 = vpop.permute.xlu0 %3512 }
 0x3d2   : >> { %10102 = vst [vmem:[#allocation77_spill] sm:$0xff] %v8384_v14  ;;  %10103 = vst [vmem:[#allocation78_spill] sm:$0xff] %v8386_v13  ;;  %v2690_v13 = vsel %vm2594_vm4, %v8395_v5, -3e+38  ;;  %vm2610_vm4 = vcmp.gt.f32.partialorder %v8087_v43, 0.5 }
 0x3d3   : >> { %4197 = vbcast.lane.b32.xlu1 %v8252_v24, 296  ;;  %4193 = vbcast.lane.b32.xlu0 %v8252_v24, 288  ;;  %v2722_v49 = vmax.f32 %v2690_v13, %v2691_v10  ;;  %v2708_v43 = vsel %vm2612_vm5, %v8407_v55, -3e+38  ;;  %vm2943_vm5 = vcmp.gt.f32.partialorder %v8157_v44, 0.5 }
 0x3d5   : >> { %v8399_v23 = vpop.permute.xlu1 %3524  ;;  %v8401_v14 = vpop.permute.xlu0 %3520 }
 0x3d6   : >> { %10104 = vst [vmem:[#allocation79_spill] sm:$0xff] %v8399_v23  ;;  %10105 = vst [vmem:[#allocation80_spill] sm:$0xff] %v8401_v14  ;;  %v8416_v23 = vld [vmem:[%s6577_s10 + $0x18] sm:$0xff]  ;;  %v2723_v14 = vmax.f32 %v2722_v49, %v2692_v4  ;;  %v2694_v49 = vsel %vm2598_vm13, %v8395_v5, -3e+38  ;;  %vm2622_vm13 = vcmp.gt.f32.partialorder %v8123_v17, 0.5 }
 0x3d7   : >> { %4205 = vbcast.lane.b32.xlu1 %v8252_v24, 312  ;;  %4201 = vbcast.lane.b32.xlu0 %v8252_v24, 304  ;;  %v2693_v13 = vsel %vm2597_vm12, %v8416_v23, -3e+38  ;;  %v2697_v28 = vsel %vm2601_vm0, %v8416_v23, -3e+38 }
 0x3d8   : >> { %v2724_v29 = vmax.f32 %v2723_v14, %v2693_v13  ;;  %v2698_v14 = vsel %vm2602_vm10, %v8395_v5, -3e+38  ;;  %vm2613_vm12 = vcmp.gt.f32.partialorder %v8091_v22, 0.5  ;;  %vm2624_vm10 = vcmp.gt.f32.partialorder %v8129_v53, 0.5 }
 0x3d9   : >> { %v8410_v61 = vpop.permute.xlu1 %3532  ;;  %v8412_v46 = vpop.permute.xlu0 %3528  ;;  %v2709_v22 = vsel %vm2613_vm12, %v8416_v23, -3e+38  ;;  %v2718_v45 = vsel %vm2622_vm13, %v8395_v5, -3e+38  ;;  %vm2936_vm0 = vcmp.gt.f32.partialorder %v8141_v3, 0.5  ;;  %vm2942_vm12 = vcmp.gt.f32.partialorder %v8159_v30, 0.5 }
 0x3da   : >> { %10106 = vst [vmem:[#allocation81_spill] sm:$0xff] %v8410_v61  ;;  %v2695_v61 = vsel %vm2599_vm8, %v8389_v15, -3e+38  ;;  %v2725_v2 = vrot.slane %v2724_v29, 4  ;;  %vm2623_vm8 = vcmp.gt.f32.partialorder %v8121_v38, 0.5  ;;  %vm2946_vm13 = vcmp.gt.f32.partialorder %v8171_v21, 0.5 }
 0x3db   : >> { %4213 = vbcast.lane.b32.xlu1 %v8268_v26, 296  ;;  %4209 = vbcast.lane.b32.xlu0 %v8268_v26, 288  ;;  %v2731_v31 = vmax.f32 %v2694_v49, %v2695_v61  ;;  %v2720_v3 = vsel %vm2624_vm10, %v8407_v55, -3e+38  ;;  %vm2617_vm10 = vcmp.gt.f32.partialorder %v8103_v52, 0.5 }
 0x3dc   : >> { %v2726_v61 = vmax.f32 %v2724_v29, %v2725_v2 }
 0x3dd   : >> { %v8423_v59 = vpop.permute.xlu1 %3540  ;;  %v8425_v10 = vpop.permute.xlu0 %3536  ;;  %v2732_v13 = vmax.f32 %v2731_v31, %v2696_v35  ;;  %v2701_v31 = vsel %vm2605_vm14, %v8416_v23, -3e+38  ;;  %vm2938_vm14 = vcmp.gt.f32.partialorder %v8147_v20, 0.5 }
 0x3de   : >> { %10107 = vst [vmem:[#allocation82_spill] sm:$0xff] %v8425_v10  ;;  %v2699_v10 = vsel %vm2603_vm3, %v8389_v15, -3e+38  ;;  %v2727_v51 = vrot.slane %v2726_v61, 2  ;;  %vm2934_vm3 = vcmp.gt.f32.partialorder %v8135_v57, 0.5 }
 0x3df   : >> { %4221 = vbcast.lane.b32.xlu1 %v8268_v26, 312  ;;  %4217 = vbcast.lane.b32.xlu0 %v8268_v26, 304  ;;  %v2740_v50 = vmax.f32 %v2698_v14, %v2699_v10  ;;  %v2733_v35 = vmax.f32 %v2732_v13, %v2697_v28  ;;  %v2702_v10 = vsel %vm2606_vm7, %v8395_v5, -3e+38  ;;  %vm2940_vm7 = vcmp.gt.f32.partialorder %v8153_v9, 0.5 }
 0x3e1   : >> { %v8435_v4 = vpop.permute.xlu1 %3548  ;;  %v8437_v39 = vpop.permute.xlu0 %3544  ;;  %v2734_v14 = vrot.slane %v2733_v35, 4 }
 0x3e2   : >> { %10108 = vst [vmem:[#allocation83_spill] sm:$0xff] %v8435_v4  ;;  %10109 = vst [vmem:[#allocation84_spill] sm:$0xff] %v8437_v39  ;;  %v2700_v4 = vsel %vm2604_vm9, %v8407_v55, -3e+38  ;;  %vm2939_vm9 = vcmp.gt.f32.partialorder %v8145_v7, 0.5 }
 0x3e3   : >> { %4229 = vbcast.lane.b32.xlu1 %v8285_v37, 296  ;;  %4225 = vbcast.lane.b32.xlu0 %v8285_v37, 288  ;;  %v2741_v49 = vmax.f32 %v2740_v50, %v2700_v4  ;;  %v2705_v50 = vsel %vm2609_vm1, %v8416_v23, -3e+38  ;;  %vm2615_vm1 = vcmp.gt.f32.partialorder %v8097_v62, 0.5 }
 0x3e5   : >> { %v8448_v25 = vpop.permute.xlu1 %3556  ;;  %v8450_v39 = vpop.permute.xlu0 %3552  ;;  %v2742_v29 = vmax.f32 %v2741_v49, %v2701_v31 }
 0x3e6   : >> { %10110 = vst [vmem:[#allocation85_spill] sm:$0xff] %v8448_v25  ;;  %10111 = vst [vmem:[#allocation86_spill] sm:$0xff] %v8450_v39  ;;  %v2703_v39 = vsel %vm2607_vm11, %v8389_v15, -3e+38  ;;  %v2735_v25 = vmax.f32 %v2733_v35, %v2734_v14  ;;  %vm2625_vm11 = vcmp.gt.f32.partialorder %v8127_v16, 0.5 }
 0x3e7   : >> { %4237 = vbcast.lane.b32.xlu1 %v8285_v37, 312  ;;  %4233 = vbcast.lane.b32.xlu0 %v8285_v37, 304  ;;  %v2749_v4 = vmax.f32 %v2702_v10, %v2703_v39  ;;  %v2721_v7 = vsel %vm2625_vm11, %v8416_v23, -3e+38  ;;  %v2711_v16 = vsel %vm2615_vm1, %v8389_v15, -3e+38 }
 0x3e8   : >> { %vm2949_vm11 = vcmp.gt.f32.partialorder %v8175_v11, 0.5 }
 0x3e9   : >> { %v8461_v8 = vpop.permute.xlu1 %3564  ;;  %v8463_v27 = vpop.permute.xlu0 %3560  ;;  %v2750_v13 = vmax.f32 %v2749_v4, %v2704_v18  ;;  %v2736_v18 = vrot.slane %v2735_v25, 2 }
 0x3ea   : >> { %10112 = vst [vmem:[#allocation87_spill] sm:$0xff] %v8461_v8  ;;  %10113 = vst [vmem:[#allocation88_spill] sm:$0xff] %v8463_v27  ;;  %v2743_v27 = vrot.slane %v2742_v29, 4  ;;  %v2728_v8 = vmax.f32 %v2726_v61, %v2727_v51  ;;  %v2706_v51 = vsel %vm2610_vm4, %v8395_v5, -3e+38  ;;  %vm2941_vm4 = vcmp.gt.f32.partialorder %v8151_v0, 0.5 }
 0x3eb   : >> { %4245 = vbcast.lane.b32.xlu1 %v8302_v47, 296  ;;  %4241 = vbcast.lane.b32.xlu0 %v8302_v47, 288  ;;  %v2751_v32 = vmax.f32 %v2750_v13, %v2705_v50 }
 0x3ec   : >> { %v2744_v31 = vmax.f32 %v2742_v29, %v2743_v27  ;;  %v2729_v10 = vrot.slane %v2728_v8, 1  ;;  %v2737_v27 = vmax.f32 %v2735_v25, %v2736_v18  ;;  %v2707_v29 = vsel %vm2611_vm15, %v8389_v15, -3e+38 }
 0x3ed   : >> { %v8469_v2 = vpop.permute.xlu1 %3572  ;;  %v8471_v28 = vpop.permute.xlu0 %3568  ;;  %vm2614_vm15 = vcmp.gt.f32.partialorder %v8099_v54, 0.5 }
 0x3ee   : >> { %10114 = vst [vmem:[#allocation89_spill] sm:$0xff] %v8469_v2  ;;  %10115 = vst [vmem:[#allocation90_spill] sm:$0xff] %v8471_v28  ;;  %v2752_v2 = vrot.slane %v2751_v32, 4  ;;  %v2745_v61 = vrot.slane %v2744_v31, 2  ;;  %v8491_v35 = vmax.f32 %v2728_v8, %v2729_v10  ;;  %v2758_v8 = vmax.f32 %v2706_v51, %v2707_v29 }
 0x3ef   : >> { %4253 = vbcast.lane.b32.xlu1 %v8302_v47, 312  ;;  %4249 = vbcast.lane.b32.xlu0 %v8302_v47, 304  ;;  %v2738_v50 = vrot.slane %v2737_v27, 1  ;;  %v2719_v51 = vsel %vm2623_vm8, %v8389_v15, -3e+38  ;;  %vm2947_vm8 = vcmp.gt.f32.partialorder %v8169_v41, 0.5 }
 0x3f0   : >> { %v2753_v40 = vmax.f32 %v2751_v32, %v2752_v2  ;;  %v2746_v19 = vmax.f32 %v2744_v31, %v2745_v61  ;;  %v2759_v18 = vmax.f32 %v2758_v8, %v2708_v43  ;;  %v8515_v31 = vld [vmem:[%s6577_s10 + $0x20] sm:$0xff]  ;;  %v8521_v61 = vld [vmem:[%s6577_s10 + $0x30] sm:$0xff]  ;;  %v2710_v9 = vsel %vm2614_vm15, %v8395_v5, -3e+38 }
 0x3f1   : >> { %v8476_v49 = vpop.permute.xlu1 %3580  ;;  %v8478_v39 = vpop.permute.xlu0 %3576  ;;  %v3030_v43 = vsel %vm2934_vm3, %v8515_v31, -3e+38  ;;  %v8540_v38 = vmax.f32 %v2737_v27, %v2738_v50  ;;  %v8553_v50 = vld [vmem:[%s6577_s10 + $0x38] sm:$0xff]  ;;  %v3036_v20 = vsel %vm2940_vm7, %v8521_v61, -3e+38  ;;  %vm2948_vm3 = vcmp.gt.f32.partialorder %v8177_v36, 0.5 }
 0x3f2   : >> { %10116 = vst [vmem:[#allocation91_spill] sm:$0xff] %v8476_v49  ;;  %10117 = vst [vmem:[#allocation92_spill] sm:$0xff] %v8478_v39  ;;  %v2754_v10 = vrot.slane %v2753_v40, 2  ;;  %v2747_v29 = vrot.slane %v2746_v19, 1  ;;  %v2760_v17 = vmax.f32 %v2759_v18, %v2709_v22  ;;  %v3037_v62 = vsel %vm2941_vm4, %v8553_v50, -3e+38 }
 0x3f3   : >> { %4261 = vbcast.lane.b32.xlu1 %v8319_v12, 296  ;;  %4257 = vbcast.lane.b32.xlu0 %v8319_v12, 288  ;;  %v3038_v30 = vsel %vm2942_vm12, %v8515_v31, -3e+38  ;;  %v3044_v41 = vsel %vm2948_vm3, %v8521_v61, -3e+38 }
 0x3f4   : >> { %v2761_v58 = vrot.slane %v2760_v17, 4  ;;  %vm2618_vm7 = vcmp.gt.f32.partialorder %v8111_v6, 0.5 }
 0x3f5   : >> { %v8482_v4 = vpop.permute.xlu1 %3588  ;;  %v8484_v28 = vpop.permute.xlu0 %3584  ;;  %v2714_v6 = vsel %vm2618_vm7, %v8395_v5, -3e+38 }
 0x3f6   : >> { %10118 = vst [vmem:[#allocation93_spill] sm:$0xff] %v8482_v4  ;;  %10119 = vst [vmem:[#allocation94_spill] sm:$0xff] %v8484_v28  ;;  %v2785_v28 = vmax.f32 %v2718_v45, %v2719_v51  ;;  %v3032_v4 = vsel %vm2936_vm0, %v8521_v61, -3e+38  ;;  %v2762_v54 = vmax.f32 %v2760_v17, %v2761_v58  ;;  %vm2616_vm0 = vcmp.gt.f32.partialorder %v8105_v48, 0.5 }
 0x3f7   : >> { %4269 = vbcast.lane.b32.xlu1 %v8319_v12, 312  ;;  %4265 = vbcast.lane.b32.xlu0 %v8319_v12, 304  ;;  %v3045_v48 = vsel %vm2949_vm11, %v8553_v50, -3e+38 }
 0x3f8   : >> { %v2786_v18 = vmax.f32 %v2785_v28, %v2720_v3  ;;  %v2763_v21 = vrot.slane %v2762_v54, 2 }
 0x3f9   : >> { %v8495_v14 = vpop.permute.xlu1 %3596  ;;  %v8497_v13 = vpop.permute.xlu0 %3592 }
 0x3fa   : >> { %10120 = vst [vmem:[#allocation95_spill] sm:$0xff] %v8495_v14  ;;  %10121 = vst [vmem:[#allocation96_spill] sm:$0xff] %v8497_v13  ;;  %v8511_v14 = vld [vmem:[%s6577_s10 + $0x28] sm:$0xff]  ;;  %v8542_v13 = vmax.f32 %v2753_v40, %v2754_v10  ;;  %v3034_v40 = vsel %vm2938_vm14, %v8515_v31, -3e+38  ;;  %v8562_v10 = vmax.f32 %v2746_v19, %v2747_v29  ;;  %vm2945_vm14 = vcmp.gt.f32.partialorder %v8163_v34, 0.5 }
 0x3fb   : >> { %4277 = vbcast.lane.b32.xlu1 %v8336_v1, 296  ;;  %4273 = vbcast.lane.b32.xlu0 %v8336_v1, 288  ;;  %v3031_v57 = vsel %vm2935_vm6, %v8511_v14, -3e+38  ;;  %v3035_v53 = vsel %vm2939_vm9, %v8511_v14, -3e+38 }
 0x3fc   : >> { %v3062_v27 = vmax.f32 %v3030_v43, %v3031_v57  ;;  %v3033_v19 = vsel %vm2937_vm2, %v8553_v50, -3e+38  ;;  %v3071_v29 = vmax.f32 %v3034_v40, %v3035_v53  ;;  %v2756_v28 = vrot.slane %v8542_v13, 1 }
 0x3fd   : >> { %v8506_v2 = vpop.permute.xlu1 %3604  ;;  %v8508_v32 = vpop.permute.xlu0 %3600  ;;  %v3039_v3 = vsel %vm2943_vm5, %v8511_v14, -3e+38  ;;  %vm2944_vm6 = vcmp.gt.f32.partialorder %v8165_v60, 0.5  ;;  %v3043_v53 = vsel %vm2947_vm8, %v8511_v14, -3e+38  ;;  %vm2619_vm9 = vcmp.gt.f32.partialorder %v8109_v63, 0.5 }
 0x3fe   : >> { %v3063_v45 = vmax.f32 %v3062_v27, %v3032_v4  ;;  %v2787_v4 = vmax.f32 %v2786_v18, %v2721_v7  ;;  %v3072_v0 = vmax.f32 %v3071_v29, %v3036_v20  ;;  %v2767_v27 = vmax.f32 %v2710_v9, %v2711_v16  ;;  %v10128_v63 = vld [vmem:[#allocation24_spill] sm:$0xff] }
 0x3ff   : >> { %4285 = vbcast.lane.b32.xlu1 %v8336_v1, 312  ;;  %4281 = vbcast.lane.b32.xlu0 %v8336_v1, 304  ;;  %v3042_v60 = vsel %vm2946_vm13, %v8515_v31, -3e+38  ;;  %v3040_v18 = vsel %vm2944_vm6, %v8521_v61, -3e+38 }
 0x400   : >> { %v3064_v43 = vmax.f32 %v3063_v45, %v3033_v19  ;;  %v2788_v17 = vrot.slane %v2787_v4, 4  ;;  %v3073_v40 = vmax.f32 %v3072_v0, %v3037_v62  ;;  %v3080_v45 = vmax.f32 %v3038_v30, %v3039_v3 }
 0x401   : >> { %v8536_v8 = vpop.permute.xlu1 %3612  ;;  %v8538_v25 = vpop.permute.xlu0 %3608  ;;  %v2713_v20 = vsel %vm2617_vm10, %v8416_v23, -3e+38  ;;  %v3089_v19 = vmax.f32 %v3042_v60, %v3043_v53  ;;  %v2712_v29 = vsel %vm2616_vm0, %v8407_v55, -3e+38  ;;  %v8630_v34 = vsel %vm2619_vm9, %v8389_v15, -3e+38 }
 0x402   : >> { %v3065_v52 = vrot.slane %v3064_v43, 4  ;;  %v3081_v36 = vmax.f32 %v3080_v45, %v3040_v18  ;;  %v2789_v16 = vmax.f32 %v2787_v4, %v2788_v17  ;;  %v3074_v9 = vrot.slane %v3073_v40, 4  ;;  %v10129_v4 = vld [vmem:[#allocation26_spill] sm:$0xff]  ;;  %v10130_v60 = vld [vmem:[#allocation23_spill] sm:$0xff]  ;;  %v10132_v18 = vld [vmem:[#allocation36_spill] sm:$0xff] }
 0x403   : >> { %4293 = vbcast.lane.b32.xlu1 %v8353_v42, 296  ;;  %4289 = vbcast.lane.b32.xlu0 %v8353_v42, 288  ;;  %v3041_v11 = vsel %vm2945_vm14, %v8553_v50, -3e+38  ;;  %v3090_v0 = vmax.f32 %v3089_v19, %v3044_v41  ;;  %vm2951_vm2 = vcmp.gt.f32.partialorder %v8181_v56, 0.5  ;;  %vm2950_vm1 = vcmp.gt.f32.partialorder %v10128_v63, 0.5 }
 0x404   : >> { %v3066_v30 = vmax.f32 %v3064_v43, %v3065_v52  ;;  %v2764_v15 = vmax.f32 %v2762_v54, %v2763_v21  ;;  %v2768_v53 = vmax.f32 %v2767_v27, %v2712_v29  ;;  %vm2952_vm15 = vcmp.gt.f32.partialorder %v10129_v4, 0.5  ;;  %v10131_v43 = vld [vmem:[#allocation35_spill] sm:$0xff]  ;;  %v10135_v29 = vld [vmem:[#allocation38_spill] sm:$0xff]  ;;  %v10137_v4 = vld [vmem:[#allocation25_spill] sm:$0xff] }
 0x405   : >> { %v8566_v22 = vpop.permute.xlu1 %3836  ;;  %v8568_v51 = vpop.permute.xlu0 %3832  ;;  %vm2620_vm4 = vcmp.gt.f32.partialorder %v10130_v60, 0.5  ;;  %v3082_v17 = vmax.f32 %v3081_v36, %v3041_v11  ;;  %vm2963_vm5 = vcmp.gt.f32.partialorder %v10131_v43, 0.5  ;;  %vm2962_vm12 = vcmp.gt.f32.partialorder %v10132_v18, 0.5 }
 0x406   : >> { %v3075_v56 = vmax.f32 %v3073_v40, %v3074_v9  ;;  %v3091_v52 = vmax.f32 %v3090_v0, %v3045_v48  ;;  %v3047_v54 = vsel %vm2951_vm2, %v8511_v14, -3e+38  ;;  %v3046_v27 = vsel %vm2950_vm1, %v8515_v31, -3e+38 }
 0x407   : >> { %4301 = vbcast.lane.b32.xlu1 %v8353_v42, 312  ;;  %4297 = vbcast.lane.b32.xlu0 %v8353_v42, 304  ;;  %v2790_v41 = vrot.slane %v2789_v16, 2  ;;  %v3067_v21 = vrot.slane %v3066_v30, 2  ;;  %v3048_v19 = vsel %vm2952_vm15, %v8521_v61, -3e+38  ;;  %v8659_v36 = vmax.f32 %v8542_v13, %v2756_v28 }
 0x408   : >> { %vm2964_vm8 = vcmp.gt.f32.partialorder %v10135_v29, 0.5  ;;  %v8661_v40 = vmax.f32 %v2768_v53, %v2713_v20  ;;  %v3059_v9 = vsel %vm2963_vm5, %v8511_v14, -3e+38  ;;  %v3058_v11 = vsel %vm2962_vm12, %v8515_v31, -3e+38 }
 0x409   : >> { %v8591_v44 = vpop.permute.xlu1 %3844  ;;  %v8593_v57 = vpop.permute.xlu0 %3840  ;;  %v2765_v0 = vrot.slane %v2764_v15, 1  ;;  %v3083_v48 = vrot.slane %v3082_v17, 4  ;;  %v3098_v63 = vmax.f32 %v3046_v27, %v3047_v54  ;;  %vm2953_vm13 = vcmp.gt.f32.partialorder %v10137_v4, 0.5  ;;  %v10141_v54 = vld [vmem:[#allocation22_spill] sm:$0xff] }
 0x40a   : >> { %10122 = vst [vmem:[#allocation97_spill] sm:$0xff] %v8591_v44  ;;  %10123 = vst [vmem:[#allocation98_spill] sm:$0xff] %v8593_v57  ;;  %v2776_v43 = vmax.f32 %v2714_v6, %v8630_v34  ;;  %v3076_v18 = vrot.slane %v3075_v56, 2  ;;  %v3092_v13 = vrot.slane %v3091_v52, 4  ;;  %v3060_v28 = vsel %vm2964_vm8, %v8521_v61, -3e+38 }
 0x40b   : >> { %4309 = vbcast.lane.b32.xlu1 %v8370_v33, 296  ;;  %4305 = vbcast.lane.b32.xlu0 %v8370_v33, 288  ;;  %10136 = vst [vmem:[#allocation23_spill] sm:$0xff] %v8661_v40  ;;  %v2716_v29 = vsel %vm2620_vm4, %v8407_v55, -3e+38  ;;  %v3099_v49 = vmax.f32 %v3098_v63, %v3048_v19  ;;  %v3125_v39 = vmax.f32 %v3058_v11, %v3059_v9  ;;  %vm2621_vm3 = vcmp.gt.f32.partialorder %v10141_v54, 0.5 }
 0x40c   : >> { %v2791_v27 = vmax.f32 %v2789_v16, %v2790_v41  ;;  %v3068_v34 = vmax.f32 %v3066_v30, %v3067_v21  ;;  %v3049_v6 = vsel %vm2953_vm13, %v8553_v50, -3e+38  ;;  %v3084_v60 = vmax.f32 %v3082_v17, %v3083_v48  ;;  %v8699_v63 = vld [vmem:[%s6577_s10 + $0x48] sm:$0xff]  ;;  %v10150_v21 = vld [vmem:[#allocation43_spill] sm:$0xff] }
 0x40d   : >> { %v8612_v58 = vpop.permute.xlu1 %3855  ;;  %v8614_v7 = vpop.permute.xlu0 %3851  ;;  %v3126_v55 = vmax.f32 %v3125_v39, %v3060_v28  ;;  %v2777_v19 = vmax.f32 %v2776_v43, %v2716_v29  ;;  %v3077_v9 = vmax.f32 %v3075_v56, %v3076_v18  ;;  %v3100_v39 = vmax.f32 %v3099_v49, %v3049_v6  ;;  %v10144_v43 = vld [vmem:[#allocation39_spill] sm:$0xff]  ;;  %v10151_v41 = vld [vmem:[#allocation44_spill] sm:$0xff] }
 0x40e   : >> { %10124 = vst [vmem:[#allocation99_spill] sm:$0xff] %v8612_v58  ;;  %10125 = vst [vmem:[#allocation100_spill] sm:$0xff] %v8614_v7  ;;  %v2792_v56 = vrot.slane %v2791_v27, 1  ;;  %vm3275_vm10 = vcmp.gt.f32.partialorder %v10144_v43, 0.5  ;;  %v8703_v18 = vld [vmem:[%s6577_s10 + $0x40] sm:$0xff]  ;;  %vm3279_vm14 = vcmp.gt.f32.partialorder %v10150_v21, 0.5 }
 0x40f   : >> { %4317 = vbcast.lane.b32.xlu1 %v8370_v33, 312  ;;  %4313 = vbcast.lane.b32.xlu0 %v8370_v33, 304  ;;  %v3078_v28 = vrot.slane %v3077_v9, 1  ;;  %v3101_v17 = vrot.slane %v3100_v39, 4  ;;  %vm3278_vm11 = vcmp.gt.f32.partialorder %v10151_v41, 0.5 }
 0x410   : >> { %v3375_v41 = vsel %vm3279_vm14, %v8699_v63, -3e+38 }
 0x411   : >> { %v8634_v62 = vpop.permute.xlu1 %3863  ;;  %v8636_v3 = vpop.permute.xlu0 %3859  ;;  %v3102_v40 = vmax.f32 %v3100_v39, %v3101_v17 }
 0x412   : >> { %10126 = vst [vmem:[#allocation101_spill] sm:$0xff] %v8634_v62  ;;  %10127 = vst [vmem:[#allocation102_spill] sm:$0xff] %v8636_v3 }
 0x413   : >> { %4537 = vbcast.lane.b32.xlu1 %v8252_v24, 328  ;;  %4533 = vbcast.lane.b32.xlu0 %v8252_v24, 320 }
 0x415   : >> { %v8650_v5 = vpop.permute.xlu1 %3874  ;;  %v8652_v45 = vpop.permute.xlu0 %3870 }
 0x416   : >> { %10133 = vst [vmem:[#allocation24_spill] sm:$0xff] %v8650_v5  ;;  %10134 = vst [vmem:[#allocation26_spill] sm:$0xff] %v8652_v45  ;;  %v10140_v45 = vld [vmem:[#allocation37_spill] sm:$0xff]  ;;  %v10183_v5 = vld [vmem:[#allocation70_spill] sm:$0xff] }
 0x417   : >> { %4545 = vbcast.lane.b32.xlu1 %v8252_v24, 344  ;;  %4541 = vbcast.lane.b32.xlu0 %v8252_v24, 336  ;;  %vm2965_vm6 = vcmp.gt.f32.partialorder %v10140_v45, 0.5  ;;  %v3093_v45 = vmax.f32 %v3091_v52, %v3092_v13  ;;  %v3069_v52 = vrot.slane %v3068_v34, 1  ;;  %v10145_v13 = vld [vmem:[#allocation40_spill] sm:$0xff] }
 0x418   : >> { %v3061_v11 = vsel %vm2965_vm6, %v8553_v50, -3e+38  ;;  %vm3274_vm0 = vcmp.gt.f32.partialorder %v10145_v13, 0.5  ;;  %v8719_v13 = vmax.f32 %v2791_v27, %v2792_v56  ;;  %v3374_v56 = vsel %vm3278_vm11, %v8703_v18, -3e+38 }
 0x419   : >> { %v8670_v20 = vpop.permute.xlu1 %3882  ;;  %v8672_v53 = vpop.permute.xlu0 %3878  ;;  %v3127_v48 = vmax.f32 %v3126_v55, %v3061_v11  ;;  %v3094_v29 = vrot.slane %v3093_v45, 2  ;;  %v8714_v55 = vld [vmem:[%s6577_s10 + $0x50] sm:$0xff]  ;;  %v10149_v11 = vld [vmem:[#allocation42_spill] sm:$0xff] }
 0x41a   : >> { %10138 = vst [vmem:[#allocation35_spill] sm:$0xff] %v8670_v20  ;;  %10139 = vst [vmem:[#allocation36_spill] sm:$0xff] %v8672_v53  ;;  %v8683_v20 = vmax.f32 %v2764_v15, %v2765_v0  ;;  %v2717_v15 = vsel %vm2621_vm3, %v8416_v23, -3e+38  ;;  %v3085_v0 = vrot.slane %v3084_v60, 2  ;;  %vm3276_vm9 = vcmp.gt.f32.partialorder %v10149_v11, 0.5 }
 0x41b   : >> { %4553 = vbcast.lane.b32.xlu1 %v8268_v26, 328  ;;  %4549 = vbcast.lane.b32.xlu0 %v8268_v26, 320  ;;  %v8707_v49 = vmax.f32 %v2777_v19, %v2717_v15  ;;  %v3070_v23 = vmax.f32 %v3068_v34, %v3069_v52  ;;  %v3371_v19 = vsel %vm3275_vm10, %v8699_v63, -3e+38  ;;  %v3370_v15 = vsel %vm3274_vm0, %v8703_v18, -3e+38 }
 0x41c   : >> { %v3086_v4 = vmax.f32 %v3084_v60, %v3085_v0  ;;  %v10152_v11 = vld [vmem:[#allocation27_spill] sm:$0xff]  ;;  %v3128_v21 = vrot.slane %v3127_v48, 4  ;;  %v8729_v27 = vmax.f32 %v3093_v45, %v3094_v29  ;;  %v3372_v34 = vsel %vm3276_vm9, %v8714_v55, -3e+38  ;;  %v8740_v0 = vld [vmem:[%s6577_s10 + $0x58] sm:$0xff]  ;;  %v10182_v53 = vld [vmem:[#allocation53_spill] sm:$0xff] }
 0x41d   : >> { %v8686_v16 = vpop.permute.xlu1 %3893  ;;  %v8688_v30 = vpop.permute.xlu0 %3889  ;;  %10146 = vst [vmem:[#allocation37_spill] sm:$0xff] %v8707_v49  ;;  %vm2955_vm7 = vcmp.gt.f32.partialorder %v10152_v11, 0.5  ;;  %v10153_v49 = vld [vmem:[#allocation46_spill] sm:$0xff]  ;;  %v3402_v60 = vmax.f32 %v3370_v15, %v3371_v19  ;;  %v10159_v19 = vld [vmem:[#allocation45_spill] sm:$0xff]  ;;  %v10163_v11 = vmax.f32 %v8540_v38, -3e+38 }
 0x41e   : >> { %10142 = vst [vmem:[#allocation38_spill] sm:$0xff] %v8686_v16  ;;  %10143 = vst [vmem:[#allocation25_spill] sm:$0xff] %v8688_v30  ;;  %vm3280_vm2 = vcmp.gt.f32.partialorder %v10153_v49, 0.5  ;;  %v10158_v49 = vmax.f32 %v8491_v35, -3e+38  ;;  %v3079_v30 = vmax.f32 %v3077_v9, %v3078_v28  ;;  %v3087_v39 = vrot.slane %v3086_v4, 1 }
 0x41f   : >> { %4561 = vbcast.lane.b32.xlu1 %v8268_v26, 344  ;;  %4557 = vbcast.lane.b32.xlu0 %v8268_v26, 336  ;;  %v3376_v16 = vsel %vm3280_vm2, %v8714_v55, -3e+38  ;;  %v3403_v17 = vmax.f32 %v3402_v60, %v3372_v34  ;;  %vm3281_vm4 = vcmp.gt.f32.partialorder %v10159_v19, 0.5  ;;  %v3129_v9 = vmax.f32 %v3127_v48, %v3128_v21  ;;  %v10165_v45 = vld [vmem:[#allocation47_spill] sm:$0xff] }
 0x420   : >> { %v8746_v29 = vmax.f32 %v10158_v49, %v3070_v23  ;;  %v8769_v49 = vmax.f32 %v10163_v11, %v3079_v30  ;;  %v3377_v19 = vsel %vm3281_vm4, %v8740_v0, -3e+38  ;;  %vm3283_vm12 = vcmp.gt.f32.partialorder %v10165_v45, 0.5  ;;  %v10166_v48 = vld [vmem:[#allocation48_spill] sm:$0xff]  ;;  %v10167_v21 = vld [vmem:[#allocation30_spill] sm:$0xff]  ;;  %v10171_v30 = vld [vmem:[#allocation31_spill] sm:$0xff] }
 0x421   : >> { %v8709_v54 = vpop.permute.xlu1 %3901  ;;  %v8711_v6 = vpop.permute.xlu0 %3897  ;;  %vm3282_vm8 = vcmp.gt.f32.partialorder %v10166_v48, 0.5  ;;  %vm2956_vm13 = vcmp.gt.f32.partialorder %v10167_v21, 0.5  ;;  %vm2959_vm10 = vcmp.gt.f32.partialorder %v10171_v30, 0.5  ;;  %v10172_v45 = vld [vmem:[#allocation50_spill] sm:$0xff]  ;;  %v10190_v30 = vld [vmem:[#allocation69_spill] sm:$0xff] }
 0x422   : >> { %10147 = vst [vmem:[#allocation22_spill] sm:$0xff] %v8709_v54  ;;  %10148 = vst [vmem:[#allocation39_spill] sm:$0xff] %v8711_v6  ;;  %v10156_v6 = vld [vmem:[#allocation28_spill] sm:$0xff]  ;;  %v10157_v54 = vld [vmem:[#allocation41_spill] sm:$0xff]  ;;  %vm3284_vm0 = vcmp.gt.f32.partialorder %v10172_v45, 0.5  ;;  %vm3305_vm4 = vcmp.gt.f32.partialorder %v10190_v30, 0.5 }
 0x423   : >> { %4569 = vbcast.lane.b32.xlu1 %v8285_v37, 328  ;;  %4565 = vbcast.lane.b32.xlu0 %v8285_v37, 320  ;;  %vm2954_vm1 = vcmp.gt.f32.partialorder %v10156_v6, 0.5  ;;  %vm3277_vm15 = vcmp.gt.f32.partialorder %v10157_v54, 0.5  ;;  %v3411_v6 = vmax.f32 %v3374_v56, %v3375_v41  ;;  %v8755_v54 = vsel %vm2955_vm7, %v8511_v14, -3e+38 }
 0x424   : >> { %v8758_v35 = vsel %vm2954_vm1, %v8515_v31, -3e+38  ;;  %v3373_v23 = vsel %vm3277_vm15, %v8740_v0, -3e+38  ;;  %v3103_v41 = vrot.slane %v3102_v40, 2  ;;  %v10162_v56 = vld [vmem:[#allocation29_spill] sm:$0xff] }
 0x425   : >> { %v8734_v52 = vpop.permute.xlu1 %3912  ;;  %v8736_v43 = vpop.permute.xlu0 %3908  ;;  %vm2957_vm5 = vcmp.gt.f32.partialorder %v10162_v56, 0.5  ;;  %v3412_v60 = vmax.f32 %v3411_v6, %v3376_v16  ;;  %10164 = vst [vmem:[#allocation27_spill] sm:$0xff] %v8769_v49  ;;  %v3404_v34 = vmax.f32 %v3403_v17, %v3373_v23  ;;  %v10169_v16 = vld [vmem:[#allocation52_spill] sm:$0xff]  ;;  %v3130_v6 = vrot.slane %v3129_v9, 2  ;;  %v10175_v23 = vld [vmem:[#allocation54_spill] sm:$0xff] }
 0x426   : >> { %10154 = vst [vmem:[#allocation40_spill] sm:$0xff] %v8734_v52  ;;  %10155 = vst [vmem:[#allocation42_spill] sm:$0xff] %v8736_v43  ;;  %vm3286_vm3 = vcmp.gt.f32.partialorder %v10169_v16, 0.5  ;;  %v8780_v38 = vsel %vm2957_vm5, %v8553_v50, -3e+38  ;;  %vm3288_vm9 = vcmp.gt.f32.partialorder %v10175_v23, 0.5  ;;  %v8791_v16 = vmax.f32 %v3102_v40, %v3103_v41 }
 0x427   : >> { %4577 = vbcast.lane.b32.xlu1 %v8285_v37, 344  ;;  %4573 = vbcast.lane.b32.xlu0 %v8285_v37, 336  ;;  %10170 = vst [vmem:[#allocation46_spill] sm:$0xff] %v8780_v38  ;;  %v3413_v48 = vmax.f32 %v3412_v60, %v3377_v19  ;;  %v3378_v17 = vsel %vm3282_vm8, %v8703_v18, -3e+38  ;;  %v3405_v45 = vrot.slane %v3404_v34, 4 }
 0x428   : >> { %v3382_v38 = vsel %vm3286_vm3, %v8703_v18, -3e+38  ;;  %v3380_v60 = vsel %vm3284_vm0, %v8714_v55, -3e+38  ;;  %v10176_v19 = vld [vmem:[#allocation67_spill] sm:$0xff]  ;;  %v10179_v40 = vld [vmem:[#allocation49_spill] sm:$0xff] }
 0x429   : >> { %v8761_v28 = vpop.permute.xlu1 %3920  ;;  %v8763_v15 = vpop.permute.xlu0 %3916  ;;  %vm3303_vm14 = vcmp.gt.f32.partialorder %v10176_v19, 0.5  ;;  %vm3285_vm2 = vcmp.gt.f32.partialorder %v10179_v40, 0.5  ;;  %v3414_v43 = vrot.slane %v3413_v48, 4  ;;  %vm3289_vm1 = vcmp.gt.f32.partialorder %v10182_v53, 0.5  ;;  %v10191_v40 = vld [vmem:[#allocation55_spill] sm:$0xff] }
 0x42a   : >> { %10160 = vst [vmem:[#allocation43_spill] sm:$0xff] %v8761_v28  ;;  %10161 = vst [vmem:[#allocation44_spill] sm:$0xff] %v8763_v15  ;;  %v10168_v28 = vld [vmem:[#allocation51_spill] sm:$0xff]  ;;  %v3379_v15 = vsel %vm3283_vm12, %v8699_v63, -3e+38  ;;  %vm3304_vm15 = vcmp.gt.f32.partialorder %v10183_v5, 0.5  ;;  %v8809_v19 = vmax.f32 %v3129_v9, %v3130_v6 }
 0x42b   : >> { %4585 = vbcast.lane.b32.xlu1 %v8302_v47, 328  ;;  %4581 = vbcast.lane.b32.xlu0 %v8302_v47, 320  ;;  %vm3287_vm6 = vcmp.gt.f32.partialorder %v10168_v28, 0.5  ;;  %v3088_v28 = vmax.f32 %v3086_v4, %v3087_v39  ;;  %v3420_v4 = vmax.f32 %v3378_v17, %v3379_v15  ;;  %v3384_v39 = vsel %vm3288_vm9, %v8714_v55, -3e+38 }
 0x42c   : >> { %v3383_v50 = vsel %vm3287_vm6, %v8699_v63, -3e+38  ;;  %v3399_v62 = vsel %vm3303_vm14, %v8699_v63, -3e+38  ;;  %v8818_v17 = vsel %vm2956_vm13, %v8521_v61, -3e+38 }
 0x42d   : >> { %v8784_v56 = vpop.permute.xlu1 %3931  ;;  %v8786_v11 = vpop.permute.xlu0 %3927  ;;  %v3429_v52 = vmax.f32 %v3382_v38, %v3383_v50  ;;  %v8820_v38 = vmax.f32 %v3404_v34, %v3405_v45  ;;  %v3381_v5 = vsel %vm3285_vm2, %v8740_v0, -3e+38  ;;  %v10184_v9 = vmax.f32 %v8562_v10, -3e+38 }
 0x42e   : >> { %10173 = vst [vmem:[#allocation28_spill] sm:$0xff] %v8784_v56  ;;  %10174 = vst [vmem:[#allocation41_spill] sm:$0xff] %v8786_v11  ;;  %v10177_v11 = vld [vmem:[#allocation68_spill] sm:$0xff]  ;;  %v8832_v50 = vsel %vm2959_vm10, %v8511_v14, -3e+38  ;;  %v8845_v10 = vmax.f32 %v3413_v48, %v3414_v43  ;;  %vm3291_vm5 = vcmp.gt.f32.partialorder %v10191_v40, 0.5 }
 0x42f   : >> { %4593 = vbcast.lane.b32.xlu1 %v8302_v47, 344  ;;  %4589 = vbcast.lane.b32.xlu0 %v8302_v47, 336  ;;  %vm3302_vm11 = vcmp.gt.f32.partialorder %v10177_v11, 0.5  ;;  %v10178_v56 = vld [vmem:[#allocation32_spill] sm:$0xff]  ;;  %v3421_v11 = vmax.f32 %v3420_v4, %v3380_v60  ;;  %v3430_v53 = vmax.f32 %v3429_v52, %v3384_v39  ;;  %v8827_v6 = vmax.f32 %v10184_v9, %v3088_v28  ;;  %v10193_v48 = vld [vmem:[#allocation57_spill] sm:$0xff]  ;;  %v10194_v39 = vld [vmem:[#allocation58_spill] sm:$0xff] }
 0x430   : >> { %vm2958_vm7 = vcmp.gt.f32.partialorder %v10178_v56, 0.5  ;;  %v3398_v15 = vsel %vm3302_vm11, %v8703_v18, -3e+38  ;;  %10186 = vst [vmem:[#allocation48_spill] sm:$0xff] %v8832_v50  ;;  %v3385_v21 = vsel %vm3289_vm1, %v8740_v0, -3e+38 }
 0x431   : >> { %v8803_v41 = vpop.permute.xlu1 %3939  ;;  %v8805_v23 = vpop.permute.xlu0 %3935  ;;  %10185 = vst [vmem:[#allocation47_spill] sm:$0xff] %v8827_v6  ;;  %v3400_v61 = vsel %vm3304_vm15, %v8714_v55, -3e+38  ;;  %v8843_v52 = vsel %vm2958_vm7, %v8515_v31, -3e+38  ;;  %v3465_v28 = vmax.f32 %v3398_v15, %v3399_v62  ;;  %v3422_v4 = vmax.f32 %v3421_v11, %v3381_v5  ;;  %v10192_v56 = vld [vmem:[#allocation56_spill] sm:$0xff] }
 0x432   : >> { %10180 = vst [vmem:[#allocation45_spill] sm:$0xff] %v8803_v41  ;;  %10181 = vst [vmem:[#allocation29_spill] sm:$0xff] %v8805_v23  ;;  %v3431_v43 = vmax.f32 %v3430_v53, %v3385_v21  ;;  %vm3290_vm12 = vcmp.gt.f32.partialorder %v10192_v56, 0.5  ;;  %vm3293_vm8 = vcmp.gt.f32.partialorder %v10193_v48, 0.5  ;;  %vm3292_vm13 = vcmp.gt.f32.partialorder %v10194_v39, 0.5  ;;  %v8859_v15 = vld [vmem:[%s6577_s10 + $0x68] sm:$0xff] }
 0x433   : >> { %4601 = vbcast.lane.b32.xlu1 %v8319_v12, 328  ;;  %4597 = vbcast.lane.b32.xlu0 %v8319_v12, 320  ;;  %10189 = vst [vmem:[#allocation52_spill] sm:$0xff] %v8843_v52  ;;  %v3466_v62 = vmax.f32 %v3465_v28, %v3400_v61  ;;  %v3401_v11 = vsel %vm3305_vm4, %v8740_v0, -3e+38  ;;  %v10195_v5 = vld [vmem:[#allocation71_spill] sm:$0xff] }
 0x434   : >> { %vm3615_vm6 = vcmp.gt.f32.partialorder %v10195_v5, 0.5  ;;  %v8868_v21 = vsel %vm3291_vm5, %v8699_v63, -3e+38  ;;  %v8871_v61 = vld [vmem:[%s6577_s10 + $0x60] sm:$0xff]  ;;  %v10198_v28 = vld [vmem:[#allocation72_spill] sm:$0xff]  ;;  %v3423_v31 = vrot.slane %v3422_v4, 4 }
 0x435   : >> { %v8836_v34 = vpop.permute.xlu1 %3950  ;;  %v8838_v45 = vpop.permute.xlu0 %3946  ;;  %vm3614_vm3 = vcmp.gt.f32.partialorder %v10198_v28, 0.5  ;;  %v10199_v40 = vld [vmem:[#allocation75_spill] sm:$0xff]  ;;  %v3386_v14 = vsel %vm3290_vm12, %v8703_v18, -3e+38  ;;  %v10200_v53 = vld [vmem:[#allocation76_spill] sm:$0xff]  ;;  %v8894_v56 = vmax.f32 %v3466_v62, %v3401_v11  ;;  %v3432_v60 = vrot.slane %v3431_v43, 4 }
 0x436   : >> { %10187 = vst [vmem:[#allocation30_spill] sm:$0xff] %v8836_v34  ;;  %10188 = vst [vmem:[#allocation51_spill] sm:$0xff] %v8838_v45  ;;  %vm3619_vm10 = vcmp.gt.f32.partialorder %v10199_v40, 0.5  ;;  %vm3618_vm0 = vcmp.gt.f32.partialorder %v10200_v53, 0.5  ;;  %v8889_v63 = vsel %vm3293_vm8, %v8740_v0, -3e+38  ;;  %v8915_v41 = vmax.f32 %v3422_v4, %v3423_v31 }
 0x437   : >> { %4609 = vbcast.lane.b32.xlu1 %v8319_v12, 344  ;;  %4605 = vbcast.lane.b32.xlu0 %v8319_v12, 336  ;;  %v3388_v28 = vsel %vm3292_vm13, %v8714_v55, -3e+38  ;;  %v3711_v18 = vsel %vm3615_vm6, %v8859_v15, -3e+38 }
 0x438   : >> { %v8900_v53 = vld [vmem:[%s6577_s10 + $0x88] sm:$0xff]  ;;  %v10201_v45 = vld [vmem:[#allocation74_spill] sm:$0xff]  ;;  %v3715_v0 = vsel %vm3619_vm10, %v8859_v15, -3e+38  ;;  %v3714_v55 = vsel %vm3618_vm0, %v8871_v61, -3e+38 }
 0x439   : >> { %v8862_v9 = vpop.permute.xlu1 %3958  ;;  %v8864_v30 = vpop.permute.xlu0 %3954  ;;  %vm3616_vm9 = vcmp.gt.f32.partialorder %v10201_v45, 0.5  ;;  %v10202_v62 = vld [vmem:[#allocation78_spill] sm:$0xff]  ;;  %v8910_v11 = vld [vmem:[%s6577_s10 + $0x80] sm:$0xff]  ;;  %v10204_v5 = vrot.slane %v8729_v27, 1  ;;  %v3468_v52 = vrot.slane %v8894_v56, 4  ;;  %v3751_v31 = vmax.f32 %v3714_v55, %v3715_v0  ;;  %v8939_v45 = vld [vmem:[%s6577_s10 + $0x90] sm:$0xff] }
 0x43a   : >> { %10196 = vst [vmem:[#allocation31_spill] sm:$0xff] %v8862_v9  ;;  %10197 = vst [vmem:[#allocation50_spill] sm:$0xff] %v8864_v30  ;;  %v8881_v9 = vld [vmem:[%s6577_s10 + $0x70] sm:$0xff]  ;;  %v3710_v30 = vsel %vm3614_vm3, %v8871_v61, -3e+38  ;;  %vm3620_vm14 = vcmp.gt.f32.partialorder %v10202_v62, 0.5  ;;  %v3433_v0 = vmax.f32 %v3431_v43, %v3432_v60  ;;  %v3438_v55 = vmax.f32 %v3386_v14, %v8868_v21 }
 0x43b   : >> { %4877 = vbcast.lane.b32.xlu1 %v8252_v24, 360  ;;  %4873 = vbcast.lane.b32.xlu0 %v8252_v24, 352  ;;  %10203 = vst [vmem:[#allocation54_spill] sm:$0xff] %v8910_v11  ;;  %v3097_v34 = vmax.f32 %v8729_v27, %v10204_v5  ;;  %v3712_v27 = vsel %vm3616_vm9, %v8881_v9, -3e+38  ;;  %v8927_v4 = vld [vmem:[%s6577_s10 + $0x78] sm:$0xff] }
 0x43c   : >> { %v10206_v5 = vld [vmem:[#allocation77_spill] sm:$0xff]  ;;  %v3716_v50 = vsel %vm3620_vm14, %v8881_v9, -3e+38  ;;  %v10207_v6 = vld [vmem:[#allocation79_spill] sm:$0xff]  ;;  %v3439_v14 = vmax.f32 %v3438_v55, %v3388_v28  ;;  %vm3624_vm8 = vcmp.gt.f32.partialorder %v8412_v46, 0.5 }
 0x43d   : >> { %v3970_v48 = vpop.permute.xlu1 %3969  ;;  %v3966_v39 = vpop.permute.xlu0 %3965  ;;  %vm3621_vm1 = vcmp.gt.f32.partialorder %v10206_v5, 0.5  ;;  %vm3623_vm15 = vcmp.gt.f32.partialorder %v10207_v6, 0.5  ;;  %v10211_v6 = vrot.slane %v8791_v16, 1 }
 0x43e   : >> { %vm4008_vm11 = vcmp.gt.f32.partialorder %v3970_v48, 0.5  ;;  %vm4007_vm7 = vcmp.gt.f32.partialorder %v3966_v39, 0.5  ;;  %v3742_v48 = vmax.f32 %v3710_v30, %v3711_v18  ;;  %v10205_v39 = vld [vmem:[#allocation73_spill] sm:$0xff]  ;;  %v10208_v30 = vld [vmem:[#allocation80_spill] sm:$0xff]  ;;  %v8936_v18 = vld [vmem:[%s6577_s10 + $0x98] sm:$0xff] }
 0x43f   : >> { %v4104_v40 = vsel %vm4008_vm11, %v8900_v53, -3e+38  ;;  %v4103_v23 = vsel %vm4007_vm7, %v8910_v11, -3e+38  ;;  %4893 = vbcast.lane.b32.xlu1 %v8268_v26, 360  ;;  %4889 = vbcast.lane.b32.xlu0 %v8268_v26, 352  ;;  %v3752_v11 = vmax.f32 %v3751_v31, %v3716_v50 }
 0x440   : >> { %vm3617_vm2 = vcmp.gt.f32.partialorder %v10205_v39, 0.5  ;;  %vm3622_vm4 = vcmp.gt.f32.partialorder %v10208_v30, 0.5  ;;  %v4170_v3 = vmax.f32 %v4103_v23, %v4104_v40  ;;  %v3743_v57 = vmax.f32 %v3742_v48, %v3712_v27 }
 0x441   : >> { %v3978_v44 = vpop.permute.xlu1 %3977  ;;  %v3974_v49 = vpop.permute.xlu0 %3973  ;;  %v3713_v58 = vsel %vm3617_vm2, %v8927_v4, -3e+38  ;;  %v3717_v60 = vsel %vm3621_vm1, %v8927_v4, -3e+38  ;;  %v3719_v43 = vsel %vm3623_vm15, %v8859_v15, -3e+38  ;;  %v3106_v48 = vmax.f32 %v8791_v16, %v10211_v6 }
 0x442   : >> { %vm4010_vm5 = vcmp.gt.f32.partialorder %v3978_v44, 0.5  ;;  %vm4009_vm12 = vcmp.gt.f32.partialorder %v3974_v49, 0.5  ;;  %v8950_v44 = vld [vmem:[%s6577_s10 + $0xa8] sm:$0xff]  ;;  %v8953_v49 = vld [vmem:[%s6577_s10 + $0xa0] sm:$0xff]  ;;  %v3718_v21 = vsel %vm3622_vm4, %v8871_v61, -3e+38  ;;  %v3744_v5 = vmax.f32 %v3743_v57, %v3713_v58 }
 0x443   : >> { %v4106_v62 = vsel %vm4010_vm5, %v8936_v18, -3e+38  ;;  %v4105_v7 = vsel %vm4009_vm12, %v8939_v45, -3e+38  ;;  %4909 = vbcast.lane.b32.xlu1 %v8285_v37, 360  ;;  %4905 = vbcast.lane.b32.xlu0 %v8285_v37, 352  ;;  %v3753_v30 = vmax.f32 %v3752_v11, %v3717_v60  ;;  %v3440_v16 = vmax.f32 %v3439_v14, %v8889_v63 }
 0x444   : >> { %v4171_v23 = vmax.f32 %v4170_v3, %v4105_v7  ;;  %v10210_v50 = vmax.f32 %v8659_v36, -3e+38  ;;  %v3425_v31 = vrot.slane %v8915_v41, 2  ;;  %v8980_v36 = vld [vmem:[%s6577_s10 + $0xb8] sm:$0xff]  ;;  %v3760_v6 = vmax.f32 %v3718_v21, %v3719_v43 }
 0x445   : >> { %v4198_v40 = vpop.permute.xlu1 %4197  ;;  %v4194_v7 = vpop.permute.xlu0 %4193  ;;  %v10213_v57 = vrot.slane %v8820_v38, 2  ;;  %v10214_v11 = vrot.slane %v8845_v10, 2  ;;  %v3754_v14 = vrot.slane %v3753_v30, 4  ;;  %vm3627_vm11 = vcmp.gt.f32.partialorder %v8423_v59, 0.5 }
 0x446   : >> { %v8965_v3 = vmax.f32 %v4171_v23, %v4106_v62  ;;  %vm4320_vm13 = vcmp.gt.f32.partialorder %v4198_v40, 0.5  ;;  %vm4319_vm6 = vcmp.gt.f32.partialorder %v4194_v7, 0.5  ;;  %v8969_v28 = vmax.f32 %v10210_v50, %v3097_v34  ;;  %v8983_v34 = vld [vmem:[%s6577_s10 + $0xb0] sm:$0xff] }
 0x447   : >> { %v4416_v39 = vsel %vm4320_vm13, %v8950_v44, -3e+38  ;;  %v4415_v27 = vsel %vm4319_vm6, %v8953_v49, -3e+38  ;;  %4617 = vbcast.lane.b32.xlu1 %v8336_v1, 328  ;;  %4613 = vbcast.lane.b32.xlu0 %v8336_v1, 320  ;;  %v3469_v23 = vmax.f32 %v8894_v56, %v3468_v52  ;;  %v3408_v58 = vmax.f32 %v8820_v38, %v10213_v57 }
 0x448   : >> { %10209 = vst [vmem:[#allocation67_spill] sm:$0xff] %v8965_v3  ;;  %v4447_v55 = vmax.f32 %v4415_v27, %v4416_v39  ;;  %v3434_v62 = vrot.slane %v3433_v0, 2  ;;  %v3720_v40 = vsel %vm3624_vm8, %v8881_v9, -3e+38  ;;  %v10212_v3 = vld [vmem:[#allocation81_spill] sm:$0xff]  ;;  %v8997_v63 = vmax.f32 %v8845_v10, %v10214_v11 }
 0x449   : >> { %v4206_v7 = vpop.permute.xlu1 %4205  ;;  %v4202_v50 = vpop.permute.xlu0 %4201  ;;  %vm3625_vm3 = vcmp.gt.f32.partialorder %v10212_v3, 0.5  ;;  %v3745_v56 = vrot.slane %v3744_v5, 4  ;;  %v3761_v60 = vmax.f32 %v3760_v6, %v3720_v40  ;;  %v9004_v21 = vmax.f32 %v8915_v41, %v3425_v31 }
 0x44a   : >> { %vm4322_vm10 = vcmp.gt.f32.partialorder %v4206_v7, 0.5  ;;  %vm4321_vm0 = vcmp.gt.f32.partialorder %v4202_v50, 0.5  ;;  %v9006_v38 = vmax.f32 %v3433_v0, %v3434_v62  ;;  %v3441_v39 = vrot.slane %v3440_v16, 4 }
 0x44b   : >> { %v4418_v52 = vsel %vm4322_vm10, %v8980_v36, -3e+38  ;;  %v4417_v46 = vsel %vm4321_vm0, %v8983_v34, -3e+38  ;;  %4897 = vbcast.lane.b32.xlu1 %v8268_v26, 368  ;;  %4881 = vbcast.lane.b32.xlu0 %v8252_v24, 368  ;;  %v10216_v41 = vmax.f32 %v8758_v35, %v8755_v54  ;;  %v3746_v62 = vmax.f32 %v3744_v5, %v3745_v56 }
 0x44c   : >> { %v4448_v43 = vmax.f32 %v4447_v55, %v4417_v46  ;;  %v3721_v10 = vsel %vm3625_vm3, %v8927_v4, -3e+38  ;;  %v3470_v50 = vrot.slane %v3469_v23, 2  ;;  %v10215_v40 = vmax.f32 %v8683_v20, -3e+38 }
 0x44d   : >> { %v4214_v27 = vpop.permute.xlu1 %4213  ;;  %v4210_v7 = vpop.permute.xlu0 %4209  ;;  %v9021_v0 = vmax.f32 %v10216_v41, %v8818_v17  ;;  %v3755_v6 = vmax.f32 %v3753_v30, %v3754_v14  ;;  %v3762_v11 = vmax.f32 %v3761_v60, %v3721_v10  ;;  %v3427_v46 = vrot.slane %v9004_v21, 1 }
 0x44e   : >> { %v9011_v57 = vmax.f32 %v4448_v43, %v4418_v52  ;;  %vm4324_vm9 = vcmp.gt.f32.partialorder %v4214_v27, 0.5  ;;  %vm4323_vm14 = vcmp.gt.f32.partialorder %v4210_v7, 0.5  ;;  %v9015_v55 = vmax.f32 %v10215_v40, %v3106_v48  ;;  %v10217_v43 = vld [vmem:[#allocation82_spill] sm:$0xff] }
 0x44f   : >> { %v4420_v3 = vsel %vm4324_vm9, %v8950_v44, -3e+38  ;;  %v4419_v31 = vsel %vm4323_vm14, %v8953_v49, -3e+38  ;;  %4925 = vbcast.lane.b32.xlu1 %v8302_v47, 360  ;;  %4921 = vbcast.lane.b32.xlu0 %v8302_v47, 352  ;;  %v9032_v27 = vmax.f32 %v3440_v16, %v3441_v39  ;;  %v9034_v5 = vmax.f32 %v3469_v23, %v3470_v50 }
 0x450   : >> { %v4456_v20 = vmax.f32 %v4419_v31, %v4420_v3  ;;  %v3409_v48 = vrot.slane %v3408_v58, 1  ;;  %v3418_v52 = vrot.slane %v8997_v63, 1  ;;  %v3436_v54 = vrot.slane %v9006_v38, 1  ;;  %v10218_v16 = vld [vmem:[#allocation84_spill] sm:$0xff] }
 0x451   : >> { %v4222_v35 = vpop.permute.xlu1 %4221  ;;  %v4218_v17 = vpop.permute.xlu0 %4217  ;;  %vm3626_vm7 = vcmp.gt.f32.partialorder %v10217_v43, 0.5  ;;  %v3747_v14 = vrot.slane %v3746_v62, 2  ;;  %v3756_v60 = vrot.slane %v3755_v6, 2  ;;  %v3763_v10 = vrot.slane %v3762_v11, 4 }
 0x452   : >> { %vm4326_vm2 = vcmp.gt.f32.partialorder %v4222_v35, 0.5  ;;  %vm4325_vm1 = vcmp.gt.f32.partialorder %v4218_v17, 0.5  ;;  %v3723_v7 = vsel %vm3627_vm11, %v8859_v15, -3e+38  ;;  %v3722_v40 = vsel %vm3626_vm7, %v8871_v61, -3e+38 }
 0x453   : >> { %v4422_v30 = vsel %vm4326_vm2, %v8980_v36, -3e+38  ;;  %v4421_v56 = vsel %vm4325_vm1, %v8983_v34, -3e+38  ;;  %4633 = vbcast.lane.b32.xlu1 %v8353_v42, 328  ;;  %4629 = vbcast.lane.b32.xlu0 %v8353_v42, 320  ;;  %v9050_v31 = vmax.f32 %v3408_v58, %v3409_v48 }
 0x454   : >> { %v4457_v59 = vmax.f32 %v4456_v20, %v4421_v56  ;;  %vm3628_vm15 = vcmp.gt.f32.partialorder %v10218_v16, 0.5  ;;  %vm3643_vm4 = vcmp.gt.f32.partialorder %v8506_v2, 0.5  ;;  %vm3642_vm5 = vcmp.gt.f32.partialorder %v8508_v32, 0.5 }
 0x455   : >> { %v4230_v23 = vpop.permute.xlu1 %4229  ;;  %v4226_v39 = vpop.permute.xlu0 %4225  ;;  %v10219_v41 = vrot.slane %v8809_v19, 1  ;;  %v3739_v58 = vsel %vm3643_vm4, %v8859_v15, -3e+38  ;;  %vm3644_vm6 = vcmp.gt.f32.partialorder %v8538_v25, 0.5  ;;  %vm3645_vm14 = vcmp.gt.f32.partialorder %v8536_v8, 0.5 }
 0x456   : >> { %v9045_v50 = vmax.f32 %v4457_v59, %v4422_v30  ;;  %vm4328_vm12 = vcmp.gt.f32.partialorder %v4230_v23, 0.5  ;;  %vm4327_vm8 = vcmp.gt.f32.partialorder %v4226_v39, 0.5  ;;  %v3764_v30 = vmax.f32 %v3762_v11, %v3763_v10  ;;  %v10220_v23 = vld [vmem:[#allocation83_spill] sm:$0xff] }
 0x457   : >> { %v3133_v3 = vmax.f32 %v8809_v19, %v10219_v41  ;;  %v4424_v20 = vsel %vm4328_vm12, %v8950_v44, -3e+38  ;;  %v4423_v35 = vsel %vm4327_vm8, %v8953_v49, -3e+38  ;;  %4937 = vbcast.lane.b32.xlu1 %v8319_v12, 352  ;;  %4913 = vbcast.lane.b32.xlu0 %v8285_v37, 368  ;;  %v3769_v59 = vmax.f32 %v3722_v40, %v3723_v7 }
 0x458   : >> { %v4465_v56 = vmax.f32 %v4423_v35, %v4424_v20  ;;  %vm3629_vm13 = vcmp.gt.f32.partialorder %v10220_v23, 0.5  ;;  %v3724_v19 = vsel %vm3628_vm15, %v8881_v9, -3e+38  ;;  %v3738_v41 = vsel %vm3642_vm5, %v8871_v61, -3e+38  ;;  %v10221_v35 = vld [vmem:[#allocation85_spill] sm:$0xff] }
 0x459   : >> { %v4238_v48 = vpop.permute.xlu1 %4237  ;;  %v4234_v39 = vpop.permute.xlu0 %4233  ;;  %v9069_v11 = vmax.f32 %v3746_v62, %v3747_v14  ;;  %v9071_v10 = vmax.f32 %v3755_v6, %v3756_v60  ;;  %v3765_v2 = vrot.slane %v3764_v30, 2  ;;  %v3725_v32 = vsel %vm3629_vm13, %v8927_v4, -3e+38  ;;  %v10222_v62 = vld [vmem:[#allocation86_spill] sm:$0xff] }
 0x45a   : >> { %vm4330_vm3 = vcmp.gt.f32.partialorder %v4238_v48, 0.5  ;;  %vm4329_vm10 = vcmp.gt.f32.partialorder %v4234_v39, 0.5  ;;  %v3770_v16 = vmax.f32 %v3769_v59, %v3724_v19  ;;  %vm3631_vm0 = vcmp.gt.f32.partialorder %v10221_v35, 0.5 }
 0x45b   : >> { %v4426_v7 = vsel %vm4330_vm3, %v8980_v36, -3e+38  ;;  %v4425_v40 = vsel %vm4329_vm10, %v8983_v34, -3e+38  ;;  %4621 = vbcast.lane.b32.xlu1 %v8336_v1, 336  ;;  %4941 = vbcast.lane.b32.xlu0 %v8319_v12, 360  ;;  %v3805_v6 = vmax.f32 %v3738_v41, %v3739_v58  ;;  %v9120_v8 = vmax.f32 %v3764_v30, %v3765_v2 }
 0x45c   : >> { %v4466_v20 = vmax.f32 %v4465_v56, %v4425_v40  ;;  %vm3630_vm9 = vcmp.gt.f32.partialorder %v10222_v62, 0.5  ;;  %v3740_v14 = vsel %vm3644_vm6, %v8881_v9, -3e+38  ;;  %v10223_v59 = vmax.f32 %v8719_v13, -3e+38 }
 0x45d   : >> { %v4246_v60 = vpop.permute.xlu1 %4245  ;;  %v4242_v48 = vpop.permute.xlu0 %4241  ;;  %v3771_v41 = vmax.f32 %v3770_v16, %v3725_v32  ;;  %vm3980_vm2 = vcmp.gt.f32.partialorder %v8566_v22, 0.5  ;;  %v9112_v32 = vsel %vm3630_vm9, %v8871_v61, -3e+38  ;;  %vm3979_vm1 = vcmp.gt.f32.partialorder %v8568_v51, 0.5 }
 0x45e   : >> { %v9086_v39 = vmax.f32 %v4466_v20, %v4426_v7  ;;  %vm4332_vm11 = vcmp.gt.f32.partialorder %v4246_v60, 0.5  ;;  %vm4331_vm7 = vcmp.gt.f32.partialorder %v4242_v48, 0.5  ;;  %v9090_v56 = vmax.f32 %v10223_v59, %v3133_v3  ;;  %v10225_v59 = vld [vmem:[#allocation98_spill] sm:$0xff] }
 0x45f   : >> { %v4428_v19 = vsel %vm4332_vm11, %v8950_v44, -3e+38  ;;  %v4427_v25 = vsel %vm4331_vm7, %v8953_v49, -3e+38  ;;  %4649 = vbcast.lane.b32.xlu1 %v8370_v33, 328  ;;  %4645 = vbcast.lane.b32.xlu0 %v8370_v33, 320  ;;  %v3806_v7 = vmax.f32 %v3805_v6, %v3740_v14 }
 0x460   : >> { %v4474_v40 = vmax.f32 %v4427_v25, %v4428_v19  ;;  %v9103_v3 = vsel %vm3631_vm0, %v8859_v15, -3e+38  ;;  %v3741_v20 = vsel %vm3645_vm14, %v8927_v4, -3e+38  ;;  %v9118_v15 = vmax.f32 %v8997_v63, %v3418_v52  ;;  %v10224_v6 = vld [vmem:[#allocation54_spill] sm:$0xff]  ;;  %v10226_v63 = vld [vmem:[#allocation99_spill] sm:$0xff] }
 0x461   : >> { %v4254_v60 = vpop.permute.xlu1 %4253  ;;  %v4250_v48 = vpop.permute.xlu0 %4249  ;;  %v3772_v61 = vrot.slane %v3771_v41, 4  ;;  %v3807_v35 = vmax.f32 %v3806_v7, %v3741_v20  ;;  %v4076_v51 = vsel %vm3980_vm2, %v8900_v53, -3e+38  ;;  %v4075_v14 = vsel %vm3979_vm1, %v10224_v6, -3e+38  ;;  %v10227_v52 = vld [vmem:[#allocation100_spill] sm:$0xff] }
 0x462   : >> { %vm4334_vm15 = vcmp.gt.f32.partialorder %v4254_v60, 0.5  ;;  %vm4333_vm4 = vcmp.gt.f32.partialorder %v4250_v48, 0.5  ;;  %vm3981_vm5 = vcmp.gt.f32.partialorder %v10225_v59, 0.5  ;;  %vm3984_vm12 = vcmp.gt.f32.partialorder %v10226_v63, 0.5  ;;  %v10228_v19 = vld [vmem:[#allocation102_spill] sm:$0xff] }
 0x463   : >> { %v4430_v22 = vsel %vm4334_vm15, %v8980_v36, -3e+38  ;;  %v4429_v16 = vsel %vm4333_vm4, %v8983_v34, -3e+38  ;;  %4901 = vbcast.lane.b32.xlu1 %v8268_v26, 376  ;;  %4885 = vbcast.lane.b32.xlu0 %v8252_v24, 376  ;;  %v9139_v7 = vmax.f32 %v9004_v21, %v3427_v46  ;;  %v4107_v63 = vmax.f32 %v4075_v14, %v4076_v51 }
 0x464   : >> { %v4475_v62 = vmax.f32 %v4474_v40, %v4429_v16  ;;  %vm3983_vm8 = vcmp.gt.f32.partialorder %v10227_v52, 0.5  ;;  %vm3985_vm13 = vcmp.gt.f32.partialorder %v10228_v19, 0.5  ;;  %v10229_v24 = vld [vmem:[#allocation27_spill] sm:$0xff]  ;;  %v3808_v60 = vrot.slane %v3807_v35, 4  ;;  %v10230_v52 = vld [vmem:[#allocation97_spill] sm:$0xff] }
 0x465   : >> { %v4262_v30 = vpop.permute.xlu1 %4261  ;;  %v4258_v2 = vpop.permute.xlu0 %4257  ;;  %v4080_v48 = vsel %vm3984_vm12, %v8900_v53, -3e+38  ;;  %vm3982_vm10 = vcmp.gt.f32.partialorder %v10230_v52, 0.5  ;;  %v4077_v21 = vsel %vm3981_vm5, %v8939_v45, -3e+38  ;;  %v3773_v59 = vmax.f32 %v3771_v41, %v3772_v61  ;;  %v10233_v19 = vld [vmem:[#allocation87_spill] sm:$0xff] }
 0x466   : >> { %v9132_v26 = vmax.f32 %v4475_v62, %v4430_v22  ;;  %vm4336_vm6 = vcmp.gt.f32.partialorder %v4262_v30, 0.5  ;;  %vm4335_vm3 = vcmp.gt.f32.partialorder %v4258_v2, 0.5  ;;  %v4079_v22 = vsel %vm3983_vm8, %v10224_v6, -3e+38  ;;  %v10231_v2 = vld [vmem:[#allocation101_spill] sm:$0xff] }
 0x467   : >> { %v4432_v40 = vsel %vm4336_vm6, %v8950_v44, -3e+38  ;;  %v4431_v20 = vsel %vm4335_vm3, %v8953_v49, -3e+38  ;;  %4953 = vbcast.lane.b32.xlu1 %v8336_v1, 352  ;;  %4929 = vbcast.lane.b32.xlu0 %v8302_v47, 368  ;;  %v4116_v51 = vmax.f32 %v4079_v22, %v4080_v48  ;;  %v3809_v62 = vmax.f32 %v3807_v35, %v3808_v60 }
 0x468   : >> { %v4483_v16 = vmax.f32 %v4431_v20, %v4432_v40  ;;  %vm3986_vm0 = vcmp.gt.f32.partialorder %v10231_v2, 0.5  ;;  %v4081_v25 = vsel %vm3985_vm13, %v8939_v45, -3e+38  ;;  %v10232_v40 = vld [vmem:[#allocation47_spill] sm:$0xff]  ;;  %v4108_v13 = vmax.f32 %v4107_v63, %v4077_v21  ;;  %v10236_v21 = vld [vmem:[#allocation26_spill] sm:$0xff] }
 0x469   : >> { %v4270_v46 = vpop.permute.xlu1 %4269  ;;  %v4266_v30 = vpop.permute.xlu0 %4265  ;;  %vm3633_vm11 = vcmp.gt.f32.partialorder %v10233_v19, 0.5  ;;  %v4078_v48 = vsel %vm3982_vm10, %v8936_v18, -3e+38  ;;  %v4117_v22 = vmax.f32 %v4116_v51, %v4081_v25  ;;  %v4082_v43 = vsel %vm3986_vm0, %v8936_v18, -3e+38 }
 0x46a   : >> { %vm4338_vm9 = vcmp.gt.f32.partialorder %v4270_v46, 0.5  ;;  %vm4337_vm14 = vcmp.gt.f32.partialorder %v4266_v30, 0.5  ;;  %v10234_v46 = vld [vmem:[#allocation88_spill] sm:$0xff]  ;;  %v3778_v41 = vmax.f32 %v9112_v32, %v9103_v3  ;;  %v3810_v25 = vrot.slane %v3809_v62, 2 }
 0x46b   : >> { %v4434_v14 = vsel %vm4338_vm9, %v8980_v36, -3e+38  ;;  %v4433_v23 = vsel %vm4337_vm14, %v8983_v34, -3e+38  ;;  %4637 = vbcast.lane.b32.xlu1 %v8353_v42, 336  ;;  %4957 = vbcast.lane.b32.xlu0 %v8336_v1, 360  ;;  %v4109_v60 = vmax.f32 %v4108_v13, %v4078_v48  ;;  %v4118_v3 = vmax.f32 %v4117_v22, %v4082_v43 }
 0x46c   : >> { %v4484_v58 = vmax.f32 %v4483_v16, %v4433_v23  ;;  %vm3632_vm7 = vcmp.gt.f32.partialorder %v10234_v46, 0.5  ;;  %v9175_v23 = vmax.f32 %v9006_v38, %v3436_v54  ;;  %v3774_v38 = vrot.slane %v3773_v59, 2  ;;  %v10235_v32 = vld [vmem:[#allocation24_spill] sm:$0xff]  ;;  %v10239_v22 = vld [vmem:[#allocation35_spill] sm:$0xff] }
 0x46d   : >> { %v4278_v30 = vpop.permute.xlu1 %4277  ;;  %v4274_v20 = vpop.permute.xlu0 %4273  ;;  %v3728_v54 = vsel %vm3632_vm7, %v8881_v9, -3e+38  ;;  %vm3988_vm15 = vcmp.gt.f32.partialorder %v10235_v32, 0.5  ;;  %vm3987_vm4 = vcmp.gt.f32.partialorder %v10236_v21, 0.5  ;;  %v10238_v13 = vrot.slane %v9032_v27, 2 }
 0x46e   : >> { %v9170_v17 = vmax.f32 %v4484_v58, %v4434_v14  ;;  %vm4340_vm2 = vcmp.gt.f32.partialorder %v4278_v30, 0.5  ;;  %vm4339_vm1 = vcmp.gt.f32.partialorder %v4274_v20, 0.5  ;;  %v3729_v58 = vsel %vm3633_vm11, %v8927_v4, -3e+38 }
 0x46f   : >> { %v4436_v61 = vsel %vm4340_vm2, %v8950_v44, -3e+38  ;;  %v4435_v35 = vsel %vm4339_vm1, %v8953_v49, -3e+38  ;;  %4945 = vbcast.lane.b32.xlu1 %v8319_v12, 368  ;;  %4917 = vbcast.lane.b32.xlu0 %v8285_v37, 376  ;;  %v3477_v4 = vmax.f32 %v8969_v28, %v9175_v23  ;;  %v9197_v2 = vmax.f32 %v9032_v27, %v10238_v13 }
 0x470   : >> { %v4492_v16 = vmax.f32 %v4435_v35, %v4436_v61  ;;  %v10237_v37 = vld [vmem:[#allocation36_spill] sm:$0xff]  ;;  %v3779_v20 = vmax.f32 %v3778_v41, %v3728_v54  ;;  %v3811_v51 = vmax.f32 %v3809_v62, %v3810_v25  ;;  %v4110_v14 = vrot.slane %v4109_v60, 4 }
 0x471   : >> { %v4286_v63 = vpop.permute.xlu1 %4285  ;;  %v4282_v52 = vpop.permute.xlu0 %4281  ;;  %vm3989_vm5 = vcmp.gt.f32.partialorder %v10237_v37, 0.5  ;;  %v4119_v46 = vrot.slane %v4118_v3, 4  ;;  %v4084_v48 = vsel %vm3988_vm15, %v8900_v53, -3e+38  ;;  %v4083_v27 = vsel %vm3987_vm4, %v10224_v6, -3e+38 }
 0x472   : >> { %vm4342_vm12 = vcmp.gt.f32.partialorder %v4286_v63, 0.5  ;;  %vm4341_vm8 = vcmp.gt.f32.partialorder %v4282_v52, 0.5  ;;  %vm3990_vm13 = vcmp.gt.f32.partialorder %v10239_v22, 0.5  ;;  %v4085_v41 = vsel %vm3989_vm5, %v8939_v45, -3e+38 }
 0x473   : >> { %v4438_v9 = vsel %vm4342_vm12, %v8980_v36, -3e+38  ;;  %v4437_v43 = vsel %vm4341_vm8, %v8983_v34, -3e+38  ;;  %4973 = vbcast.lane.b32.xlu1 %v8353_v42, 360  ;;  %4969 = vbcast.lane.b32.xlu0 %v8353_v42, 352  ;;  %v3775_v52 = vmax.f32 %v3773_v59, %v3774_v38  ;;  %v4111_v21 = vmax.f32 %v4109_v60, %v4110_v14 }
 0x474   : >> { %v4493_v19 = vmax.f32 %v4492_v16, %v4437_v43  ;;  %v10240_v35 = vrot.slane %v9034_v5, 1  ;;  %v10241_v16 = vrot.slane %v9069_v11, 1  ;;  %v4125_v37 = vmax.f32 %v4083_v27, %v4084_v48 }
 0x475   : >> { %v4294_v30 = vpop.permute.xlu1 %4293  ;;  %v4290_v61 = vpop.permute.xlu0 %4289  ;;  %v3812_v43 = vrot.slane %v3811_v51, 1  ;;  %v10243_v60 = vrot.slane %v9071_v10, 1  ;;  %v4112_v48 = vrot.slane %v4111_v21, 2 }
 0x476   : >> { %v9213_v62 = vmax.f32 %v4493_v19, %v4438_v9  ;;  %vm4344_vm6 = vcmp.gt.f32.partialorder %v4294_v30, 0.5  ;;  %vm4343_vm3 = vcmp.gt.f32.partialorder %v4290_v61, 0.5  ;;  %v9218_v25 = vmax.f32 %v9034_v5, %v10240_v35  ;;  %v10242_v19 = vld [vmem:[#allocation67_spill] sm:$0xff] }
 0x477   : >> { %v3750_v54 = vmax.f32 %v9069_v11, %v10241_v16  ;;  %v4440_v32 = vsel %vm4344_vm6, %v8950_v44, -3e+38  ;;  %v4439_v63 = vsel %vm4343_vm3, %v8953_v49, -3e+38  ;;  %4653 = vbcast.lane.b32.xlu1 %v8370_v33, 336  ;;  %4625 = vbcast.lane.b32.xlu0 %v8336_v1, 344  ;;  %v3780_v9 = vmax.f32 %v3779_v20, %v3729_v58 }
 0x478   : >> { %v4501_v13 = vmax.f32 %v4439_v63, %v4440_v32  ;;  %v4120_v5 = vmax.f32 %v4118_v3, %v4119_v46  ;;  %v4173_v30 = vrot.slane %v10242_v19, 4  ;;  %v4086_v11 = vsel %vm3990_vm13, %v8936_v18, -3e+38 }
 0x479   : >> { %v4302_v61 = vpop.permute.xlu1 %4301  ;;  %v4298_v35 = vpop.permute.xlu0 %4297  ;;  %v4126_v16 = vmax.f32 %v4125_v37, %v4085_v41  ;;  %v3481_v59 = vmax.f32 %v9090_v56, %v9218_v25  ;;  %v3759_v58 = vmax.f32 %v9071_v10, %v10243_v60  ;;  %v10244_v20 = vrot.slane %v9120_v8, 1 }
 0x47a   : >> { %vm4346_vm10 = vcmp.gt.f32.partialorder %v4302_v61, 0.5  ;;  %vm4345_vm0 = vcmp.gt.f32.partialorder %v4298_v35, 0.5  ;;  %v3776_v46 = vrot.slane %v3775_v52, 1  ;;  %v10245_v56 = vmax.f32 %v8746_v29, %v9050_v31  ;;  %v10248_v35 = vld [vmem:[#allocation38_spill] sm:$0xff] }
 0x47b   : >> { %v4442_v38 = vsel %vm4346_vm10, %v8980_v36, -3e+38  ;;  %v4441_v3 = vsel %vm4345_vm0, %v8983_v34, -3e+38  ;;  %4961 = vbcast.lane.b32.xlu1 %v8336_v1, 368  ;;  %4933 = vbcast.lane.b32.xlu0 %v8302_v47, 376  ;;  %v3768_v14 = vmax.f32 %v9120_v8, %v10244_v20  ;;  %v4174_v25 = vmax.f32 %v10242_v19, %v4173_v30 }
 0x47c   : >> { %v4502_v27 = vmax.f32 %v4501_v13, %v4441_v3  ;;  %v9246_v22 = vmax.f32 %v10245_v56, %v3750_v54  ;;  %v3781_v10 = vrot.slane %v3780_v9, 4  ;;  %v4121_v41 = vrot.slane %v4120_v5, 2  ;;  %v9290_v3 = vld [vmem:[%s6577_s10 + $0xc0] sm:$0xff]  ;;  %v9297_v56 = vld [vmem:[%s6577_s10 + $0xd8] sm:$0xff] }
 0x47d   : >> { %v4310_v32 = vpop.permute.xlu1 %4309  ;;  %v4306_v63 = vpop.permute.xlu0 %4305  ;;  %v4127_v37 = vmax.f32 %v4126_v16, %v4086_v11  ;;  %v10246_v8 = vmax.f32 %v10229_v24, %v9118_v15  ;;  %v3813_v61 = vmax.f32 %v3811_v51, %v3812_v43  ;;  %v10247_v54 = vmax.f32 %v10232_v40, %v9139_v7  ;;  %v10249_v51 = vld [vmem:[#allocation25_spill] sm:$0xff]  ;;  %v9273_v7 = vld [vmem:[%s6577_s10 + $0xc8] sm:$0xff] }
 0x47e   : >> { %v9249_v47 = vmax.f32 %v4502_v27, %v4442_v38  ;;  %vm4348_vm9 = vcmp.gt.f32.partialorder %v4310_v32, 0.5  ;;  %vm4347_vm14 = vcmp.gt.f32.partialorder %v4306_v63, 0.5  ;;  %v9265_v30 = vmax.f32 %v3775_v52, %v3776_v46 }
 0x47f   : >> { %v9254_v13 = vmax.f32 %v10246_v8, %v3759_v58  ;;  %v4444_v29 = vsel %vm4348_vm9, %v8950_v44, -3e+38  ;;  %v4443_v31 = vsel %vm4347_vm14, %v8953_v49, -3e+38  ;;  %4989 = vbcast.lane.b32.xlu1 %v8370_v33, 360  ;;  %4985 = vbcast.lane.b32.xlu0 %v8370_v33, 352  ;;  %v9263_v19 = vmax.f32 %v10247_v54, %v3768_v14 }
 0x480   : >> { %v4113_v15 = vmax.f32 %v4111_v21, %v4112_v48  ;;  %v4510_v24 = vmax.f32 %v4443_v31, %v4444_v29  ;;  %vm3992_vm11 = vcmp.gt.f32.partialorder %v10248_v35, 0.5  ;;  %vm3991_vm7 = vcmp.gt.f32.partialorder %v10249_v51, 0.5  ;;  %v10252_v29 = vld [vmem:[#allocation40_spill] sm:$0xff] }
 0x481   : >> { %v4175_v44 = vrot.slane %v4174_v25, 2  ;;  %v4450_v49 = vrot.slane %v9011_v57, 4  ;;  %v4318_v43 = vpop.permute.xlu1 %4317  ;;  %v4314_v11 = vpop.permute.xlu0 %4313  ;;  %v9270_v16 = vmax.f32 %v4120_v5, %v4121_v41  ;;  %v4128_v60 = vrot.slane %v4127_v37, 4 }
 0x482   : >> { %vm4350_vm2 = vcmp.gt.f32.partialorder %v4318_v43, 0.5  ;;  %vm4349_vm1 = vcmp.gt.f32.partialorder %v4314_v11, 0.5  ;;  %v9275_v40 = vmax.f32 %v3780_v9, %v3781_v10  ;;  %v9277_v52 = vmax.f32 %v3481_v59, %v3813_v61  ;;  %v9312_v61 = vld [vmem:[%s6577_s10 + $0xd0] sm:$0xff] }
 0x483   : >> { %v4446_v21 = vsel %vm4350_vm2, %v8980_v36, -3e+38  ;;  %v4445_v58 = vsel %vm4349_vm1, %v8983_v34, -3e+38  ;;  %4949 = vbcast.lane.b32.xlu1 %v8319_v12, 376  ;;  %4641 = vbcast.lane.b32.xlu0 %v8353_v42, 344  ;;  %v4176_v12 = vmax.f32 %v4174_v25, %v4175_v44  ;;  %v4451_v20 = vmax.f32 %v9011_v57, %v4450_v49 }
 0x484   : >> { %v4114_v5 = vrot.slane %v4113_v15, 1  ;;  %v4088_v38 = vsel %vm3992_vm11, %v8900_v53, -3e+38  ;;  %v4087_v9 = vsel %vm3991_vm7, %v10224_v6, -3e+38  ;;  %v4511_v59 = vmax.f32 %v4510_v24, %v4445_v58  ;;  %v10250_v36 = vld [vmem:[#allocation22_spill] sm:$0xff] }
 0x485   : >> { %vm3994_vm15 = vcmp.gt.f32.partialorder %v10250_v36, 0.5  ;;  %v10251_v34 = vld [vmem:[#allocation39_spill] sm:$0xff]  ;;  %v4538_v14 = vpop.permute.xlu1 %4537  ;;  %v4534_v46 = vpop.permute.xlu0 %4533  ;;  %v4123_v48 = vrot.slane %v9270_v16, 1  ;;  %v9299_v10 = vmax.f32 %v4127_v37, %v4128_v60  ;;  %v4134_v41 = vmax.f32 %v4087_v9, %v4088_v38  ;;  %v10253_v44 = vld [vmem:[#allocation42_spill] sm:$0xff] }
 0x486   : >> { %vm3993_vm4 = vcmp.gt.f32.partialorder %v10251_v34, 0.5  ;;  %v4512_v27 = vmax.f32 %v4511_v59, %v4446_v21  ;;  %vm4660_vm5 = vcmp.gt.f32.partialorder %v4538_v14, 0.5  ;;  %vm4659_vm12 = vcmp.gt.f32.partialorder %v4534_v46, 0.5 }
 0x487   : >> { %v4756_v32 = vsel %vm4660_vm5, %v9273_v7, -3e+38  ;;  %v4755_v63 = vsel %vm4659_vm12, %v9290_v3, -3e+38  ;;  %4657 = vbcast.lane.b32.xlu1 %v8370_v33, 344  ;;  %4977 = vbcast.lane.b32.xlu0 %v8353_v42, 368  ;;  %v9317_v43 = vmax.f32 %v4113_v15, %v4114_v5 }
 0x488   : >> { %v4090_v57 = vsel %vm3994_vm15, %v8936_v18, -3e+38  ;;  %v4089_v25 = vsel %vm3993_vm4, %v8939_v45, -3e+38  ;;  %v4513_v8 = vrot.slane %v4512_v27, 4  ;;  %v4787_v37 = vmax.f32 %v4755_v63, %v4756_v32 }
 0x489   : >> { %vm3996_vm8 = vcmp.gt.f32.partialorder %v10252_v29, 0.5  ;;  %v4177_v31 = vrot.slane %v4176_v12, 1  ;;  %v4452_v54 = vrot.slane %v4451_v20, 2  ;;  %v4459_v24 = vrot.slane %v9045_v50, 4  ;;  %v4546_v35 = vpop.permute.xlu1 %4545  ;;  %v4542_v51 = vpop.permute.xlu0 %4541 }
 0x48a   : >> { %vm3995_vm13 = vcmp.gt.f32.partialorder %v10253_v44, 0.5  ;;  %v4514_v49 = vmax.f32 %v4512_v27, %v4513_v8  ;;  %vm4662_vm6 = vcmp.gt.f32.partialorder %v4546_v35, 0.5  ;;  %vm4661_vm3 = vcmp.gt.f32.partialorder %v4542_v51, 0.5  ;;  %v10255_v51 = vld [vmem:[#allocation43_spill] sm:$0xff] }
 0x48b   : >> { %v4135_v11 = vmax.f32 %v4134_v41, %v4089_v25  ;;  %v4758_v60 = vsel %vm4662_vm6, %v9297_v56, -3e+38  ;;  %v4757_v21 = vsel %vm4661_vm3, %v9312_v61, -3e+38  ;;  %4993 = vbcast.lane.b32.xlu1 %v8370_v33, 368  ;;  %4965 = vbcast.lane.b32.xlu0 %v8336_v1, 376  ;;  %v4178_v5 = vmax.f32 %v4176_v12, %v4177_v31 }
 0x48c   : >> { %v4130_v58 = vrot.slane %v9299_v10, 2  ;;  %v4092_v38 = vsel %vm3996_vm8, %v8900_v53, -3e+38  ;;  %v4515_v9 = vrot.slane %v4514_v49, 2  ;;  %v4788_v59 = vmax.f32 %v4787_v37, %v4757_v21 }
 0x48d   : >> { %v4091_v15 = vsel %vm3995_vm13, %v10224_v6, -3e+38  ;;  %v4453_v36 = vmax.f32 %v4451_v20, %v4452_v54  ;;  %v4460_v34 = vmax.f32 %v9045_v50, %v4459_v24  ;;  %v4554_v14 = vpop.permute.xlu1 %4553  ;;  %v4550_v46 = vpop.permute.xlu0 %4549  ;;  %v4179_v1 = vmax.f32 %v9246_v22, %v9317_v43  ;;  %v10254_v6 = vld [vmem:[#allocation44_spill] sm:$0xff] }
 0x48e   : >> { %v4516_v27 = vmax.f32 %v4514_v49, %v4515_v9  ;;  %v4789_v41 = vmax.f32 %v4788_v59, %v4758_v60  ;;  %vm4664_vm10 = vcmp.gt.f32.partialorder %v4554_v14, 0.5  ;;  %vm4663_vm0 = vcmp.gt.f32.partialorder %v4550_v46, 0.5 }
 0x48f   : >> { %v4136_v32 = vmax.f32 %v4135_v11, %v4090_v57  ;;  %v4760_v53 = vsel %vm4664_vm10, %v9273_v7, -3e+38  ;;  %v4759_v63 = vsel %vm4663_vm0, %v9290_v3, -3e+38  ;;  %4997 = vbcast.lane.b32.xlu1 %v8370_v33, 376  ;;  %4981 = vbcast.lane.b32.xlu0 %v8353_v42, 376  ;;  %v4186_v25 = vmax.f32 %v9277_v52, %v4178_v5 }
 0x490   : >> { %vm3997_vm9 = vcmp.gt.f32.partialorder %v10254_v6, 0.5  ;;  %v4517_v50 = vrot.slane %v4516_v27, 1  ;;  %v4790_v12 = vrot.slane %v4789_v41, 4  ;;  %v4796_v20 = vmax.f32 %v4759_v63, %v4760_v53 }
 0x491   : >> { %v4454_v8 = vrot.slane %v4453_v36, 1  ;;  %v4461_v37 = vrot.slane %v4460_v34, 2  ;;  %v4468_v22 = vrot.slane %v9086_v39, 4  ;;  %v4562_v57 = vpop.permute.xlu1 %4561  ;;  %v4558_v29 = vpop.permute.xlu0 %4557  ;;  %v4137_v33 = vrot.slane %v4136_v32, 4 }
 0x492   : >> { %v4518_v31 = vmax.f32 %v4516_v27, %v4517_v50  ;;  %v4791_v54 = vmax.f32 %v4789_v41, %v4790_v12  ;;  %vm4666_vm14 = vcmp.gt.f32.partialorder %v4562_v57, 0.5  ;;  %vm4665_vm11 = vcmp.gt.f32.partialorder %v4558_v29, 0.5  ;;  %v10281_v57 = vld [vmem:[#allocation64_spill] sm:$0xff] }
 0x493   : >> { %v4143_v24 = vmax.f32 %v4091_v15, %v4092_v38  ;;  %v4762_v42 = vsel %vm4666_vm14, %v9297_v56, -3e+38  ;;  %v4761_v35 = vsel %vm4665_vm11, %v9312_v61, -3e+38  ;;  %vm3998_vm7 = vcmp.gt.f32.partialorder %v10255_v51, 0.5 }
 0x494   : >> { %v4792_v44 = vrot.slane %v4791_v54, 2  ;;  %v4797_v52 = vmax.f32 %v4796_v20, %v4761_v35  ;;  %v9341_v49 = vmax.f32 %v4186_v25, %v4518_v31  ;;  %v4093_v43 = vsel %vm3997_vm9, %v8939_v45, -3e+38 }
 0x495   : >> { %v4455_v11 = vmax.f32 %v4453_v36, %v4454_v8  ;;  %v4462_v60 = vmax.f32 %v4460_v34, %v4461_v37  ;;  %v4469_v21 = vmax.f32 %v9086_v39, %v4468_v22  ;;  %v4570_v9 = vpop.permute.xlu1 %4569  ;;  %v4566_v38 = vpop.permute.xlu0 %4565  ;;  %v4124_v5 = vmax.f32 %v9270_v16, %v4123_v48 }
 0x496   : >> { %10256 = vst [vmem:[#allocation68_spill] sm:$0xff] %v9341_v49  ;;  %v4793_v59 = vmax.f32 %v4791_v54, %v4792_v44  ;;  %v4798_v15 = vmax.f32 %v4797_v52, %v4762_v42  ;;  %vm4668_vm2 = vcmp.gt.f32.partialorder %v4570_v9, 0.5  ;;  %vm4667_vm1 = vcmp.gt.f32.partialorder %v4566_v38, 0.5  ;;  %v10285_v49 = vld [vmem:[#allocation45_spill] sm:$0xff] }
 0x497   : >> { %v4094_v14 = vsel %vm3998_vm7, %v8936_v18, -3e+38  ;;  %v4764_v46 = vsel %vm4668_vm2, %v9273_v7, -3e+38  ;;  %v4763_v45 = vsel %vm4667_vm1, %v9290_v3, -3e+38  ;;  %v4144_v36 = vmax.f32 %v4143_v24, %v4093_v43 }
 0x498   : >> { %v4794_v34 = vrot.slane %v4793_v59, 1  ;;  %v4799_v27 = vrot.slane %v4798_v15, 4  ;;  %v4805_v39 = vmax.f32 %v4763_v45, %v4764_v46  ;;  %v9353_v41 = vmax.f32 %v4179_v1, %v4455_v11 }
 0x499   : >> { %v4463_v53 = vrot.slane %v4462_v60, 1  ;;  %v4470_v63 = vrot.slane %v4469_v21, 2  ;;  %v4477_v6 = vrot.slane %v9132_v26, 4  ;;  %v4578_v50 = vpop.permute.xlu1 %4577  ;;  %v4574_v12 = vpop.permute.xlu0 %4573  ;;  %v4131_v18 = vmax.f32 %v9299_v10, %v4130_v58 }
 0x49a   : >> { %v9356_v20 = vmax.f32 %v4793_v59, %v4794_v34  ;;  %v4800_v16 = vmax.f32 %v4798_v15, %v4799_v27  ;;  %vm4670_vm15 = vcmp.gt.f32.partialorder %v4578_v50, 0.5  ;;  %vm4669_vm4 = vcmp.gt.f32.partialorder %v4574_v12, 0.5 }
 0x49b   : >> { %v4138_v48 = vmax.f32 %v4136_v32, %v4137_v33  ;;  %v4766_v25 = vsel %vm4670_vm15, %v9297_v56, -3e+38  ;;  %v4765_v1 = vsel %vm4669_vm4, %v9312_v61, -3e+38  ;;  %v4145_v8 = vmax.f32 %v4144_v36, %v4094_v14 }
 0x49c   : >> { %v4801_v37 = vrot.slane %v4800_v16, 2  ;;  %v4806_v22 = vmax.f32 %v4805_v39, %v4765_v1  ;;  %v4180_v29 = vmax.f32 %v9254_v13, %v4124_v5  ;;  %v4464_v31 = vmax.f32 %v4462_v60, %v4463_v53 }
 0x49d   : >> { %v4471_v54 = vmax.f32 %v4469_v21, %v4470_v63  ;;  %v4478_v24 = vmax.f32 %v9132_v26, %v4477_v6  ;;  %v4586_v42 = vpop.permute.xlu1 %4585  ;;  %v4582_v35 = vpop.permute.xlu0 %4581  ;;  %v4132_v32 = vrot.slane %v4131_v18, 1  ;;  %v4139_v33 = vrot.slane %v4138_v48, 2 }
 0x49e   : >> { %v4802_v10 = vmax.f32 %v4800_v16, %v4801_v37  ;;  %v4807_v58 = vmax.f32 %v4806_v22, %v4766_v25  ;;  %vm4672_vm5 = vcmp.gt.f32.partialorder %v4586_v42, 0.5  ;;  %vm4671_vm12 = vcmp.gt.f32.partialorder %v4582_v35, 0.5 }
 0x49f   : >> { %v4768_v51 = vsel %vm4672_vm5, %v9273_v7, -3e+38  ;;  %v4767_v44 = vsel %vm4671_vm12, %v9290_v3, -3e+38  ;;  %v4146_v52 = vrot.slane %v4145_v8, 4  ;;  %v9369_v60 = vmax.f32 %v4180_v29, %v4464_v31 }
 0x4a0   : >> { %v4803_v43 = vrot.slane %v4802_v10, 1  ;;  %v4808_v11 = vrot.slane %v4807_v58, 4  ;;  %v4814_v13 = vmax.f32 %v4767_v44, %v4768_v51  ;;  %v4472_v21 = vrot.slane %v4471_v54, 1 }
 0x4a1   : >> { %v4479_v26 = vrot.slane %v4478_v24, 2  ;;  %v4486_v9 = vrot.slane %v9170_v17, 4  ;;  %v4594_v38 = vpop.permute.xlu1 %4593  ;;  %v4590_v59 = vpop.permute.xlu0 %4589  ;;  %v4133_v14 = vmax.f32 %v4131_v18, %v4132_v32  ;;  %v4140_v46 = vmax.f32 %v4138_v48, %v4139_v33 }
 0x4a2   : >> { %v9372_v15 = vmax.f32 %v4802_v10, %v4803_v43  ;;  %v4809_v5 = vmax.f32 %v4807_v58, %v4808_v11  ;;  %vm4674_vm8 = vcmp.gt.f32.partialorder %v4594_v38, 0.5  ;;  %vm4673_vm13 = vcmp.gt.f32.partialorder %v4590_v59, 0.5  ;;  %v10279_v38 = vld [vmem:[#allocation63_spill] sm:$0xff] }
 0x4a3   : >> { %v4770_v45 = vsel %vm4674_vm8, %v9297_v56, -3e+38  ;;  %v4769_v36 = vsel %vm4673_vm13, %v9312_v61, -3e+38  ;;  %v4147_v34 = vmax.f32 %v4145_v8, %v4146_v52  ;;  %v3783_v63 = vrot.slane %v9275_v40, 2 }
 0x4a4   : >> { %v4810_v27 = vrot.slane %v4809_v5, 2  ;;  %v4815_v39 = vmax.f32 %v4814_v13, %v4769_v36  ;;  %v4473_v6 = vmax.f32 %v4471_v54, %v4472_v21  ;;  %v4480_v50 = vmax.f32 %v4478_v24, %v4479_v26  ;;  %v9393_v26 = vld [vmem:[%s6577_s10 + $0xe8] sm:$0xff] }
 0x4a5   : >> { %v4487_v12 = vmax.f32 %v9170_v17, %v4486_v9  ;;  %v4602_v16 = vpop.permute.xlu1 %4601  ;;  %v4598_v25 = vpop.permute.xlu0 %4597  ;;  %v4181_v1 = vmax.f32 %v9263_v19, %v4133_v14  ;;  %v4141_v8 = vrot.slane %v4140_v46, 1  ;;  %v4148_v29 = vrot.slane %v4147_v34, 2  ;;  %v10258_v19 = vld [vmem:[#allocation59_spill] sm:$0xff] }
 0x4a6   : >> { %v4811_v18 = vmax.f32 %v4809_v5, %v4810_v27  ;;  %v4816_v48 = vmax.f32 %v4815_v39, %v4770_v45  ;;  %vm4676_vm6 = vcmp.gt.f32.partialorder %v4602_v16, 0.5  ;;  %vm4675_vm3 = vcmp.gt.f32.partialorder %v4598_v25, 0.5  ;;  %v9396_v9 = vld [vmem:[%s6577_s10 + $0xe0] sm:$0xff] }
 0x4a7   : >> { %v4772_v37 = vsel %vm4676_vm6, %v9273_v7, -3e+38  ;;  %v4771_v22 = vsel %vm4675_vm3, %v9290_v3, -3e+38  ;;  %v3784_v24 = vmax.f32 %v9275_v40, %v3783_v63  ;;  %v9384_v17 = vmax.f32 %v4181_v1, %v4473_v6 }
 0x4a8   : >> { %v4812_v31 = vrot.slane %v4811_v18, 1  ;;  %v4817_v42 = vrot.slane %v4816_v48, 4  ;;  %v4823_v54 = vmax.f32 %v4771_v22, %v4772_v37  ;;  %v4481_v35 = vrot.slane %v4480_v50, 1  ;;  %v10263_v22 = vld [vmem:[#allocation62_spill] sm:$0xff] }
 0x4a9   : >> { %10257 = vst [vmem:[#allocation32_spill] sm:$0xff] %v9384_v17  ;;  %v4488_v10 = vrot.slane %v4487_v12, 2  ;;  %v4610_v58 = vpop.permute.xlu1 %4609  ;;  %v4606_v32 = vpop.permute.xlu0 %4605  ;;  %vm3295_vm10 = vcmp.gt.f32.partialorder %v10258_v19, 0.5  ;;  %v3445_v44 = vrot.slane %v9197_v2, 1  ;;  %v4142_v52 = vmax.f32 %v4140_v46, %v4141_v8  ;;  %v10290_v17 = vld [vmem:[#allocation30_spill] sm:$0xff] }
 0x4aa   : >> { %v9387_v33 = vmax.f32 %v4811_v18, %v4812_v31  ;;  %v4818_v51 = vmax.f32 %v4816_v48, %v4817_v42  ;;  %vm4678_vm0 = vcmp.gt.f32.partialorder %v4610_v58, 0.5  ;;  %vm4677_vm9 = vcmp.gt.f32.partialorder %v4606_v32, 0.5  ;;  %v9437_v58 = vld [vmem:[%s6577_s10 + $0x40] sm:$0xff] }
 0x4ab   : >> { %v4774_v40 = vsel %vm4678_vm0, %v9297_v56, -3e+38  ;;  %v4773_v43 = vsel %vm4677_vm9, %v9312_v61, -3e+38  ;;  %v4149_v11 = vmax.f32 %v4147_v34, %v4148_v29  ;;  %v3817_v59 = vmax.f32 %v3477_v4, %v9265_v30 }
 0x4ac   : >> { %10259 = vst [vmem:[#allocation49_spill] sm:$0xff] %v9387_v33  ;;  %v4819_v13 = vrot.slane %v4818_v51, 2  ;;  %v4824_v21 = vmax.f32 %v4823_v54, %v4773_v43  ;;  %v3785_v5 = vrot.slane %v3784_v24, 1  ;;  %v4482_v14 = vmax.f32 %v4480_v50, %v4481_v35  ;;  %v10260_v50 = vld [vmem:[#allocation60_spill] sm:$0xff] }
 0x4ad   : >> { %v4489_v46 = vmax.f32 %v4487_v12, %v4488_v10  ;;  %v4878_v45 = vpop.permute.xlu1 %4877  ;;  %v4874_v36 = vpop.permute.xlu0 %4873  ;;  %v3446_v39 = vmax.f32 %v9197_v2, %v3445_v44  ;;  %v4182_v63 = vmax.f32 %v3817_v59, %v4142_v52  ;;  %v4150_v28 = vrot.slane %v4149_v11, 1  ;;  %v9431_v10 = vld [vmem:[%s6577_s10 + $0x48] sm:$0xff]  ;;  %v10264_v44 = vld [vmem:[#allocation89_spill] sm:$0xff] }
 0x4ae   : >> { %v4820_v34 = vmax.f32 %v4818_v51, %v4819_v13  ;;  %v4825_v27 = vmax.f32 %v4824_v21, %v4774_v40  ;;  %vm5000_vm14 = vcmp.gt.f32.partialorder %v4878_v45, 0.5  ;;  %vm4999_vm11 = vcmp.gt.f32.partialorder %v4874_v36, 0.5  ;;  %v10265_v13 = vld [vmem:[#allocation46_spill] sm:$0xff]  ;;  %v9446_v21 = vld [vmem:[%s6577_s10 + $0x50] sm:$0xff] }
 0x4af   : >> { %v9406_v6 = vsel %vm5000_vm14, %v9393_v26, -3e+38  ;;  %v9409_v16 = vsel %vm4999_vm11, %v9396_v9, -3e+38  ;;  %vm3294_vm7 = vcmp.gt.f32.partialorder %v10260_v50, 0.5  ;;  %v3786_v12 = vmax.f32 %v3784_v24, %v3785_v5  ;;  %v10266_v45 = vld [vmem:[#allocation90_spill] sm:$0xff] }
 0x4b0   : >> { %v4821_v23 = vrot.slane %v4820_v34, 1  ;;  %v4826_v4 = vrot.slane %v4825_v27, 4  ;;  %v9414_v25 = vmax.f32 %v4182_v63, %v4482_v14  ;;  %v4490_v2 = vrot.slane %v4489_v46, 1 }
 0x4b1   : >> { %v4894_v18 = vpop.permute.xlu1 %4893  ;;  %v4890_v48 = vpop.permute.xlu0 %4889  ;;  %v3478_v37 = vmax.f32 %v9015_v55, %v3446_v39  ;;  %vm3296_vm15 = vcmp.gt.f32.partialorder %v10263_v22, 0.5  ;;  %v4151_v42 = vmax.f32 %v4149_v11, %v4150_v28  ;;  %v3391_v55 = vsel %vm3295_vm10, %v9431_v10, -3e+38  ;;  %v9462_v39 = vld [vmem:[%s6577_s10 + $0x68] sm:$0xff]  ;;  %v10271_v22 = vld [vmem:[#allocation34_spill] sm:$0xff] }
 0x4b2   : >> { %10261 = vst [vmem:[#allocation53_spill] sm:$0xff] %v9414_v25  ;;  %v9416_v1 = vmax.f32 %v4820_v34, %v4821_v23  ;;  %v4827_v8 = vmax.f32 %v4825_v27, %v4826_v4  ;;  %vm5004_vm2 = vcmp.gt.f32.partialorder %v4894_v18, 0.5  ;;  %vm5003_vm1 = vcmp.gt.f32.partialorder %v4890_v48, 0.5  ;;  %v10267_v27 = vld [vmem:[#allocation61_spill] sm:$0xff]  ;;  %v10268_v28 = vld [vmem:[#allocation92_spill] sm:$0xff]  ;;  %v9473_v18 = vld [vmem:[%s6577_s10 + $0x60] sm:$0xff] }
 0x4b3   : >> { %v9421_v29 = vsel %vm5004_vm2, %v9393_v26, -3e+38  ;;  %v9424_v31 = vsel %vm5003_vm1, %v9396_v9, -3e+38  ;;  %v3390_v32 = vsel %vm3294_vm7, %v9437_v58, -3e+38  ;;  %v3818_v51 = vmax.f32 %v3478_v37, %v3786_v12 }
 0x4b4   : >> { %10262 = vst [vmem:[#allocation70_spill] sm:$0xff] %v9416_v1  ;;  %v4828_v54 = vrot.slane %v4827_v8, 2  ;;  %vm3635_vm4 = vcmp.gt.f32.partialorder %v10264_v44, 0.5  ;;  %v4491_v43 = vmax.f32 %v4489_v46, %v4490_v2  ;;  %v3109_v19 = vmax.f32 %v9021_v0, %v10265_v13  ;;  %v9493_v44 = vld [vmem:[%s6577_s10 + $0x70] sm:$0xff]  ;;  %v10284_v0 = vld [vmem:[#allocation66_spill] sm:$0xff] }
 0x4b5   : >> { %v4910_v52 = vpop.permute.xlu1 %4909  ;;  %v4906_v40 = vpop.permute.xlu0 %4905  ;;  %v3392_v59 = vsel %vm3296_vm15, %v9446_v21, -3e+38  ;;  %vm3634_vm8 = vcmp.gt.f32.partialorder %v10266_v45, 0.5  ;;  %v4183_v46 = vmax.f32 %v3818_v51, %v4151_v42  ;;  %v3447_v34 = vmax.f32 %v3390_v32, %v3391_v55  ;;  %v6183_v42 = vld [vmem:[%s6577_s10 + $0x58] sm:$0xff]  ;;  %v10280_v55 = vld [vmem:[#allocation29_spill] sm:$0xff] }
 0x4b6   : >> { %v4829_v11 = vmax.f32 %v4827_v8, %v4828_v54  ;;  %vm5008_vm5 = vcmp.gt.f32.partialorder %v4910_v52, 0.5  ;;  %vm5007_vm12 = vcmp.gt.f32.partialorder %v4906_v40, 0.5  ;;  %vm3297_vm13 = vcmp.gt.f32.partialorder %v10267_v27, 0.5  ;;  %v10272_v40 = vld [vmem:[#allocation28_spill] sm:$0xff] }
 0x4b7   : >> { %v9452_v5 = vsel %vm5008_vm5, %v9393_v26, -3e+38  ;;  %v9455_v14 = vsel %vm5007_vm12, %v9396_v9, -3e+38  ;;  %v3731_v63 = vsel %vm3635_vm4, %v9462_v39, -3e+38  ;;  %v9468_v50 = vmax.f32 %v4183_v46, %v4491_v43 }
 0x4b8   : >> { %v4830_v36 = vrot.slane %v4829_v11, 1  ;;  %vm3636_vm6 = vcmp.gt.f32.partialorder %v10268_v28, 0.5  ;;  %v3448_v2 = vmax.f32 %v3447_v34, %v3392_v59  ;;  %v3730_v48 = vsel %vm3634_vm8, %v9473_v18, -3e+38  ;;  %v10273_v43 = vld [vmem:[#allocation41_spill] sm:$0xff]  ;;  %v10274_v59 = vld [vmem:[#allocation23_spill] sm:$0xff] }
 0x4b9   : >> { %v4618_v23 = vpop.permute.xlu1 %4617  ;;  %v4614_v4 = vpop.permute.xlu0 %4613  ;;  %10269 = vst [vmem:[#allocation69_spill] sm:$0xff] %v9468_v50  ;;  %vm2960_vm0 = vcmp.gt.f32.partialorder %v10271_v22, 0.5  ;;  %v3393_v54 = vsel %vm3297_vm13, %v6183_v42, -3e+38  ;;  %v3110_v51 = vrot.slane %v3109_v19, 4  ;;  %vm4000_vm9 = vcmp.gt.f32.partialorder %v10272_v40, 0.5 }
 0x4ba   : >> { %v9470_v12 = vmax.f32 %v4829_v11, %v4830_v36  ;;  %vm4680_vm3 = vcmp.gt.f32.partialorder %v4618_v23, 0.5  ;;  %vm4679_vm10 = vcmp.gt.f32.partialorder %v4614_v4, 0.5  ;;  %v3732_v52 = vsel %vm3636_vm6, %v9493_v44, -3e+38  ;;  %v10276_v36 = vld [vmem:[#allocation48_spill] sm:$0xff]  ;;  %v10278_v28 = vld [vmem:[#allocation91_spill] sm:$0xff] }
 0x4bb   : >> { %v9479_v8 = vsel %vm4680_vm3, %v9273_v7, -3e+38  ;;  %v9482_v37 = vsel %vm4679_vm10, %v9290_v3, -3e+38  ;;  %vm3999_vm14 = vcmp.gt.f32.partialorder %v10273_v43, 0.5  ;;  %v10275_v45 = vrot.slane %v10274_v59, 4 }
 0x4bc   : >> { %10270 = vst [vmem:[#allocation55_spill] sm:$0xff] %v9470_v12  ;;  %v10277_v34 = vld [vmem:[#allocation52_spill] sm:$0xff]  ;;  %v3787_v23 = vmax.f32 %v3730_v48, %v3731_v63  ;;  %vm3637_vm11 = vcmp.gt.f32.partialorder %v10278_v28, 0.5  ;;  %v6185_v4 = vld [vmem:[%s6577_s10 + $0x30] sm:$0xff]  ;;  %v3449_v35 = vmax.f32 %v3448_v2, %v3393_v54  ;;  %vm3299_vm7 = vcmp.gt.f32.partialorder %v10279_v38, 0.5  ;;  %v6187_v48 = vld [vmem:[%s6577_s10 + $0x80] sm:$0xff] }
 0x4bd   : >> { %v9500_v11 = vpop.permute.xlu1 %4897  ;;  %v9502_v13 = vpop.permute.xlu0 %4881  ;;  %v2771_v46 = vmax.f32 %v10274_v59, %v10275_v45  ;;  %v3116_v27 = vmax.f32 %v10277_v34, %v10276_v36  ;;  %v3056_v32 = vsel %vm2960_vm0, %v6185_v4, -3e+38  ;;  %vm4001_vm2 = vcmp.gt.f32.partialorder %v10280_v55, 0.5  ;;  %v6186_v45 = vld [vmem:[%s6577_s10 + $0x88] sm:$0xff]  ;;  %v10282_v34 = vld [vmem:[#allocation37_spill] sm:$0xff]  ;;  %v9525_v54 = vld [vmem:[%s6577_s10 + $0x78] sm:$0xff] }
 0x4be   : >> { %vm3298_vm1 = vcmp.gt.f32.partialorder %v10281_v57, 0.5  ;;  %v3788_v59 = vmax.f32 %v3787_v23, %v3732_v52  ;;  %v4096_v63 = vsel %vm4000_vm9, %v6186_v45, -3e+38  ;;  %v4095_v36 = vsel %vm3999_vm14, %v6187_v48, -3e+38  ;;  %v10283_v2 = vld [vmem:[#allocation33_spill] sm:$0xff] }
 0x4bf   : >> { %v2779_v22 = vrot.slane %v10282_v34, 4  ;;  %v3111_v4 = vmax.f32 %v3109_v19, %v3110_v51  ;;  %vm2961_vm15 = vcmp.gt.f32.partialorder %v10283_v2, 0.5  ;;  %v3733_v52 = vsel %vm3637_vm11, %v9525_v54, -3e+38  ;;  %v6189_v19 = vld [vmem:[%s6577_s10 + $0x90] sm:$0xff] }
 0x4c0   : >> { %v3117_v53 = vmax.f32 %v3116_v27, %v3056_v32  ;;  %v3395_v43 = vsel %vm3299_vm7, %v9431_v10, -3e+38  ;;  %vm3300_vm4 = vcmp.gt.f32.partialorder %v10284_v0, 0.5  ;;  %v4097_v51 = vsel %vm4001_vm2, %v6189_v19, -3e+38  ;;  %v6190_v27 = vld [vmem:[%s6577_s10 + $0x38] sm:$0xff] }
 0x4c1   : >> { %v9530_v23 = vpop.permute.xlu1 %4925  ;;  %v9532_v40 = vpop.permute.xlu0 %4921  ;;  %v3450_v30 = vrot.slane %v3449_v35, 4  ;;  %v3394_v28 = vsel %vm3298_vm1, %v9437_v58, -3e+38  ;;  %v4152_v24 = vmax.f32 %v4095_v36, %v4096_v63  ;;  %vm4002_vm5 = vcmp.gt.f32.partialorder %v10285_v49, 0.5  ;;  %v10286_v0 = vld [vmem:[#allocation65_spill] sm:$0xff]  ;;  %v6191_v49 = vld [vmem:[%s6577_s10 + $0x98] sm:$0xff] }
 0x4c2   : >> { %v2772_v32 = vrot.slane %v2771_v46, 2  ;;  %v3057_v38 = vsel %vm2961_vm15, %v6190_v27, -3e+38  ;;  %v3789_v10 = vmax.f32 %v3788_v59, %v3733_v52  ;;  %vm3301_vm12 = vcmp.gt.f32.partialorder %v10286_v0, 0.5  ;;  %v10287_v2 = vld [vmem:[#allocation93_spill] sm:$0xff]  ;;  %v10288_v59 = vld [vmem:[#allocation94_spill] sm:$0xff] }
 0x4c3   : >> { %v3396_v55 = vsel %vm3300_vm4, %v9446_v21, -3e+38  ;;  %v4153_v12 = vmax.f32 %v4152_v24, %v4097_v51  ;;  %v2780_v57 = vmax.f32 %v10282_v34, %v2779_v22  ;;  %v3112_v58 = vrot.slane %v3111_v4, 2  ;;  %v10289_v51 = vld [vmem:[#allocation96_spill] sm:$0xff]  ;;  %v10291_v34 = vld [vmem:[#allocation51_spill] sm:$0xff] }
 0x4c4   : >> { %v3456_v63 = vmax.f32 %v3394_v28, %v3395_v43  ;;  %v4098_v36 = vsel %vm4002_vm5, %v6191_v49, -3e+38  ;;  %v3118_v25 = vmax.f32 %v3117_v53, %v3057_v38  ;;  %v3451_v33 = vmax.f32 %v3449_v35, %v3450_v30 }
 0x4c5   : >> { %v9550_v50 = vpop.permute.xlu1 %4633  ;;  %v9552_v1 = vpop.permute.xlu0 %4629  ;;  %vm3639_vm8 = vcmp.gt.f32.partialorder %v10287_v2, 0.5  ;;  %vm3638_vm13 = vcmp.gt.f32.partialorder %v10288_v59, 0.5  ;;  %v2773_v52 = vmax.f32 %v2771_v46, %v2772_v32  ;;  %v3397_v27 = vsel %vm3301_vm12, %v6183_v42, -3e+38  ;;  %v10292_v32 = vld [vmem:[#allocation50_spill] sm:$0xff]  ;;  %v10293_v2 = vld [vmem:[#allocation95_spill] sm:$0xff] }
 0x4c6   : >> { %v3457_v21 = vmax.f32 %v3456_v63, %v3396_v55  ;;  %v3790_v24 = vrot.slane %v3789_v10, 4  ;;  %vm3640_vm6 = vcmp.gt.f32.partialorder %v10289_v51, 0.5  ;;  %v4154_v0 = vmax.f32 %v4153_v12, %v4098_v36 }
 0x4c7   : >> { %vm4004_vm3 = vcmp.gt.f32.partialorder %v10290_v17, 0.5  ;;  %vm4003_vm10 = vcmp.gt.f32.partialorder %v10291_v34, 0.5  ;;  %v2781_v53 = vrot.slane %v2780_v57, 2  ;;  %v3113_v30 = vmax.f32 %v3111_v4, %v3112_v58 }
 0x4c8   : >> { %v3735_v35 = vsel %vm3639_vm8, %v9462_v39, -3e+38  ;;  %v3734_v46 = vsel %vm3638_vm13, %v9473_v18, -3e+38  ;;  %v3119_v42 = vrot.slane %v3118_v25, 4  ;;  %v3452_v28 = vrot.slane %v3451_v33, 2 }
 0x4c9   : >> { %v9561_v22 = vpop.permute.xlu1 %4937  ;;  %v9563_v43 = vpop.permute.xlu0 %4913  ;;  %vm4005_vm0 = vcmp.gt.f32.partialorder %v10292_v32, 0.5  ;;  %v3458_v38 = vmax.f32 %v3457_v21, %v3397_v27  ;;  %v3736_v12 = vsel %vm3640_vm6, %v9493_v44, -3e+38  ;;  %v4100_v17 = vsel %vm4004_vm3, %v6186_v45, -3e+38  ;;  %v10294_v44 = vld [vmem:[#allocation31_spill] sm:$0xff] }
 0x4ca   : >> { %v4099_v55 = vsel %vm4003_vm10, %v6187_v48, -3e+38  ;;  %v3791_v63 = vmax.f32 %v3789_v10, %v3790_v24  ;;  %v3796_v36 = vmax.f32 %v3734_v46, %v3735_v35  ;;  %vm3641_vm9 = vcmp.gt.f32.partialorder %v10293_v2, 0.5  ;;  %v9577_v10 = vld [vmem:[%s6577_s10 + $0xf0] sm:$0xff] }
 0x4cb   : >> { %v4155_v59 = vrot.slane %v4154_v0, 4  ;;  %v2774_v18 = vrot.slane %v2773_v52, 1  ;;  %v2782_v58 = vmax.f32 %v2780_v57, %v2781_v53  ;;  %v3114_v51 = vrot.slane %v3113_v30, 1 }
 0x4cc   : >> { %v4101_v34 = vsel %vm4005_vm0, %v6189_v19, -3e+38  ;;  %v3120_v32 = vmax.f32 %v3118_v25, %v3119_v42  ;;  %v3797_v27 = vmax.f32 %v3796_v36, %v3736_v12  ;;  %v4161_v21 = vmax.f32 %v4099_v55, %v4100_v17  ;;  %v9588_v55 = vld [vmem:[%s6577_s10 + $0xf8] sm:$0xff] }
 0x4cd   : >> { %v9570_v4 = vpop.permute.xlu1 %4621  ;;  %v9572_v39 = vpop.permute.xlu0 %4941  ;;  %vm4006_vm14 = vcmp.gt.f32.partialorder %v10294_v44, 0.5  ;;  %v3453_v45 = vmax.f32 %v3451_v33, %v3452_v28  ;;  %v3737_v48 = vsel %vm3641_vm9, %v9525_v54, -3e+38  ;;  %vm5005_vm11 = vcmp.gt.f32.partialorder %v9500_v11, 0.5 }
 0x4ce   : >> { %vm5001_vm7 = vcmp.gt.f32.partialorder %v9502_v13, 0.5  ;;  %v3459_v24 = vrot.slane %v3458_v38, 4  ;;  %v3792_v35 = vrot.slane %v3791_v63, 2  ;;  %v4156_v57 = vmax.f32 %v4154_v0, %v4155_v59 }
 0x4cf   : >> { %v4162_v53 = vmax.f32 %v4161_v21, %v4101_v34  ;;  %v4102_v46 = vsel %vm4006_vm14, %v6191_v49, -3e+38  ;;  %v2775_v42 = vmax.f32 %v2773_v52, %v2774_v18  ;;  %v3798_v33 = vmax.f32 %v3797_v27, %v3737_v48 }
 0x4d0   : >> { %v5101_v54 = vsel %vm5005_vm11, %v9577_v10, -3e+38  ;;  %v5097_v28 = vsel %vm5001_vm7, %v9577_v10, -3e+38  ;;  %v2783_v12 = vrot.slane %v2782_v58, 1  ;;  %v3115_v11 = vmax.f32 %v3113_v30, %v3114_v51 }
 0x4d1   : >> { %v9581_v19 = vpop.permute.xlu1 %4649  ;;  %v9583_v25 = vpop.permute.xlu0 %4645  ;;  %v3121_v17 = vrot.slane %v3120_v32, 2  ;;  %v3454_v13 = vrot.slane %v3453_v45, 1  ;;  %v3460_v36 = vmax.f32 %v3458_v38, %v3459_v24  ;;  %v3793_v0 = vmax.f32 %v3791_v63, %v3792_v35 }
 0x4d2   : >> { %v4157_v2 = vrot.slane %v4156_v57, 2  ;;  %v4163_v59 = vmax.f32 %v4162_v53, %v4102_v46  ;;  %v10295_v49 = vmax.f32 %v9424_v31, %v9421_v29  ;;  %v10296_v18 = vmax.f32 %v9409_v16, %v9406_v6 }
 0x4d3   : >> { %v3799_v30 = vrot.slane %v3798_v33, 4  ;;  %v4495_v51 = vrot.slane %v9213_v62, 4  ;;  %v2799_v44 = vmax.f32 %v2775_v42, -3e+38  ;;  %v3122_v48 = vmax.f32 %v3120_v32, %v3121_v17 }
 0x4d4   : >> { %v5137_v52 = vmax.f32 %v10295_v49, %v5101_v54  ;;  %v5128_v27 = vmax.f32 %v10296_v18, %v5097_v28  ;;  %v3461_v53 = vrot.slane %v3460_v36, 2  ;;  %v3794_v29 = vrot.slane %v3793_v0, 1 }
 0x4d5   : >> { %v4902_v34 = vpop.permute.xlu1 %4901  ;;  %v4886_v21 = vpop.permute.xlu0 %4885  ;;  %v4158_v31 = vmax.f32 %v4156_v57, %v4157_v2  ;;  %v4164_v46 = vrot.slane %v4163_v59, 4  ;;  %v9603_v16 = vmax.f32 %v2782_v58, %v2783_v12  ;;  %v3455_v49 = vmax.f32 %v3453_v45, %v3454_v13 }
 0x4d6   : >> { %vm5006_vm2 = vcmp.gt.f32.partialorder %v4902_v34, 0.5  ;;  %vm5002_vm1 = vcmp.gt.f32.partialorder %v4886_v21, 0.5  ;;  %v3139_v21 = vmax.f32 %v2799_v44, %v3115_v11  ;;  %v3800_v18 = vmax.f32 %v3798_v33, %v3799_v30 }
 0x4d7   : >> { %v5102_v38 = vsel %vm5006_vm2, %v9588_v55, -3e+38  ;;  %v5098_v63 = vsel %vm5002_vm1, %v9588_v55, -3e+38  ;;  %v4496_v42 = vmax.f32 %v9213_v62, %v4495_v51  ;;  %v3123_v32 = vrot.slane %v3122_v48, 1 }
 0x4d8   : >> { %v5138_v24 = vmax.f32 %v5137_v52, %v5102_v38  ;;  %v5129_v35 = vmax.f32 %v5128_v27, %v5098_v63  ;;  %vm5009_vm15 = vcmp.gt.f32.partialorder %v9563_v43, 0.5  ;;  %v9607_v57 = vmax.f32 %v3460_v36, %v3461_v53 }
 0x4d9   : >> { %v9599_v54 = vpop.permute.xlu1 %4953  ;;  %v9601_v6 = vpop.permute.xlu0 %4929  ;;  %v3795_v2 = vmax.f32 %v3793_v0, %v3794_v29  ;;  %v4159_v27 = vrot.slane %v4158_v31, 1  ;;  %v4165_v38 = vmax.f32 %v4163_v59, %v4164_v46  ;;  %v3479_v45 = vmax.f32 %v3139_v21, %v3455_v49 }
 0x4da   : >> { %v5139_v28 = vrot.slane %v5138_v24, 4  ;;  %v5130_v34 = vrot.slane %v5129_v35, 4  ;;  %v3801_v33 = vrot.slane %v3800_v18, 2  ;;  %v4497_v13 = vrot.slane %v4496_v42, 2 }
 0x4db   : >> { %v5105_v62 = vsel %vm5009_vm15, %v9577_v10, -3e+38  ;;  %v2800_v43 = vmax.f32 %v9603_v16, -3e+38  ;;  %v9615_v30 = vmax.f32 %v3122_v48, %v3123_v32  ;;  %v3463_v0 = vrot.slane %v9607_v57, 1 }
 0x4dc   : >> { %v5140_v17 = vmax.f32 %v5138_v24, %v5139_v28  ;;  %v5131_v52 = vmax.f32 %v5129_v35, %v5130_v34  ;;  %v9618_v59 = vmax.f32 %v3479_v45, %v3795_v2  ;;  %v9620_v44 = vmax.f32 %v4158_v31, %v4159_v27 }
 0x4dd   : >> { %v9609_v63 = vpop.permute.xlu1 %4637  ;;  %v9611_v58 = vpop.permute.xlu0 %4957  ;;  %v4166_v24 = vrot.slane %v4165_v38, 2  ;;  %v10297_v29 = vmax.f32 %v9455_v14, %v9452_v5  ;;  %v9627_v48 = vmax.f32 %v3800_v18, %v3801_v33  ;;  %v4498_v21 = vmax.f32 %v4496_v42, %v4497_v13 }
 0x4de   : >> { %v5141_v12 = vrot.slane %v5140_v17, 2  ;;  %v5132_v11 = vrot.slane %v5131_v52, 2  ;;  %v4504_v49 = vrot.slane %v9249_v47, 4  ;;  %vm4681_vm5 = vcmp.gt.f32.partialorder %v9570_v4, 0.5 }
 0x4df   : >> { %v5146_v46 = vmax.f32 %v10297_v29, %v5105_v62  ;;  %v4184_v2 = vmax.f32 %v9618_v59, %v9620_v44  ;;  %vm5012_vm12 = vcmp.gt.f32.partialorder %v9530_v23, 0.5  ;;  %vm5011_vm8 = vcmp.gt.f32.partialorder %v9532_v40, 0.5 }
 0x4e0   : >> { %v5142_v36 = vmax.f32 %v5140_v17, %v5141_v12  ;;  %v5133_v51 = vmax.f32 %v5131_v52, %v5132_v11  ;;  %vm5217_vm13 = vcmask 1041409   ;;  %v9640_v18 = vmax.f32 %v4165_v38, %v4166_v24 }
 0x4e1   : >> { %v9622_v35 = vpop.permute.xlu1 %4945  ;;  %v4918_v53 = vpop.permute.xlu0 %4917  ;;  %v10298_v42 = vmax.f32 %v9369_v60, %v9372_v15  ;;  %v10299_v12 = vmax.f32 %v9353_v41, %v9356_v20  ;;  %v4499_v33 = vrot.slane %v4498_v21, 1  ;;  %v9649_v23 = vmax.f32 %v9249_v47, %v4504_v49 }
 0x4e2   : >> { %v5143_v28 = vrot.slane %v5142_v36, 1  ;;  %v5134_v34 = vrot.slane %v5133_v51, 1  ;;  %vm5010_vm4 = vcmp.gt.f32.partialorder %v4918_v53, 0.5  ;;  %v4777_v40 = vsel %vm4681_vm5, %v9312_v61, -3e+38 }
 0x4e3   : >> { %v5106_v32 = vsel %vm5010_vm4, %v9588_v55, -3e+38  ;;  %vm5013_vm6 = vcmp.gt.f32.partialorder %v9601_v6, 0.5  ;;  %v5108_v38 = vsel %vm5012_vm12, %v9393_v26, -3e+38  ;;  %vm4684_vm3 = vcmp.gt.f32.partialorder %v9550_v50, 0.5 }
 0x4e4   : >> { %v5144_v31 = vmax.f32 %v5142_v36, %v5143_v28  ;;  %v5135_v17 = vmax.f32 %v5133_v51, %v5134_v34  ;;  %v5147_v52 = vmax.f32 %v5146_v46, %v5106_v32  ;;  %v5107_v60 = vsel %vm5011_vm8, %v9396_v9, -3e+38 }
 0x4e5   : >> { %v9636_v5 = vpop.permute.xlu1 %4973  ;;  %v9638_v14 = vpop.permute.xlu0 %4969  ;;  %vm4683_vm10 = vcmp.gt.f32.partialorder %v9552_v1, 0.5  ;;  %vm5015_vm0 = vcmp.gt.f32.partialorder %v9561_v22, 0.5  ;;  %vm5219_vm9 = vcmask 1042434   ;;  %v10300_v20 = vmax.f32 %v9482_v37, %v9479_v8 }
 0x4e6   : >> { %v5200_v27 = vmax.f32 %v10298_v42, %v5144_v31  ;;  %v5199_v11 = vmax.f32 %v10299_v12, %v5135_v17  ;;  %v5148_v45 = vrot.slane %v5147_v52, 4  ;;  %v5109_v6 = vsel %vm5013_vm6, %v9577_v10, -3e+38 }
 0x4e7   : >> { %v4833_v4 = vmax.f32 %v10300_v20, %v4777_v40  ;;  %v4500_v36 = vmax.f32 %v4498_v21, %v4499_v33  ;;  %v4506_v51 = vrot.slane %v9649_v23, 2  ;;  %v5154_v59 = vmax.f32 %v5107_v60, %v5108_v38 }
 0x4e8   : >> { %v5218_v15 = vsel %vm5217_vm13, %v5200_v27, %v5199_v11  ;;  %v5149_v13 = vmax.f32 %v5147_v52, %v5148_v45  ;;  %v4780_v44 = vsel %vm4684_vm3, %v9273_v7, -3e+38  ;;  %vm5016_vm11 = vcmp.gt.f32.partialorder %v9572_v39, 0.5  ;;  %v10301_v52 = vld [vmem:[#allocation32_spill] sm:$0xff] }
 0x4e9   : >> { %v4654_v47 = vpop.permute.xlu1 %4653  ;;  %v4626_v41 = vpop.permute.xlu0 %4625  ;;  %v4779_v8 = vsel %vm4683_vm10, %v9290_v3, -3e+38  ;;  %v5111_v37 = vsel %vm5015_vm0, %v9396_v9, -3e+38  ;;  %v5155_v29 = vmax.f32 %v5154_v59, %v5109_v6  ;;  %vm4685_vm7 = vcmp.gt.f32.partialorder %v9609_v63, 0.5  ;;  %v6193_v59 = vld [vmem:[%s6577_s10 + $0xd8] sm:$0xff] }
 0x4ea   : >> { %v5150_v62 = vrot.slane %v5149_v13, 2  ;;  %vm4682_vm14 = vcmp.gt.f32.partialorder %v4626_v41, 0.5  ;;  %vm5017_vm2 = vcmp.gt.f32.partialorder %v9622_v35, 0.5  ;;  %v5112_v28 = vsel %vm5016_vm11, %v9393_v26, -3e+38 }
 0x4eb   : >> { %v4778_v50 = vsel %vm4682_vm14, %v9297_v56, -3e+38  ;;  %vm4688_vm15 = vcmp.gt.f32.partialorder %v9581_v19, 0.5  ;;  %v9680_v1 = vmax.f32 %v4184_v2, %v4500_v36  ;;  %vm4687_vm4 = vcmp.gt.f32.partialorder %v9583_v25, 0.5  ;;  %v10302_v2 = vld [vmem:[#allocation49_spill] sm:$0xff] }
 0x4ec   : >> { %v5151_v24 = vmax.f32 %v5149_v13, %v5150_v62  ;;  %v4834_v53 = vmax.f32 %v4833_v4, %v4778_v50  ;;  %vm5019_vm5 = vcmp.gt.f32.partialorder %v9599_v54, 0.5  ;;  %v4781_v35 = vsel %vm4685_vm7, %v9312_v61, -3e+38  ;;  %v6192_v54 = vld [vmem:[%s6577_s10 + $0xc8] sm:$0xff] }
 0x4ed   : >> { %v9675_v46 = vpop.permute.xlu1 %4961  ;;  %v4934_v56 = vpop.permute.xlu0 %4933  ;;  %vm5020_vm12 = vcmp.gt.f32.partialorder %v9611_v58, 0.5  ;;  %v5113_v32 = vsel %vm5017_vm2, %v9577_v10, -3e+38  ;;  %v10303_v42 = vmax.f32 %v10301_v52, %v10302_v2  ;;  %vm4689_vm8 = vcmp.gt.f32.partialorder %v4654_v47, 0.5 }
 0x4ee   : >> { %v5152_v7 = vrot.slane %v5151_v24, 1  ;;  %v4835_v39 = vrot.slane %v4834_v53, 4  ;;  %vm5014_vm1 = vcmp.gt.f32.partialorder %v4934_v56, 0.5  ;;  %v4841_v45 = vmax.f32 %v4779_v8, %v4780_v44 }
 0x4ef   : >> { %v5110_v22 = vsel %vm5014_vm1, %v9588_v55, -3e+38  ;;  %v5163_v33 = vmax.f32 %v5111_v37, %v5112_v28  ;;  %v4784_v63 = vsel %vm4688_vm15, %v6192_v54, -3e+38  ;;  %v4783_v40 = vsel %vm4687_vm4, %v9290_v3, -3e+38 }
 0x4f0   : >> { %v5153_v34 = vmax.f32 %v5151_v24, %v5152_v7  ;;  %v4836_v21 = vmax.f32 %v4834_v53, %v4835_v39  ;;  %v5156_v49 = vmax.f32 %v5155_v29, %v5110_v22  ;;  %v5115_v38 = vsel %vm5019_vm5, %v9396_v9, -3e+38 }
 0x4f1   : >> { %v4990_v31 = vpop.permute.xlu1 %4989  ;;  %v4986_v17 = vpop.permute.xlu0 %4985  ;;  %v4842_v47 = vmax.f32 %v4841_v45, %v4781_v35  ;;  %v5116_v20 = vsel %vm5020_vm12, %v9393_v26, -3e+38  ;;  %v5164_v4 = vmax.f32 %v5163_v33, %v5113_v32  ;;  %v4785_v19 = vsel %vm4689_vm8, %v9312_v61, -3e+38 }
 0x4f2   : >> { %v5201_v27 = vmax.f32 %v10303_v42, %v5153_v34  ;;  %v4837_v12 = vrot.slane %v4836_v21, 2  ;;  %v5157_v11 = vrot.slane %v5156_v49, 4  ;;  %vm5221_vm13 = vcmask 1043459  }
 0x4f3   : >> { %v4850_v36 = vmax.f32 %v4783_v40, %v4784_v63  ;;  %vm5021_vm10 = vcmp.gt.f32.partialorder %v9675_v46, 0.5  ;;  %v5172_v61 = vmax.f32 %v5115_v38, %v5116_v20  ;;  %vm5024_vm0 = vcmp.gt.f32.partialorder %v9636_v5, 0.5 }
 0x4f4   : >> { %v5220_v60 = vsel %vm5219_vm9, %v5201_v27, %v5218_v15  ;;  %v4838_v13 = vmax.f32 %v4836_v21, %v4837_v12  ;;  %v5158_v41 = vmax.f32 %v5156_v49, %v5157_v11  ;;  %vm5023_vm9 = vcmp.gt.f32.partialorder %v9638_v14, 0.5  ;;  %v10304_v27 = vld [vmem:[#allocation53_spill] sm:$0xff]  ;;  %v10305_v12 = vld [vmem:[#allocation70_spill] sm:$0xff] }
 0x4f5   : >> { %v4950_v6 = vpop.permute.xlu1 %4949  ;;  %v4642_v62 = vpop.permute.xlu0 %4641  ;;  %vm5028_vm14 = vcmp.gt.f32.partialorder %v4990_v31, 0.5  ;;  %vm5027_vm11 = vcmp.gt.f32.partialorder %v4986_v17, 0.5  ;;  %v4851_v39 = vmax.f32 %v4850_v36, %v4785_v19  ;;  %v5117_v28 = vsel %vm5021_vm10, %v9577_v10, -3e+38 }
 0x4f6   : >> { %v4839_v25 = vrot.slane %v4838_v13, 1  ;;  %v5159_v3 = vrot.slane %v5158_v41, 2  ;;  %vm5018_vm6 = vcmp.gt.f32.partialorder %v4950_v6, 0.5  ;;  %vm4686_vm3 = vcmp.gt.f32.partialorder %v4642_v62, 0.5 }
 0x4f7   : >> { %v5114_v15 = vsel %vm5018_vm6, %v9588_v55, -3e+38  ;;  %v4782_v50 = vsel %vm4686_vm3, %v6193_v59, -3e+38  ;;  %v5120_v5 = vsel %vm5024_vm0, %v9393_v26, -3e+38  ;;  %v5173_v42 = vmax.f32 %v5172_v61, %v5117_v28 }
 0x4f8   : >> { %v9708_v44 = vmax.f32 %v4838_v13, %v4839_v25  ;;  %v5160_v58 = vmax.f32 %v5158_v41, %v5159_v3  ;;  %v5165_v24 = vmax.f32 %v5164_v4, %v5114_v15  ;;  %v4843_v53 = vmax.f32 %v4842_v47, %v4782_v50 }
 0x4f9   : >> { %v4658_v8 = vpop.permute.xlu1 %4657  ;;  %v4978_v37 = vpop.permute.xlu0 %4977  ;;  %v5119_v35 = vsel %vm5023_vm9, %v9396_v9, -3e+38  ;;  %v5124_v32 = vsel %vm5028_vm14, %v9393_v26, -3e+38  ;;  %v5123_v17 = vsel %vm5027_vm11, %v9396_v9, -3e+38  ;;  %v10306_v11 = vmax.f32 %v10304_v27, %v10305_v12 }
 0x4fa   : >> { %v4864_v29 = vmax.f32 %v9680_v1, %v9708_v44  ;;  %v5161_v56 = vrot.slane %v5160_v58, 1  ;;  %v5166_v7 = vrot.slane %v5165_v24, 4  ;;  %v4844_v22 = vrot.slane %v4843_v53, 4 }
 0x4fb   : >> { %vm4690_vm7 = vcmp.gt.f32.partialorder %v4658_v8, 0.5  ;;  %vm5025_vm2 = vcmp.gt.f32.partialorder %v4978_v37, 0.5  ;;  %v5190_v31 = vmax.f32 %v5123_v17, %v5124_v32  ;;  %v5181_v40 = vmax.f32 %v5119_v35, %v5120_v5 }
 0x4fc   : >> { %v5162_v34 = vmax.f32 %v5160_v58, %v5161_v56  ;;  %v5167_v21 = vmax.f32 %v5165_v24, %v5166_v7  ;;  %v4786_v49 = vsel %vm4690_vm7, %v6193_v59, -3e+38  ;;  %v4845_v54 = vmax.f32 %v4843_v53, %v4844_v22  ;;  %v10307_v24 = vld [vmem:[#allocation69_spill] sm:$0xff]  ;;  %v10308_v53 = vld [vmem:[#allocation55_spill] sm:$0xff] }
 0x4fd   : >> { %v4852_v52 = vmax.f32 %v4851_v39, %v4786_v49  ;;  %v4994_v2 = vpop.permute.xlu1 %4993  ;;  %v4966_v46 = vpop.permute.xlu0 %4965  ;;  %v5121_v13 = vsel %vm5025_vm2, %v9577_v10, -3e+38  ;;  %v3803_v3 = vrot.slane %v9627_v48, 1  ;;  %vm5223_vm12 = vcmask 1044484  }
 0x4fe   : >> { %v5202_v45 = vmax.f32 %v10306_v11, %v5162_v34  ;;  %v5168_v33 = vrot.slane %v5167_v21, 2  ;;  %vm5029_vm1 = vcmp.gt.f32.partialorder %v4994_v2, 0.5  ;;  %vm5022_vm15 = vcmp.gt.f32.partialorder %v4966_v46, 0.5 }
 0x4ff   : >> { %v4853_v63 = vrot.slane %v4852_v52, 4  ;;  %v5125_v9 = vsel %vm5029_vm1, %v9577_v10, -3e+38  ;;  %v5118_v41 = vsel %vm5022_vm15, %v9588_v55, -3e+38  ;;  %v4846_v62 = vrot.slane %v4845_v54, 2 }
 0x500   : >> { %v5222_v14 = vsel %vm5221_vm13, %v5202_v45, %v5220_v60  ;;  %v5169_v26 = vmax.f32 %v5167_v21, %v5168_v33  ;;  %v5191_v19 = vmax.f32 %v5190_v31, %v5125_v9  ;;  %v5174_v6 = vmax.f32 %v5173_v42, %v5118_v41 }
 0x501   : >> { %v4854_v38 = vmax.f32 %v4852_v52, %v4853_v63  ;;  %v4998_v47 = vpop.permute.xlu1 %4997  ;;  %v4982_v20 = vpop.permute.xlu0 %4981  ;;  %v4507_v10 = vmax.f32 %v9649_v23, %v4506_v51  ;;  %v5182_v50 = vmax.f32 %v5181_v40, %v5121_v13  ;;  %v10309_v61 = vmax.f32 %v10307_v24, %v10308_v53 }
 0x502   : >> { %v5170_v4 = vrot.slane %v5169_v26, 1  ;;  %vm5030_vm4 = vcmp.gt.f32.partialorder %v4998_v47, 0.5  ;;  %vm5026_vm5 = vcmp.gt.f32.partialorder %v4982_v20, 0.5  ;;  %v5175_v15 = vrot.slane %v5174_v6, 4  ;;  %v5208_v20 = vld [vmem:[%s5207_s29] sm:$0xff] }
 0x503   : >> { %v4855_v25 = vrot.slane %v4854_v38, 2  ;;  %v5126_v60 = vsel %vm5030_vm4, %v9588_v55, -3e+38  ;;  %v5122_v58 = vsel %vm5026_vm5, %v9588_v55, -3e+38  ;;  %v3464_v39 = vmax.f32 %v9607_v57, %v3463_v0 }
 0x504   : >> { %v5171_v36 = vmax.f32 %v5169_v26, %v5170_v4  ;;  %v5192_v59 = vmax.f32 %v5191_v19, %v5126_v60  ;;  %v5176_v56 = vmax.f32 %v5174_v6, %v5175_v15  ;;  %v4168_v28 = vrot.slane %v9640_v18, 1  ;;  %v10310_v26 = vld [vmem:[#allocation68_spill] sm:$0xff] }
 0x505   : >> { %v4856_v37 = vmax.f32 %v4854_v38, %v4855_v25  ;;  %v4847_v22 = vmax.f32 %v4845_v54, %v4846_v62  ;;  %v5183_v5 = vmax.f32 %v5182_v50, %v5122_v58  ;;  %v3140_v55 = vmax.f32 %v2800_v43, %v9615_v30 }
 0x506   : >> { %v5203_v8 = vmax.f32 %v10309_v61, %v5171_v36  ;;  %v5193_v7 = vrot.slane %v5192_v59, 4  ;;  %v5177_v51 = vrot.slane %v5176_v56, 2  ;;  %v3804_v21 = vmax.f32 %v9627_v48, %v3803_v3 }
 0x507   : >> { %v4508_v49 = vrot.slane %v4507_v10, 1  ;;  %v5184_v35 = vrot.slane %v5183_v5, 4  ;;  %v4857_v32 = vrot.slane %v4856_v37, 1  ;;  %v3480_v2 = vmax.f32 %v3140_v55, %v3464_v39 }
 0x508   : >> { %v5224_v23 = vsel %vm5223_vm12, %v5203_v8, %v5222_v14  ;;  %v5194_v34 = vmax.f32 %v5192_v59, %v5193_v7  ;;  %v5178_v17 = vmax.f32 %v5176_v56, %v5177_v51  ;;  %v4169_v57 = vmax.f32 %v9640_v18, %v4168_v28 }
 0x509   : >> { %v4848_v0 = vrot.slane %v4847_v22, 1  ;;  %v5185_v46 = vmax.f32 %v5183_v5, %v5184_v35  ;;  %v3820_v12 = vmax.f32 %v3480_v2, %v3804_v21  ;;  %v4509_v11 = vmax.f32 %v4507_v10, %v4508_v49 }
 0x50a   : >> { %v5195_v52 = vrot.slane %v5194_v34, 2  ;;  %v5179_v42 = vrot.slane %v5178_v17, 1  ;;  %v4858_v33 = vmax.f32 %v4856_v37, %v4857_v32  ;;  %vm5225_vm8 = vcmask 1045509  }
 0x50b   : >> { %v5186_v45 = vrot.slane %v5185_v46, 2  ;;  %v4185_v30 = vmax.f32 %v3820_v12, %v4169_v57  ;;  %v4849_v48 = vmax.f32 %v4847_v22, %v4848_v0  ;;  %vm5227_vm13 = vcmask 1046534  }
 0x50c   : >> { %v5196_v27 = vmax.f32 %v5194_v34, %v5195_v52  ;;  %v5180_v16 = vmax.f32 %v5178_v17, %v5179_v42  ;;  %v4866_v9 = vmax.f32 %v10310_v26, %v4858_v33  ;;  %vm5229_vm6 = vcmask 1047559  }
 0x50d   : >> { %v5187_v54 = vmax.f32 %v5185_v46, %v5186_v45  ;;  %v4525_v14 = vmax.f32 %v4185_v30, %v4509_v11 }
 0x50e   : >> { %v5197_v43 = vrot.slane %v5196_v27, 1  ;;  %v5204_v63 = vmax.f32 %v4864_v29, %v5180_v16 }
 0x50f   : >> { %v5188_v31 = vrot.slane %v5187_v54, 1  ;;  %v4865_v38 = vmax.f32 %v4525_v14, %v4849_v48 }
 0x510   : >> { %v5198_v18 = vmax.f32 %v5196_v27, %v5197_v43  ;;  %v5226_v40 = vsel %vm5225_vm8, %v5204_v63, %v5224_v23 }
 0x511   : >> { %v5189_v13 = vmax.f32 %v5187_v54, %v5188_v31 }
 0x512   : >> { %v5206_v41 = vmax.f32 %v4866_v9, %v5198_v18 }
 0x513   : >> { %v5205_v47 = vmax.f32 %v4865_v38, %v5189_v13 }
 0x515   : >> { %v5228_v4 = vsel %vm5227_vm13, %v5205_v47, %v5226_v40  ;;  %2429 = sbr.rel (!%p2427_p1) target bundleno = 652 (0x28c), region = 117 }
 0x516   : >> { %v5230_v19 = vsel %vm5229_vm6, %v5206_v41, %v5228_v4 }
 0x517   : >> { %v5232_v6 = vmax.f32 %v5208_v20, %v5230_v19 }
 0x519   : >> { %5233 = vst [vmem:[%s5207_s29] sm:$0xff] %v5232_v6 }
 0x51a   : > { %5237 = sbr.rel (%p5873_p4) target bundleno = 1487 (0x5cf), region = 67 }
 0x51f   : > { %v5240_v1 = vld [vmem:[#allocation3 + $0x10] sm:$0xff]  ;;  %v5238_v44 = vld [vmem:[#allocation3] sm:$0xff]  ;;  %v5241_v29 = vld [vmem:[#allocation3 + $0x18] sm:$0xff]  ;;  %v6411_v62 = vmov 0  }
 0x520   : > { %6195 = vset.pattern.permute.xlu1 %v6411_v62  ;;  %6194 = vset.pattern.permute.xlu0 %v6411_v62  ;;  %v5264_v25 = vmin.f32 %v5240_v1, 3.0  ;;  %v5262_v60 = vmin.f32 %v5238_v44, 3.0  ;;  %v5265_v3 = vmin.f32 %v5241_v29, 3.0  ;;  %v5239_v36 = vld [vmem:[#allocation3 + $0x8] sm:$0xff]  ;;  %v5242_v59 = vld [vmem:[#allocation3 + $0x20] sm:$0xff]  ;;  %v5245_v61 = vld [vmem:[#allocation3 + $0x38] sm:$0xff] }
 0x521   : > { %v5243_v15 = vld [vmem:[#allocation3 + $0x28] sm:$0xff]  ;;  %v5263_v10 = vmin.f32 %v5239_v36, 3.0  ;;  %v5266_v58 = vmin.f32 %v5242_v59, 3.0  ;;  %v5244_v8 = vld [vmem:[#allocation3 + $0x30] sm:$0xff]  ;;  %v5269_v7 = vmin.f32 %v5245_v61, 3.0  ;;  %v5246_v22 = vld [vmem:[#allocation3 + $0x40] sm:$0xff] }
 0x522   : > { %v5267_v50 = vmin.f32 %v5243_v15, 3.0  ;;  %vm5288_vm3 = vcmp.gt.f32.partialorder %v5264_v25, 0.0  ;;  %vm5286_vm10 = vcmp.gt.f32.partialorder %v5262_v60, 0.0  ;;  %vm5289_vm0 = vcmp.gt.f32.partialorder %v5265_v3, 0.0  ;;  %v5247_v28 = vld [vmem:[#allocation3 + $0x48] sm:$0xff]  ;;  %v5249_v55 = vld [vmem:[#allocation3 + $0x58] sm:$0xff] }
 0x523   : > { %v5336_v24 = vsel %vm5288_vm3, 1, %v6411_v62  ;;  %v5334_v53 = vsel %vm5286_vm10, 1, %v6411_v62  ;;  %vm5287_vm9 = vcmp.gt.f32.partialorder %v5263_v10, 0.0  ;;  %v5337_v37 = vsel %vm5289_vm0, 1, %v6411_v62  ;;  %v5248_v21 = vld [vmem:[#allocation3 + $0x50] sm:$0xff]  ;;  %v5251_v52 = vld [vmem:[#allocation3 + $0x68] sm:$0xff] }
 0x524   : > { %5365 = vperm.xlu1 %6195, %v5336_v24   ;;  %5359 = vperm.xlu0 %6194, %v5334_v53   ;;  %v5335_v56 = vsel %vm5287_vm9, 1, %v6411_v62  ;;  %vm5291_vm14 = vcmp.gt.f32.partialorder %v5267_v50, 0.0  ;;  %vm5290_vm11 = vcmp.gt.f32.partialorder %v5266_v58, 0.0  ;;  %v5268_v39 = vmin.f32 %v5244_v8, 3.0  ;;  %v5250_v2 = vld [vmem:[#allocation3 + $0x60] sm:$0xff]  ;;  %v5253_v27 = vld [vmem:[#allocation3 + $0x78] sm:$0xff] }
 0x525   : > { %v5339_v5 = vsel %vm5291_vm14, 1, %v6411_v62  ;;  %v5338_v23 = vsel %vm5290_vm11, 1, %v6411_v62  ;;  %vm5293_vm7 = vcmp.gt.f32.partialorder %v5269_v7, 0.0  ;;  %v5271_v51 = vmin.f32 %v5247_v28, 3.0  ;;  %v5252_v12 = vld [vmem:[#allocation3 + $0x70] sm:$0xff]  ;;  %v5255_v43 = vld [vmem:[#allocation3 + $0x88] sm:$0xff] }
 0x526   : > { %vm5292_vm2 = vcmp.gt.f32.partialorder %v5268_v39, 0.0  ;;  %v5270_v34 = vmin.f32 %v5246_v22, 3.0  ;;  %v5341_v49 = vsel %vm5293_vm7, 1, %v6411_v62  ;;  %v5273_v32 = vmin.f32 %v5249_v55, 3.0  ;;  %v5254_v30 = vld [vmem:[#allocation3 + $0x80] sm:$0xff]  ;;  %v5257_v14 = vld [vmem:[#allocation3 + $0x98] sm:$0xff] }
 0x527   : > { %v5340_v35 = vsel %vm5292_vm2, 1, %v6411_v62  ;;  %vm5295_vm1 = vcmp.gt.f32.partialorder %v5271_v51, 0.0  ;;  %v5272_v17 = vmin.f32 %v5248_v21, 3.0  ;;  %v5275_v46 = vmin.f32 %v5251_v52, 3.0  ;;  %v5256_v31 = vld [vmem:[#allocation3 + $0x90] sm:$0xff]  ;;  %v5259_v13 = vld [vmem:[#allocation3 + $0xa8] sm:$0xff] }
 0x528   : > { %5368 = vperm.xlu1 %6195, %v5337_v37   ;;  %5362 = vperm.xlu0 %6194, %v5335_v56   ;;  %vm5294_vm15 = vcmp.gt.f32.partialorder %v5270_v34, 0.0  ;;  %v5343_v57 = vsel %vm5295_vm1, 1, %v6411_v62  ;;  %vm5297_vm4 = vcmp.gt.f32.partialorder %v5273_v32, 0.0  ;;  %v5274_v42 = vmin.f32 %v5250_v2, 3.0  ;;  %v5258_v41 = vld [vmem:[#allocation3 + $0xa0] sm:$0xff]  ;;  %v5261_v6 = vld [vmem:[#allocation3 + $0xb8] sm:$0xff] }
 0x529   : > { %v5342_v0 = vsel %vm5294_vm15, 1, %v6411_v62  ;;  %vm5296_vm5 = vcmp.gt.f32.partialorder %v5272_v17, 0.0  ;;  %v5345_v11 = vsel %vm5297_vm4, 1, %v6411_v62  ;;  %vm5299_vm12 = vcmp.gt.f32.partialorder %v5275_v46, 0.0  ;;  %v5260_v1 = vld [vmem:[#allocation3 + $0xb0] sm:$0xff]  ;;  %v5310_v50 = vld [vmem:[#allocation2] sm:$0xff] }
 0x52a   : > { %v5344_v45 = vsel %vm5296_vm5, 1, %v6411_v62  ;;  %vm5298_vm8 = vcmp.gt.f32.partialorder %v5274_v42, 0.0  ;;  %v5277_v33 = vmin.f32 %v5253_v27, 3.0  ;;  %v5276_v16 = vmin.f32 %v5252_v12, 3.0  ;;  %v5312_v10 = vld [vmem:[#allocation2 + $0x10] sm:$0xff]  ;;  %v5313_v8 = vld [vmem:[#allocation2 + $0x18] sm:$0xff] }
 0x52b   : > { %v5347_v48 = vsel %vm5299_vm12, 1, %v6411_v62  ;;  %v5346_v54 = vsel %vm5298_vm8, 1, %v6411_v62  ;;  %v5279_v63 = vmin.f32 %v5255_v43, 3.0  ;;  %v5278_v18 = vmin.f32 %v5254_v30, 3.0  ;;  %v5311_v37 = vld [vmem:[#allocation2 + $0x8] sm:$0xff]  ;;  %v5314_v22 = vld [vmem:[#allocation2 + $0x20] sm:$0xff] }
 0x52c   : > { %5374 = vperm.xlu1 %6195, %v5339_v5   ;;  %5371 = vperm.xlu0 %6194, %v5338_v23   ;;  %vm5301_vm13 = vcmp.gt.f32.partialorder %v5277_v33, 0.0  ;;  %vm5300_vm6 = vcmp.gt.f32.partialorder %v5276_v16, 0.0  ;;  %v5281_v40 = vmin.f32 %v5257_v14, 3.0  ;;  %v5280_v38 = vmin.f32 %v5256_v31, 3.0  ;;  %v5315_v28 = vld [vmem:[#allocation2 + $0x28] sm:$0xff]  ;;  %v5317_v55 = vld [vmem:[#allocation2 + $0x38] sm:$0xff] }
 0x52d   : > { %v5349_v26 = vsel %vm5301_vm13, 1, %v6411_v62  ;;  %v5348_v9 = vsel %vm5300_vm6, 1, %v6411_v62  ;;  %vm5303_vm3 = vcmp.gt.f32.partialorder %v5279_v63, 0.0  ;;  %vm5302_vm10 = vcmp.gt.f32.partialorder %v5278_v18, 0.0  ;;  %v5316_v21 = vld [vmem:[#allocation2 + $0x30] sm:$0xff]  ;;  %v5319_v52 = vld [vmem:[#allocation2 + $0x48] sm:$0xff] }
 0x52e   : > { %v5351_v47 = vsel %vm5303_vm3, 1, %v6411_v62  ;;  %v5350_v20 = vsel %vm5302_vm10, 1, %v6411_v62  ;;  %vm5305_vm0 = vcmp.gt.f32.partialorder %v5281_v40, 0.0  ;;  %vm5304_vm9 = vcmp.gt.f32.partialorder %v5280_v38, 0.0  ;;  %v5318_v2 = vld [vmem:[#allocation2 + $0x40] sm:$0xff]  ;;  %v5321_v27 = vld [vmem:[#allocation2 + $0x58] sm:$0xff] }
 0x52f   : > { %v5283_v4 = vmin.f32 %v5259_v13, 3.0  ;;  %v5282_v19 = vmin.f32 %v5258_v41, 3.0  ;;  %v5353_v44 = vsel %vm5305_vm0, 1, %v6411_v62  ;;  %v5352_v29 = vsel %vm5304_vm9, 1, %v6411_v62  ;;  %v5320_v12 = vld [vmem:[#allocation2 + $0x50] sm:$0xff]  ;;  %v5323_v43 = vld [vmem:[#allocation2 + $0x68] sm:$0xff] }
 0x530   : > { %5380 = vperm.xlu1 %6195, %v5341_v49   ;;  %5377 = vperm.xlu0 %6194, %v5340_v35   ;;  %v5285_v25 = vmin.f32 %v5261_v6, 3.0  ;;  %v5284_v60 = vmin.f32 %v5260_v1, 3.0  ;;  %v5322_v30 = vld [vmem:[#allocation2 + $0x60] sm:$0xff]  ;;  %v5325_v14 = vld [vmem:[#allocation2 + $0x78] sm:$0xff]  ;;  %v5324_v31 = vld [vmem:[#allocation2 + $0x70] sm:$0xff] }
 0x531   : > { %vm5307_vm14 = vcmp.gt.f32.partialorder %v5283_v4, 0.0  ;;  %vm5306_vm11 = vcmp.gt.f32.partialorder %v5282_v19, 0.0  ;;  %v5327_v13 = vld [vmem:[#allocation2 + $0x88] sm:$0xff]  ;;  %v5326_v41 = vld [vmem:[#allocation2 + $0x80] sm:$0xff]  ;;  %v5329_v6 = vld [vmem:[#allocation2 + $0x98] sm:$0xff] }
 0x532   : > { %v5355_v3 = vsel %vm5307_vm14, 1, %v6411_v62  ;;  %v5354_v36 = vsel %vm5306_vm11, 1, %v6411_v62  ;;  %vm5309_vm7 = vcmp.gt.f32.partialorder %v5285_v25, 0.0  ;;  %vm5308_vm2 = vcmp.gt.f32.partialorder %v5284_v60, 0.0  ;;  %v5328_v1 = vld [vmem:[#allocation2 + $0x90] sm:$0xff] }
 0x533   : > { %v5357_v15 = vsel %vm5309_vm7, 1, %v6411_v62  ;;  %v5356_v59 = vsel %vm5308_vm2, 1, %v6411_v62 }
 0x534   : > { %5386 = vperm.xlu1 %6195, %v5343_v57   ;;  %5383 = vperm.xlu0 %6194, %v5342_v0  }
 0x538   : > { %5392 = vperm.xlu1 %6195, %v5345_v11   ;;  %5389 = vperm.xlu0 %6194, %v5344_v45  }
 0x53c   : > { %5398 = vperm.xlu1 %6195, %v5347_v48   ;;  %5395 = vperm.xlu0 %6194, %v5346_v54  }
 0x540   : > { %5404 = vperm.xlu1 %6195, %v5349_v26   ;;  %5401 = vperm.xlu0 %6194, %v5348_v9  }
 0x544   : > { %5410 = vperm.xlu1 %6195, %v5351_v47   ;;  %5407 = vperm.xlu0 %6194, %v5350_v20  }
 0x548   : > { %5416 = vperm.xlu1 %6195, %v5353_v44   ;;  %5413 = vperm.xlu0 %6194, %v5352_v29  }
 0x54c   : > { %5422 = vperm.xlu1 %6195, %v5355_v3   ;;  %5419 = vperm.xlu0 %6194, %v5354_v36   ;;  %v5331_v3 = vld [vmem:[#allocation2 + $0xa8] sm:$0xff]  ;;  %v5330_v36 = vld [vmem:[#allocation2 + $0xa0] sm:$0xff] }
 0x550   : > { %5428 = vperm.xlu1 %6195, %v5357_v15   ;;  %5425 = vperm.xlu0 %6194, %v5356_v59  }
 0x59f   : > { %v5366_v58 = vpop.permute.xlu1 %5365  ;;  %v5360_v24 = vpop.permute.xlu0 %5359 }
 0x5a0   : > { %vm5432_vm1 = vcmp.eq.s32.totalorder %v5366_v58, 1  ;;  %vm5430_vm15 = vcmp.eq.s32.totalorder %v5360_v24, 1  ;;  %v5333_v58 = vld [vmem:[#allocation2 + $0xb8] sm:$0xff]  ;;  %v5332_v24 = vld [vmem:[#allocation2 + $0xb0] sm:$0xff] }
 0x5a1   : > { %v5456_v53 = vsel %vm5432_vm1, %v5312_v10, 0.0  ;;  %v5454_v61 = vsel %vm5430_vm15, %v5310_v50, 0.0 }
 0x5a2   : > { %5480 = vst [vmem:[#allocation13 + $0x10] sm:$0xff] %v5456_v53  ;;  %5478 = vst [vmem:[#allocation13] sm:$0xff] %v5454_v61 }
 0x5a3   : > { %v5369_v56 = vpop.permute.xlu1 %5368  ;;  %v5363_v7 = vpop.permute.xlu0 %5362 }
 0x5a4   : > { %vm5433_vm4 = vcmp.eq.s32.totalorder %v5369_v56, 1  ;;  %vm5431_vm5 = vcmp.eq.s32.totalorder %v5363_v7, 1 }
 0x5a5   : > { %v5457_v39 = vsel %vm5433_vm4, %v5313_v8, 0.0  ;;  %v5455_v62 = vsel %vm5431_vm5, %v5311_v37, 0.0 }
 0x5a6   : > { %5481 = vst [vmem:[#allocation13 + $0x18] sm:$0xff] %v5457_v39  ;;  %5479 = vst [vmem:[#allocation13 + $0x8] sm:$0xff] %v5455_v62 }
 0x5a7   : > { %v5375_v5 = vpop.permute.xlu1 %5374  ;;  %v5372_v23 = vpop.permute.xlu0 %5371 }
 0x5a8   : > { %vm5435_vm12 = vcmp.eq.s32.totalorder %v5375_v5, 1  ;;  %vm5434_vm8 = vcmp.eq.s32.totalorder %v5372_v23, 1 }
 0x5a9   : > { %v5459_v51 = vsel %vm5435_vm12, %v5315_v28, 0.0  ;;  %v5458_v34 = vsel %vm5434_vm8, %v5314_v22, 0.0 }
 0x5aa   : > { %5483 = vst [vmem:[#allocation13 + $0x28] sm:$0xff] %v5459_v51  ;;  %5482 = vst [vmem:[#allocation13 + $0x20] sm:$0xff] %v5458_v34 }
 0x5ab   : > { %v5381_v49 = vpop.permute.xlu1 %5380  ;;  %v5378_v35 = vpop.permute.xlu0 %5377 }
 0x5ac   : > { %vm5437_vm13 = vcmp.eq.s32.totalorder %v5381_v49, 1  ;;  %vm5436_vm6 = vcmp.eq.s32.totalorder %v5378_v35, 1 }
 0x5ad   : > { %v5461_v32 = vsel %vm5437_vm13, %v5317_v55, 0.0  ;;  %v5460_v17 = vsel %vm5436_vm6, %v5316_v21, 0.0 }
 0x5ae   : > { %5485 = vst [vmem:[#allocation13 + $0x38] sm:$0xff] %v5461_v32  ;;  %5484 = vst [vmem:[#allocation13 + $0x30] sm:$0xff] %v5460_v17 }
 0x5af   : > { %v5387_v57 = vpop.permute.xlu1 %5386  ;;  %v5384_v0 = vpop.permute.xlu0 %5383 }
 0x5b0   : > { %vm5439_vm3 = vcmp.eq.s32.totalorder %v5387_v57, 1  ;;  %vm5438_vm10 = vcmp.eq.s32.totalorder %v5384_v0, 1 }
 0x5b1   : > { %v5463_v46 = vsel %vm5439_vm3, %v5319_v52, 0.0  ;;  %v5462_v42 = vsel %vm5438_vm10, %v5318_v2, 0.0 }
 0x5b2   : > { %5488 = vst [vmem:[#allocation13 + $0x48] sm:$0xff] %v5463_v46  ;;  %5487 = vst [vmem:[#allocation13 + $0x40] sm:$0xff] %v5462_v42 }
 0x5b3   : > { %v5393_v11 = vpop.permute.xlu1 %5392  ;;  %v5390_v45 = vpop.permute.xlu0 %5389 }
 0x5b4   : > { %vm5441_vm0 = vcmp.eq.s32.totalorder %v5393_v11, 1  ;;  %vm5440_vm9 = vcmp.eq.s32.totalorder %v5390_v45, 1 }
 0x5b5   : > { %v5465_v33 = vsel %vm5441_vm0, %v5321_v27, 0.0  ;;  %v5464_v16 = vsel %vm5440_vm9, %v5320_v12, 0.0 }
 0x5b6   : > { %5490 = vst [vmem:[#allocation13 + $0x58] sm:$0xff] %v5465_v33  ;;  %5489 = vst [vmem:[#allocation13 + $0x50] sm:$0xff] %v5464_v16 }
 0x5b7   : > { %v5399_v48 = vpop.permute.xlu1 %5398  ;;  %v5396_v54 = vpop.permute.xlu0 %5395 }
 0x5b8   : > { %vm5443_vm14 = vcmp.eq.s32.totalorder %v5399_v48, 1  ;;  %vm5442_vm11 = vcmp.eq.s32.totalorder %v5396_v54, 1 }
 0x5b9   : > { %v5467_v63 = vsel %vm5443_vm14, %v5323_v43, 0.0  ;;  %v5466_v18 = vsel %vm5442_vm11, %v5322_v30, 0.0 }
 0x5ba   : > { %5492 = vst [vmem:[#allocation13 + $0x68] sm:$0xff] %v5467_v63  ;;  %5491 = vst [vmem:[#allocation13 + $0x60] sm:$0xff] %v5466_v18 }
 0x5bb   : > { %v5405_v26 = vpop.permute.xlu1 %5404  ;;  %v5402_v9 = vpop.permute.xlu0 %5401 }
 0x5bc   : > { %vm5445_vm7 = vcmp.eq.s32.totalorder %v5405_v26, 1  ;;  %vm5444_vm2 = vcmp.eq.s32.totalorder %v5402_v9, 1 }
 0x5bd   : > { %v5469_v40 = vsel %vm5445_vm7, %v5325_v14, 0.0  ;;  %v5468_v38 = vsel %vm5444_vm2, %v5324_v31, 0.0 }
 0x5be   : > { %5494 = vst [vmem:[#allocation13 + $0x78] sm:$0xff] %v5469_v40  ;;  %5493 = vst [vmem:[#allocation13 + $0x70] sm:$0xff] %v5468_v38 }
 0x5bf   : > { %v5411_v47 = vpop.permute.xlu1 %5410  ;;  %v5408_v20 = vpop.permute.xlu0 %5407 }
 0x5c0   : > { %vm5447_vm1 = vcmp.eq.s32.totalorder %v5411_v47, 1  ;;  %vm5446_vm15 = vcmp.eq.s32.totalorder %v5408_v20, 1 }
 0x5c1   : > { %v5471_v4 = vsel %vm5447_vm1, %v5327_v13, 0.0  ;;  %v5470_v19 = vsel %vm5446_vm15, %v5326_v41, 0.0 }
 0x5c2   : > { %5497 = vst [vmem:[#allocation13 + $0x88] sm:$0xff] %v5471_v4  ;;  %5496 = vst [vmem:[#allocation13 + $0x80] sm:$0xff] %v5470_v19 }
 0x5c3   : > { %v5417_v44 = vpop.permute.xlu1 %5416  ;;  %v5414_v29 = vpop.permute.xlu0 %5413 }
 0x5c4   : > { %vm5449_vm4 = vcmp.eq.s32.totalorder %v5417_v44, 1  ;;  %vm5448_vm5 = vcmp.eq.s32.totalorder %v5414_v29, 1 }
 0x5c5   : > { %v5473_v25 = vsel %vm5449_vm4, %v5329_v6, 0.0  ;;  %v5472_v60 = vsel %vm5448_vm5, %v5328_v1, 0.0 }
 0x5c6   : > { %5499 = vst [vmem:[#allocation13 + $0x98] sm:$0xff] %v5473_v25  ;;  %5498 = vst [vmem:[#allocation13 + $0x90] sm:$0xff] %v5472_v60 }
 0x5c7   : > { %v5423_v15 = vpop.permute.xlu1 %5422  ;;  %v5420_v59 = vpop.permute.xlu0 %5419 }
 0x5c8   : > { %vm5451_vm12 = vcmp.eq.s32.totalorder %v5423_v15, 1  ;;  %vm5450_vm8 = vcmp.eq.s32.totalorder %v5420_v59, 1 }
 0x5c9   : > { %v5475_v10 = vsel %vm5451_vm12, %v5331_v3, 0.0  ;;  %v5474_v50 = vsel %vm5450_vm8, %v5330_v36, 0.0 }
 0x5ca   : > { %5501 = vst [vmem:[#allocation13 + $0xa8] sm:$0xff] %v5475_v10  ;;  %5500 = vst [vmem:[#allocation13 + $0xa0] sm:$0xff] %v5474_v50 }
 0x5cb   : > { %v5429_v53 = vpop.permute.xlu1 %5428  ;;  %v5426_v61 = vpop.permute.xlu0 %5425 }
 0x5cc   : > { %vm5453_vm13 = vcmp.eq.s32.totalorder %v5429_v53, 1  ;;  %vm5452_vm6 = vcmp.eq.s32.totalorder %v5426_v61, 1 }
 0x5cd   : > { %v5477_v8 = vsel %vm5453_vm13, %v5333_v58, 0.0  ;;  %v5476_v37 = vsel %vm5452_vm6, %v5332_v24, 0.0 }
 0x5ce   : > { %5503 = vst [vmem:[#allocation13 + $0xb8] sm:$0xff] %v5477_v8  ;;  %5502 = vst [vmem:[#allocation13 + $0xb0] sm:$0xff] %v5476_v37 }
 0x5cf PF: > { %p5996_p7 = scmp.eq.s32.totalorder %s6469_s21, 1  ;;  %s6412_s18 = smov [#allocation13]  }
 0x5d0   : > { %s5514_s10 = sshll.u32 %s6412_s18, 4  ;;  %s5515_s10 = int_to_ptr.vmem [resolvable:$true] %s5514_s10 }
 0x5d1   : > { %s6293_s23 = scalar_lea.vmem %s5515_s10, 3072  ;;  %p6300_p6 = scmp.lt.s32.totalorder %s5515_s10, %s5515_s10 }
 0x5d2   : > { %p6294_p10 = scmp.ne.s32.totalorder %s5515_s10, %s6293_s23  ;;  %p6301_p9 = scmp.lt.s32.totalorder %s6293_s23, %s6293_s23 }
 0x5d4   : > { %p6295_p2 = pnand %p6294_p10, %p5996_p7  ;;  %p6302_p11 = por %p6301_p9, %p6300_p6 }
 0x5d6   : > { %p6296_p3 = pneg %p6295_p2 }
 0x5d8   : > { %p6303_p12 = pnand %p6302_p11, %p6296_p3 }
 0x5da   : > { %6306 = shalt.err (!%p6303_p12)
}
 0x5db   : > { %s6413_s14 = smov 128   ;;  %s6414_s13 = smov 8  }
 0x5dc   : > { %5974 = dma.vmem_to_hbm [thread:$0]  (%p5996_p7), %s5515_s10, 3072, %s9819_s4, [#allocation7], %s6413_s14, %s6413_s14, %s6414_s13  }
 0x5dd   : > { %6362 = dma.done.wait (%p5996_p7), [#allocation7], 3072  }
 0x5de   : > { %6364 = vsyncadd (%p5996_p7), [#allocation7], 4294964224 }
 0x5df PF: > { %s22_s20 = sadd.s32 1, %s6387_s20   ;;  %s10311_s15 = smov %s6371_s16 }
 0x5e0   : > { %p19_p13 = scmp.ge.s32.totalorder %s22_s20, 4   ;;  %s10312_s16 = smov %s6375_s17 }
 0x5e1   : > { %s10313_s17 = smov %s6530_s25  ;;  %s10314_s18 = smov %s6383_s19 }
 0x5e2   : > { %s10315_s19 = smov %s10317_s11  ;;  %21 = sbr.rel (!%p19_p13) target bundleno = 10 (0xa), region = 128 }
 0x5e7   :  { %5530 = vsyncpa [#allocation6], 1 }
 0x5e8   :  { %5532 = vsyncpa [#allocation6 + $0x1], 1 }
 0x5e9   :  { %5533 = vsyncpa [#allocation11], 1 }
 0x5ea   :  { %5535 = vsyncpa [#allocation11 + $0x1], 1 }
 0x5eb   :  { %5536 = vsyncpa [#allocation7], 1 }
 0x5ec   :  { %5538 = vsyncpa [#allocation7 + $0x1], 1 }
 0x5ed   :  { %5539 = vsyncpa [#allocation8], 1 }
 0x5ee   :  { %5541 = vsyncpa [#allocation8 + $0x1], 1 }

</bundles_post_ra>
